<compile_context>
chip_gen: v7x
topology: tpu7x:2x2x1
jax: 0.10.0
libtpu: 0.0.40
codegen_flags: <defaults>
</compile_context>

<pallas_src>
import functools

import jax
import jax.numpy as jnp
from jax import lax
from jax.experimental import pallas as pl
from jax.experimental.pallas import tpu as pltpu


def _round_up(x, m):
    return (x + m - 1) // m * m


# ----------------------------------------------------------------------------
# Fused kernel: fc1 (MXU) -> depthwise 3x3x3 conv (stride 1, pad 1, groups=C)
# -> exact GELU -> fc2 partial product (MXU, accumulated over channel tiles).
# grid = (B, C_hidden / tc); the channel-tile axis is fc2's K reduction.
# ----------------------------------------------------------------------------
def _mlp_fused_kernel(x_ref, w1t_ref, b1_ref, wdw_ref, bdw_ref, w2_ref, b2_ref,
                      o_ref, xp_ref, *, nf, H, W, tc):
    # x_ref  : (1, n_tok, Cin)         bf16   input tokens for one batch
    # w1t_ref: (Cp, Cin)               bf16   fc1 weight, transposed, resident
    # b1_ref : (1, tc)                 f32    fc1 bias tile
    # wdw_ref: (27, tc)                f32    depthwise taps, row k = dt*9+dh*3+dw
    # bdw_ref: (1, tc)                 f32
    # w2_ref : (Cp, Cout)              bf16   fc2 weight, resident
    # b2_ref : (1, Cout)               f32
    # o_ref  : (1, n_tok, Cout)        f32    resident across the channel axis
    # xp_ref : (nf+2, H+2, W+2, tc)    bf16   VMEM scratch: in-kernel zero halo
    c = pl.program_id(1)
    n_tok = nf * H * W
    c_off = pl.multiple_of(c * tc, tc)

    # ---- fc1 for this hidden-channel tile (bf16 MXU, f32 accumulate) -------
    w1_tile = w1t_ref[pl.ds(c_off, tc), :]                       # (tc, Cin)
    h = lax.dot_general(x_ref[0], w1_tile,
                        (((1,), (1,)), ((), ())),
                        preferred_element_type=jnp.float32)      # (n_tok, tc)
    h = h + b1_ref[...]

    # ---- build the zero halo in VMEM (bf16 scratch) -------------------------
    # Zero once per batch step: halo cells are never written afterwards, so
    # they stay zero across all channel-tile steps.
    @pl.when(c == 0)
    def _():
        xp_ref[...] = jnp.zeros(xp_ref.shape, xp_ref.dtype)

    xp_ref[1:nf + 1, 1:H + 1, 1:W + 1, :] = (
        h.reshape(nf, H, W, tc).astype(jnp.bfloat16))

    # ---- 27-tap depthwise conv, f32 arithmetic ------------------------------
    # W shifts hoisted: 3 (possibly misaligned) minor-dim slices instead of 27;
    # the inner 9 taps per plane slice only leading (aligned) dims.
    wdw = wdw_ref[...]                                            # (27, tc)
    acc = jnp.zeros((nf, H, W, tc), jnp.float32)
    for dw in range(3):
        plane = xp_ref[:, :, dw:dw + W, :].astype(jnp.float32)   # (nf+2, H+2, W, tc)
        for dt in range(3):
            for dh in range(3):
                k = dt * 9 + dh * 3 + dw
                acc = acc + plane[dt:dt + nf, dh:dh + H] * wdw[k:k + 1, :]
    acc = acc + bdw_ref[...]

    # ---- exact GELU (torch.nn.GELU default): 0.5*x*(1+erf(x/sqrt(2))) -------
    inv_sqrt2 = jnp.float32(0.7071067811865476)
    g = 0.5 * acc * (1.0 + lax.erf(acc * inv_sqrt2))

    # ---- fc2 partial product for this channel (K) tile ----------------------
    y2 = g.reshape(n_tok, tc).astype(jnp.bfloat16)
    w2_tile = w2_ref[pl.ds(c_off, tc), :]                        # (tc, Cout)
    partial = jnp.dot(y2, w2_tile, preferred_element_type=jnp.float32)

    @pl.when(c == 0)
    def _():
        o_ref[0] = partial + b2_ref[...]

    @pl.when(c > 0)
    def _():
        o_ref[0] = o_ref[0] + partial


def dwconv_mlp_fused(x, p, *, nf, H, W, tc=None, out_dtype=jnp.float32):
    """x: (B, N, Cin) bf16; p: prepared params -> (B, N, Cout_padded) out_dtype."""
    B, N, Cin = x.shape
    assert N == nf * H * W
    Cp = p["w1t"].shape[0]
    Cout_p = p["w2"].shape[1]
    if tc is None:
        # NOTE: prefer tc=128 on v5e (4x128 MXU) / VMEM-constrained v7x configs.
        tc = 256 if Cp % 256 == 0 else 128
    tc = min(tc, Cp)
    assert Cp % tc == 0 and Cp % 128 == 0 and Cout_p % 128 == 0

    kern = functools.partial(_mlp_fused_kernel, nf=nf, H=H, W=W, tc=tc)
    flops = B * N * (2 * Cin * Cp + 2 * 27 * Cp + 2 * Cp * Cout_p)
    bytes_accessed = (x.size * 2 + p["w1t"].size * 2 + p["w2"].size * 2
                      + (p["b1"].size + p["w_dw27"].size + p["b_dw"].size
                         + p["b2"].size) * 4
                      + B * N * Cout_p * jnp.dtype(out_dtype).itemsize)
    return pl.pallas_call(
        kern,
        out_shape=jax.ShapeDtypeStruct((B, N, Cout_p), out_dtype),
        grid=(B, Cp // tc),
        in_specs=[
            pl.BlockSpec((1, N, Cin), lambda b, c: (b, 0, 0)),
            pl.BlockSpec((Cp, Cin), lambda b, c: (0, 0)),      # resident fc1 weight
            pl.BlockSpec((1, tc), lambda b, c: (0, c)),
            pl.BlockSpec((27, tc), lambda b, c: (0, c)),
            pl.BlockSpec((1, tc), lambda b, c: (0, c)),
            pl.BlockSpec((Cp, Cout_p), lambda b, c: (0, 0)),   # resident fc2 weight
            pl.BlockSpec((1, Cout_p), lambda b, c: (0, 0)),
        ],
        out_specs=pl.BlockSpec((1, N, Cout_p), lambda b, c: (b, 0, 0)),
        scratch_shapes=[pltpu.VMEM((nf + 2, H + 2, W + 2, tc), jnp.bfloat16)],
        compiler_params=pltpu.CompilerParams(
            dimension_semantics=("parallel", "arbitrary"),
            vmem_limit_bytes=56 * 1024 * 1024),
        cost_estimate=pl.CostEstimate(
            flops=int(flops), transcendentals=int(B * N * Cp),
            bytes_accessed=int(bytes_accessed)),
    )(x, p["w1t"], p["b1"], p["w_dw27"], p["b_dw"], p["w2"], p["b2"])


# ----------------------------------------------------------------------------
# One-time parameter prep (hoisted out of the forward pass).
# Zero-padding the hidden / output channel dims to multiples of 128 is exact:
# GELU(0) = 0 and the padded fc2 weight rows / columns are zero.
# ----------------------------------------------------------------------------
def prepare_params(params):
    w1, b1 = params["w1"], params["b1"]        # (Cin, hid), (hid,)
    w2, b2 = params["w2"], params["b2"]        # (hid, cout), (cout,)
    w_dw, b_dw = params["w_dw"], params["b_dw"]  # (3,3,3,hid), (hid,)
    hid = w1.shape[1]
    cout = w2.shape[1]
    hid_p = _round_up(hid, 128)
    out_p = _round_up(cout, 128)
    ph, po = hid_p - hid, out_p - cout
    return {
        # fc1 weight transposed to (hid_p, Cin) so the K-tile slice is on sublanes.
        "w1t": jnp.pad(w1, ((0, 0), (0, ph))).T.astype(jnp.bfloat16),
        "b1": jnp.pad(b1, (0, ph)).reshape(1, hid_p).astype(jnp.float32),
        "w_dw27": jnp.pad(w_dw.reshape(27, hid), ((0, 0), (0, ph))).astype(jnp.float32),
        "b_dw": jnp.pad(b_dw, (0, ph)).reshape(1, hid_p).astype(jnp.float32),
        "w2": jnp.pad(w2, ((0, ph), (0, po))).astype(jnp.bfloat16),
        "b2": jnp.pad(b2, (0, po)).reshape(1, out_p).astype(jnp.float32),
    }


# ----------------------------------------------------------------------------
# Full Mlp forward: x -> fc1 -> DWConv3d -> GELU -> (drop=0) -> fc2 -> (drop=0)
# ----------------------------------------------------------------------------
def mlp_forward(x, prepped, *, nf, H, W, out_features):
    B, N, _ = x.shape
    assert N == nf * H * W
    y = dwconv_mlp_fused(x.astype(jnp.bfloat16), prepped, nf=nf, H=H, W=W)
    if y.shape[-1] != out_features:
        y = y[..., :out_features]
    return y


# ----------------------------------------------------------------------------
# Parameter init + pure-JAX reference for a sanity check.
# ----------------------------------------------------------------------------
def init_params(key, in_features, hidden_features, out_features):
    k1, k2, k3, k4 = jax.random.split(key, 4)
    std = 0.02
    w1 = std * jax.random.truncated_normal(k1, -2.0, 2.0,
                                           (in_features, hidden_features), jnp.float32)
    w2 = std * jax.random.truncated_normal(k2, -2.0, 2.0,
                                           (hidden_features, out_features), jnp.float32)
    b1 = jnp.zeros((hidden_features,), jnp.float32)
    b2 = jnp.zeros((out_features,), jnp.float32)
    w_dw = 0.1 * jax.random.normal(k3, (3, 3, 3, hidden_features), jnp.float32)
    b_dw = 0.1 * jax.random.normal(k4, (hidden_features,), jnp.float32)
    return {"w1": w1, "b1": b1, "w2": w2, "b2": b2, "w_dw": w_dw, "b_dw": b_dw}


def mlp_reference(x, params, nf, H, W):
    B, N, _ = x.shape
    h = x @ params["w1"] + params["b1"]
    hid = h.shape[-1]
    hv = h.reshape(B, nf, H, W, hid)
    hp = jnp.pad(hv, ((0, 0), (1, 1), (1, 1), (1, 1), (0, 0)))
    conv = jnp.zeros_like(hv)
    for dt in range(3):
        for dh in range(3):
            for dw in range(3):
                conv = conv + (hp[:, dt:dt + nf, dh:dh + H, dw:dw + W, :]
                               * params["w_dw"][dt, dh, dw])
    conv = conv + params["b_dw"]
    g = 0.5 * conv * (1.0 + lax.erf(conv * jnp.float32(0.7071067811865476)))
    return g.reshape(B, N, hid) @ params["w2"] + params["b2"]


if __name__ == "__main__":
    key = jax.random.PRNGKey(0)
    kx, kp = jax.random.split(key)

    B, nf, H, W = 2, 4, 8, 8
    in_features, hidden_features = 32, 64
    out_features = in_features
    N = nf * H * W  # 256

    x = jax.random.normal(kx, (B, N, in_features), jnp.float32)
    params = init_params(kp, in_features, hidden_features, out_features)

    # One-time parameter preparation (padding / casting / transpose).
    prepped = jax.tree_util.tree_map(jax.block_until_ready, prepare_params(params))

    fwd = jax.jit(functools.partial(mlp_forward, nf=nf, H=H, W=W,
                                    out_features=out_features))
    y = jax.block_until_ready(fwd(x, prepped))
    assert y.shape == (B, N, out_features)

    # Loose sanity check vs pure-JAX f32 reference (kernel uses bf16 MXU inputs).
    y_ref = mlp_reference(x, params, nf, H, W)
    err = float(jnp.max(jnp.abs(y - y_ref)))
    assert err < 5e-3, f"max abs err {err}"

    print("KERNEL_OK")
</pallas_src>

<mosaic_0001>
module attributes {stable_mosaic.version = 11 : i64} {
  func.func @_mlp_fused_kernel(%arg0: i32, %arg1: i32, %arg2: memref<1x256x32xbf16, #tpu.memory_space<vmem>>, %arg3: memref<128x32xbf16, #tpu.memory_space<vmem>>, %arg4: memref<1x128xf32, #tpu.memory_space<vmem>>, %arg5: memref<27x128xf32, #tpu.memory_space<vmem>>, %arg6: memref<1x128xf32, #tpu.memory_space<vmem>>, %arg7: memref<128x128xbf16, #tpu.memory_space<vmem>>, %arg8: memref<1x128xf32, #tpu.memory_space<vmem>>, %arg9: memref<1x256x128xf32, #tpu.memory_space<vmem>>, %arg10: memref<6x10x10x128xbf16, #tpu.memory_space<vmem>>) attributes {dimension_semantics = [#tpu.dimension_semantics<parallel>, #tpu.dimension_semantics<arbitrary>], iteration_bounds = array<i64: 2, 1>, scalar_prefetch = 0 : i64, scratch_operands = 1 : i64, tpu.core_type = #tpu.core_type<tc>, window_params = [{transform_indices = @transform_0, window_bounds = array<i64: 1, 256, 32>}, {pipeline_mode = #tpu.pipeline_mode<synchronous>, transform_indices = @transform_1, window_bounds = array<i64: 128, 32>}, {transform_indices = @transform_2, window_bounds = array<i64: 1, 128>}, {transform_indices = @transform_3, window_bounds = array<i64: 27, 128>}, {transform_indices = @transform_4, window_bounds = array<i64: 1, 128>}, {pipeline_mode = #tpu.pipeline_mode<synchronous>, transform_indices = @transform_5, window_bounds = array<i64: 128, 128>}, {pipeline_mode = #tpu.pipeline_mode<synchronous>, transform_indices = @transform_6, window_bounds = array<i64: 1, 128>}, {transform_indices = @transform_7, window_bounds = array<i64: 1, 256, 128>}]} {
    %c128_i32 = arith.constant 128 : i32
    %0 = arith.muli %arg1, %c128_i32 : i32
    %1 = tpu.assume_multiple %0, 128 : i32
    %2 = arith.index_cast %1 : i32 to index
    %c0 = arith.constant 0 : index
    %3 = vector.load %arg3[%2, %c0] : memref<128x32xbf16, #tpu.memory_space<vmem>>, vector<128x32xbf16>
    %c0_0 = arith.constant 0 : index
    %c0_1 = arith.constant 0 : index
    %c0_2 = arith.constant 0 : index
    %4 = vector.load %arg2[%c0_0, %c0_1, %c0_2] : memref<1x256x32xbf16, #tpu.memory_space<vmem>>, vector<1x256x32xbf16>
    %5 = vector.shape_cast %4 : vector<1x256x32xbf16> to vector<256x32xbf16>
    %cst = arith.constant dense<0.000000e+00> : vector<256x128xf32>
    %6 = tpu.matmul %5, %3, %cst {dimension_numbers = #tpu.dot_dimension_numbers<[1], [1], [0], [0], [0, 0, 1, 0], [], []>} : vector<256x32xbf16>, vector<128x32xbf16>, vector<256x128xf32> -> vector<256x128xf32>
    %c0_3 = arith.constant 0 : index
    %c0_4 = arith.constant 0 : index
    %7 = vector.load %arg4[%c0_3, %c0_4] : memref<1x128xf32, #tpu.memory_space<vmem>>, vector<1x128xf32>
    %8 = vector.broadcast %7 : vector<1x128xf32> to vector<256x128xf32>
    %9 = arith.addf %6, %8 : vector<256x128xf32>
    %c0_i32 = arith.constant 0 : i32
    %10 = arith.cmpi eq, %arg1, %c0_i32 : i32
    %11 = arith.extui %10 : i1 to i32
    %c0_i32_5 = arith.constant 0 : i32
    %12 = arith.cmpi ne, %11, %c0_i32_5 : i32
    scf.if %12 {
      %cst_34 = arith.constant 0.000000e+00 : bf16
      %209 = vector.broadcast %cst_34 : bf16 to vector<6x10x10x128xbf16>
      %c0_35 = arith.constant 0 : index
      %c0_36 = arith.constant 0 : index
      %c0_37 = arith.constant 0 : index
      %c0_38 = arith.constant 0 : index
      %210 = vector.load %arg10[%c0_35, %c0_36, %c0_37, %c0_38] : memref<6x10x10x128xbf16, #tpu.memory_space<vmem>>, vector<6x10x10x128xbf16>
      tpu.vector_store %arg10[%c0_35, %c0_36, %c0_37, %c0_38], %209 {strides = array<i32>} : memref<6x10x10x128xbf16, #tpu.memory_space<vmem>>, vector<6x10x10x128xbf16>,
    } else {
    }
    %13 = vector.shape_cast %9 : vector<256x128xf32> to vector<4x8x8x128xf32>
    %14 = arith.truncf %13 : vector<4x8x8x128xf32> to vector<4x8x8x128xbf16>
    %c1 = arith.constant 1 : index
    %c1_6 = arith.constant 1 : index
    %c1_7 = arith.constant 1 : index
    %c0_8 = arith.constant 0 : index
    %15 = vector.load %arg10[%c1, %c1_6, %c1_7, %c0_8] : memref<6x10x10x128xbf16, #tpu.memory_space<vmem>>, vector<4x8x8x128xbf16>
    tpu.vector_store %arg10[%c1, %c1_6, %c1_7, %c0_8], %14 {strides = array<i32>} : memref<6x10x10x128xbf16, #tpu.memory_space<vmem>>, vector<4x8x8x128xbf16>,
    %c0_9 = arith.constant 0 : index
    %c0_10 = arith.constant 0 : index
    %16 = vector.load %arg5[%c0_9, %c0_10] : memref<27x128xf32, #tpu.memory_space<vmem>>, vector<27x128xf32>
    %cst_11 = arith.constant 0.000000e+00 : f32
    %17 = vector.broadcast %cst_11 : f32 to vector<4x8x8x128xf32>
    %c0_12 = arith.constant 0 : index
    %c0_13 = arith.constant 0 : index
    %c0_14 = arith.constant 0 : index
    %c0_15 = arith.constant 0 : index
    %18 = vector.load %arg10[%c0_12, %c0_13, %c0_14, %c0_15] : memref<6x10x10x128xbf16, #tpu.memory_space<vmem>>, vector<6x10x8x128xbf16>
    %19 = arith.extf %18 : vector<6x10x8x128xbf16> to vector<6x10x8x128xf32>
    %20 = vector.extract_strided_slice %19 {offsets = [0, 0, 0, 0], sizes = [4, 8, 8, 128], strides = [1, 1, 1, 1]} : vector<6x10x8x128xf32> to vector<4x8x8x128xf32>
    %21 = vector.extract_strided_slice %16 {offsets = [0, 0], sizes = [1, 128], strides = [1, 1]} : vector<27x128xf32> to vector<1x128xf32>
    %22 = vector.shape_cast %21 : vector<1x128xf32> to vector<1x1x1x128xf32>
    %23 = vector.broadcast %22 : vector<1x1x1x128xf32> to vector<4x8x8x128xf32>
    %24 = arith.mulf %20, %23 : vector<4x8x8x128xf32>
    %25 = arith.addf %17, %24 : vector<4x8x8x128xf32>
    %26 = vector.extract_strided_slice %19 {offsets = [0, 1, 0, 0], sizes = [4, 8, 8, 128], strides = [1, 1, 1, 1]} : vector<6x10x8x128xf32> to vector<4x8x8x128xf32>
    %27 = vector.extract_strided_slice %16 {offsets = [3, 0], sizes = [1, 128], strides = [1, 1]} : vector<27x128xf32> to vector<1x128xf32>
    %28 = vector.shape_cast %27 : vector<1x128xf32> to vector<1x1x1x128xf32>
    %29 = vector.broadcast %28 : vector<1x1x1x128xf32> to vector<4x8x8x128xf32>
    %30 = arith.mulf %26, %29 : vector<4x8x8x128xf32>
    %31 = arith.addf %25, %30 : vector<4x8x8x128xf32>
    %32 = vector.extract_strided_slice %19 {offsets = [0, 2, 0, 0], sizes = [4, 8, 8, 128], strides = [1, 1, 1, 1]} : vector<6x10x8x128xf32> to vector<4x8x8x128xf32>
    %33 = vector.extract_strided_slice %16 {offsets = [6, 0], sizes = [1, 128], strides = [1, 1]} : vector<27x128xf32> to vector<1x128xf32>
    %34 = vector.shape_cast %33 : vector<1x128xf32> to vector<1x1x1x128xf32>
    %35 = vector.broadcast %34 : vector<1x1x1x128xf32> to vector<4x8x8x128xf32>
    %36 = arith.mulf %32, %35 : vector<4x8x8x128xf32>
    %37 = arith.addf %31, %36 : vector<4x8x8x128xf32>
    %38 = vector.extract_strided_slice %19 {offsets = [1, 0, 0, 0], sizes = [4, 8, 8, 128], strides = [1, 1, 1, 1]} : vector<6x10x8x128xf32> to vector<4x8x8x128xf32>
    %39 = vector.extract_strided_slice %16 {offsets = [9, 0], sizes = [1, 128], strides = [1, 1]} : vector<27x128xf32> to vector<1x128xf32>
    %40 = vector.shape_cast %39 : vector<1x128xf32> to vector<1x1x1x128xf32>
    %41 = vector.broadcast %40 : vector<1x1x1x128xf32> to vector<4x8x8x128xf32>
    %42 = arith.mulf %38, %41 : vector<4x8x8x128xf32>
    %43 = arith.addf %37, %42 : vector<4x8x8x128xf32>
    %44 = vector.extract_strided_slice %19 {offsets = [1, 1, 0, 0], sizes = [4, 8, 8, 128], strides = [1, 1, 1, 1]} : vector<6x10x8x128xf32> to vector<4x8x8x128xf32>
    %45 = vector.extract_strided_slice %16 {offsets = [12, 0], sizes = [1, 128], strides = [1, 1]} : vector<27x128xf32> to vector<1x128xf32>
    %46 = vector.shape_cast %45 : vector<1x128xf32> to vector<1x1x1x128xf32>
    %47 = vector.broadcast %46 : vector<1x1x1x128xf32> to vector<4x8x8x128xf32>
    %48 = arith.mulf %44, %47 : vector<4x8x8x128xf32>
    %49 = arith.addf %43, %48 : vector<4x8x8x128xf32>
    %50 = vector.extract_strided_slice %19 {offsets = [1, 2, 0, 0], sizes = [4, 8, 8, 128], strides = [1, 1, 1, 1]} : vector<6x10x8x128xf32> to vector<4x8x8x128xf32>
    %51 = vector.extract_strided_slice %16 {offsets = [15, 0], sizes = [1, 128], strides = [1, 1]} : vector<27x128xf32> to vector<1x128xf32>
    %52 = vector.shape_cast %51 : vector<1x128xf32> to vector<1x1x1x128xf32>
    %53 = vector.broadcast %52 : vector<1x1x1x128xf32> to vector<4x8x8x128xf32>
    %54 = arith.mulf %50, %53 : vector<4x8x8x128xf32>
    %55 = arith.addf %49, %54 : vector<4x8x8x128xf32>
    %56 = vector.extract_strided_slice %19 {offsets = [2, 0, 0, 0], sizes = [4, 8, 8, 128], strides = [1, 1, 1, 1]} : vector<6x10x8x128xf32> to vector<4x8x8x128xf32>
    %57 = vector.extract_strided_slice %16 {offsets = [18, 0], sizes = [1, 128], strides = [1, 1]} : vector<27x128xf32> to vector<1x128xf32>
    %58 = vector.shape_cast %57 : vector<1x128xf32> to vector<1x1x1x128xf32>
    %59 = vector.broadcast %58 : vector<1x1x1x128xf32> to vector<4x8x8x128xf32>
    %60 = arith.mulf %56, %59 : vector<4x8x8x128xf32>
    %61 = arith.addf %55, %60 : vector<4x8x8x128xf32>
    %62 = vector.extract_strided_slice %19 {offsets = [2, 1, 0, 0], sizes = [4, 8, 8, 128], strides = [1, 1, 1, 1]} : vector<6x10x8x128xf32> to vector<4x8x8x128xf32>
    %63 = vector.extract_strided_slice %16 {offsets = [21, 0], sizes = [1, 128], strides = [1, 1]} : vector<27x128xf32> to vector<1x128xf32>
    %64 = vector.shape_cast %63 : vector<1x128xf32> to vector<1x1x1x128xf32>
    %65 = vector.broadcast %64 : vector<1x1x1x128xf32> to vector<4x8x8x128xf32>
    %66 = arith.mulf %62, %65 : vector<4x8x8x128xf32>
    %67 = arith.addf %61, %66 : vector<4x8x8x128xf32>
    %68 = vector.extract_strided_slice %19 {offsets = [2, 2, 0, 0], sizes = [4, 8, 8, 128], strides = [1, 1, 1, 1]} : vector<6x10x8x128xf32> to vector<4x8x8x128xf32>
    %69 = vector.extract_strided_slice %16 {offsets = [24, 0], sizes = [1, 128], strides = [1, 1]} : vector<27x128xf32> to vector<1x128xf32>
    %70 = vector.shape_cast %69 : vector<1x128xf32> to vector<1x1x1x128xf32>
    %71 = vector.broadcast %70 : vector<1x1x1x128xf32> to vector<4x8x8x128xf32>
    %72 = arith.mulf %68, %71 : vector<4x8x8x128xf32>
    %73 = arith.addf %67, %72 : vector<4x8x8x128xf32>
    %c0_16 = arith.constant 0 : index
    %c0_17 = arith.constant 0 : index
    %c1_18 = arith.constant 1 : index
    %c0_19 = arith.constant 0 : index
    %74 = vector.load %arg10[%c0_16, %c0_17, %c1_18, %c0_19] : memref<6x10x10x128xbf16, #tpu.memory_space<vmem>>, vector<6x10x8x128xbf16>
    %75 = arith.extf %74 : vector<6x10x8x128xbf16> to vector<6x10x8x128xf32>
    %76 = vector.extract_strided_slice %75 {offsets = [0, 0, 0, 0], sizes = [4, 8, 8, 128], strides = [1, 1, 1, 1]} : vector<6x10x8x128xf32> to vector<4x8x8x128xf32>
    %77 = vector.extract_strided_slice %16 {offsets = [1, 0], sizes = [1, 128], strides = [1, 1]} : vector<27x128xf32> to vector<1x128xf32>
    %78 = vector.shape_cast %77 : vector<1x128xf32> to vector<1x1x1x128xf32>
    %79 = vector.broadcast %78 : vector<1x1x1x128xf32> to vector<4x8x8x128xf32>
    %80 = arith.mulf %76, %79 : vector<4x8x8x128xf32>
    %81 = arith.addf %73, %80 : vector<4x8x8x128xf32>
    %82 = vector.extract_strided_slice %75 {offsets = [0, 1, 0, 0], sizes = [4, 8, 8, 128], strides = [1, 1, 1, 1]} : vector<6x10x8x128xf32> to vector<4x8x8x128xf32>
    %83 = vector.extract_strided_slice %16 {offsets = [4, 0], sizes = [1, 128], strides = [1, 1]} : vector<27x128xf32> to vector<1x128xf32>
    %84 = vector.shape_cast %83 : vector<1x128xf32> to vector<1x1x1x128xf32>
    %85 = vector.broadcast %84 : vector<1x1x1x128xf32> to vector<4x8x8x128xf32>
    %86 = arith.mulf %82, %85 : vector<4x8x8x128xf32>
    %87 = arith.addf %81, %86 : vector<4x8x8x128xf32>
    %88 = vector.extract_strided_slice %75 {offsets = [0, 2, 0, 0], sizes = [4, 8, 8, 128], strides = [1, 1, 1, 1]} : vector<6x10x8x128xf32> to vector<4x8x8x128xf32>
    %89 = vector.extract_strided_slice %16 {offsets = [7, 0], sizes = [1, 128], strides = [1, 1]} : vector<27x128xf32> to vector<1x128xf32>
    %90 = vector.shape_cast %89 : vector<1x128xf32> to vector<1x1x1x128xf32>
    %91 = vector.broadcast %90 : vector<1x1x1x128xf32> to vector<4x8x8x128xf32>
    %92 = arith.mulf %88, %91 : vector<4x8x8x128xf32>
    %93 = arith.addf %87, %92 : vector<4x8x8x128xf32>
    %94 = vector.extract_strided_slice %75 {offsets = [1, 0, 0, 0], sizes = [4, 8, 8, 128], strides = [1, 1, 1, 1]} : vector<6x10x8x128xf32> to vector<4x8x8x128xf32>
    %95 = vector.extract_strided_slice %16 {offsets = [10, 0], sizes = [1, 128], strides = [1, 1]} : vector<27x128xf32> to vector<1x128xf32>
    %96 = vector.shape_cast %95 : vector<1x128xf32> to vector<1x1x1x128xf32>
    %97 = vector.broadcast %96 : vector<1x1x1x128xf32> to vector<4x8x8x128xf32>
    %98 = arith.mulf %94, %97 : vector<4x8x8x128xf32>
    %99 = arith.addf %93, %98 : vector<4x8x8x128xf32>
    %100 = vector.extract_strided_slice %75 {offsets = [1, 1, 0, 0], sizes = [4, 8, 8, 128], strides = [1, 1, 1, 1]} : vector<6x10x8x128xf32> to vector<4x8x8x128xf32>
    %101 = vector.extract_strided_slice %16 {offsets = [13, 0], sizes = [1, 128], strides = [1, 1]} : vector<27x128xf32> to vector<1x128xf32>
    %102 = vector.shape_cast %101 : vector<1x128xf32> to vector<1x1x1x128xf32>
    %103 = vector.broadcast %102 : vector<1x1x1x128xf32> to vector<4x8x8x128xf32>
    %104 = arith.mulf %100, %103 : vector<4x8x8x128xf32>
    %105 = arith.addf %99, %104 : vector<4x8x8x128xf32>
    %106 = vector.extract_strided_slice %75 {offsets = [1, 2, 0, 0], sizes = [4, 8, 8, 128], strides = [1, 1, 1, 1]} : vector<6x10x8x128xf32> to vector<4x8x8x128xf32>
    %107 = vector.extract_strided_slice %16 {offsets = [16, 0], sizes = [1, 128], strides = [1, 1]} : vector<27x128xf32> to vector<1x128xf32>
    %108 = vector.shape_cast %107 : vector<1x128xf32> to vector<1x1x1x128xf32>
    %109 = vector.broadcast %108 : vector<1x1x1x128xf32> to vector<4x8x8x128xf32>
    %110 = arith.mulf %106, %109 : vector<4x8x8x128xf32>
    %111 = arith.addf %105, %110 : vector<4x8x8x128xf32>
    %112 = vector.extract_strided_slice %75 {offsets = [2, 0, 0, 0], sizes = [4, 8, 8, 128], strides = [1, 1, 1, 1]} : vector<6x10x8x128xf32> to vector<4x8x8x128xf32>
    %113 = vector.extract_strided_slice %16 {offsets = [19, 0], sizes = [1, 128], strides = [1, 1]} : vector<27x128xf32> to vector<1x128xf32>
    %114 = vector.shape_cast %113 : vector<1x128xf32> to vector<1x1x1x128xf32>
    %115 = vector.broadcast %114 : vector<1x1x1x128xf32> to vector<4x8x8x128xf32>
    %116 = arith.mulf %112, %115 : vector<4x8x8x128xf32>
    %117 = arith.addf %111, %116 : vector<4x8x8x128xf32>
    %118 = vector.extract_strided_slice %75 {offsets = [2, 1, 0, 0], sizes = [4, 8, 8, 128], strides = [1, 1, 1, 1]} : vector<6x10x8x128xf32> to vector<4x8x8x128xf32>
    %119 = vector.extract_strided_slice %16 {offsets = [22, 0], sizes = [1, 128], strides = [1, 1]} : vector<27x128xf32> to vector<1x128xf32>
    %120 = vector.shape_cast %119 : vector<1x128xf32> to vector<1x1x1x128xf32>
    %121 = vector.broadcast %120 : vector<1x1x1x128xf32> to vector<4x8x8x128xf32>
    %122 = arith.mulf %118, %121 : vector<4x8x8x128xf32>
    %123 = arith.addf %117, %122 : vector<4x8x8x128xf32>
    %124 = vector.extract_strided_slice %75 {offsets = [2, 2, 0, 0], sizes = [4, 8, 8, 128], strides = [1, 1, 1, 1]} : vector<6x10x8x128xf32> to vector<4x8x8x128xf32>
    %125 = vector.extract_strided_slice %16 {offsets = [25, 0], sizes = [1, 128], strides = [1, 1]} : vector<27x128xf32> to vector<1x128xf32>
    %126 = vector.shape_cast %125 : vector<1x128xf32> to vector<1x1x1x128xf32>
    %127 = vector.broadcast %126 : vector<1x1x1x128xf32> to vector<4x8x8x128xf32>
    %128 = arith.mulf %124, %127 : vector<4x8x8x128xf32>
    %129 = arith.addf %123, %128 : vector<4x8x8x128xf32>
    %c0_20 = arith.constant 0 : index
    %c0_21 = arith.constant 0 : index
    %c2 = arith.constant 2 : index
    %c0_22 = arith.constant 0 : index
    %130 = vector.load %arg10[%c0_20, %c0_21, %c2, %c0_22] : memref<6x10x10x128xbf16, #tpu.memory_space<vmem>>, vector<6x10x8x128xbf16>
    %131 = arith.extf %130 : vector<6x10x8x128xbf16> to vector<6x10x8x128xf32>
    %132 = vector.extract_strided_slice %131 {offsets = [0, 0, 0, 0], sizes = [4, 8, 8, 128], strides = [1, 1, 1, 1]} : vector<6x10x8x128xf32> to vector<4x8x8x128xf32>
    %133 = vector.extract_strided_slice %16 {offsets = [2, 0], sizes = [1, 128], strides = [1, 1]} : vector<27x128xf32> to vector<1x128xf32>
    %134 = vector.shape_cast %133 : vector<1x128xf32> to vector<1x1x1x128xf32>
    %135 = vector.broadcast %134 : vector<1x1x1x128xf32> to vector<4x8x8x128xf32>
    %136 = arith.mulf %132, %135 : vector<4x8x8x128xf32>
    %137 = arith.addf %129, %136 : vector<4x8x8x128xf32>
    %138 = vector.extract_strided_slice %131 {offsets = [0, 1, 0, 0], sizes = [4, 8, 8, 128], strides = [1, 1, 1, 1]} : vector<6x10x8x128xf32> to vector<4x8x8x128xf32>
    %139 = vector.extract_strided_slice %16 {offsets = [5, 0], sizes = [1, 128], strides = [1, 1]} : vector<27x128xf32> to vector<1x128xf32>
    %140 = vector.shape_cast %139 : vector<1x128xf32> to vector<1x1x1x128xf32>
    %141 = vector.broadcast %140 : vector<1x1x1x128xf32> to vector<4x8x8x128xf32>
    %142 = arith.mulf %138, %141 : vector<4x8x8x128xf32>
    %143 = arith.addf %137, %142 : vector<4x8x8x128xf32>
    %144 = vector.extract_strided_slice %131 {offsets = [0, 2, 0, 0], sizes = [4, 8, 8, 128], strides = [1, 1, 1, 1]} : vector<6x10x8x128xf32> to vector<4x8x8x128xf32>
    %145 = vector.extract_strided_slice %16 {offsets = [8, 0], sizes = [1, 128], strides = [1, 1]} : vector<27x128xf32> to vector<1x128xf32>
    %146 = vector.shape_cast %145 : vector<1x128xf32> to vector<1x1x1x128xf32>
    %147 = vector.broadcast %146 : vector<1x1x1x128xf32> to vector<4x8x8x128xf32>
    %148 = arith.mulf %144, %147 : vector<4x8x8x128xf32>
    %149 = arith.addf %143, %148 : vector<4x8x8x128xf32>
    %150 = vector.extract_strided_slice %131 {offsets = [1, 0, 0, 0], sizes = [4, 8, 8, 128], strides = [1, 1, 1, 1]} : vector<6x10x8x128xf32> to vector<4x8x8x128xf32>
    %151 = vector.extract_strided_slice %16 {offsets = [11, 0], sizes = [1, 128], strides = [1, 1]} : vector<27x128xf32> to vector<1x128xf32>
    %152 = vector.shape_cast %151 : vector<1x128xf32> to vector<1x1x1x128xf32>
    %153 = vector.broadcast %152 : vector<1x1x1x128xf32> to vector<4x8x8x128xf32>
    %154 = arith.mulf %150, %153 : vector<4x8x8x128xf32>
    %155 = arith.addf %149, %154 : vector<4x8x8x128xf32>
    %156 = vector.extract_strided_slice %131 {offsets = [1, 1, 0, 0], sizes = [4, 8, 8, 128], strides = [1, 1, 1, 1]} : vector<6x10x8x128xf32> to vector<4x8x8x128xf32>
    %157 = vector.extract_strided_slice %16 {offsets = [14, 0], sizes = [1, 128], strides = [1, 1]} : vector<27x128xf32> to vector<1x128xf32>
    %158 = vector.shape_cast %157 : vector<1x128xf32> to vector<1x1x1x128xf32>
    %159 = vector.broadcast %158 : vector<1x1x1x128xf32> to vector<4x8x8x128xf32>
    %160 = arith.mulf %156, %159 : vector<4x8x8x128xf32>
    %161 = arith.addf %155, %160 : vector<4x8x8x128xf32>
    %162 = vector.extract_strided_slice %131 {offsets = [1, 2, 0, 0], sizes = [4, 8, 8, 128], strides = [1, 1, 1, 1]} : vector<6x10x8x128xf32> to vector<4x8x8x128xf32>
    %163 = vector.extract_strided_slice %16 {offsets = [17, 0], sizes = [1, 128], strides = [1, 1]} : vector<27x128xf32> to vector<1x128xf32>
    %164 = vector.shape_cast %163 : vector<1x128xf32> to vector<1x1x1x128xf32>
    %165 = vector.broadcast %164 : vector<1x1x1x128xf32> to vector<4x8x8x128xf32>
    %166 = arith.mulf %162, %165 : vector<4x8x8x128xf32>
    %167 = arith.addf %161, %166 : vector<4x8x8x128xf32>
    %168 = vector.extract_strided_slice %131 {offsets = [2, 0, 0, 0], sizes = [4, 8, 8, 128], strides = [1, 1, 1, 1]} : vector<6x10x8x128xf32> to vector<4x8x8x128xf32>
    %169 = vector.extract_strided_slice %16 {offsets = [20, 0], sizes = [1, 128], strides = [1, 1]} : vector<27x128xf32> to vector<1x128xf32>
    %170 = vector.shape_cast %169 : vector<1x128xf32> to vector<1x1x1x128xf32>
    %171 = vector.broadcast %170 : vector<1x1x1x128xf32> to vector<4x8x8x128xf32>
    %172 = arith.mulf %168, %171 : vector<4x8x8x128xf32>
    %173 = arith.addf %167, %172 : vector<4x8x8x128xf32>
    %174 = vector.extract_strided_slice %131 {offsets = [2, 1, 0, 0], sizes = [4, 8, 8, 128], strides = [1, 1, 1, 1]} : vector<6x10x8x128xf32> to vector<4x8x8x128xf32>
    %175 = vector.extract_strided_slice %16 {offsets = [23, 0], sizes = [1, 128], strides = [1, 1]} : vector<27x128xf32> to vector<1x128xf32>
    %176 = vector.shape_cast %175 : vector<1x128xf32> to vector<1x1x1x128xf32>
    %177 = vector.broadcast %176 : vector<1x1x1x128xf32> to vector<4x8x8x128xf32>
    %178 = arith.mulf %174, %177 : vector<4x8x8x128xf32>
    %179 = arith.addf %173, %178 : vector<4x8x8x128xf32>
    %180 = vector.extract_strided_slice %131 {offsets = [2, 2, 0, 0], sizes = [4, 8, 8, 128], strides = [1, 1, 1, 1]} : vector<6x10x8x128xf32> to vector<4x8x8x128xf32>
    %181 = vector.extract_strided_slice %16 {offsets = [26, 0], sizes = [1, 128], strides = [1, 1]} : vector<27x128xf32> to vector<1x128xf32>
    %182 = vector.shape_cast %181 : vector<1x128xf32> to vector<1x1x1x128xf32>
    %183 = vector.broadcast %182 : vector<1x1x1x128xf32> to vector<4x8x8x128xf32>
    %184 = arith.mulf %180, %183 : vector<4x8x8x128xf32>
    %185 = arith.addf %179, %184 : vector<4x8x8x128xf32>
    %c0_23 = arith.constant 0 : index
    %c0_24 = arith.constant 0 : index
    %186 = vector.load %arg6[%c0_23, %c0_24] : memref<1x128xf32, #tpu.memory_space<vmem>>, vector<1x128xf32>
    %187 = vector.shape_cast %186 : vector<1x128xf32> to vector<1x1x1x128xf32>
    %188 = vector.broadcast %187 : vector<1x1x1x128xf32> to vector<4x8x8x128xf32>
    %189 = arith.addf %185, %188 : vector<4x8x8x128xf32>
    %cst_25 = arith.constant 5.000000e-01 : f32
    %190 = vector.broadcast %cst_25 : f32 to vector<4x8x8x128xf32>
    %191 = arith.mulf %190, %189 : vector<4x8x8x128xf32>
    %cst_26 = arith.constant 0.707106769 : f32
    %192 = vector.broadcast %cst_26 : f32 to vector<4x8x8x128xf32>
    %193 = arith.mulf %189, %192 : vector<4x8x8x128xf32>
    %194 = math.erf %193 : vector<4x8x8x128xf32>
    %cst_27 = arith.constant 1.000000e+00 : f32
    %195 = vector.broadcast %cst_27 : f32 to vector<4x8x8x128xf32>
    %196 = arith.addf %195, %194 : vector<4x8x8x128xf32>
    %197 = arith.mulf %191, %196 : vector<4x8x8x128xf32>
    %198 = vector.shape_cast %197 : vector<4x8x8x128xf32> to vector<256x128xf32>
    %199 = arith.truncf %198 : vector<256x128xf32> to vector<256x128xbf16>
    %200 = arith.index_cast %1 : i32 to index
    %c0_28 = arith.constant 0 : index
    %201 = vector.load %arg7[%200, %c0_28] : memref<128x128xbf16, #tpu.memory_space<vmem>>, vector<128x128xbf16>
    %cst_29 = arith.constant dense<0.000000e+00> : vector<256x128xf32>
    %202 = tpu.matmul %199, %201, %cst_29 {dimension_numbers = #tpu.dot_dimension_numbers<[1], [0], [0], [1], [0, 0, 1, 1], [], []>} : vector<256x128xbf16>, vector<128x128xbf16>, vector<256x128xf32> -> vector<256x128xf32>
    %c0_i32_30 = arith.constant 0 : i32
    %203 = arith.cmpi eq, %arg1, %c0_i32_30 : i32
    %204 = arith.extui %203 : i1 to i32
    %c0_i32_31 = arith.constant 0 : i32
    %205 = arith.cmpi ne, %204, %c0_i32_31 : i32
    scf.if %205 {
      %c0_34 = arith.constant 0 : index
      %c0_35 = arith.constant 0 : index
      %209 = vector.load %arg8[%c0_34, %c0_35] : memref<1x128xf32, #tpu.memory_space<vmem>>, vector<1x128xf32>
      %210 = vector.broadcast %209 : vector<1x128xf32> to vector<256x128xf32>
      %211 = arith.addf %202, %210 : vector<256x128xf32>
      %c0_36 = arith.constant 0 : index
      %c0_37 = arith.constant 0 : index
      %c0_38 = arith.constant 0 : index
      %212 = vector.load %arg9[%c0_36, %c0_37, %c0_38] : memref<1x256x128xf32, #tpu.memory_space<vmem>>, vector<1x256x128xf32>
      %213 = vector.shape_cast %212 : vector<1x256x128xf32> to vector<256x128xf32>
      %214 = vector.shape_cast %211 : vector<256x128xf32> to vector<1x256x128xf32>
      tpu.vector_store %arg9[%c0_36, %c0_37, %c0_38], %214 {strides = array<i32>} : memref<1x256x128xf32, #tpu.memory_space<vmem>>, vector<1x256x128xf32>,
    } else {
    }
    %c0_i32_32 = arith.constant 0 : i32
    %206 = arith.cmpi sgt, %arg1, %c0_i32_32 : i32
    %207 = arith.extui %206 : i1 to i32
    %c0_i32_33 = arith.constant 0 : i32
    %208 = arith.cmpi ne, %207, %c0_i32_33 : i32
    scf.if %208 {
      %c0_34 = arith.constant 0 : index
      %c0_35 = arith.constant 0 : index
      %c0_36 = arith.constant 0 : index
      %209 = vector.load %arg9[%c0_34, %c0_35, %c0_36] : memref<1x256x128xf32, #tpu.memory_space<vmem>>, vector<1x256x128xf32>
      %210 = vector.shape_cast %209 : vector<1x256x128xf32> to vector<256x128xf32>
      %211 = arith.addf %210, %202 : vector<256x128xf32>
      %c0_37 = arith.constant 0 : index
      %c0_38 = arith.constant 0 : index
      %c0_39 = arith.constant 0 : index
      %212 = vector.load %arg9[%c0_37, %c0_38, %c0_39] : memref<1x256x128xf32, #tpu.memory_space<vmem>>, vector<1x256x128xf32>
      %213 = vector.shape_cast %212 : vector<1x256x128xf32> to vector<256x128xf32>
      %214 = vector.shape_cast %211 : vector<256x128xf32> to vector<1x256x128xf32>
      tpu.vector_store %arg9[%c0_37, %c0_38, %c0_39], %214 {strides = array<i32>} : memref<1x256x128xf32, #tpu.memory_space<vmem>>, vector<1x256x128xf32>,
    } else {
    }
    return
  }
  func.func @transform_0(%arg0: i32, %arg1: i32) -> (i32, i32, i32) {
    %c0_i32 = arith.constant 0 : i32
    %c0_i32_0 = arith.constant 0 : i32
    %c0_i32_1 = arith.constant 0 : i32
    return %arg0, %c0_i32, %c0_i32_0 : i32, i32, i32
  }
  func.func @transform_1(%arg0: i32, %arg1: i32) -> (i32, i32) {
    %c0_i32 = arith.constant 0 : i32
    %c0_i32_0 = arith.constant 0 : i32
    %c0_i32_1 = arith.constant 0 : i32
    return %c0_i32, %c0_i32_0 : i32, i32
  }
  func.func @transform_2(%arg0: i32, %arg1: i32) -> (i32, i32) {
    %c0_i32 = arith.constant 0 : i32
    %c0_i32_0 = arith.constant 0 : i32
    return %c0_i32, %arg1 : i32, i32
  }
  func.func @transform_3(%arg0: i32, %arg1: i32) -> (i32, i32) {
    %c0_i32 = arith.constant 0 : i32
    %c0_i32_0 = arith.constant 0 : i32
    return %c0_i32, %arg1 : i32, i32
  }
  func.func @transform_4(%arg0: i32, %arg1: i32) -> (i32, i32) {
    %c0_i32 = arith.constant 0 : i32
    %c0_i32_0 = arith.constant 0 : i32
    return %c0_i32, %arg1 : i32, i32
  }
  func.func @transform_5(%arg0: i32, %arg1: i32) -> (i32, i32) {
    %c0_i32 = arith.constant 0 : i32
    %c0_i32_0 = arith.constant 0 : i32
    %c0_i32_1 = arith.constant 0 : i32
    return %c0_i32, %c0_i32_0 : i32, i32
  }
  func.func @transform_6(%arg0: i32, %arg1: i32) -> (i32, i32) {
    %c0_i32 = arith.constant 0 : i32
    %c0_i32_0 = arith.constant 0 : i32
    %c0_i32_1 = arith.constant 0 : i32
    return %c0_i32, %c0_i32_0 : i32, i32
  }
  func.func @transform_7(%arg0: i32, %arg1: i32) -> (i32, i32, i32) {
    %c0_i32 = arith.constant 0 : i32
    %c0_i32_0 = arith.constant 0 : i32
    %c0_i32_1 = arith.constant 0 : i32
    return %arg0, %c0_i32, %c0_i32_0 : i32, i32, i32
  }
}

</mosaic_0001>

<bundles_post_ra>
// kernel: mlp_forward.1
= control target key start
LH: loop header
LB: loop body
LE: loop exit
PB: predicated region body
PF: predicated region fallthrough
CT: control target
= control target key end

     0   :  { %s8958_s24 = smov 0   ;;  %s8960_s25 = smov 0   ;;  %s13901_s0 = inlined_call_operand.vmem [shape: bf16[2,256,32], index: 0, kind: input, shape index: {}]   ;;  %s13902_s1 = inlined_call_operand.vmem [shape: bf16[128,32], index: 1, kind: input, shape index: {}]   ;;  %s13903_s2 = inlined_call_operand.vmem [shape: f32[1,128], index: 2, kind: input, shape index: {}]   ;;  %s13904_s3 = inlined_call_operand.vmem [shape: f32[27,128], index: 3, kind: input, shape index: {}]   ;;  %s13905_s4 = inlined_call_operand.vmem [shape: f32[1,128], index: 4, kind: input, shape index: {}]   ;;  %s13906_s5 = inlined_call_operand.vmem [shape: bf16[128,128], index: 5, kind: input, shape index: {}]   ;;  %s13907_s6 = inlined_call_operand.vmem [shape: f32[1,128], index: 6, kind: input, shape index: {}]   ;;  %s13908_s7 = inlined_call_operand.vmem [shape: f32[2,256,128], index: 7, kind: output, shape index: {}]  }
   0x1   :  { %s8962_s26 = smov 0  }
   0x2 LB: > { %s29_s27 = sadd.s32 1, %s8911_s25  ;;  %p8486_p0 = scmp.ge.s32.totalorder %s8915_s26, 1  ;;  %s8915_s26 = sphi %s8962_s26, %s17_s26   ;;  %s8911_s25 = sphi %s8960_s25, %s15229_s25   ;;  %s8907_s24 = sphi %s8958_s24, %s15228_s24  }
   0x3   : > { %p31_p1 = scmp.ge.s32.totalorder %s29_s27, 2  ;;  %p274_p2 = scmp.lt.s32.totalorder %s8915_s26, 3 }
   0x5   : > { %s15231_s27 = smov (%p31_p1, %s29_s27), 0  ;;  %p275_p3 = pnand %p8486_p0, %p274_p2 }
   0x7   : > { %278 = sbr.rel (%p275_p3) target bundleno = 1713 (0x6b1), region = 48 }
   0xe   : > { %v8787_v0 = vld [vmem:[%s13902_s1] sm:$0xff]   ;;  %vm517_vm0 = vcmask 261120   ;;  %v8788_v1 = vld [vmem:[%s13902_s1 + $0x8] sm:$0xff]   ;;  %p316_p4 = scmp.lt.s32.totalorder %s8907_s24, 1  ;;  %v8789_v3 = vld [vmem:[%s13902_s1 + $0x10] sm:$0xff]   ;;  %v8917_v32 = vmov 0   ;;  %v1646_v33 = vlaneseq }
   0xf   : > { %8754 = vmatprep.subr.msk.bf16.mxu0 %vm517_vm0, %v8787_v0  ;;  %v567_v2 = vsel %vm517_vm0, %v8787_v0, 0  ;;  %v570_v4 = vsel %vm517_vm0, %v8788_v1, 0  ;;  %v573_v6 = vsel %vm517_vm0, %v8789_v3, 0  ;;  %v8790_v7 = vld [vmem:[%s13902_s1 + $0x18] sm:$0xff]   ;;  %v8791_v9 = vld [vmem:[%s13902_s1 + $0x20] sm:$0xff]   ;;  %v8792_v11 = vld [vmem:[%s13902_s1 + $0x28] sm:$0xff]  }
  0x10   : > { %8659 = vmatpush3.bf16.xpose.msra.mxu0 %v567_v2  ;;  %s15233_s24 = smov (!%p316_p4, %s8907_s24), 1  ;;  %v576_v8 = vsel %vm517_vm0, %v8790_v7, 0  ;;  %v579_v10 = vsel %vm517_vm0, %v8791_v9, 0  ;;  %v582_v12 = vsel %vm517_vm0, %v8792_v11, 0  ;;  %v8793_v13 = vld [vmem:[%s13902_s1 + $0x30] sm:$0xff]   ;;  %v8794_v15 = vld [vmem:[%s13902_s1 + $0x38] sm:$0xff]  }
  0x11   : > { %8755 = vmatprep.subr.msk.bf16.mxu0 %vm517_vm0, %v8788_v1  ;;  %s8576_s11 = sshll.u32 %s15233_s24, 7  ;;  %v585_v14 = vsel %vm517_vm0, %v8793_v13, 0  ;;  %v588_v16 = vsel %vm517_vm0, %v8794_v15, 0  ;;  %781 = vst [vmem:[#allocation2 + $0x68] sm:$0xf] %v8917_v32  ;;  %v1647_v34 = vshrl.u32 %v1646_v33, 7 }
  0x12   : > { %s8995_s14 = scalar_lea.vmem %s13901_s0, %s8576_s11  ;;  %782 = vst [vmem:[#allocation2 + $0x6c] sm:$0x1] %v8917_v32  ;;  %755 = vst [vmem:[#allocation2] sm:$0xf] %v8917_v32  ;;  %v9183_v37 = vld [vmem:[%s13904_s3] sm:$0xff]  ;;  %v8812_v44 = vld [vmem:[%s13906_s5 + $0x8] sm:$0xff]  }
  0x13   : > { %v8795_v5 = vld [vmem:[%s8995_s14] sm:$0xff]   ;;  %v8796_v17 = vld [vmem:[%s8995_s14 + $0x8] sm:$0xff]   ;;  %v8797_v18 = vld [vmem:[%s8995_s14 + $0x10] sm:$0xff]   ;;  %756 = vst [vmem:[#allocation2 + $0x4] sm:$0x1] %v8917_v32  ;;  %v9176_v35 = vsub.s32 0, %v1647_v34 }
  0x14   : > { %8674 = vmatprep.mubr.msk.bf16.mxu0 %vm517_vm0, %v8795_v5  ;;  %v8798_v19 = vld [vmem:[%s8995_s14 + $0x18] sm:$0xff]   ;;  %v8799_v20 = vld [vmem:[%s8995_s14 + $0x20] sm:$0xff]   ;;  %v8800_v21 = vld [vmem:[%s8995_s14 + $0x28] sm:$0xff]   ;;  %757 = vst [vmem:[#allocation2 + $0x8] sm:$0xf] %v8917_v32  ;;  %v9178_v36 = vsub.s32 3, %v1647_v34 }
  0x15   : > { %v8801_v22 = vld [vmem:[%s8995_s14 + $0x30] sm:$0xff]   ;;  %v8802_v23 = vld [vmem:[%s8995_s14 + $0x38] sm:$0xff]   ;;  %v8803_v24 = vld [vmem:[%s8995_s14 + $0x40] sm:$0xff]   ;;  %758 = vst [vmem:[#allocation2 + $0xc] sm:$0x1] %v8917_v32  ;;  %v9191_v41 = vrot.slane %v9183_v37, %v9176_v35  ;;  %v9203_v45 = vsub.s32 6, %v1647_v34 }
  0x16   : > { %v8804_v25 = vld [vmem:[%s8995_s14 + $0x48] sm:$0xff]   ;;  %v8805_v26 = vld [vmem:[%s8995_s14 + $0x50] sm:$0xff]   ;;  %v8806_v27 = vld [vmem:[%s8995_s14 + $0x58] sm:$0xff]   ;;  %759 = vst [vmem:[#allocation2 + $0x10] sm:$0xf] %v8917_v32  ;;  %v9195_v42 = vrot.slane %v9183_v37, %v9178_v36  ;;  %v9209_v49 = vsub.s32 1, %v1647_v34 }
  0x17   : > { %v8807_v28 = vld [vmem:[%s8995_s14 + $0x60] sm:$0xff]   ;;  %v8808_v29 = vld [vmem:[%s8995_s14 + $0x68] sm:$0xff]   ;;  %v8809_v30 = vld [vmem:[%s8995_s14 + $0x70] sm:$0xff]   ;;  %760 = vst [vmem:[#allocation2 + $0x14] sm:$0x1] %v8917_v32  ;;  %v9216_v51 = vrot.slane %v9183_v37, %v9203_v45  ;;  %v9218_v52 = vsub.s32 4, %v1647_v34 }
  0x18   : > { %8661 = vmatpush3.bf16.xpose.msra.mxu0 %v570_v4  ;;  %v8810_v31 = vld [vmem:[%s8995_s14 + $0x78] sm:$0xff]   ;;  %761 = vst [vmem:[#allocation2 + $0x18] sm:$0xf] %v8917_v32  ;;  %762 = vst [vmem:[#allocation2 + $0x1c] sm:$0x1] %v8917_v32  ;;  %v8811_v43 = vld [vmem:[%s13906_s5] sm:$0xff]   ;;  %v9232_v62 = vrot.slane %v9183_v37, %v9209_v49 }
  0x19   : > { %8756 = vmatprep.subr.msk.bf16.mxu0 %vm517_vm0, %v8789_v3  ;;  %763 = vst [vmem:[#allocation2 + $0x20] sm:$0xf] %v8917_v32  ;;  %764 = vst [vmem:[#allocation2 + $0x24] sm:$0x1] %v8917_v32  ;;  %8706 = vmatprep.subr.bf16.mxu1 %v8811_v43  ;;  %v8813_v50 = vld [vmem:[%s13906_s5 + $0x10] sm:$0xff]   ;;  %v9220_v54 = vsub.s32 7, %v1647_v34  ;;  %v9243_v4 = vrot.slane %v9183_v37, %v9218_v52 }
  0x1a   : > { %765 = vst [vmem:[#allocation2 + $0x28] sm:$0xf] %v8917_v32  ;;  %766 = vst [vmem:[#allocation2 + $0x2c] sm:$0x1] %v8917_v32  ;;  %8707 = vmatpush3.bf16.msra.mxu1 %v8811_v43  ;;  %v8814_v63 = vld [vmem:[%s13906_s5 + $0x18] sm:$0xff]   ;;  %v9239_v1 = vsub.s32 2, %v1647_v34 }
  0x1b   : > { %767 = vst [vmem:[#allocation2 + $0x30] sm:$0xf] %v8917_v32  ;;  %768 = vst [vmem:[#allocation2 + $0x34] sm:$0x1] %v8917_v32  ;;  %8708 = vmatprep.subr.bf16.mxu1 %v8812_v44  ;;  %v2124_v2 = vsub.s32 5, %v1647_v34  ;;  %v9248_v5 = vld [vmem:[%s13904_s3 + $0x8] sm:$0xff] }
  0x1c   : > { %769 = vst [vmem:[#allocation2 + $0x38] sm:$0xf] %v8917_v32  ;;  %770 = vst [vmem:[#allocation2 + $0x3c] sm:$0x1] %v8917_v32  ;;  %v2259_v53 = vld [vmem:[#allocation2 + $0xc] sm:$0x1] }
  0x1d   : > { %771 = vst [vmem:[#allocation2 + $0x40] sm:$0xf] %v8917_v32  ;;  %772 = vst [vmem:[#allocation2 + $0x44] sm:$0x1] %v8917_v32  ;;  %v1527_v38 = vld [vmem:[#allocation2 + $0x8] ss:$8 sps:$4 sm:$0xff]   ;;  %v9222_v55 = vunpack.c.l.bf16 %v2259_v53 }
  0x1e   : > { %773 = vst [vmem:[#allocation2 + $0x48] sm:$0xf] %v8917_v32  ;;  %774 = vst [vmem:[#allocation2 + $0x4c] sm:$0x1] %v8917_v32  ;;  %v9185_v39 = vunpack.c.l.bf16 %v1527_v38  ;;  %v9187_v40 = vunpack.c.h.bf16 %v1527_v38  ;;  %v2260_v57 = vld [vmem:[#allocation2 + $0x14] sm:$0x1]  ;;  %8709 = vmatpush3.bf16.msra.mxu1 %v8812_v44 }
  0x1f   : > { %775 = vst [vmem:[#allocation2 + $0x50] sm:$0xf] %v8917_v32  ;;  %776 = vst [vmem:[#allocation2 + $0x54] sm:$0x1] %v8917_v32  ;;  %v9228_v61 = vunpack.c.l.bf16 %v2260_v57  ;;  %8710 = vmatprep.subr.bf16.mxu1 %v8813_v50  ;;  %v2261_v3 = vld [vmem:[#allocation2 + $0x1c] sm:$0x1] }
  0x20   : > { %8663 = vmatpush3.bf16.xpose.msra.mxu0 %v573_v6  ;;  %777 = vst [vmem:[#allocation2 + $0x58] sm:$0xf] %v8917_v32  ;;  %778 = vst [vmem:[#allocation2 + $0x5c] sm:$0x1] %v8917_v32  ;;  %v1651_v47 = vmul.f32 %v9191_v41, %v9185_v39  ;;  %v1719_v48 = vmul.f32 %v9195_v42, %v9187_v40  ;;  %v9250_v6 = vunpack.c.l.bf16 %v2261_v3  ;;  %vm2510_vm1 = vcmask 1046528   ;;  %v8816_v34 = vld [vmem:[%s13906_s5 + $0x28] sm:$0xff]  }
  0x21   : > { %8757 = vmatprep.subr.msk.bf16.mxu0 %vm517_vm0, %v8790_v7  ;;  %779 = vst [vmem:[#allocation2 + $0x60] sm:$0xf] %v8917_v32  ;;  %780 = vst [vmem:[#allocation2 + $0x64] sm:$0x1] %v8917_v32  ;;  %v2384_v7 = vmul.f32 %v9232_v62, %v9185_v39  ;;  %v9322_v38 = vmul.f32 %v9195_v42, %v9185_v39  ;;  %v9326_v43 = vmul.f32 %v9216_v51, %v9187_v40  ;;  %vm1324_vm2 = vcmask 1043456   ;;  %s8577_s16 = sshll.u32 %s15233_s24, 8 }
  0x22   : > { %783 = vst [vmem:[#allocation2 + $0x70] sm:$0xf] %v8917_v32  ;;  %784 = vst [vmem:[#allocation2 + $0x74] sm:$0x1] %v8917_v32  ;;  %v1751_v60 = vadd.f32 %v1719_v48, %v1651_v47  ;;  %8711 = vmatpush3.bf16.msra.mxu1 %v8813_v50  ;;  %vm1325_vm3 = vsmask.f32 7938  ;;  %s13796_s20 = scalar_lea.vmem %s13908_s7, %s8577_s16 }
  0x23   : > { %785 = vst [vmem:[#allocation2 + $0x78] sm:$0xf] %v8917_v32  ;;  %786 = vst [vmem:[#allocation2 + $0x7c] sm:$0x1] %v8917_v32  ;;  %8712 = vmatprep.subr.bf16.mxu1 %v8814_v63  ;;  %v9350_v57 = vld [vmem:[#allocation2 + $0x4] sm:$0x1] }
  0x24   : > { %787 = vst [vmem:[#allocation2 + $0x80] sm:$0xf] %v8917_v32  ;;  %788 = vst [vmem:[#allocation2 + $0x84] sm:$0x1] %v8917_v32  ;;  %vm1330_vm4 = vcmask 1040384   ;;  %vm5259_vm8 = vcmask 1045504  }
  0x25   : > { %789 = vst [vmem:[#allocation2 + $0x88] sm:$0xf] %v8917_v32  ;;  %790 = vst [vmem:[#allocation2 + $0x8c] sm:$0x1] %v8917_v32  ;;  %vm1331_vm5 = vsmask.f32 256 }
  0x26   : > { %791 = vst [vmem:[#allocation2 + $0x90] sm:$0xf] %v8917_v32  ;;  %792 = vst [vmem:[#allocation2 + $0x94] sm:$0x1] %v8917_v32  ;;  %v1529_v46 = vld [vmem:[#allocation2 + $0x18] ss:$56 sps:$4 sm:$0xff]   ;;  %8713 = vmatpush3.bf16.msra.mxu1 %v8814_v63 }
  0x27   : > { %793 = vst [vmem:[#allocation2 + $0x98] sm:$0xf] %v8917_v32  ;;  %794 = vst [vmem:[#allocation2 + $0x9c] sm:$0x1] %v8917_v32  ;;  %v9224_v56 = vunpack.c.l.bf16 %v1529_v46  ;;  %v9226_v59 = vunpack.c.h.bf16 %v1529_v46 }
  0x28   : > { %8665 = vmatpush3.bf16.xpose.msra.mxu0 %v576_v8  ;;  %795 = vst [vmem:[#allocation2 + $0xa0] sm:$0xf] %v8917_v32  ;;  %796 = vst [vmem:[#allocation2 + $0xa4] sm:$0x1] %v8917_v32  ;;  %v2385_v8 = vmul.f32 %v9232_v62, %v9222_v55 }
  0x29   : > { %8758 = vmatprep.subr.msk.bf16.mxu0 %vm517_vm0, %v8791_v9  ;;  %797 = vst [vmem:[#allocation2 + $0xa8] sm:$0xf] %v8917_v32  ;;  %798 = vst [vmem:[#allocation2 + $0xac] sm:$0x1] %v8917_v32  ;;  %v1787_v0 = vmul.f32 %v9216_v51, %v9224_v56  ;;  %v9258_v9 = vrot.slane %v9183_v37, %v9220_v54  ;;  %v2398_v63 = vmul.f32 %v9232_v62, %v9226_v59 }
  0x2a   : > { %799 = vst [vmem:[#allocation2 + $0xb0] sm:$0xf] %v8917_v32  ;;  %800 = vst [vmem:[#allocation2 + $0xb4] sm:$0x1] %v8917_v32 }
  0x2b   : > { %801 = vst [vmem:[#allocation2 + $0xb8] sm:$0xf] %v8917_v32  ;;  %802 = vst [vmem:[#allocation2 + $0xbc] sm:$0x1] %v8917_v32 }
  0x2c   : > { %803 = vst [vmem:[#allocation2 + $0xc0] sm:$0xf] %v8917_v32  ;;  %804 = vst [vmem:[#allocation2 + $0xc4] sm:$0x1] %v8917_v32 }
  0x2d   : > { %805 = vst [vmem:[#allocation2 + $0xc8] sm:$0xf] %v8917_v32  ;;  %806 = vst [vmem:[#allocation2 + $0xcc] sm:$0x1] %v8917_v32 }
  0x2e   : > { %807 = vst [vmem:[#allocation2 + $0xd0] sm:$0xf] %v8917_v32  ;;  %808 = vst [vmem:[#allocation2 + $0xd4] sm:$0x1] %v8917_v32 }
  0x2f   : > { %809 = vst [vmem:[#allocation2 + $0xd8] sm:$0xf] %v8917_v32  ;;  %810 = vst [vmem:[#allocation2 + $0xdc] sm:$0x1] %v8917_v32  ;;  %v1546_v58 = vld [vmem:[#allocation2 + $0xa0] sm:$0xf] }
  0x30   : > { %8667 = vmatpush3.bf16.xpose.msra.mxu0 %v579_v10  ;;  %811 = vst [vmem:[#allocation2 + $0xe0] sm:$0xf] %v8917_v32  ;;  %812 = vst [vmem:[#allocation2 + $0xe4] sm:$0x1] %v8917_v32  ;;  %v2677_v10 = vmul.f32 %v9243_v4, %v9187_v40 }
  0x31   : > { %8759 = vmatprep.subr.msk.bf16.mxu0 %vm517_vm0, %v8792_v11  ;;  %813 = vst [vmem:[#allocation2 + $0xe8] sm:$0xf] %v8917_v32  ;;  %814 = vst [vmem:[#allocation2 + $0xec] sm:$0x1] %v8917_v32  ;;  %v2678_v11 = vmul.f32 %v9243_v4, %v9228_v61 }
  0x32   : > { %815 = vst [vmem:[#allocation2 + $0xf0] sm:$0xf] %v8917_v32  ;;  %816 = vst [vmem:[#allocation2 + $0xf4] sm:$0x1] %v8917_v32 }
  0x33   : > { %817 = vst [vmem:[#allocation2 + $0xf8] sm:$0xf] %v8917_v32  ;;  %818 = vst [vmem:[#allocation2 + $0xfc] sm:$0x1] %v8917_v32 }
  0x34   : > { %819 = vst [vmem:[#allocation2 + $0x100] sm:$0xf] %v8917_v32  ;;  %820 = vst [vmem:[#allocation2 + $0x104] sm:$0x1] %v8917_v32 }
  0x35   : > { %821 = vst [vmem:[#allocation2 + $0x108] sm:$0xf] %v8917_v32  ;;  %822 = vst [vmem:[#allocation2 + $0x10c] sm:$0x1] %v8917_v32 }
  0x36   : > { %823 = vst [vmem:[#allocation2 + $0x110] sm:$0xf] %v8917_v32  ;;  %824 = vst [vmem:[#allocation2 + $0x114] sm:$0x1] %v8917_v32 }
  0x37   : > { %825 = vst [vmem:[#allocation2 + $0x118] sm:$0xf] %v8917_v32  ;;  %826 = vst [vmem:[#allocation2 + $0x11c] sm:$0x1] %v8917_v32 }
  0x38   : > { %8669 = vmatpush3.bf16.xpose.msra.mxu0 %v582_v12  ;;  %827 = vst [vmem:[#allocation2 + $0x120] sm:$0xf] %v8917_v32  ;;  %828 = vst [vmem:[#allocation2 + $0x124] sm:$0x1] %v8917_v32  ;;  %v9267_v12 = vld [vmem:[%s13904_s3 + $0x10] sm:$0xff] }
  0x39   : > { %8760 = vmatprep.subr.msk.bf16.mxu0 %vm517_vm0, %v8793_v13  ;;  %829 = vst [vmem:[#allocation2 + $0x128] sm:$0xf] %v8917_v32  ;;  %830 = vst [vmem:[#allocation2 + $0x12c] sm:$0x1] %v8917_v32  ;;  %v9269_v13 = vunpack.c.l.bf16 %v1546_v58  ;;  %v9344_v50 = vrot.slane %v9267_v12, %v9178_v36  ;;  %v9348_v53 = vrot.slane %v9267_v12, %v9203_v45  ;;  %v2268_v58 = vld [vmem:[#allocation2 + $0x54] sm:$0x1] }
  0x3a   : > { %831 = vst [vmem:[#allocation2 + $0x130] sm:$0xf] %v8917_v32  ;;  %832 = vst [vmem:[#allocation2 + $0x134] sm:$0x1] %v8917_v32 }
  0x3b   : > { %833 = vst [vmem:[#allocation2 + $0x138] sm:$0xf] %v8917_v32  ;;  %834 = vst [vmem:[#allocation2 + $0x13c] sm:$0x1] %v8917_v32 }
  0x3c   : > { %835 = vst [vmem:[#allocation2 + $0x140] sm:$0xf] %v8917_v32  ;;  %836 = vst [vmem:[#allocation2 + $0x144] sm:$0x1] %v8917_v32 }
  0x3d   : > { %837 = vst [vmem:[#allocation2 + $0x148] sm:$0xf] %v8917_v32  ;;  %838 = vst [vmem:[#allocation2 + $0x14c] sm:$0x1] %v8917_v32 }
  0x3e   : > { %839 = vst [vmem:[#allocation2 + $0x150] sm:$0xf] %v8917_v32  ;;  %840 = vst [vmem:[#allocation2 + $0x154] sm:$0x1] %v8917_v32 }
  0x3f   : > { %841 = vst [vmem:[#allocation2 + $0x158] sm:$0xf] %v8917_v32  ;;  %842 = vst [vmem:[#allocation2 + $0x15c] sm:$0x1] %v8917_v32 }
  0x40   : > { %8671 = vmatpush3.bf16.xpose.msra.mxu0 %v585_v14  ;;  %843 = vst [vmem:[#allocation2 + $0x160] sm:$0xf] %v8917_v32  ;;  %844 = vst [vmem:[#allocation2 + $0x164] sm:$0x1] %v8917_v32  ;;  %v9273_v14 = vmul.f32 %v9191_v41, %v9226_v59 }
  0x41   : > { %8761 = vmatprep.subr.msk.bf16.mxu0 %vm517_vm0, %v8794_v15  ;;  %845 = vst [vmem:[#allocation2 + $0x168] sm:$0xf] %v8917_v32  ;;  %846 = vst [vmem:[#allocation2 + $0x16c] sm:$0x1] %v8917_v32  ;;  %v2969_v15 = vmul.f32 %v9258_v9, %v9224_v56 }
  0x42   : > { %847 = vst [vmem:[#allocation2 + $0x170] sm:$0xf] %v8917_v32  ;;  %848 = vst [vmem:[#allocation2 + $0x174] sm:$0x1] %v8917_v32 }
  0x43   : > { %849 = vst [vmem:[#allocation2 + $0x178] sm:$0xf] %v8917_v32  ;;  %850 = vst [vmem:[#allocation2 + $0x17c] sm:$0x1] %v8917_v32 }
  0x44   : > { %851 = vst [vmem:[#allocation2 + $0x180] sm:$0xf] %v8917_v32  ;;  %852 = vst [vmem:[#allocation2 + $0x184] sm:$0x1] %v8917_v32 }
  0x45   : > { %853 = vst [vmem:[#allocation2 + $0x188] sm:$0xf] %v8917_v32  ;;  %854 = vst [vmem:[#allocation2 + $0x18c] sm:$0x1] %v8917_v32 }
  0x46   : > { %855 = vst [vmem:[#allocation2 + $0x190] sm:$0xf] %v8917_v32  ;;  %856 = vst [vmem:[#allocation2 + $0x194] sm:$0x1] %v8917_v32 }
  0x47   : > { %857 = vst [vmem:[#allocation2 + $0x198] sm:$0xf] %v8917_v32  ;;  %858 = vst [vmem:[#allocation2 + $0x19c] sm:$0x1] %v8917_v32 }
  0x48   : > { %8673 = vmatpush3.bf16.xpose.msra.mxu0 %v588_v16  ;;  %859 = vst [vmem:[#allocation2 + $0x1a0] sm:$0xf] %v8917_v32  ;;  %860 = vst [vmem:[#allocation2 + $0x1a4] sm:$0x1] %v8917_v32  ;;  %v2970_v16 = vmul.f32 %v9258_v9, %v9250_v6 }
  0x49   : > { %861 = vst [vmem:[#allocation2 + $0x1a8] sm:$0xf] %v8917_v32  ;;  %862 = vst [vmem:[#allocation2 + $0x1ac] sm:$0x1] %v8917_v32 }
  0x4a   : > { %863 = vst [vmem:[#allocation2 + $0x1b0] sm:$0xf] %v8917_v32  ;;  %864 = vst [vmem:[#allocation2 + $0x1b4] sm:$0x1] %v8917_v32  ;;  %v3099_v33 = vrot.slane %v2970_v16, 1 }
  0x4b   : > { %865 = vst [vmem:[#allocation2 + $0x1b8] sm:$0xf] %v8917_v32  ;;  %866 = vst [vmem:[#allocation2 + $0x1bc] sm:$0x1] %v8917_v32  ;;  %v9376_v16 = vld [vmem:[%s13903_s2] ss:$0 sm:$0xff] }
  0x4c   : > { %867 = vst [vmem:[#allocation2 + $0x1c0] sm:$0xf] %v8917_v32  ;;  %868 = vst [vmem:[#allocation2 + $0x1c4] sm:$0x1] %v8917_v32 }
  0x4d   : > { %869 = vst [vmem:[#allocation2 + $0x1c8] sm:$0xf] %v8917_v32  ;;  %870 = vst [vmem:[#allocation2 + $0x1cc] sm:$0x1] %v8917_v32 }
  0x4e   : > { %871 = vst [vmem:[#allocation2 + $0x1d0] sm:$0xf] %v8917_v32  ;;  %872 = vst [vmem:[#allocation2 + $0x1d4] sm:$0x1] %v8917_v32 }
  0x4f   : > { %8675 = vmatmul.mubr.msk.bf16.vlgmr.msra.gmra.mrb[0].mxu0 %vm517_vm0, %v8796_v17  ;;  %873 = vst [vmem:[#allocation2 + $0x1d8] sm:$0xf] %v8917_v32  ;;  %874 = vst [vmem:[#allocation2 + $0x1dc] sm:$0x1] %v8917_v32  ;;  %v8815_v17 = vld [vmem:[%s13906_s5 + $0x20] sm:$0xff]   ;;  %v3098_v32 = vrot.slane %v2969_v15, 1  ;;  %v9371_v15 = vrot.slane %v9183_v37, %v2124_v2 }
  0x50   : > { %8678 = vmatprep.mubr.msk.bf16.mxu0 %vm517_vm0, %v8797_v18  ;;  %14461 = vst [vmem:[#allocation3_spill] sm:$0xff] %v9187_v40  ;;  %14462 = vst [vmem:[#allocation4_spill] sm:$0xff] %v9191_v41  ;;  %v9282_v18 = vadd.f32 %v1787_v0, %v1751_v60  ;;  %8714 = vmatprep.subr.bf16.mxu1 %v8815_v17  ;;  %v2278_v60 = vld [vmem:[#allocation2 + $0xa4] sm:$0x1] }
  0x51   : > { %14463 = vst [vmem:[#allocation5_spill] sm:$0xff] %v9195_v42  ;;  %14464 = vst [vmem:[#allocation6_spill] sm:$0xff] %v9216_v51  ;;  %8715 = vmatpush3.bf16.msra.mxu1 %v8815_v17  ;;  %v8817_v17 = vld [vmem:[%s13906_s5 + $0x30] sm:$0xff]  }
  0x52   : > { %14465 = vst [vmem:[#allocation7_spill] sm:$0xff] %v9218_v52  ;;  %14466 = vst [vmem:[#allocation8_spill] sm:$0xff] %v9220_v54  ;;  %8716 = vmatprep.subr.bf16.mxu1 %v8816_v34 }
  0x53   : > { %14467 = vst [vmem:[#allocation9_spill] sm:$0xff] %v9222_v55  ;;  %14468 = vst [vmem:[#allocation10_spill] sm:$0xff] %v9224_v56  ;;  %v9410_v56 = vrot.slane %v9248_v5, %v9203_v45 }
  0x54   : > { %14469 = vst [vmem:[#allocation11_spill] sm:$0xff] %v9228_v61  ;;  %14470 = vst [vmem:[#allocation12_spill] sm:$0xff] %v9232_v62 }
  0x55   : > { %14471 = vst [vmem:[#allocation13_spill] sm:$0xff] %v9239_v1  ;;  %14472 = vst [vmem:[#allocation14_spill] sm:$0xff] %v9243_v4  ;;  %8717 = vmatpush3.bf16.msra.mxu1 %v8816_v34 }
  0x56   : > { %14473 = vst [vmem:[#allocation15_spill] sm:$0xff] %v9250_v6  ;;  %14474 = vst [vmem:[#allocation16_spill] sm:$0xff] %v9258_v9  ;;  %8718 = vmatprep.subr.bf16.mxu1 %v8817_v17 }
  0x57   : > { %8679 = vmatmul.mubr.msk.bf16.gmra.mrb[4].mxu0 %vm517_vm0, %v8798_v19  ;;  %14475 = vst [vmem:[#allocation17_spill] sm:$0xff] %v9269_v13  ;;  %v9286_v19 = vrot.slane %v9248_v5, %v9209_v49  ;;  %14482 = vst [vmem:[#allocation24_spill] sm:$0xff] %v9322_v38 }
  0x58   : > { %8682 = vmatprep.mubr.msk.bf16.mxu0 %vm517_vm0, %v8799_v20  ;;  %v9290_v20 = vrot.slane %v9248_v5, %v9218_v52  ;;  %14483 = vst [vmem:[#allocation25_spill] sm:$0xff] %v9326_v43  ;;  %14487 = vst [vmem:[#allocation29_spill] sm:$0xff] %v9348_v53  ;;  %v1411_v53 = vld [vmem:[#allocation2 + $0xd4] sm:$0x1] }
  0x59   : > { %14476 = vst [vmem:[#allocation18_spill] sm:$0xff] %v9286_v19  ;;  %v9330_v44 = vmul.f32 %v9286_v19, %v9226_v59  ;;  %14488 = vst [vmem:[#allocation30_spill] sm:$0xff] %v9350_v57  ;;  %8719 = vmatpush3.bf16.msra.mxu1 %v8817_v17  ;;  %v9439_v17 = vrot.slane %v9267_v12, %v9209_v49 }
  0x5a   : > { %14477 = vst [vmem:[#allocation19_spill] sm:$0xff] %v9290_v20  ;;  %14492 = vst [vmem:[#allocation34_spill] sm:$0xff] %v9371_v15  ;;  %v1372_v15 = vld [vmem:[#allocation2 + $0x90] sm:$0xf] }
  0x5b   : > { %14484 = vst [vmem:[#allocation26_spill] sm:$0xff] %v9330_v44  ;;  %14497 = vst [vmem:[#allocation39_spill] sm:$0xff] %v9410_v56 }
  0x5c   : > { %vm9433_vm6 = vmand %vm1324_vm2, %vm1325_vm3  ;;  %14503 = vst [vmem:[#allocation43_spill] sm:$0xff] %v9439_v17 }
  0x5d   : > { %vm9443_vm7 = vmand %vm1330_vm4, %vm1331_vm5 }
  0x5f   : > { %8683 = vmatmul.mubr.msk.bf16.gmra.mrb[8].mxu0 %vm517_vm0, %v8800_v21  ;;  %v9294_v21 = vrot.slane %v9248_v5, %v9220_v54 }
  0x60   : > { %8686 = vmatprep.mubr.msk.bf16.mxu0 %vm517_vm0, %v8801_v22  ;;  %v1525_v22 = vld [vmem:[%s13904_s3 + $0x18] sm:$0x7] }
  0x61   : > { %14478 = vst [vmem:[#allocation20_spill] sm:$0xff] %v9294_v21  ;;  %v9333_v46 = vrot.slane %v1525_v22, %v9176_v35  ;;  %v9358_v3 = vrot.slane %v1525_v22, %v9209_v49  ;;  %v2675_v22 = vmul.f32 %v9243_v4, %v9185_v39 }
  0x63   : > { %14485 = vst [vmem:[#allocation27_spill] sm:$0xff] %v9333_v46  ;;  %14489 = vst [vmem:[#allocation31_spill] sm:$0xff] %v9358_v3 }
  0x67   : > { %8687 = vmatmul.mubr.msk.bf16.gmra.mrb[12].mxu0 %vm517_vm0, %v8802_v23  ;;  %v2514_v23 = vrot.slane %v2384_v7, 1  ;;  %v9362_v7 = vrot.slane %v9183_v37, %v9239_v1  ;;  %v9387_v37 = vrot.slane %v9248_v5, %v9176_v35 }
  0x68   : > { %8690 = vmatprep.mubr.msk.bf16.mxu0 %vm517_vm0, %v8803_v24  ;;  %v2515_v24 = vrot.slane %v2385_v8, 1  ;;  %v13911_v8 = vunpack.c.l.bf16 %v9350_v57 }
  0x69   : > { %14490 = vst [vmem:[#allocation32_spill] sm:$0xff] %v9362_v7  ;;  %14493 = vst [vmem:[#allocation35_spill] sm:$0xff] %v9387_v37 }
  0x6a   : > { %v9340_v48 = vsel %vm2510_vm1, %v2514_v23, %v2515_v24  ;;  %v2676_v23 = vmul.f32 %v9243_v4, %v9222_v55  ;;  %v9393_v24 = vunpack.c.l.bf16 %v2278_v60 }
  0x6c   : > { %14495 = vst [vmem:[#allocation37_spill] sm:$0xff] %v9393_v24 }
  0x6f   : > { %8691 = vmatmul.mubr.msk.bf16.gmra.mrb[16].mxu0 %vm517_vm0, %v8804_v25  ;;  %v9301_v25 = vrot.slane %v9248_v5, %v9239_v1 }
  0x70   : > { %8694 = vmatprep.mubr.msk.bf16.mxu0 %vm517_vm0, %v8805_v26  ;;  %v9304_v26 = vrot.slane %v9248_v5, %v2124_v2 }
  0x71   : > { %14479 = vst [vmem:[#allocation21_spill] sm:$0xff] %v9301_v25 }
  0x77   : > { %8695 = vmatmul.mubr.msk.bf16.gmra.mrb[20].mxu0 %vm517_vm0, %v8806_v27  ;;  %v2806_v27 = vrot.slane %v2677_v10, 1  ;;  %v9365_v10 = vunpack.c.l.bf16 %v2268_v58  ;;  %v2804_v58 = vrot.slane %v2676_v23, 1  ;;  %v8818_v23 = vld [vmem:[%s13906_s5 + $0x38] sm:$0xff]  }
  0x78   : > { %8698 = vmatprep.mubr.msk.bf16.mxu0 %vm517_vm0, %v8807_v28  ;;  %v2807_v28 = vrot.slane %v2678_v11, 1  ;;  %v9368_v11 = vsel %vm2510_vm1, %v3098_v32, %v3099_v33  ;;  %v2803_v33 = vrot.slane %v2675_v22, 1  ;;  %8720 = vmatprep.subr.bf16.mxu1 %v8818_v23 }
  0x79   : > { %14491 = vst [vmem:[#allocation33_spill] sm:$0xff] %v9365_v10  ;;  %v2399_v39 = vmul.f32 %v9232_v62, %v9365_v10  ;;  %8721 = vmatpush3.bf16.msra.mxu1 %v8818_v23 }
  0x7a   : > { %v9355_v0 = vsel %vm2510_vm1, %v2806_v27, %v2807_v28  ;;  %v9398_v27 = vmul.f32 %v9232_v62, %v13911_v8  ;;  %v2535_v28 = vrot.slane %v2398_v63, 1 }
  0x7b   : > { %v2536_v51 = vrot.slane %v2399_v39, 1 }
  0x7c   : > { %14496 = vst [vmem:[#allocation38_spill] sm:$0xff] %v9398_v27 }
  0x7d   : > { %v9421_v45 = vsel %vm2510_vm1, %v2535_v28, %v2536_v51  ;;  %v1345_v51 = vld [vmem:[#allocation2 + $0x6c] sm:$0x1] }
  0x7e   : > { %14499 = vst [vmem:[#allocation41_spill] sm:$0xff] %v9421_v45 }
  0x7f   : > { %8699 = vmatmul.mubr.msk.bf16.gmra.mrb[24].mxu0 %vm517_vm0, %v8808_v29  ;;  %v9308_v29 = vrot.slane %v9267_v12, %v9176_v35  ;;  %v2967_v35 = vmul.f32 %v9258_v9, %v9187_v40 }
  0x80   : > { %8702 = vmatprep.mubr.msk.bf16.mxu0 %vm517_vm0, %v8809_v30  ;;  %v9312_v30 = vrot.slane %v9267_v12, %v9239_v1 }
  0x82   : > { %14480 = vst [vmem:[#allocation22_spill] sm:$0xff] %v9312_v30  ;;  %v9337_v47 = vmul.f32 %v9312_v30, %v9269_v13 }
  0x84   : > { %14486 = vst [vmem:[#allocation28_spill] sm:$0xff] %v9337_v47 }
  0x87   : > { %8703 = vmatmul.mubr.msk.bf16.gmra.mrb[28].mxu0 %vm517_vm0, %v8810_v31  ;;  %v9315_v31 = vrot.slane %v9267_v12, %v2124_v2  ;;  %v9391_v2 = vrot.slane %v9248_v5, %v9178_v36  ;;  %v2968_v36 = vmul.f32 %v9258_v9, %v9228_v61  ;;  %v9417_v9 = vsel %vm2510_vm1, %v2803_v33, %v2804_v58 }
  0x88   : > { %14498 = vst [vmem:[#allocation40_spill] sm:$0xff] %v9417_v9  ;;  %v3260_v33 = vmul.f32 %v9301_v25, %v9365_v10  ;;  %v1351_v9 = vld [vmem:[#allocation2 + $0x74] sm:$0x1] }
  0x89   : > { %14481 = vst [vmem:[#allocation23_spill] sm:$0xff] %v9315_v31  ;;  %14494 = vst [vmem:[#allocation36_spill] sm:$0xff] %v9391_v2  ;;  %v3096_v34 = vrot.slane %v2968_v36, 1  ;;  %v1348_v2 = vld [vmem:[#allocation2 + $0x70] sm:$0xf] }
 0x122   : > { %v8676_v32 = vpop.f32.mrb[0].mxu0 }
 0x123   : > { %v633_v60 = vadd.f32 %v8676_v32, %v9376_v16  ;;  %v624_v4 = vpop.f32.mrb[1].mxu0  ;;  %v3095_v32 = vrot.slane %v2967_v35, 1 }
 0x124   : > { %v625_v63 = vadd.f32 %v9376_v16, %v624_v4  ;;  %v8677_v22 = vpop.f32.mrb[2].mxu0  ;;  %v3259_v4 = vmul.f32 %v9301_v25, %v9226_v59  ;;  %v3388_v59 = vrot.slane %v3260_v33, 1 }
 0x125   : > { %v8580_v40 = vpack.c.bf16 %v633_v60, %v633_v60  ;;  %v636_v39 = vadd.f32 %v8677_v22, %v9376_v16  ;;  %v627_v8 = vpop.f32.mrb[3].mxu0  ;;  %v9427_v54 = vsel %vm2510_vm1, %v3095_v32, %v3096_v34  ;;  %v1342_v22 = vld [vmem:[#allocation2 + $0x68] sm:$0xf]  ;;  %v1327_v32 = vld [vmem:[#allocation2 + $0x58] sm:$0xf] }
 0x126   : > { %v8578_v5 = vpack.c.bf16 %v625_v63, %v625_v63  ;;  %v628_v1 = vadd.f32 %v9376_v16, %v627_v8  ;;  %14500 = vst [vmem:[#allocation42_spill] sm:$0xff] %v9427_v54  ;;  %v3387_v60 = vrot.slane %v3259_v4, 1  ;;  %v1333_v4 = vld [vmem:[#allocation2 + $0x5c] sm:$0x1] }
 0x127   : > { %v1020_v58 = vshrl.u32 %v8580_v40, 16  ;;  %v1023_v35 = vshll.u32 %v8580_v40, 16  ;;  %v8581_v36 = vpack.c.bf16 %v636_v39, %v636_v39 }
 0x128   : > { %v1004_v28 = vshrl.u32 %v8578_v5, 16  ;;  %v1007_v45 = vshll.u32 %v8578_v5, 16  ;;  %v8579_v52 = vpack.c.bf16 %v628_v1, %v628_v1  ;;  %v9448_v56 = vsel %vm2510_vm1, %v3387_v60, %v3388_v59 }
 0x129   : > { %v1022_v63 = vrot.slane %v1020_v58, 7  ;;  %v1028_v34 = vshrl.u32 %v8581_v36, 16  ;;  %v1031_v40 = vshll.u32 %v8581_v36, 16  ;;  %14506 = vst [vmem:[#allocation44_spill] sm:$0xff] %v9448_v56 }
 0x12a   : > { %v1006_v39 = vrot.slane %v1004_v28, 7  ;;  %v1012_v5 = vshrl.u32 %v8579_v52, 16  ;;  %v1015_v33 = vshll.u32 %v8579_v52, 16  ;;  %v8680_v58 = vpop.f32.mrb[4].mxu0 }
 0x12b   : > { %v1025_v10 = vor.u32 %v1023_v35, %v1022_v63  ;;  %v1026_v36 = vrot.slane %v1022_v63, 4  ;;  %v1030_v54 = vrot.slane %v1028_v34, 7  ;;  %v649_v49 = vadd.f32 %v8680_v58, %v9376_v16  ;;  %v640_v12 = vpop.f32.mrb[5].mxu0  ;;  %v1336_v63 = vld [vmem:[#allocation2 + $0x60] sm:$0xf] }
 0x12c   : > { %v1009_v17 = vor.u32 %v1007_v45, %v1006_v39  ;;  %v1010_v6 = vrot.slane %v1006_v39, 4  ;;  %v1014_v37 = vrot.slane %v1012_v5, 7  ;;  %v641_v28 = vadd.f32 %v9376_v16, %v640_v12  ;;  %v8681_v61 = vpop.f32.mrb[6].mxu0  ;;  %v1339_v34 = vld [vmem:[#allocation2 + $0x64] sm:$0x1] }
 0x12d   : > { %v1343_v52 = vsel %vm9433_vm6, %v1025_v10, %v1342_v22  ;;  %v1346_v35 = vsel %vm9443_vm7, %v1026_v36, %v1345_v51  ;;  %v1033_v60 = vor.u32 %v1031_v40, %v1030_v54  ;;  %v1034_v59 = vrot.slane %v1030_v54, 4  ;;  %v643_v58 = vpop.f32.mrb[7].mxu0  ;;  %v1366_v36 = vld [vmem:[#allocation2 + $0x88] sm:$0xf] }
 0x12e   : > { %1344 = vst [vmem:[#allocation2 + $0x68] sm:$0xf] %v1343_v52  ;;  %1347 = vst [vmem:[#allocation2 + $0x6c] sm:$0x1] %v1346_v35  ;;  %v1328_v23 = vsel %vm9433_vm6, %v1009_v17, %v1327_v32  ;;  %v1334_v45 = vsel %vm9443_vm7, %v1010_v6, %v1333_v4  ;;  %v1017_v39 = vor.u32 %v1015_v33, %v1014_v37  ;;  %v1018_v5 = vrot.slane %v1014_v37, 4 }
 0x12f   : > { %1329 = vst [vmem:[#allocation2 + $0x58] sm:$0xf] %v1328_v23  ;;  %1335 = vst [vmem:[#allocation2 + $0x5c] sm:$0x1] %v1334_v45  ;;  %v1349_v10 = vsel %vm9433_vm6, %v1033_v60, %v1348_v2  ;;  %v1352_v54 = vsel %vm9443_vm7, %v1034_v59, %v1351_v9  ;;  %v8584_v22 = vpack.c.bf16 %v649_v49, %v649_v49  ;;  %v9470_v17 = vld [vmem:[#allocation2] sm:$0xe] }
 0x130   : > { %v8582_v51 = vpack.c.bf16 %v641_v28, %v641_v28  ;;  %1350 = vst [vmem:[#allocation2 + $0x70] sm:$0xf] %v1349_v10  ;;  %1353 = vst [vmem:[#allocation2 + $0x74] sm:$0x1] %v1352_v54  ;;  %v1337_v32 = vsel %vm9433_vm6, %v1017_v39, %v1336_v63  ;;  %v1340_v6 = vsel %vm9443_vm7, %v1018_v5, %v1339_v34  ;;  %v1369_v49 = vld [vmem:[#allocation2 + $0x8c] sm:$0x1] }
 0x131   : > { %v652_v37 = vadd.f32 %v8681_v61, %v9376_v16  ;;  %v644_v40 = vadd.f32 %v9376_v16, %v643_v58  ;;  %14507 = vst [vmem:[#allocation45_spill] sm:$0xff] %v9470_v17  ;;  %1338 = vst [vmem:[#allocation2 + $0x60] sm:$0xf] %v1337_v32  ;;  %v1052_v2 = vshrl.u32 %v8584_v22, 16  ;;  %v1055_v9 = vshll.u32 %v8584_v22, 16 }
 0x132   : > { %1341 = vst [vmem:[#allocation2 + $0x64] sm:$0x1] %v1340_v6  ;;  %v1036_v4 = vshrl.u32 %v8582_v51, 16  ;;  %v1039_v33 = vshll.u32 %v8582_v51, 16  ;;  %v8684_v52 = vpop.f32.mrb[8].mxu0  ;;  %v9474_v35 = vmul.f32 %v9344_v50, %v9269_v13  ;;  %v9478_v61 = vmul.f32 %v9344_v50, %v9393_v24 }
 0x133   : > { %v8585_v12 = vpack.c.bf16 %v652_v37, %v652_v37  ;;  %v8583_v28 = vpack.c.bf16 %v644_v40, %v644_v40  ;;  %v1054_v60 = vrot.slane %v1052_v2, 7  ;;  %v1354_v63 = vld [vmem:[#allocation2 + $0x78] sm:$0xf]  ;;  %v1357_v34 = vld [vmem:[#allocation2 + $0x7c] sm:$0x1]  ;;  %v665_v58 = vadd.f32 %v8684_v52, %v9376_v16  ;;  %v656_v23 = vpop.f32.mrb[9].mxu0 }
 0x134   : > { %14508 = vst [vmem:[#allocation46_spill] sm:$0xff] %v9474_v35  ;;  %14509 = vst [vmem:[#allocation47_spill] sm:$0xff] %v9478_v61  ;;  %v1038_v59 = vrot.slane %v1036_v4, 7  ;;  %v8685_v22 = vpop.f32.mrb[10].mxu0  ;;  %v1444_v35 = vld [vmem:[#allocation2 + $0x110] sm:$0xf] }
 0x135   : > { %v1060_v39 = vshrl.u32 %v8585_v12, 16  ;;  %v1063_v5 = vshll.u32 %v8585_v12, 16  ;;  %v1044_v10 = vshrl.u32 %v8583_v28, 16  ;;  %v1047_v54 = vshll.u32 %v8583_v28, 16  ;;  %v1539_v51 = vld [vmem:[#allocation2 + $0x68] sm:$0xf] }
 0x136   : > { %v2271_v32 = vld [vmem:[#allocation2 + $0x6c] sm:$0x1]  ;;  %v1057_v6 = vor.u32 %v1055_v9, %v1054_v60  ;;  %v1058_v37 = vrot.slane %v1054_v60, 4  ;;  %v1041_v40 = vor.u32 %v1039_v33, %v1038_v59  ;;  %v1042_v13 = vrot.slane %v1038_v59, 4  ;;  %v1537_v24 = vld [vmem:[#allocation2 + $0x58] sm:$0xf] }
 0x137   : > { %v9482_v2 = vunpack.c.l.bf16 %v1539_v51  ;;  %v9484_v4 = vunpack.c.l.bf16 %v2271_v32  ;;  %v2269_v52 = vld [vmem:[#allocation2 + $0x5c] sm:$0x1]  ;;  %v1062_v56 = vrot.slane %v1060_v39, 7  ;;  %v1046_v45 = vrot.slane %v1044_v10, 7  ;;  %v1540_v28 = vld [vmem:[#allocation2 + $0x70] sm:$0xf] }
 0x138   : > { %v9486_v55 = vunpack.c.l.bf16 %v1537_v24  ;;  %v9488_v12 = vunpack.c.l.bf16 %v2269_v52  ;;  %v2272_v57 = vld [vmem:[#allocation2 + $0x74] sm:$0x1]  ;;  %v1367_v9 = vsel %vm9433_vm6, %v1057_v6, %v1366_v36  ;;  %v1370_v33 = vsel %vm9443_vm7, %v1058_v37, %v1369_v49  ;;  %v659_v60 = vpop.f32.mrb[11].mxu0  ;;  %v1538_v39 = vld [vmem:[#allocation2 + $0x60] sm:$0xf] }
 0x139   : > { %14510 = vst [vmem:[#allocation48_spill] sm:$0xff] %v9482_v2  ;;  %14511 = vst [vmem:[#allocation49_spill] sm:$0xff] %v9484_v4  ;;  %v9494_v59 = vunpack.c.l.bf16 %v1540_v28  ;;  %v9496_v51 = vunpack.c.l.bf16 %v2272_v57  ;;  %v2270_v32 = vld [vmem:[#allocation2 + $0x64] sm:$0x1]  ;;  %v1355_v24 = vsel %vm9433_vm6, %v1041_v40, %v1354_v63  ;;  %v1358_v10 = vsel %vm9443_vm7, %v1042_v13, %v1357_v34  ;;  %v1375_v52 = vld [vmem:[#allocation2 + $0x94] sm:$0x1] }
 0x13a   : > { %14512 = vst [vmem:[#allocation50_spill] sm:$0xff] %v9486_v55  ;;  %14513 = vst [vmem:[#allocation51_spill] sm:$0xff] %v9488_v12  ;;  %v9502_v36 = vunpack.c.l.bf16 %v1538_v39  ;;  %v9504_v6 = vunpack.c.l.bf16 %v2270_v32  ;;  %v1065_v49 = vor.u32 %v1063_v5, %v1062_v56  ;;  %v1066_v57 = vrot.slane %v1062_v56, 4  ;;  %v1360_v37 = vld [vmem:[#allocation2 + $0x80] sm:$0xf]  ;;  %v8688_v63 = vpop.f32.mrb[12].mxu0 }
 0x13b   : > { %14514 = vst [vmem:[#allocation52_spill] sm:$0xff] %v9494_v59  ;;  %14515 = vst [vmem:[#allocation53_spill] sm:$0xff] %v9496_v51  ;;  %v1363_v28 = vld [vmem:[#allocation2 + $0x84] sm:$0x1]  ;;  %v1049_v51 = vor.u32 %v1047_v54, %v1046_v45  ;;  %v657_v59 = vadd.f32 %v9376_v16, %v656_v23  ;;  %v668_v40 = vadd.f32 %v8685_v22, %v9376_v16  ;;  %v672_v5 = vpop.f32.mrb[13].mxu0 }
 0x13c   : > { %1368 = vst [vmem:[#allocation2 + $0x88] sm:$0xf] %v1367_v9  ;;  %1371 = vst [vmem:[#allocation2 + $0x8c] sm:$0x1] %v1370_v33  ;;  %v1050_v9 = vrot.slane %v1046_v45, 4  ;;  %v8588_v33 = vpack.c.bf16 %v665_v58, %v665_v58  ;;  %v1373_v13 = vsel %vm9433_vm6, %v1065_v49, %v1372_v15  ;;  %v1376_v34 = vsel %vm9443_vm7, %v1066_v57, %v1375_v52  ;;  %v8689_v54 = vpop.f32.mrb[14].mxu0 }
 0x13d   : > { %14516 = vst [vmem:[#allocation54_spill] sm:$0xff] %v9502_v36  ;;  %14517 = vst [vmem:[#allocation55_spill] sm:$0xff] %v9504_v6  ;;  %v660_v39 = vadd.f32 %v9376_v16, %v659_v60  ;;  %v1361_v56 = vsel %vm9433_vm6, %v1049_v51, %v1360_v37  ;;  %v8586_v15 = vpack.c.bf16 %v657_v59, %v657_v59  ;;  %v675_v60 = vpop.f32.mrb[15].mxu0  ;;  %v1390_v52 = vld [vmem:[#allocation2 + $0xb8] sm:$0xf] }
 0x13e   : > { %1356 = vst [vmem:[#allocation2 + $0x78] sm:$0xf] %v1355_v24  ;;  %1359 = vst [vmem:[#allocation2 + $0x7c] sm:$0x1] %v1358_v10  ;;  %v1364_v58 = vsel %vm9443_vm7, %v1050_v9, %v1363_v28  ;;  %v1084_v23 = vshrl.u32 %v8588_v33, 16  ;;  %v1087_v45 = vshll.u32 %v8588_v33, 16  ;;  %v8589_v32 = vpack.c.bf16 %v668_v40, %v668_v40 }
 0x13f   : > { %1374 = vst [vmem:[#allocation2 + $0x90] sm:$0xf] %v1373_v13  ;;  %1377 = vst [vmem:[#allocation2 + $0x94] sm:$0x1] %v1376_v34  ;;  %v8587_v24 = vpack.c.bf16 %v660_v39, %v660_v39  ;;  %v681_v22 = vadd.f32 %v8688_v63, %v9376_v16  ;;  %v1393_v49 = vld [vmem:[#allocation2 + $0xbc] sm:$0x1]  ;;  %v673_v57 = vadd.f32 %v9376_v16, %v672_v5 }
 0x140   : > { %1362 = vst [vmem:[#allocation2 + $0x80] sm:$0xf] %v1361_v56  ;;  %1365 = vst [vmem:[#allocation2 + $0x84] sm:$0x1] %v1364_v58  ;;  %v1086_v10 = vrot.slane %v1084_v23, 7  ;;  %v9520_v51 = vadd.f32 %v8689_v54, %v9376_v16  ;;  %v9523_v37 = vadd.f32 %v9376_v16, %v675_v60  ;;  %v1068_v33 = vshrl.u32 %v8586_v15, 16 }
 0x141   : > { %v1071_v59 = vshll.u32 %v8586_v15, 16  ;;  %v9525_v13 = vpack.c.bf16 %v681_v22, %v681_v22  ;;  %v9529_v63 = vmul.f32 %v9195_v42, %v9486_v55  ;;  %v1378_v15 = vld [vmem:[#allocation2 + $0xa8] sm:$0xf]  ;;  %v1092_v22 = vshrl.u32 %v8589_v32, 16 }
 0x142   : > { %v1089_v56 = vor.u32 %v1087_v45, %v1086_v10  ;;  %v1090_v58 = vrot.slane %v1086_v10, 4  ;;  %v1070_v60 = vrot.slane %v1068_v33, 7  ;;  %v8692_v42 = vpop.f32.mrb[16].mxu0  ;;  %v1396_v33 = vld [vmem:[#allocation2 + $0xc0] sm:$0xf]  ;;  %v3261_v8 = vmul.f32 %v9301_v25, %v9486_v55 }
 0x143   : > { %v1543_v28 = vld [vmem:[#allocation2 + $0x88] sm:$0xf]  ;;  %v2275_v9 = vld [vmem:[#allocation2 + $0x8c] sm:$0x1]  ;;  %v3262_v1 = vmul.f32 %v9301_v25, %v9488_v12 }
 0x144   : > { %v9531_v34 = vunpack.c.l.bf16 %v1543_v28  ;;  %v9533_v40 = vunpack.c.l.bf16 %v2275_v9  ;;  %v1391_v7 = vsel %vm9433_vm6, %v1089_v56, %v1390_v52  ;;  %v1394_v28 = vsel %vm9443_vm7, %v1090_v58, %v1393_v49 }
 0x145   : > { %v1541_v39 = vld [vmem:[#allocation2 + $0x78] sm:$0xf]  ;;  %v2273_v5 = vld [vmem:[#allocation2 + $0x7c] sm:$0x1]  ;;  %v1095_v9 = vshll.u32 %v8589_v32, 16  ;;  %v1073_v10 = vor.u32 %v1071_v59, %v1070_v60  ;;  %v1079_v32 = vshll.u32 %v8587_v24, 16 }
 0x146   : > { %14518 = vst [vmem:[#allocation56_spill] sm:$0xff] %v9531_v34  ;;  %14519 = vst [vmem:[#allocation57_spill] sm:$0xff] %v9533_v40  ;;  %v9535_v23 = vunpack.c.l.bf16 %v1541_v39  ;;  %v9537_v54 = vunpack.c.l.bf16 %v2273_v5  ;;  %v1381_v34 = vld [vmem:[#allocation2 + $0xac] sm:$0x1]  ;;  %v1076_v40 = vshrl.u32 %v8587_v24, 16  ;;  %v1074_v39 = vrot.slane %v1070_v60, 4 }
 0x147   : > { %v1544_v17 = vld [vmem:[#allocation2 + $0x90] sm:$0xf]  ;;  %v2276_v45 = vld [vmem:[#allocation2 + $0x94] sm:$0x1]  ;;  %1392 = vst [vmem:[#allocation2 + $0xb8] sm:$0xf] %v1391_v7  ;;  %v1379_v7 = vsel %vm9433_vm6, %v1073_v10, %v1378_v15 }
 0x148   : > { %14520 = vst [vmem:[#allocation58_spill] sm:$0xff] %v9535_v23  ;;  %14521 = vst [vmem:[#allocation59_spill] sm:$0xff] %v9537_v54  ;;  %v1094_v5 = vrot.slane %v1092_v22, 7  ;;  %v1399_v54 = vld [vmem:[#allocation2 + $0xc4] sm:$0x1]  ;;  %v8590_v23 = vpack.c.bf16 %v673_v57, %v673_v57  ;;  %v9543_v47 = vunpack.c.l.bf16 %v1544_v17  ;;  %v9545_v52 = vunpack.c.l.bf16 %v2276_v45  ;;  %v688_v17 = vpop.f32.mrb[17].mxu0 }
 0x149   : > { %1395 = vst [vmem:[#allocation2 + $0xbc] sm:$0x1] %v1394_v28  ;;  %v1542_v56 = vld [vmem:[#allocation2 + $0x80] sm:$0xf]  ;;  %v2274_v49 = vld [vmem:[#allocation2 + $0x84] sm:$0x1]  ;;  %v1382_v59 = vsel %vm9443_vm7, %v1074_v39, %v1381_v34 }
 0x14a   : > { %14522 = vst [vmem:[#allocation60_spill] sm:$0xff] %v9543_v47  ;;  %14523 = vst [vmem:[#allocation61_spill] sm:$0xff] %v9545_v52  ;;  %v1078_v58 = vrot.slane %v1076_v40, 7  ;;  %v9547_v3 = vunpack.c.l.bf16 %v1542_v56  ;;  %v9549_v44 = vunpack.c.l.bf16 %v2274_v49  ;;  %v1384_v60 = vld [vmem:[#allocation2 + $0xb0] sm:$0xf]  ;;  %v1097_v22 = vor.u32 %v1095_v9, %v1094_v5  ;;  %v8693_v24 = vpop.f32.mrb[18].mxu0 }
 0x14b   : > { %v1387_v57 = vld [vmem:[#allocation2 + $0xb4] sm:$0x1]  ;;  %1380 = vst [vmem:[#allocation2 + $0xa8] sm:$0xf] %v1379_v7  ;;  %1383 = vst [vmem:[#allocation2 + $0xac] sm:$0x1] %v1382_v59  ;;  %v697_v59 = vadd.f32 %v8692_v42, %v9376_v16 }
 0x14c   : > { %14524 = vst [vmem:[#allocation62_spill] sm:$0xff] %v9547_v3  ;;  %14525 = vst [vmem:[#allocation63_spill] sm:$0xff] %v9549_v44  ;;  %v1098_v28 = vrot.slane %v1094_v5, 4  ;;  %v1081_v45 = vor.u32 %v1079_v32, %v1078_v58  ;;  %v1082_v40 = vrot.slane %v1078_v58, 4  ;;  %v1116_v56 = vshrl.u32 %v9525_v13, 16  ;;  %v691_v15 = vpop.f32.mrb[19].mxu0 }
 0x14d   : > { %v1119_v49 = vshll.u32 %v9525_v13, 16  ;;  %v1100_v52 = vshrl.u32 %v8590_v23, 16  ;;  %v1103_v47 = vshll.u32 %v8590_v23, 16  ;;  %v1397_v34 = vsel %vm9433_vm6, %v1097_v22, %v1396_v33  ;;  %v1414_v5 = vld [vmem:[#allocation2 + $0xd8] sm:$0xf] }
 0x14e   : > { %v1400_v10 = vsel %vm9443_vm7, %v1098_v28, %v1399_v54  ;;  %v1385_v9 = vsel %vm9433_vm6, %v1081_v45, %v1384_v60  ;;  %v1388_v39 = vsel %vm9443_vm7, %v1082_v40, %v1387_v57  ;;  %1398 = vst [vmem:[#allocation2 + $0xc0] sm:$0xf] %v1397_v34  ;;  %v1118_v13 = vrot.slane %v1116_v56, 7  ;;  %v1549_v54 = vld [vmem:[#allocation2 + $0xb8] sm:$0xf]  ;;  %v8696_v56 = vpop.f32.mrb[20].mxu0 }
 0x14f   : > { %1401 = vst [vmem:[#allocation2 + $0xc4] sm:$0x1] %v1400_v10  ;;  %1386 = vst [vmem:[#allocation2 + $0xb0] sm:$0xf] %v1385_v9  ;;  %v1102_v23 = vrot.slane %v1100_v52, 7  ;;  %v8593_v58 = vpack.c.bf16 %v9520_v51, %v9520_v51  ;;  %v9569_v33 = vpack.c.bf16 %v9523_v37, %v9523_v37  ;;  %v689_v60 = vadd.f32 %v9376_v16, %v688_v17  ;;  %v9581_v17 = vpop.f32.mrb[21].mxu0 }
 0x150   : > { %1389 = vst [vmem:[#allocation2 + $0xb4] sm:$0x1] %v1388_v39  ;;  %v2281_v32 = vld [vmem:[#allocation2 + $0xbc] sm:$0x1]  ;;  %v5030_v7 = vld [vmem:[#allocation2 + $0xb8] sm:$0xe]  ;;  %v700_v57 = vadd.f32 %v8693_v24, %v9376_v16  ;;  %v692_v22 = vadd.f32 %v9376_v16, %v691_v15  ;;  %v9575_v28 = vunpack.c.l.bf16 %v1549_v54  ;;  %v1121_v45 = vor.u32 %v1119_v49, %v1118_v13 }
 0x151   : > { %v9577_v52 = vunpack.c.l.bf16 %v2281_v32  ;;  %v9579_v51 = vunpack.c.l.bf16 %v5030_v7  ;;  %v1417_v37 = vld [vmem:[#allocation2 + $0xdc] sm:$0x1]  ;;  %v1402_v40 = vld [vmem:[#allocation2 + $0xc8] sm:$0xf]  ;;  %v1122_v34 = vrot.slane %v1118_v13, 4  ;;  %v1105_v10 = vor.u32 %v1103_v47, %v1102_v23 }
 0x152   : > { %14526 = vst [vmem:[#allocation64_spill] sm:$0xff] %v9575_v28  ;;  %v1106_v9 = vrot.slane %v1102_v23, 4  ;;  %v1405_v42 = vld [vmem:[#allocation2 + $0xcc] sm:$0x1]  ;;  %v1124_v39 = vshrl.u32 %v8593_v58, 16  ;;  %v1415_v15 = vsel %vm9433_vm6, %v1121_v45, %v1414_v5  ;;  %v1127_v54 = vshll.u32 %v8593_v58, 16 }
 0x153   : > { %14527 = vst [vmem:[#allocation65_spill] sm:$0xff] %v9577_v52  ;;  %14528 = vst [vmem:[#allocation66_spill] sm:$0xff] %v9579_v51  ;;  %v1547_v24 = vld [vmem:[#allocation2 + $0xa8] sm:$0xf]  ;;  %v2279_v44 = vld [vmem:[#allocation2 + $0xac] sm:$0x1]  ;;  %v9586_v7 = vpack.c.bf16 %v697_v59, %v697_v59  ;;  %v1418_v47 = vsel %vm9443_vm7, %v1122_v34, %v1417_v37  ;;  %v1403_v13 = vsel %vm9433_vm6, %v1105_v10, %v1402_v40 }
 0x154   : > { %v1108_v32 = vshrl.u32 %v9569_v33, 16  ;;  %v9588_v49 = vunpack.c.l.bf16 %v1547_v24  ;;  %v9590_v3 = vunpack.c.l.bf16 %v2279_v44  ;;  %1416 = vst [vmem:[#allocation2 + $0xd8] sm:$0xf] %v1415_v15  ;;  %v1420_v23 = vld [vmem:[#allocation2 + $0xe0] sm:$0xf]  ;;  %v9596_v51 = vpop.f32.mrb[22].mxu0  ;;  %v1406_v5 = vsel %vm9443_vm7, %v1106_v9, %v1405_v42 }
 0x155   : > { %1419 = vst [vmem:[#allocation2 + $0xdc] sm:$0x1] %v1418_v47  ;;  %1404 = vst [vmem:[#allocation2 + $0xc8] sm:$0xf] %v1403_v13  ;;  %v1126_v58 = vrot.slane %v1124_v39, 7  ;;  %v1111_v44 = vshll.u32 %v9569_v33, 16  ;;  %v9603_v40 = vpack.c.bf16 %v689_v60, %v689_v60  ;;  %v9605_v10 = vpack.c.bf16 %v700_v57, %v700_v57 }
 0x156   : > { %14529 = vst [vmem:[#allocation67_spill] sm:$0xff] %v9588_v49  ;;  %14530 = vst [vmem:[#allocation68_spill] sm:$0xff] %v9590_v3  ;;  %v1423_v59 = vld [vmem:[#allocation2 + $0xe4] sm:$0x1]  ;;  %v1110_v45 = vrot.slane %v1108_v32, 7  ;;  %v9601_v24 = vpop.f32.mrb[23].mxu0  ;;  %v9607_v47 = vpack.c.bf16 %v692_v22, %v692_v22  ;;  %v713_v13 = vadd.f32 %v8696_v56, %v9376_v16 }
 0x157   : > { %v1550_v15 = vld [vmem:[#allocation2 + $0xc0] sm:$0xf]  ;;  %v2282_v37 = vld [vmem:[#allocation2 + $0xc4] sm:$0x1]  ;;  %1407 = vst [vmem:[#allocation2 + $0xcc] sm:$0x1] %v1406_v5  ;;  %v1129_v27 = vor.u32 %v1127_v54, %v1126_v58 }
 0x158   : > { %v5031_v34 = vld [vmem:[#allocation2 + $0xc0] sm:$0xe]  ;;  %v9610_v9 = vunpack.c.l.bf16 %v1550_v15  ;;  %v9612_v42 = vunpack.c.l.bf16 %v2282_v37  ;;  %v1548_v33 = vld [vmem:[#allocation2 + $0xb0] sm:$0xf]  ;;  %v2280_v32 = vld [vmem:[#allocation2 + $0xb4] sm:$0x1]  ;;  %v1113_v37 = vor.u32 %v1111_v44, %v1110_v45 }
 0x159   : > { %v9614_v39 = vunpack.c.l.bf16 %v5031_v34  ;;  %v5029_v52 = vld [vmem:[#allocation2 + $0xb0] sm:$0xe]  ;;  %v9616_v43 = vunpack.c.l.bf16 %v1548_v33  ;;  %v9618_v60 = vunpack.c.l.bf16 %v2280_v32  ;;  %v1130_v22 = vrot.slane %v1126_v58, 4  ;;  %v9622_v56 = vpop.f32.mrb[24].mxu0  ;;  %v1438_v58 = vld [vmem:[#allocation2 + $0x108] sm:$0xf] }
 0x15a   : > { %14531 = vst [vmem:[#allocation69_spill] sm:$0xff] %v9610_v9  ;;  %14532 = vst [vmem:[#allocation70_spill] sm:$0xff] %v9612_v42  ;;  %v9620_v57 = vunpack.c.l.bf16 %v5029_v52  ;;  %v1408_v5 = vld [vmem:[#allocation2 + $0xd0] sm:$0xf]  ;;  %v1421_v15 = vsel %vm9433_vm6, %v1129_v27, %v1420_v23  ;;  %v1114_v34 = vrot.slane %v1110_v45, 4  ;;  %v9627_v42 = vpop.f32.mrb[25].mxu0 }
 0x15b   : > { %14533 = vst [vmem:[#allocation71_spill] sm:$0xff] %v9614_v39  ;;  %14534 = vst [vmem:[#allocation72_spill] sm:$0xff] %v9616_v43  ;;  %v1148_v39 = vshrl.u32 %v9586_v7, 16  ;;  %v1424_v54 = vsel %vm9443_vm7, %v1130_v22, %v1423_v59  ;;  %v1151_v52 = vshll.u32 %v9586_v7, 16  ;;  %v1132_v33 = vshrl.u32 %v9603_v40, 16  ;;  %v9634_v9 = vpop.f32.mrb[26].mxu0 }
 0x15c   : > { %14535 = vst [vmem:[#allocation73_spill] sm:$0xff] %v9618_v60  ;;  %14536 = vst [vmem:[#allocation74_spill] sm:$0xff] %v9620_v57  ;;  %v1135_v32 = vshll.u32 %v9603_v40, 16  ;;  %v1553_v27 = vld [vmem:[#allocation2 + $0xd8] sm:$0xf]  ;;  %v1409_v45 = vsel %vm9433_vm6, %v1113_v37, %v1408_v5  ;;  %v1412_v44 = vsel %vm9443_vm7, %v1114_v34, %v1411_v53  ;;  %v1156_v7 = vshrl.u32 %v9605_v10, 16 }
 0x15d   : > { %1422 = vst [vmem:[#allocation2 + $0xe0] sm:$0xf] %v1421_v15  ;;  %v5034_v23 = vld [vmem:[#allocation2 + $0xd8] sm:$0xe]  ;;  %1425 = vst [vmem:[#allocation2 + $0xe4] sm:$0x1] %v1424_v54  ;;  %v9641_v22 = vunpack.c.l.bf16 %v1553_v27  ;;  %v9645_v54 = vpack.c.bf16 %v713_v13, %v713_v13  ;;  %v705_v5 = vadd.f32 %v9376_v16, %v9581_v17 }
 0x15e   : > { %v1150_v15 = vrot.slane %v1148_v39, 7  ;;  %v1441_v59 = vld [vmem:[#allocation2 + $0x10c] sm:$0x1]  ;;  %v2285_v57 = vld [vmem:[#allocation2 + $0xdc] sm:$0x1]  ;;  %v9643_v60 = vunpack.c.l.bf16 %v5034_v23  ;;  %v1134_v13 = vrot.slane %v1132_v33, 7 }
 0x15f   : > { %14537 = vst [vmem:[#allocation75_spill] sm:$0xff] %v9641_v22  ;;  %v1551_v40 = vld [vmem:[#allocation2 + $0xc8] sm:$0xf]  ;;  %1410 = vst [vmem:[#allocation2 + $0xd0] sm:$0xf] %v1409_v45  ;;  %v9649_v37 = vunpack.c.l.bf16 %v2285_v57  ;;  %v1159_v57 = vshll.u32 %v9605_v10, 16 }
 0x160   : > { %14538 = vst [vmem:[#allocation76_spill] sm:$0xff] %v9643_v60  ;;  %v5032_v38 = vld [vmem:[#allocation2 + $0xc8] sm:$0xe]  ;;  %1413 = vst [vmem:[#allocation2 + $0xd4] sm:$0x1] %v1412_v44  ;;  %v9651_v53 = vunpack.c.l.bf16 %v1551_v40  ;;  %v1153_v27 = vor.u32 %v1151_v52, %v1150_v15  ;;  %v9655_v60 = vpop.f32.mrb[27].mxu0 }
 0x161   : > { %14539 = vst [vmem:[#allocation77_spill] sm:$0xff] %v9649_v37  ;;  %v2283_v39 = vld [vmem:[#allocation2 + $0xcc] sm:$0x1]  ;;  %v9653_v34 = vunpack.c.l.bf16 %v5032_v38  ;;  %v1426_v22 = vld [vmem:[#allocation2 + $0xf8] sm:$0xf]  ;;  %v1154_v45 = vrot.slane %v1150_v15, 4 }
 0x162   : > { %14540 = vst [vmem:[#allocation78_spill] sm:$0xff] %v9651_v53  ;;  %v1429_v23 = vld [vmem:[#allocation2 + $0xfc] sm:$0x1]  ;;  %v9657_v61 = vunpack.c.l.bf16 %v2283_v39  ;;  %v1158_v44 = vrot.slane %v1156_v7, 7  ;;  %v1439_v17 = vsel %vm9433_vm6, %v1153_v27, %v1438_v58  ;;  %v1447_v40 = vld [vmem:[#allocation2 + $0x114] sm:$0x1]  ;;  %v1137_v39 = vor.u32 %v1135_v32, %v1134_v13 }
 0x163   : > { %14541 = vst [vmem:[#allocation79_spill] sm:$0xff] %v9653_v34  ;;  %v1140_v38 = vshrl.u32 %v9607_v47, 16  ;;  %v1143_v52 = vshll.u32 %v9607_v47, 16  ;;  %1440 = vst [vmem:[#allocation2 + $0x108] sm:$0xf] %v1439_v17  ;;  %v1442_v37 = vsel %vm9443_vm7, %v1154_v45, %v1441_v59  ;;  %v1138_v34 = vrot.slane %v1134_v13, 4 }
 0x164   : > { %14542 = vst [vmem:[#allocation80_spill] sm:$0xff] %v9657_v61  ;;  %v1162_v15 = vrot.slane %v1158_v44, 4  ;;  %v1432_v33 = vld [vmem:[#allocation2 + $0x100] sm:$0xf]  ;;  %v9666_v7 = vpop.f32.mrb[28].mxu0  ;;  %v1161_v58 = vor.u32 %v1159_v57, %v1158_v44  ;;  %v1180_v10 = vshrl.u32 %v9645_v54, 16  ;;  %v1427_v32 = vsel %vm9433_vm6, %v1137_v39, %v1426_v22 }
 0x165   : > { %v1554_v61 = vld [vmem:[#allocation2 + $0xe0] sm:$0xf]  ;;  %1443 = vst [vmem:[#allocation2 + $0x10c] sm:$0x1] %v1442_v37  ;;  %v1142_v27 = vrot.slane %v1140_v38, 7  ;;  %v1183_v53 = vshll.u32 %v9645_v54, 16  ;;  %v1430_v59 = vsel %vm9443_vm7, %v1138_v34, %v1429_v23  ;;  %v8598_v39 = vpack.c.bf16 %v705_v5, %v705_v5 }
 0x166   : > { %v9670_v3 = vpop.f32.mrb[29].mxu0  ;;  %v9672_v47 = vunpack.c.l.bf16 %v1554_v61  ;;  %v2286_v17 = vld [vmem:[#allocation2 + $0xe4] sm:$0x1]  ;;  %v1448_v37 = vsel %vm9443_vm7, %v1162_v15, %v1447_v40  ;;  %v1552_v54 = vld [vmem:[#allocation2 + $0xd0] sm:$0xf]  ;;  %v1445_v61 = vsel %vm9433_vm6, %v1161_v58, %v1444_v35  ;;  %v716_v58 = vadd.f32 %v9596_v51, %v9376_v16 }
 0x167   : > { %v1435_v45 = vld [vmem:[#allocation2 + $0x104] sm:$0x1]  ;;  %v9680_v13 = vpop.f32.mrb[30].mxu0  ;;  %v9682_v44 = vunpack.c.l.bf16 %v2286_v17  ;;  %v2284_v57 = vld [vmem:[#allocation2 + $0xd4] sm:$0x1]  ;;  %v1145_v22 = vor.u32 %v1143_v52, %v1142_v27  ;;  %v9686_v34 = vunpack.c.l.bf16 %v1552_v54  ;;  %v1146_v15 = vrot.slane %v1142_v27, 4 }
 0x168   : > { %14543 = vst [vmem:[#allocation81_spill] sm:$0xff] %v9672_v47  ;;  %v5033_v38 = vld [vmem:[#allocation2 + $0xd0] sm:$0xe]  ;;  %1428 = vst [vmem:[#allocation2 + $0xf8] sm:$0xf] %v1427_v32  ;;  %v9688_v23 = vunpack.c.l.bf16 %v2284_v57  ;;  %v9692_v17 = vpop.f32.mrb[31].mxu0  ;;  %v708_v27 = vadd.f32 %v9376_v16, %v9601_v24  ;;  %v8601_v51 = vpack.c.bf16 %v716_v58, %v716_v58 }
 0x169   : > { %14544 = vst [vmem:[#allocation82_spill] sm:$0xff] %v9682_v44  ;;  %1431 = vst [vmem:[#allocation2 + $0xfc] sm:$0x1] %v1430_v59  ;;  %v9690_v40 = vunpack.c.l.bf16 %v5033_v38  ;;  %v1433_v32 = vsel %vm9433_vm6, %v1145_v22, %v1432_v33  ;;  %v1182_v59 = vrot.slane %v1180_v10, 7  ;;  %v1164_v44 = vshrl.u32 %v8598_v39, 16 }
 0x16a   : > { %1449 = vst [vmem:[#allocation2 + $0x114] sm:$0x1] %v1448_v37  ;;  %14545 = vst [vmem:[#allocation83_spill] sm:$0xff] %v9686_v34  ;;  %v1167_v47 = vshll.u32 %v8598_v39, 16  ;;  %v1436_v35 = vsel %vm9443_vm7, %v1146_v15, %v1435_v45  ;;  %v1462_v5 = vld [vmem:[#allocation2 + $0x128] sm:$0xf]  ;;  %v729_v37 = vadd.f32 %v9622_v56, %v9376_v16  ;;  %v721_v45 = vadd.f32 %v9376_v16, %v9627_v42 }
 0x16b   : > { %14546 = vst [vmem:[#allocation84_spill] sm:$0xff] %v9688_v23  ;;  %14547 = vst [vmem:[#allocation85_spill] sm:$0xff] %v9690_v40  ;;  %v1465_v52 = vld [vmem:[#allocation2 + $0x12c] sm:$0x1]  ;;  %v1559_v54 = vld [vmem:[#allocation2 + $0x108] sm:$0xf]  ;;  %v1185_v10 = vor.u32 %v1183_v53, %v1182_v59  ;;  %v8599_v15 = vpack.c.bf16 %v708_v27, %v708_v27  ;;  %v732_v27 = vadd.f32 %v9634_v9, %v9376_v16 }
 0x16c   : > { %1446 = vst [vmem:[#allocation2 + $0x110] sm:$0xf] %v1445_v61  ;;  %1434 = vst [vmem:[#allocation2 + $0x100] sm:$0xf] %v1433_v32  ;;  %v5040_v33 = vld [vmem:[#allocation2 + $0x108] sm:$0xe]  ;;  %v9706_v61 = vunpack.c.l.bf16 %v1559_v54  ;;  %v9718_v58 = vpack.c.bf16 %v721_v45, %v721_v45 }
 0x16d   : > { %1437 = vst [vmem:[#allocation2 + $0x104] sm:$0x1] %v1436_v35  ;;  %v1186_v57 = vrot.slane %v1182_v59, 4  ;;  %v1166_v38 = vrot.slane %v1164_v44, 7  ;;  %v2291_v22 = vld [vmem:[#allocation2 + $0x10c] sm:$0x1]  ;;  %v9708_v39 = vunpack.c.l.bf16 %v5040_v33  ;;  %v1463_v56 = vsel %vm9433_vm6, %v1185_v10, %v1462_v5 }
 0x16e   : > { %14548 = vst [vmem:[#allocation86_spill] sm:$0xff] %v9706_v61  ;;  %v9710_v24 = vunpack.c.l.bf16 %v2291_v22  ;;  %v1450_v44 = vld [vmem:[#allocation2 + $0x118] sm:$0xf]  ;;  %v1453_v59 = vld [vmem:[#allocation2 + $0x11c] sm:$0x1]  ;;  %v9716_v33 = vpack.c.bf16 %v729_v37, %v729_v37  ;;  %v724_v5 = vadd.f32 %v9376_v16, %v9655_v60  ;;  %v1188_v9 = vshrl.u32 %v8601_v51, 16 }
 0x16f   : > { %14549 = vst [vmem:[#allocation87_spill] sm:$0xff] %v9708_v39  ;;  %v1466_v53 = vsel %vm9443_vm7, %v1186_v57, %v1465_v52  ;;  %v1169_v32 = vor.u32 %v1167_v47, %v1166_v38  ;;  %v1557_v35 = vld [vmem:[#allocation2 + $0xf8] sm:$0xf]  ;;  %1464 = vst [vmem:[#allocation2 + $0x128] sm:$0xf] %v1463_v56  ;;  %v1170_v56 = vrot.slane %v1166_v38, 4 }
 0x170   : > { %14550 = vst [vmem:[#allocation88_spill] sm:$0xff] %v9710_v24  ;;  %v2289_v42 = vld [vmem:[#allocation2 + $0xfc] sm:$0x1]  ;;  %1467 = vst [vmem:[#allocation2 + $0x12c] sm:$0x1] %v1466_v53  ;;  %v9724_v10 = vunpack.c.l.bf16 %v1557_v35  ;;  %v1191_v35 = vshll.u32 %v8601_v51, 16 }
 0x171   : > { %v2292_v54 = vld [vmem:[#allocation2 + $0x114] sm:$0x1]  ;;  %v9726_v47 = vunpack.c.l.bf16 %v2289_v42  ;;  %v1451_v45 = vsel %vm9433_vm6, %v1169_v32, %v1450_v44  ;;  %v1454_v60 = vsel %vm9443_vm7, %v1170_v56, %v1453_v59  ;;  %v1172_v42 = vshrl.u32 %v8599_v15, 16  ;;  %v1456_v56 = vld [vmem:[#allocation2 + $0x120] sm:$0xf] }
 0x172   : > { %14551 = vst [vmem:[#allocation89_spill] sm:$0xff] %v9724_v10  ;;  %v9728_v57 = vunpack.c.l.bf16 %v2292_v54  ;;  %1452 = vst [vmem:[#allocation2 + $0x118] sm:$0xf] %v1451_v45  ;;  %v9738_v54 = vpack.c.bf16 %v732_v27, %v732_v27  ;;  %v1175_v32 = vshll.u32 %v8599_v15, 16  ;;  %v1215_v51 = vshll.u32 %v9716_v33, 16  ;;  %v14617_v34 = vld [vmem:[#allocation15_spill] sm:$0xff] }
 0x173   : > { %14552 = vst [vmem:[#allocation90_spill] sm:$0xff] %v9726_v47  ;;  %v1560_v52 = vld [vmem:[#allocation2 + $0x110] sm:$0xf]  ;;  %v1558_v39 = vld [vmem:[#allocation2 + $0x100] sm:$0xf]  ;;  %v1174_v45 = vrot.slane %v1172_v42, 7  ;;  %v9750_v15 = vpack.c.bf16 %v724_v5, %v724_v5  ;;  %v745_v42 = vadd.f32 %v9666_v7, %v9376_v16 }
 0x174   : > { %14553 = vst [vmem:[#allocation91_spill] sm:$0xff] %v9728_v57  ;;  %v5041_v22 = vld [vmem:[#allocation2 + $0x110] sm:$0xe]  ;;  %v9730_v53 = vunpack.c.l.bf16 %v1560_v52  ;;  %v5039_v24 = vld [vmem:[#allocation2 + $0x100] sm:$0xe]  ;;  %v9740_v57 = vunpack.c.l.bf16 %v1558_v39  ;;  %v1212_v47 = vshrl.u32 %v9716_v33, 16 }
 0x175   : > { %v9732_v37 = vunpack.c.l.bf16 %v5041_v22  ;;  %v2290_v38 = vld [vmem:[#allocation2 + $0x104] sm:$0x1]  ;;  %v9742_v52 = vunpack.c.l.bf16 %v5039_v24  ;;  %1455 = vst [vmem:[#allocation2 + $0x11c] sm:$0x1] %v1454_v60  ;;  %v1190_v22 = vrot.slane %v1188_v9, 7  ;;  %v1196_v39 = vshrl.u32 %v9718_v58, 16 }
 0x176   : > { %14554 = vst [vmem:[#allocation92_spill] sm:$0xff] %v9730_v53  ;;  %14556 = vst [vmem:[#allocation94_spill] sm:$0xff] %v9740_v57  ;;  %v9744_v44 = vunpack.c.l.bf16 %v2290_v38  ;;  %v1471_v53 = vld [vmem:[#allocation2 + $0x134] sm:$0x1]  ;;  %v1199_v24 = vshll.u32 %v9718_v58, 16  ;;  %v1177_v61 = vor.u32 %v1175_v32, %v1174_v45  ;;  %v737_v38 = vadd.f32 %v9376_v16, %v9670_v3 }
 0x177   : > { %14555 = vst [vmem:[#allocation93_spill] sm:$0xff] %v9732_v37  ;;  %14557 = vst [vmem:[#allocation95_spill] sm:$0xff] %v9742_v52  ;;  %v1468_v37 = vld [vmem:[#allocation2 + $0x130] sm:$0xf]  ;;  %v1193_v59 = vor.u32 %v1191_v35, %v1190_v22  ;;  %v1194_v27 = vrot.slane %v1190_v22, 4  ;;  %v1178_v32 = vrot.slane %v1174_v45, 4 }
 0x178   : > { %14558 = vst [vmem:[#allocation96_spill] sm:$0xff] %v9744_v44  ;;  %v1563_v52 = vld [vmem:[#allocation2 + $0x128] sm:$0xf]  ;;  %v2295_v60 = vld [vmem:[#allocation2 + $0x12c] sm:$0x1]  ;;  %v1457_v7 = vsel %vm9433_vm6, %v1177_v61, %v1456_v56  ;;  %v1214_v57 = vrot.slane %v1212_v47, 7 }
 0x179   : > { %v5044_v9 = vld [vmem:[#allocation2 + $0x128] sm:$0xe]  ;;  %v9756_v33 = vunpack.c.l.bf16 %v1563_v52  ;;  %v9758_v35 = vunpack.c.l.bf16 %v2295_v60  ;;  %v1469_v58 = vsel %vm9433_vm6, %v1193_v59, %v1468_v37  ;;  %v1459_v44 = vld [vmem:[#allocation2 + $0x124] sm:$0x1]  ;;  %v1472_v5 = vsel %vm9443_vm7, %v1194_v27, %v1471_v53  ;;  %v1486_v3 = vld [vmem:[#allocation2 + $0x158] sm:$0xf] }
 0x17a   : > { %v9760_v22 = vunpack.c.l.bf16 %v5044_v9  ;;  %1470 = vst [vmem:[#allocation2 + $0x130] sm:$0xf] %v1469_v58  ;;  %v1489_v16 = vld [vmem:[#allocation2 + $0x15c] sm:$0x1]  ;;  %v1561_v52 = vld [vmem:[#allocation2 + $0x118] sm:$0xf]  ;;  %v9769_v37 = vpack.c.bf16 %v745_v42, %v745_v42  ;;  %v9771_v59 = vpack.c.bf16 %v737_v38, %v737_v38  ;;  %v1460_v61 = vsel %vm9443_vm7, %v1178_v32, %v1459_v44 }
 0x17b   : > { %14559 = vst [vmem:[#allocation97_spill] sm:$0xff] %v9756_v33  ;;  %14560 = vst [vmem:[#allocation98_spill] sm:$0xff] %v9758_v35  ;;  %v5042_v60 = vld [vmem:[#allocation2 + $0x118] sm:$0xe]  ;;  %v1198_v9 = vrot.slane %v1196_v39, 7  ;;  %v9773_v58 = vunpack.c.l.bf16 %v1561_v52  ;;  %v1217_v47 = vor.u32 %v1215_v51, %v1214_v57  ;;  %v1218_v39 = vrot.slane %v1214_v57, 4 }
 0x17c   : > { %14561 = vst [vmem:[#allocation99_spill] sm:$0xff] %v9760_v22  ;;  %1473 = vst [vmem:[#allocation2 + $0x134] sm:$0x1] %v1472_v5  ;;  %v1220_v22 = vshrl.u32 %v9738_v54, 16  ;;  %v2293_v53 = vld [vmem:[#allocation2 + $0x11c] sm:$0x1]  ;;  %v9775_v45 = vunpack.c.l.bf16 %v5042_v60 }
 0x17d   : > { %1458 = vst [vmem:[#allocation2 + $0x120] sm:$0xf] %v1457_v7  ;;  %14562 = vst [vmem:[#allocation100_spill] sm:$0xff] %v9773_v58  ;;  %v1474_v27 = vld [vmem:[#allocation2 + $0x148] sm:$0xf]  ;;  %v9779_v5 = vunpack.c.l.bf16 %v2293_v53  ;;  %v1201_v7 = vor.u32 %v1199_v24, %v1198_v9  ;;  %v1202_v42 = vrot.slane %v1198_v9, 4  ;;  %v1487_v38 = vsel %vm9433_vm6, %v1217_v47, %v1486_v3 }
 0x17e   : > { %14563 = vst [vmem:[#allocation101_spill] sm:$0xff] %v9775_v45  ;;  %v1477_v56 = vld [vmem:[#allocation2 + $0x14c] sm:$0x1]  ;;  %1461 = vst [vmem:[#allocation2 + $0x124] sm:$0x1] %v1460_v61  ;;  %v1222_v52 = vrot.slane %v1220_v22, 7  ;;  %v1490_v44 = vsel %vm9443_vm7, %v1218_v39, %v1489_v16 }
 0x17f   : > { %14564 = vst [vmem:[#allocation102_spill] sm:$0xff] %v9779_v5  ;;  %v1223_v35 = vshll.u32 %v9738_v54, 16  ;;  %v1492_v60 = vld [vmem:[#allocation2 + $0x160] sm:$0xf]  ;;  %v1204_v33 = vshrl.u32 %v9750_v15, 16  ;;  %v1475_v51 = vsel %vm9433_vm6, %v1201_v7, %v1474_v27  ;;  %v1478_v57 = vsel %vm9443_vm7, %v1202_v42, %v1477_v56 }
 0x180   : > { %1488 = vst [vmem:[#allocation2 + $0x158] sm:$0xf] %v1487_v38  ;;  %v1495_v24 = vld [vmem:[#allocation2 + $0x164] sm:$0x1]  ;;  %v1207_v32 = vshll.u32 %v9750_v15, 16  ;;  %v1226_v22 = vrot.slane %v1222_v52, 4 }
 0x181   : > { %v1480_v3 = vld [vmem:[#allocation2 + $0x150] sm:$0xf]  ;;  %1491 = vst [vmem:[#allocation2 + $0x15c] sm:$0x1] %v1490_v44  ;;  %1476 = vst [vmem:[#allocation2 + $0x148] sm:$0xf] %v1475_v51  ;;  %v1225_v54 = vor.u32 %v1223_v35, %v1222_v52 }
 0x182   : > { %1479 = vst [vmem:[#allocation2 + $0x14c] sm:$0x1] %v1478_v57  ;;  %v1206_v9 = vrot.slane %v1204_v33, 7  ;;  %v1483_v53 = vld [vmem:[#allocation2 + $0x154] sm:$0x1]  ;;  %v1244_v61 = vshrl.u32 %v9769_v37, 16 }
 0x183   : > { %v1564_v16 = vld [vmem:[#allocation2 + $0x130] sm:$0xf]  ;;  %v1247_v47 = vshll.u32 %v9769_v37, 16  ;;  %v1228_v27 = vshrl.u32 %v9771_v59, 16  ;;  %v1231_v56 = vshll.u32 %v9771_v59, 16  ;;  %v1493_v38 = vsel %vm9433_vm6, %v1225_v54, %v1492_v60 }
 0x184   : > { %v8883_v15 = vld [vmem:[%s13903_s2] ss:$0 sm:$0xff]  ;;  %v9800_v7 = vunpack.c.l.bf16 %v1564_v16  ;;  %v2296_v35 = vld [vmem:[#allocation2 + $0x134] sm:$0x1]  ;;  %v5043_v42 = vld [vmem:[#allocation2 + $0x120] sm:$0xe]  ;;  %v1496_v37 = vsel %vm9443_vm7, %v1226_v22, %v1495_v24  ;;  %v1209_v52 = vor.u32 %v1207_v32, %v1206_v9 }
 0x185   : > { %v748_v39 = vadd.f32 %v8883_v15, %v9680_v13  ;;  %v1562_v33 = vld [vmem:[#allocation2 + $0x120] sm:$0xf]  ;;  %v9806_v44 = vunpack.c.l.bf16 %v2296_v35  ;;  %v9810_v51 = vunpack.c.l.bf16 %v5043_v42  ;;  %1494 = vst [vmem:[#allocation2 + $0x160] sm:$0xf] %v1493_v38  ;;  %1497 = vst [vmem:[#allocation2 + $0x164] sm:$0x1] %v1496_v37 }
 0x186   : > { %14565 = vst [vmem:[#allocation103_spill] sm:$0xff] %v9800_v7  ;;  %v9808_v59 = vunpack.c.l.bf16 %v1562_v33  ;;  %v1210_v13 = vrot.slane %v1206_v9, 4  ;;  %v2294_v57 = vld [vmem:[#allocation2 + $0x124] sm:$0x1]  ;;  %v1481_v16 = vsel %vm9433_vm6, %v1209_v52, %v1480_v3  ;;  %v1246_v7 = vrot.slane %v1244_v61, 7 }
 0x187   : > { %14566 = vst [vmem:[#allocation104_spill] sm:$0xff] %v9806_v44  ;;  %14568 = vst [vmem:[#allocation106_spill] sm:$0xff] %v9810_v51  ;;  %v1230_v45 = vrot.slane %v1228_v27, 7  ;;  %v8609_v60 = vpack.c.bf16 %v748_v39, %v748_v39  ;;  %v9814_v54 = vunpack.c.l.bf16 %v2294_v57  ;;  %v1510_v32 = vld [vmem:[#allocation2 + $0x178] sm:$0xf]  ;;  %v740_v33 = vadd.f32 %v8883_v15, %v9692_v17  ;;  %v14597_v51 = vld [vmem:[#allocation31_spill] sm:$0xff] }
 0x188   : > { %14567 = vst [vmem:[#allocation105_spill] sm:$0xff] %v9808_v59  ;;  %1482 = vst [vmem:[#allocation2 + $0x150] sm:$0xf] %v1481_v16  ;;  %v1484_v24 = vsel %vm9443_vm7, %v1210_v13, %v1483_v53  ;;  %v1513_v22 = vld [vmem:[#allocation2 + $0x17c] sm:$0x1]  ;;  %v9821_v9 = vadd.f32 %v9529_v63, %v9273_v14  ;;  %v1249_v3 = vor.u32 %v1247_v47, %v1246_v7  ;;  %v1250_v61 = vrot.slane %v1246_v7, 4 }
 0x189   : > { %14569 = vst [vmem:[#allocation107_spill] sm:$0xff] %v9814_v54  ;;  %v1498_v35 = vld [vmem:[#allocation2 + $0x168] sm:$0xf]  ;;  %v1569_v42 = vld [vmem:[#allocation2 + $0x158] sm:$0xf]  ;;  %v1233_v27 = vor.u32 %v1231_v56, %v1230_v45  ;;  %v1234_v39 = vrot.slane %v1230_v45, 4  ;;  %v8607_v57 = vpack.c.bf16 %v740_v33, %v740_v33  ;;  %v1855_v17 = vmul.f32 %v9286_v19, %v9486_v55 }
 0x18a   : > { %14570 = vst [vmem:[#allocation108_spill] sm:$0xff] %v9821_v9  ;;  %1485 = vst [vmem:[#allocation2 + $0x154] sm:$0x1] %v1484_v24  ;;  %v1501_v38 = vld [vmem:[#allocation2 + $0x16c] sm:$0x1]  ;;  %v9823_v37 = vunpack.c.l.bf16 %v1569_v42  ;;  %v9829_v14 = vmul.f32 %v9290_v20, %v9486_v55  ;;  %v1511_v45 = vsel %vm9433_vm6, %v1249_v3, %v1510_v32  ;;  %v1514_v15 = vsel %vm9443_vm7, %v1250_v61, %v1513_v22 }
 0x18b   : > { %v2301_v52 = vld [vmem:[#allocation2 + $0x15c] sm:$0x1]  ;;  %v1567_v53 = vld [vmem:[#allocation2 + $0x148] sm:$0xf]  ;;  %v2299_v13 = vld [vmem:[#allocation2 + $0x14c] sm:$0x1]  ;;  %v1499_v7 = vsel %vm9433_vm6, %v1233_v27, %v1498_v35  ;;  %v1502_v16 = vsel %vm9443_vm7, %v1234_v39, %v1501_v38  ;;  %v1887_v32 = vadd.f32 %v1855_v17, %v9282_v18  ;;  %v1923_v3 = vmul.f32 %v9290_v20, %v9502_v36 }
 0x18c   : > { %14571 = vst [vmem:[#allocation109_spill] sm:$0xff] %v9823_v37  ;;  %v9831_v63 = vunpack.c.l.bf16 %v2301_v52  ;;  %v9833_v47 = vunpack.c.l.bf16 %v1567_v53  ;;  %v9835_v56 = vunpack.c.l.bf16 %v2299_v13  ;;  %1512 = vst [vmem:[#allocation2 + $0x178] sm:$0xf] %v1511_v45  ;;  %v1252_v24 = vshrl.u32 %v8609_v60, 16  ;;  %v1570_v33 = vld [vmem:[#allocation2 + $0x160] sm:$0xf] }
 0x18d   : > { %v2302_v42 = vld [vmem:[#allocation2 + $0x164] sm:$0x1]  ;;  %1515 = vst [vmem:[#allocation2 + $0x17c] sm:$0x1] %v1514_v15  ;;  %1500 = vst [vmem:[#allocation2 + $0x168] sm:$0xf] %v1499_v7  ;;  %v9848_v22 = vunpack.c.l.bf16 %v1570_v33  ;;  %v1955_v7 = vadd.f32 %v1923_v3, %v1887_v32  ;;  %v1991_v18 = vmul.f32 %v9294_v21, %v9482_v2 }
 0x18e   : > { %14572 = vst [vmem:[#allocation110_spill] sm:$0xff] %v9831_v63  ;;  %14573 = vst [vmem:[#allocation111_spill] sm:$0xff] %v9833_v47  ;;  %v1255_v52 = vshll.u32 %v8609_v60, 16  ;;  %v1236_v53 = vshrl.u32 %v8607_v57, 16  ;;  %v9850_v61 = vunpack.c.l.bf16 %v2302_v42  ;;  %v1254_v35 = vrot.slane %v1252_v24, 7 }
 0x18f   : > { %14574 = vst [vmem:[#allocation112_spill] sm:$0xff] %v9835_v56  ;;  %1503 = vst [vmem:[#allocation2 + $0x16c] sm:$0x1] %v1502_v16  ;;  %v1516_v27 = vld [vmem:[#allocation2 + $0x180] sm:$0xf]  ;;  %v1239_v38 = vshll.u32 %v8607_v57, 16  ;;  %v9854_v60 = vmul.f32 %v9294_v21, %v9502_v36  ;;  %v2059_v57 = vmul.f32 %v9312_v30, %v9588_v49  ;;  %v2023_v3 = vadd.f32 %v1991_v18, %v1955_v7 }
 0x190   : > { %14575 = vst [vmem:[#allocation113_spill] sm:$0xff] %v9848_v22  ;;  %14576 = vst [vmem:[#allocation114_spill] sm:$0xff] %v9850_v61  ;;  %v1519_v39 = vld [vmem:[#allocation2 + $0x184] sm:$0x1]  ;;  %v1568_v13 = vld [vmem:[#allocation2 + $0x150] sm:$0xf]  ;;  %v1257_v33 = vor.u32 %v1255_v52, %v1254_v35  ;;  %v2127_v52 = vmul.f32 %v9315_v31, %v9616_v43 }
 0x191   : > { %v1238_v45 = vrot.slane %v1236_v53, 7  ;;  %v1504_v15 = vld [vmem:[#allocation2 + $0x170] sm:$0xf]  ;;  %v9858_v17 = vunpack.c.l.bf16 %v1568_v13  ;;  %v2300_v16 = vld [vmem:[#allocation2 + $0x154] sm:$0x1]  ;;  %v1258_v42 = vrot.slane %v1254_v35, 4  ;;  %v9870_v13 = vmul.f32 %v9315_v31, %v9588_v49 }
 0x192   : > { %v1507_v24 = vld [vmem:[#allocation2 + $0x174] sm:$0x1]  ;;  %v9862_v61 = vunpack.c.l.bf16 %v2300_v16  ;;  %v1517_v22 = vsel %vm9433_vm6, %v1257_v33, %v1516_v27  ;;  %v2091_v27 = vadd.f32 %v2059_v57, %v2023_v3  ;;  %v3390_v57 = vrot.slane %v3261_v8, 1  ;;  %v5020_v59 = vld [vmem:[#allocation2 + $0x68] sm:$0xe] }
 0x193   : > { %14577 = vst [vmem:[#allocation115_spill] sm:$0xff] %v9858_v17  ;;  %v1241_v53 = vor.u32 %v1239_v38, %v1238_v45  ;;  %v1242_v32 = vrot.slane %v1238_v45, 4  ;;  %v1520_v63 = vsel %vm9443_vm7, %v1258_v42, %v1519_v39  ;;  %v1573_v35 = vld [vmem:[#allocation2 + $0x178] sm:$0xf]  ;;  %1518 = vst [vmem:[#allocation2 + $0x180] sm:$0xf] %v1517_v22  ;;  %v9880_v39 = vmul.f32 %v9333_v46, %v9616_v43 }
 0x194   : > { %14578 = vst [vmem:[#allocation116_spill] sm:$0xff] %v9862_v61  ;;  %1521 = vst [vmem:[#allocation2 + $0x184] sm:$0x1] %v1520_v63  ;;  %v9882_v7 = vunpack.c.l.bf16 %v1573_v35  ;;  %v2305_v18 = vld [vmem:[#allocation2 + $0x17c] sm:$0x1]  ;;  %v2195_v63 = vmul.f32 %v9333_v46, %v9575_v28  ;;  %v3552_v3 = vmul.f32 %v9304_v26, %v9488_v12 }
 0x195   : > { %v1505_v38 = vsel %vm9433_vm6, %v1241_v53, %v1504_v15  ;;  %v1508_v45 = vsel %vm9443_vm7, %v1242_v32, %v1507_v24  ;;  %v1571_v16 = vld [vmem:[#allocation2 + $0x168] sm:$0xf]  ;;  %v9890_v22 = vunpack.c.l.bf16 %v2305_v18  ;;  %v2159_v24 = vadd.f32 %v2127_v52, %v2091_v27  ;;  %v5027_v5 = vld [vmem:[#allocation2 + $0xa0] sm:$0xe] }
 0x196   : > { %14579 = vst [vmem:[#allocation117_spill] sm:$0xff] %v9882_v7  ;;  %v2303_v33 = vld [vmem:[#allocation2 + $0x16c] sm:$0x1]  ;;  %1506 = vst [vmem:[#allocation2 + $0x170] sm:$0xf] %v1505_v38  ;;  %v9892_v15 = vunpack.c.l.bf16 %v1571_v16  ;;  %v3391_v53 = vrot.slane %v3262_v1, 1  ;;  %v3551_v32 = vmul.f32 %v9304_v26, %v9486_v55  ;;  %v3553_v38 = vmul.f32 %v9304_v26, %v9502_v36 }
 0x197   : > { %1509 = vst [vmem:[#allocation2 + $0x174] sm:$0x1] %v1508_v45  ;;  %14580 = vst [vmem:[#allocation118_spill] sm:$0xff] %v9890_v22  ;;  %v9894_v42 = vunpack.c.l.bf16 %v2303_v33  ;;  %v2227_v35 = vadd.f32 %v2195_v63, %v2159_v24  ;;  %v3554_v45 = vmul.f32 %v9304_v26, %v9504_v6  ;;  %v3843_v18 = vmul.f32 %v9308_v29, %v9502_v36 }
 0x198   : > { %14581 = vst [vmem:[#allocation119_spill] sm:$0xff] %v9892_v15  ;;  %v3392_v52 = vsel %vm2510_vm1, %v3390_v57, %v3391_v53  ;;  %v3679_v27 = vrot.slane %v3551_v32, 1  ;;  %v3680_v16 = vrot.slane %v3552_v3, 1  ;;  %v3844_v33 = vmul.f32 %v9308_v29, %v9504_v6 }
 0x199   : > { %14582 = vst [vmem:[#allocation120_spill] sm:$0xff] %v9894_v42  ;;  %v2640_v8 = vadd.f32 %v9340_v48, %v2227_v35  ;;  %v3682_v1 = vrot.slane %v3553_v38, 1  ;;  %v3683_v63 = vrot.slane %v3554_v45, 1  ;;  %v3845_v24 = vmul.f32 %v9308_v29, %v9482_v2 }
 0x19a   : > { %v1574_v22 = vld [vmem:[#allocation2 + $0x180] sm:$0xf]  ;;  %v9913_v42 = vsel %vm2510_vm1, %v3679_v27, %v3680_v16  ;;  %v3846_v57 = vmul.f32 %v9308_v29, %v9484_v4  ;;  %v3971_v53 = vrot.slane %v3843_v18, 1  ;;  %v3972_v32 = vrot.slane %v3844_v33, 1 }
 0x19b   : > { %v2306_v7 = vld [vmem:[#allocation2 + $0x184] sm:$0x1]  ;;  %v9917_v3 = vunpack.c.l.bf16 %v1574_v22  ;;  %v2932_v38 = vadd.f32 %v9355_v0, %v2640_v8  ;;  %v3684_v45 = vsel %vm2510_vm1, %v3682_v1, %v3683_v63  ;;  %v3974_v22 = vrot.slane %v3845_v24, 1  ;;  %v14587_v8 = vld [vmem:[#allocation68_spill] sm:$0xff]  ;;  %v14588_v63 = vld [vmem:[#allocation46_spill] sm:$0xff] }
 0x19c   : > { %v9919_v15 = vunpack.c.l.bf16 %v2306_v7  ;;  %v9928_v16 = vsel %vm2510_vm1, %v3971_v53, %v3972_v32  ;;  %v3975_v33 = vrot.slane %v3846_v57, 1  ;;  %v4137_v7 = vmul.f32 %v9344_v50, %v9588_v49  ;;  %v14589_v32 = vld [vmem:[#allocation47_spill] sm:$0xff]  ;;  %v14590_v24 = vld [vmem:[#allocation24_spill] sm:$0xff] }
 0x19d   : > { %14583 = vst [vmem:[#allocation121_spill] sm:$0xff] %v9917_v3  ;;  %v1572_v48 = vld [vmem:[#allocation2] ss:$368 sps:$4 sm:$0xff]   ;;  %v3224_v18 = vadd.f32 %v9368_v11, %v2932_v38  ;;  %v4138_v1 = vmul.f32 %v9344_v50, %v14587_v8  ;;  %v4264_v3 = vrot.slane %v14589_v32, 1 }
 0x19e   : > { %14584 = vst [vmem:[#allocation122_spill] sm:$0xff] %v9919_v15  ;;  %v2304_v35 = vld [vmem:[#allocation2 + $0x174] sm:$0x1]  ;;  %v9923_v61 = vunpack.c.h.bf16 %v1572_v48  ;;  %v1586_v27 = vunpack.c.l.bf16 %v1572_v48  ;;  %v3976_v53 = vsel %vm2510_vm1, %v3974_v22, %v3975_v33  ;;  %v4266_v11 = vrot.slane %v4137_v7, 1  ;;  %v14593_v33 = vld [vmem:[#allocation38_spill] sm:$0xff] }
 0x19f   : > { %v9925_v56 = vunpack.c.l.bf16 %v2304_v35  ;;  %v4263_v35 = vrot.slane %v14588_v63, 1  ;;  %v3516_v48 = vadd.f32 %v3392_v52, %v3224_v18  ;;  %v14592_v18 = vld [vmem:[#allocation25_spill] sm:$0xff]  ;;  %v14594_v7 = vrot.slane %v14593_v33, 1 }
 0x1a0   : > { %14585 = vst [vmem:[#allocation123_spill] sm:$0xff] %v9923_v61  ;;  %v1650_v15 = vmul.f32 %v9191_v41, %v1586_v27  ;;  %v2382_v0 = vmul.f32 %v9232_v62, %v1586_v27  ;;  %v14591_v61 = vld [vmem:[#allocation29_spill] sm:$0xff] }
 0x1a1   : > { %14586 = vst [vmem:[#allocation124_spill] sm:$0xff] %v9925_v56  ;;  %v4267_v56 = vrot.slane %v4138_v1, 1  ;;  %v4427_v37 = vmul.f32 %v14591_v61, %v9588_v49  ;;  %v3808_v17 = vadd.f32 %v3684_v45, %v3516_v48  ;;  %v9944_v27 = vsel %vm2510_vm1, %v4263_v35, %v4264_v3  ;;  %v14595_v1 = vld [vmem:[#allocation73_spill] sm:$0xff]  ;;  %v5028_v49 = vld [vmem:[#allocation2 + $0xa8] sm:$0xe] }
 0x1a2   : > { %v1750_v57 = vadd.f32 %v14590_v24, %v1650_v15  ;;  %v2511_v38 = vrot.slane %v2382_v0, 1  ;;  %v4428_v63 = vmul.f32 %v14591_v61, %v14587_v8  ;;  %v4429_v52 = vmul.f32 %v14591_v61, %v9616_v43  ;;  %v14596_v24 = vld [vmem:[#allocation26_spill] sm:$0xff] }
 0x1a3   : > { %v4268_v0 = vsel %vm2510_vm1, %v4266_v11, %v4267_v56  ;;  %v4430_v45 = vmul.f32 %v14591_v61, %v14595_v1  ;;  %v4100_v3 = vadd.f32 %v3976_v53, %v3808_v17  ;;  %v4555_v35 = vrot.slane %v4427_v37, 1  ;;  %v14598_v37 = vld [vmem:[#allocation65_spill] sm:$0xff] }
 0x1a4   : > { %v1818_v22 = vadd.f32 %v14592_v18, %v1750_v57  ;;  %v9954_v15 = vsel %vm2510_vm1, %v2511_v38, %v14594_v7  ;;  %v4556_v48 = vrot.slane %v4428_v63, 1  ;;  %v4558_v32 = vrot.slane %v4429_v52, 1  ;;  %v5008_v38 = vld [vmem:[#allocation2 + $0x8] sm:$0xe]  ;;  %v5009_v11 = vld [vmem:[#allocation2 + $0x10] sm:$0xe] }
 0x1a5   : > { %v4559_v44 = vrot.slane %v4430_v45, 1  ;;  %v4719_v57 = vmul.f32 %v14597_v51, %v9616_v43  ;;  %v4720_v18 = vmul.f32 %v14597_v51, %v14595_v1  ;;  %v4392_v33 = vadd.f32 %v4268_v0, %v4100_v3  ;;  %v5010_v63 = vld [vmem:[#allocation2 + $0x18] sm:$0xe]  ;;  %v9971_v52 = vld [vmem:[#allocation2 + $0x50] sm:$0xe] }
 0x1a6   : > { %v1886_v47 = vadd.f32 %v14596_v24, %v1818_v22  ;;  %v9965_v56 = vsel %vm2510_vm1, %v4555_v35, %v4556_v48  ;;  %v4721_v17 = vmul.f32 %v14597_v51, %v9575_v28  ;;  %v4722_v53 = vmul.f32 %v14597_v51, %v14598_v37  ;;  %v5018_v0 = vld [vmem:[#allocation2 + $0x58] sm:$0xe]  ;;  %v5019_v3 = vld [vmem:[#allocation2 + $0x60] sm:$0xe] }
 0x1a7   : > { %v4560_v7 = vsel %vm2510_vm1, %v4558_v32, %v4559_v44  ;;  %v4847_v45 = vrot.slane %v4719_v57, 1  ;;  %v4848_v24 = vrot.slane %v4720_v18, 1  ;;  %v5068_v58 = vunpack.c.l.bf16 %v5008_v38 }
 0x1a8   : > { %v1954_v22 = vadd.f32 %v9829_v14, %v1886_v47  ;;  %v4684_v35 = vadd.f32 %v4560_v7, %v4392_v33  ;;  %v4850_v48 = vrot.slane %v4721_v17, 1  ;;  %v4851_v54 = vrot.slane %v4722_v53, 1  ;;  %v14602_v33 = vld [vmem:[#allocation28_spill] sm:$0xff] }
 0x1a9   : > { %v9977_v9 = vsel %vm2510_vm1, %v4847_v45, %v4848_v24  ;;  %v9979_v14 = vunpack.c.l.bf16 %v5009_v11  ;;  %v9981_v44 = vunpack.c.l.bf16 %v5010_v63  ;;  %v5077_v32 = vunpack.c.l.bf16 %v9971_v52  ;;  %v14605_v11 = vld [vmem:[#allocation45_spill] sm:$0xff]  ;;  %v14607_v7 = vld [vmem:[#allocation32_spill] sm:$0xff] }
 0x1aa   : > { %v2022_v10 = vadd.f32 %v9854_v60, %v1954_v22  ;;  %v4852_v47 = vsel %vm2510_vm1, %v4850_v48, %v4851_v54  ;;  %v9985_v57 = vunpack.c.l.bf16 %v5018_v0  ;;  %v9987_v18 = vunpack.c.l.bf16 %v5019_v3  ;;  %v14608_v54 = vld [vmem:[#allocation30_spill] sm:$0xff] }
 0x1ab   : > { %14599 = vst [vmem:[#allocation46_spill] sm:$0xff] %v9981_v44  ;;  %v4976_v17 = vadd.f32 %v4852_v47, %v4684_v35  ;;  %v9990_v60 = vunpack.c.l.bf16 %v5020_v59  ;;  %v9992_v53 = vunpack.c.l.bf16 %v5027_v5  ;;  %v9994_v22 = vunpack.c.l.bf16 %v5028_v49 }
 0x1ac   : > { %14600 = vst [vmem:[#allocation47_spill] sm:$0xff] %v9985_v57  ;;  %14601 = vst [vmem:[#allocation24_spill] sm:$0xff] %v9987_v18  ;;  %v2090_v38 = vadd.f32 %v14602_v33, %v2022_v10  ;;  %v14606_v63 = vunpack.c.l.bf16 %v14605_v11  ;;  %v14609_v24 = vunpack.c.l.bf16 %v14608_v54  ;;  %v5133_v0 = vmul.f32 %v14607_v7, %v5068_v58  ;;  %v14610_v10 = vld [vmem:[#allocation9_spill] sm:$0xff]  ;;  %v14613_v33 = vld [vmem:[#allocation34_spill] sm:$0xff] }
 0x1ad   : > { %14603 = vst [vmem:[#allocation29_spill] sm:$0xff] %v9990_v60  ;;  %14604 = vst [vmem:[#allocation25_spill] sm:$0xff] %v9994_v22  ;;  %v5134_v59 = vmul.f32 %v14607_v7, %v14610_v10  ;;  %v10007_v5 = vmul.f32 %v14607_v7, %v5077_v32  ;;  %v10011_v49 = vmul.f32 %v14607_v7, %v9992_v53 }
 0x1ae   : > { %v5131_v45 = vmul.f32 %v14607_v7, %v14606_v63  ;;  %v5132_v52 = vmul.f32 %v14607_v7, %v14609_v24  ;;  %v2158_v3 = vadd.f32 %v9870_v13, %v2090_v38  ;;  %v5263_v47 = vrot.slane %v5133_v0, 2 }
 0x1af   : > { %14611 = vst [vmem:[#allocation38_spill] sm:$0xff] %v10007_v5  ;;  %14612 = vst [vmem:[#allocation26_spill] sm:$0xff] %v10011_v49  ;;  %v5424_v11 = vmul.f32 %v14613_v33, %v5068_v58  ;;  %v5264_v54 = vrot.slane %v5134_v59, 2  ;;  %v5425_v55 = vmul.f32 %v14613_v33, %v14610_v10  ;;  %v14615_v59 = vld [vmem:[#allocation35_spill] sm:$0xff]  ;;  %v14616_v5 = vld [vmem:[#allocation40_spill] sm:$0xff] }
 0x1b0   : > { %v5260_v35 = vrot.slane %v5131_v45, 2  ;;  %v5261_v48 = vrot.slane %v5132_v52, 2  ;;  %v2226_v63 = vadd.f32 %v9880_v39, %v2158_v3  ;;  %v5426_v45 = vmul.f32 %v14613_v33, %v9979_v14  ;;  %v14614_v52 = vld [vmem:[#allocation11_spill] sm:$0xff] }
 0x1b1   : > { %v5427_v0 = vmul.f32 %v14613_v33, %v14614_v52  ;;  %v5265_v39 = vsel %vm5259_vm8, %v5263_v47, %v5264_v54  ;;  %v5552_v3 = vrot.slane %v5424_v11, 2  ;;  %v5716_v38 = vmul.f32 %v14615_v59, %v9979_v14  ;;  %v14619_v54 = vld [vmem:[#allocation42_spill] sm:$0xff]  ;;  %v14620_v33 = vld [vmem:[#allocation33_spill] sm:$0xff] }
 0x1b2   : > { %v10018_v24 = vsel %vm5259_vm8, %v5260_v35, %v5261_v48  ;;  %v2639_v58 = vadd.f32 %v9954_v15, %v2226_v63  ;;  %v5389_v13 = vadd.f32 %v5265_v39, %v4976_v17  ;;  %v5553_v35 = vrot.slane %v5425_v55, 2  ;;  %v14618_v55 = vld [vmem:[#allocation36_spill] sm:$0xff] }
 0x1b3   : > { %v5555_v48 = vrot.slane %v5426_v45, 2  ;;  %v5556_v49 = vrot.slane %v5427_v0, 2  ;;  %v5717_v40 = vmul.f32 %v14615_v59, %v14614_v52  ;;  %v5718_v23 = vmul.f32 %v14615_v59, %v9981_v44 }
 0x1b4   : > { %v2931_v10 = vadd.f32 %v14616_v5, %v2639_v58  ;;  %v5719_v15 = vmul.f32 %v14615_v59, %v14617_v34  ;;  %v10038_v47 = vsel %vm5259_vm8, %v5552_v3, %v5553_v35  ;;  %v5844_v17 = vrot.slane %v5716_v38, 2  ;;  %v14621_v35 = vld [vmem:[#allocation44_spill] sm:$0xff] }
 0x1b5   : > { %v5557_v11 = vsel %vm5259_vm8, %v5555_v48, %v5556_v49  ;;  %v6008_v63 = vmul.f32 %v14618_v55, %v5077_v32  ;;  %v5845_v0 = vrot.slane %v5717_v40, 2  ;;  %v5847_v58 = vrot.slane %v5718_v23, 2 }
 0x1b6   : > { %v3223_v45 = vadd.f32 %v14619_v54, %v2931_v10  ;;  %v5681_v5 = vadd.f32 %v5557_v11, %v5389_v13  ;;  %v5848_v39 = vrot.slane %v5719_v15, 2  ;;  %v6009_v44 = vmul.f32 %v14618_v55, %v14620_v33  ;;  %v14623_v54 = vld [vmem:[#allocation39_spill] sm:$0xff] }
 0x1b7   : > { %v6010_v59 = vmul.f32 %v14618_v55, %v9985_v57  ;;  %v6011_v3 = vmul.f32 %v14618_v55, %v9488_v12  ;;  %v10051_v38 = vsel %vm5259_vm8, %v5844_v17, %v5845_v0  ;;  %v10055_v32 = vmul.f32 %v14618_v55, %v9992_v53 }
 0x1b8   : > { %v3515_v49 = vadd.f32 %v14621_v35, %v3223_v45  ;;  %v6136_v23 = vrot.slane %v6008_v63, 2  ;;  %v5849_v40 = vsel %vm5259_vm8, %v5847_v58, %v5848_v39  ;;  %v6137_v13 = vrot.slane %v6009_v44, 2  ;;  %v14624_v35 = vld [vmem:[#allocation43_spill] sm:$0xff] }
 0x1b9   : > { %14622 = vst [vmem:[#allocation31_spill] sm:$0xff] %v10055_v32  ;;  %v6139_v48 = vrot.slane %v6010_v59, 2  ;;  %v6140_v10 = vrot.slane %v6011_v3, 2  ;;  %v5973_v11 = vadd.f32 %v5849_v40, %v5681_v5  ;;  %v6300_v33 = vmul.f32 %v14623_v54, %v9985_v57 }
 0x1ba   : > { %v3807_v15 = vadd.f32 %v9913_v42, %v3515_v49  ;;  %v6301_v17 = vmul.f32 %v14623_v54, %v9488_v12  ;;  %v10064_v45 = vsel %vm5259_vm8, %v6136_v23, %v6137_v13  ;;  %v6302_v63 = vmul.f32 %v14623_v54, %v9987_v18 }
 0x1bb   : > { %v6141_v0 = vsel %vm5259_vm8, %v6139_v48, %v6140_v10  ;;  %v6303_v44 = vmul.f32 %v14623_v54, %v9504_v6  ;;  %v6428_v5 = vrot.slane %v6300_v33, 2  ;;  %v6592_v49 = vmul.f32 %v14624_v35, %v9987_v18 }
 0x1bc   : > { %v4099_v42 = vadd.f32 %v9928_v16, %v3807_v15  ;;  %v6265_v59 = vadd.f32 %v6141_v0, %v5973_v11  ;;  %v6429_v58 = vrot.slane %v6301_v17, 2  ;;  %v6431_v39 = vrot.slane %v6302_v63, 2  ;;  %v8884_v11 = vld [vmem:[%s13904_s3 + $0x10] sm:$0xff]  ;;  %v14625_v17 = vld [vmem:[#allocation7_spill] sm:$0xff] }
 0x1bd   : > { %v6432_v3 = vrot.slane %v6303_v44, 2  ;;  %v6593_v23 = vmul.f32 %v14624_v35, %v9504_v6  ;;  %v6594_v48 = vmul.f32 %v14624_v35, %v9990_v60  ;;  %v6595_v16 = vmul.f32 %v14624_v35, %v9484_v4 }
 0x1be   : > { %v4391_v40 = vadd.f32 %v9944_v27, %v4099_v42  ;;  %v6430_v13 = vsel %vm5259_vm8, %v6428_v5, %v6429_v58  ;;  %v6720_v10 = vrot.slane %v6592_v49, 2  ;;  %v10087_v0 = vrot.slane %v8884_v11, %v14625_v17 }
 0x1bf   : > { %v6433_v33 = vsel %vm5259_vm8, %v6431_v39, %v6432_v3  ;;  %v6721_v15 = vrot.slane %v6593_v23, 2  ;;  %v6723_v44 = vrot.slane %v6594_v48, 2  ;;  %v6724_v42 = vrot.slane %v6595_v16, 2  ;;  %v14627_v39 = vld [vmem:[#allocation37_spill] sm:$0xff] }
 0x1c0   : > { %14626 = vst [vmem:[#allocation28_spill] sm:$0xff] %v10087_v0  ;;  %v4683_v27 = vadd.f32 %v9965_v56, %v4391_v40  ;;  %v6557_v63 = vadd.f32 %v6433_v33, %v6265_v59  ;;  %v6884_v58 = vmul.f32 %v10087_v0, %v9992_v53  ;;  %v6885_v3 = vmul.f32 %v10087_v0, %v14627_v39  ;;  %v14628_v59 = vld [vmem:[#allocation8_spill] sm:$0xff] }
 0x1c1   : > { %v6722_v5 = vsel %vm5259_vm8, %v6720_v10, %v6721_v15  ;;  %v6886_v49 = vmul.f32 %v10087_v0, %v9994_v22  ;;  %v6725_v17 = vsel %vm5259_vm8, %v6723_v44, %v6724_v42  ;;  %v6887_v56 = vmul.f32 %v10087_v0, %v14587_v8  ;;  %v14630_v44 = vld [vmem:[#allocation74_spill] sm:$0xff] }
 0x1c2   : > { %v4975_v23 = vadd.f32 %v9977_v9, %v4683_v27  ;;  %v10102_v40 = vrot.slane %v8884_v11, %v14628_v59  ;;  %v6849_v48 = vadd.f32 %v6725_v17, %v6557_v63  ;;  %v7012_v16 = vrot.slane %v6884_v58, 2  ;;  %v8885_v63 = vld [vmem:[%s13904_s3 + $0x18] sm:$0x7] }
 0x1c3   : > { %v7013_v33 = vrot.slane %v6885_v3, 2  ;;  %v7015_v53 = vrot.slane %v6886_v49, 2  ;;  %v7016_v15 = vrot.slane %v6887_v56, 2  ;;  %v1530_v56 = vld [vmem:[#allocation2 + $0x20] ss:$8 sps:$4 sm:$0xff]  }
 0x1c4   : > { %14629 = vst [vmem:[#allocation45_spill] sm:$0xff] %v10102_v40  ;;  %v5388_v10 = vadd.f32 %v10018_v24, %v4975_v23  ;;  %v7176_v32 = vmul.f32 %v10102_v40, %v9994_v22  ;;  %v7177_v9 = vmul.f32 %v10102_v40, %v14587_v8  ;;  %v7178_v42 = vmul.f32 %v10102_v40, %v14630_v44  ;;  %v14631_v24 = vld [vmem:[#allocation13_spill] sm:$0xff] }
 0x1c5   : > { %v7014_v27 = vsel %vm5259_vm8, %v7012_v16, %v7013_v33  ;;  %v7179_v11 = vmul.f32 %v10102_v40, %v14595_v1  ;;  %v10118_v58 = vrot.slane %v8885_v63, %v14631_v24  ;;  %v7017_v49 = vsel %vm5259_vm8, %v7015_v53, %v7016_v15  ;;  %v14633_v24 = vld [vmem:[#allocation66_spill] sm:$0xff] }
 0x1c6   : > { %v5680_v3 = vadd.f32 %v10038_v47, %v5388_v10  ;;  %v7304_v23 = vrot.slane %v7176_v32, 2  ;;  %v7305_v17 = vrot.slane %v7177_v9, 2  ;;  %v7141_v59 = vadd.f32 %v7017_v49, %v6849_v48  ;;  %v14634_v49 = vld [vmem:[#allocation3_spill] sm:$0xff] }
 0x1c7   : > { %14632 = vst [vmem:[#allocation30_spill] sm:$0xff] %v10118_v58  ;;  %v7307_v16 = vrot.slane %v7178_v42, 2  ;;  %v7308_v33 = vrot.slane %v7179_v11, 2  ;;  %v7468_v22 = vmul.f32 %v10118_v58, %v14630_v44  ;;  %v7469_v63 = vmul.f32 %v10118_v58, %v14595_v1 }
 0x1c8   : > { %v5972_v57 = vadd.f32 %v10051_v38, %v5680_v3  ;;  %v7306_v8 = vsel %vm5259_vm8, %v7304_v23, %v7305_v17  ;;  %v7470_v47 = vmul.f32 %v10118_v58, %v14633_v24  ;;  %v7471_v48 = vmul.f32 %v10118_v58, %v14598_v37  ;;  %v14635_v17 = vld [vmem:[#allocation10_spill] sm:$0xff] }
 0x1c9   : > { %v7309_v32 = vsel %vm5259_vm8, %v7307_v16, %v7308_v33  ;;  %v7596_v53 = vrot.slane %v7468_v22, 2  ;;  %v10133_v10 = vunpack.c.l.bf16 %v1530_v56  ;;  %v7597_v38 = vrot.slane %v7469_v63, 2  ;;  %v14636_v22 = vld [vmem:[#allocation5_spill] sm:$0xff] }
 0x1ca   : > { %v6264_v15 = vadd.f32 %v10064_v45, %v5972_v57  ;;  %v7433_v9 = vadd.f32 %v7309_v32, %v7141_v59  ;;  %v7599_v42 = vrot.slane %v7470_v47, 2  ;;  %v7600_v11 = vrot.slane %v7471_v48, 2  ;;  %v14637_v59 = vld [vmem:[#allocation6_spill] sm:$0xff] }
 0x1cb   : > { %v10136_v3 = vunpack.c.h.bf16 %v1530_v56  ;;  %v1652_v23 = vmul.f32 %v9191_v41, %v14634_v49  ;;  %v1653_v16 = vmul.f32 %v9191_v41, %v14635_v17  ;;  %v7598_v39 = vsel %vm5259_vm8, %v7596_v53, %v7597_v38  ;;  %v10151_v56 = vld [vmem:[%s13905_s4] ss:$0 sm:$0xff] }
 0x1cc   : > { %v6556_v33 = vadd.f32 %v6430_v13, %v6264_v15  ;;  %v1720_v12 = vmul.f32 %v14636_v22, %v14635_v17  ;;  %v1721_v57 = vmul.f32 %v14636_v22, %v10133_v10  ;;  %v7601_v45 = vsel %vm5259_vm8, %v7599_v42, %v7600_v11  ;;  %v14638_v11 = vld [vmem:[#allocation52_spill] sm:$0xff] }
 0x1cd   : > { %v1788_v63 = vmul.f32 %v14637_v59, %v10133_v10  ;;  %v1789_v13 = vmul.f32 %v14637_v59, %v10136_v3  ;;  %v1856_v47 = vmul.f32 %v9286_v19, %v9502_v36  ;;  %v7725_v48 = vadd.f32 %v7601_v45, %v7433_v9  ;;  %v14639_v9 = vld [vmem:[#allocation58_spill] sm:$0xff] }
 0x1ce   : > { %v6848_v32 = vadd.f32 %v6722_v5, %v6556_v33  ;;  %v1752_v53 = vadd.f32 %v1720_v12, %v1652_v23  ;;  %v1753_v15 = vadd.f32 %v1721_v57, %v1653_v16  ;;  %v1857_v38 = vmul.f32 %v9286_v19, %v9482_v2  ;;  %v2262_v57 = vld [vmem:[#allocation2 + $0x24] sm:$0x1] }
 0x1cf   : > { %v1924_v42 = vmul.f32 %v9290_v20, %v9482_v2  ;;  %v1925_v22 = vmul.f32 %v9290_v20, %v14638_v11  ;;  %v1992_v41 = vmul.f32 %v9294_v21, %v14638_v11  ;;  %v7764_v58 = vadd.f32 %v10151_v56, %v7725_v48  ;;  %v2263_v48 = vld [vmem:[#allocation2 + $0x2c] sm:$0x1] }
 0x1d0   : > { %v7140_v59 = vadd.f32 %v7014_v27, %v6848_v32  ;;  %v1820_v40 = vadd.f32 %v1788_v63, %v1752_v53  ;;  %v1821_v5 = vadd.f32 %v1789_v13, %v1753_v15  ;;  %v1993_v12 = vmul.f32 %v9294_v21, %v14639_v9  ;;  %v14640_v13 = vld [vmem:[#allocation69_spill] sm:$0xff]  ;;  %v14641_v21 = vld [vmem:[#allocation78_spill] sm:$0xff] }
 0x1d1   : > { %v2060_v23 = vmul.f32 %v9312_v30, %v9616_v43  ;;  %v2061_v16 = vmul.f32 %v9312_v30, %v9575_v28  ;;  %v2128_v33 = vmul.f32 %v9315_v31, %v9575_v28  ;;  %v7796_v20 = vmul.f32 0.5, %v7764_v58 }
 0x1d2   : > { %v7432_v45 = vadd.f32 %v7306_v8, %v7140_v59  ;;  %v7828_v27 = vmul.f32 0.70710677, %v7764_v58  ;;  %v1888_v32 = vadd.f32 %v1856_v47, %v1820_v40  ;;  %v1889_v63 = vadd.f32 %v1857_v38, %v1821_v5 }
 0x1d3   : > { %v2129_v53 = vmul.f32 %v9315_v31, %v14640_v13  ;;  %v2196_v15 = vmul.f32 %v9333_v46, %v14640_v13  ;;  %v2197_v19 = vmul.f32 %v9333_v46, %v14641_v21  ;;  %v10182_v0 = vunpack.c.l.bf16 %v2262_v57 }
 0x1d4   : > { %v7724_v30 = vadd.f32 %v7598_v39, %v7432_v45  ;;  %8819 = verf.f32 %v7828_v27  ;;  %v1956_v24 = vadd.f32 %v1924_v42, %v1888_v32  ;;  %v1957_v8 = vadd.f32 %v1925_v22, %v1889_v63  ;;  %v14642_v45 = vld [vmem:[#allocation14_spill] sm:$0xff] }
 0x1d5   : > { %v10184_v59 = vunpack.c.l.bf16 %v2263_v48  ;;  %v2386_v40 = vmul.f32 %v9232_v62, %v14634_v49  ;;  %v2387_v58 = vmul.f32 %v9232_v62, %v14614_v52  ;;  %v2388_v5 = vmul.f32 %v9232_v62, %v14635_v17 }
 0x1d6   : > { %v7763_v47 = vadd.f32 %v10151_v56, %v7724_v30  ;;  %v2024_v38 = vadd.f32 %v1992_v41, %v1956_v24  ;;  %v2389_v39 = vmul.f32 %v9232_v62, %v14617_v34  ;;  %v2025_v42 = vadd.f32 %v1993_v12, %v1957_v8 }
 0x1d7   : > { %v2517_v57 = vrot.slane %v2386_v40, 1  ;;  %v2518_v22 = vrot.slane %v2387_v58, 1  ;;  %v2679_v27 = vmul.f32 %v14642_v45, %v14635_v17  ;;  %v2520_v63 = vrot.slane %v2388_v5, 1  ;;  %v14643_v5 = vld [vmem:[#allocation16_spill] sm:$0xff] }
 0x1d8   : > { %v7795_v32 = vmul.f32 0.5, %v7763_v47  ;;  %v7827_v49 = vmul.f32 0.70710677, %v7763_v47  ;;  %v2092_v48 = vadd.f32 %v2060_v23, %v2024_v38  ;;  %v2093_v46 = vadd.f32 %v2061_v16, %v2025_v42 }
 0x1d9   : > { %v2519_v30 = vsel %vm2510_vm1, %v2517_v57, %v2518_v22  ;;  %v2521_v41 = vrot.slane %v2389_v39, 1  ;;  %v2680_v24 = vmul.f32 %v14642_v45, %v14617_v34  ;;  %v2681_v12 = vmul.f32 %v14642_v45, %v10133_v10 }
 0x1da   : > { %8821 = verf.f32 %v7827_v49  ;;  %v2160_v31 = vadd.f32 %v2128_v33, %v2092_v48  ;;  %v2682_v8 = vmul.f32 %v14642_v45, %v10182_v0  ;;  %v2161_v17 = vadd.f32 %v2129_v53, %v2093_v46 }
 0x1db   : > { %v2522_v40 = vsel %vm2510_vm1, %v2520_v63, %v2521_v41  ;;  %v2809_v23 = vrot.slane %v2679_v27, 1  ;;  %v2810_v58 = vrot.slane %v2680_v24, 1  ;;  %v2812_v47 = vrot.slane %v2681_v12, 1 }
 0x1dc   : > { %v2228_v16 = vadd.f32 %v2196_v15, %v2160_v31  ;;  %v2813_v38 = vrot.slane %v2682_v8, 1  ;;  %v2971_v39 = vmul.f32 %v14643_v5, %v10133_v10  ;;  %v2229_v42 = vadd.f32 %v2197_v19, %v2161_v17 }
 0x1dd   : > { %v2811_v33 = vsel %vm2510_vm1, %v2809_v23, %v2810_v58  ;;  %v2972_v57 = vmul.f32 %v14643_v5, %v10182_v0  ;;  %v2973_v22 = vmul.f32 %v14643_v5, %v10136_v3  ;;  %v2974_v31 = vmul.f32 %v14643_v5, %v10184_v59 }
 0x1de   : > { %v8820_v46 = vpop.eup %8819  ;;  %v2641_v53 = vadd.f32 %v2519_v30, %v2228_v16  ;;  %v2814_v27 = vsel %vm2510_vm1, %v2812_v47, %v2813_v38  ;;  %v3101_v15 = vrot.slane %v2971_v39, 1  ;;  %v2642_v48 = vadd.f32 %v2522_v40, %v2229_v42 }
 0x1df   : > { %v7892_v49 = vadd.f32 1.0, %v8820_v46  ;;  %v3102_v63 = vrot.slane %v2972_v57, 1  ;;  %v3104_v19 = vrot.slane %v2973_v22, 1  ;;  %v3105_v24 = vrot.slane %v2974_v31, 1 }
 0x1e0   : > { %v2933_v41 = vadd.f32 %v2811_v33, %v2641_v53  ;;  %v3263_v12 = vmul.f32 %v9301_v25, %v9502_v36  ;;  %v3264_v8 = vmul.f32 %v9301_v25, %v9504_v6  ;;  %v2934_v30 = vadd.f32 %v2814_v27, %v2642_v48  ;;  %v14644_v27 = vld [vmem:[#allocation53_spill] sm:$0xff] }
 0x1e1   : > { %v7924_v17 = vmul.f32 %v7892_v49, %v7796_v20  ;;  %v3103_v23 = vsel %vm2510_vm1, %v3101_v15, %v3102_v63  ;;  %v3265_v58 = vmul.f32 %v9301_v25, %v9482_v2  ;;  %v3106_v16 = vsel %vm2510_vm1, %v3104_v19, %v3105_v24 }
 0x1e2   : > { %v3225_v40 = vadd.f32 %v3103_v23, %v2933_v41  ;;  %v3266_v47 = vmul.f32 %v9301_v25, %v9484_v4  ;;  %v3393_v38 = vrot.slane %v3263_v12, 1  ;;  %v3226_v39 = vadd.f32 %v3106_v16, %v2934_v30 }
 0x1e3   : > { %v3394_v42 = vrot.slane %v3264_v8, 1  ;;  %v3396_v33 = vrot.slane %v3265_v58, 1  ;;  %v3555_v57 = vmul.f32 %v9304_v26, %v9482_v2  ;;  %v3556_v46 = vmul.f32 %v9304_v26, %v9484_v4 }
 0x1e4   : > { %v8822_v20 = vpop.eup %8821  ;;  %v3397_v22 = vrot.slane %v3266_v47, 1  ;;  %v3557_v53 = vmul.f32 %v9304_v26, %v14638_v11  ;;  %v3558_v31 = vmul.f32 %v9304_v26, %v14644_v27  ;;  %v3847_v63 = vmul.f32 %v9308_v29, %v14638_v11 }
 0x1e5   : > { %v7891_v15 = vadd.f32 1.0, %v8822_v20  ;;  %v3395_v49 = vsel %vm2510_vm1, %v3393_v38, %v3394_v42  ;;  %v3685_v48 = vrot.slane %v3555_v57, 1  ;;  %v3686_v24 = vrot.slane %v3556_v46, 1  ;;  %v14645_v38 = vld [vmem:[#allocation59_spill] sm:$0xff] }
 0x1e6   : > { %v3398_v19 = vsel %vm2510_vm1, %v3396_v33, %v3397_v22  ;;  %v3517_v41 = vadd.f32 %v3395_v49, %v3225_v40  ;;  %v3688_v12 = vrot.slane %v3557_v53, 1  ;;  %v3689_v23 = vrot.slane %v3558_v31, 1 }
 0x1e7   : > { %v7923_v8 = vmul.f32 %v7891_v15, %v7795_v32  ;;  %v3518_v30 = vadd.f32 %v3398_v19, %v3226_v39  ;;  %v3848_v58 = vmul.f32 %v9308_v29, %v14644_v27  ;;  %v3687_v16 = vsel %vm2510_vm1, %v3685_v48, %v3686_v24 }
 0x1e8   : > { %v3849_v47 = vmul.f32 %v9308_v29, %v14639_v9  ;;  %v3850_v42 = vmul.f32 %v9308_v29, %v14645_v38  ;;  %v3977_v57 = vrot.slane %v3847_v63, 1  ;;  %v3690_v40 = vsel %vm2510_vm1, %v3688_v12, %v3689_v23 }
 0x1e9   : > { %v7955_v20 = vpack.c.bf16 %v7924_v17, %v7923_v8  ;;  %v3809_v33 = vadd.f32 %v3687_v16, %v3517_v41  ;;  %v3978_v22 = vrot.slane %v3848_v58, 1  ;;  %v3810_v32 = vadd.f32 %v3690_v40, %v3518_v30  ;;  %v14646_v16 = vld [vmem:[#allocation70_spill] sm:$0xff] }
 0x1ea   : > { %v3980_v39 = vrot.slane %v3849_v47, 1  ;;  %v3981_v46 = vrot.slane %v3850_v42, 1  ;;  %v4139_v53 = vmul.f32 %v9344_v50, %v9616_v43  ;;  %v4140_v15 = vmul.f32 %v9344_v50, %v14595_v1 }
 0x1eb   : > { %8722 = vmatprep.mubr.bf16.mxu1 %v7955_v20  ;;  %v3979_v31 = vsel %vm2510_vm1, %v3977_v57, %v3978_v22  ;;  %v4141_v49 = vmul.f32 %v9344_v50, %v9575_v28  ;;  %v4142_v17 = vmul.f32 %v9344_v50, %v14598_v37  ;;  %v4431_v41 = vmul.f32 %v14591_v61, %v9575_v28  ;;  %v5011_v22 = vld [vmem:[#allocation2 + $0x20] sm:$0xe] }
 0x1ec   : > { %v3982_v48 = vsel %vm2510_vm1, %v3980_v39, %v3981_v46  ;;  %v4101_v63 = vadd.f32 %v3979_v31, %v3809_v33  ;;  %v4269_v19 = vrot.slane %v4139_v53, 1  ;;  %v4270_v12 = vrot.slane %v4140_v15, 1 }
 0x1ed   : > { %v4102_v24 = vadd.f32 %v3982_v48, %v3810_v32  ;;  %v4272_v8 = vrot.slane %v4141_v49, 1  ;;  %v4273_v30 = vrot.slane %v4142_v17, 1  ;;  %v4432_v23 = vmul.f32 %v14591_v61, %v14598_v37  ;;  %v5012_v32 = vld [vmem:[#allocation2 + $0x28] sm:$0xe] }
 0x1ee   : > { %v4433_v58 = vmul.f32 %v14591_v61, %v14640_v13  ;;  %v4434_v47 = vmul.f32 %v14591_v61, %v14646_v16  ;;  %v4561_v42 = vrot.slane %v4431_v41, 1  ;;  %v4271_v57 = vsel %vm2510_vm1, %v4269_v19, %v4270_v12  ;;  %v14647_v17 = vld [vmem:[#allocation80_spill] sm:$0xff]  ;;  %v5021_v41 = vld [vmem:[#allocation2 + $0x70] sm:$0xe]  ;;  %v5022_v12 = vld [vmem:[#allocation2 + $0x78] sm:$0xe] }
 0x1ef   : > { %v4274_v20 = vsel %vm2510_vm1, %v4272_v8, %v4273_v30  ;;  %v4723_v40 = vmul.f32 %v14597_v51, %v14640_v13  ;;  %v4724_v33 = vmul.f32 %v14597_v51, %v14646_v16  ;;  %v4393_v39 = vadd.f32 %v4271_v57, %v4101_v63 }
 0x1f0   : > { %v4394_v46 = vadd.f32 %v4274_v20, %v4102_v24  ;;  %v4562_v53 = vrot.slane %v4432_v23, 1  ;;  %v4564_v31 = vrot.slane %v4433_v58, 1  ;;  %v4565_v15 = vrot.slane %v4434_v47, 1 }
 0x1f1   : > { %v4725_v49 = vmul.f32 %v14597_v51, %v14641_v21  ;;  %v4726_v48 = vmul.f32 %v14597_v51, %v14647_v17  ;;  %v4853_v19 = vrot.slane %v4723_v40, 1  ;;  %v4854_v30 = vrot.slane %v4724_v33, 1 }
 0x1f2   : > { %v4563_v8 = vsel %vm2510_vm1, %v4561_v42, %v4562_v53  ;;  %v10274_v28 = vunpack.c.l.bf16 %v5011_v22  ;;  %v10276_v43 = vunpack.c.l.bf16 %v5012_v32  ;;  %v4566_v63 = vsel %vm2510_vm1, %v4564_v31, %v4565_v15  ;;  %v14651_v31 = vld [vmem:[#allocation34_spill] sm:$0xff] }
 0x1f3   : > { %v4685_v24 = vadd.f32 %v4563_v8, %v4393_v39  ;;  %v4856_v23 = vrot.slane %v4725_v49, 1  ;;  %v4857_v58 = vrot.slane %v4726_v48, 1  ;;  %v4686_v47 = vadd.f32 %v4566_v63, %v4394_v46  ;;  %v14650_v39 = vld [vmem:[#allocation46_spill] sm:$0xff] }
 0x1f4   : > { %v4855_v57 = vsel %vm2510_vm1, %v4853_v19, %v4854_v30  ;;  %v10280_v20 = vunpack.c.l.bf16 %v5021_v41  ;;  %v10282_v40 = vunpack.c.l.bf16 %v5022_v12  ;;  %v5135_v33 = vmul.f32 %v14607_v7, %v9979_v14 }
 0x1f5   : > { %v4858_v2 = vsel %vm2510_vm1, %v4856_v23, %v4857_v58  ;;  %v4977_v42 = vadd.f32 %v4855_v57, %v4685_v24  ;;  %v5136_v22 = vmul.f32 %v14607_v7, %v14614_v52  ;;  %v5137_v53 = vmul.f32 %v14607_v7, %v14650_v39  ;;  %v14652_v24 = vld [vmem:[#allocation35_spill] sm:$0xff] }
 0x1f6   : > { %14648 = vst [vmem:[#allocation9_spill] sm:$0xff] %v10280_v20  ;;  %14649 = vst [vmem:[#allocation11_spill] sm:$0xff] %v10282_v40  ;;  %v4978_v32 = vadd.f32 %v4858_v2, %v4686_v47  ;;  %v5138_v46 = vmul.f32 %v14607_v7, %v14617_v34  ;;  %v5428_v15 = vmul.f32 %v14651_v31, %v14650_v39  ;;  %v5266_v49 = vrot.slane %v5135_v33, 2 }
 0x1f7   : > { %v5267_v48 = vrot.slane %v5136_v22, 2  ;;  %v5429_v19 = vmul.f32 %v14651_v31, %v14617_v34  ;;  %v5430_v14 = vmul.f32 %v14651_v31, %v10274_v28  ;;  %v5269_v41 = vrot.slane %v5137_v53, 2 }
 0x1f8   : > { %v5270_v52 = vrot.slane %v5138_v46, 2  ;;  %v5431_v2 = vmul.f32 %v14651_v31, %v10182_v0  ;;  %v5558_v12 = vrot.slane %v5428_v15, 2  ;;  %v5720_v23 = vmul.f32 %v14652_v24, %v10274_v28 }
 0x1f9   : > { %v5268_v8 = vsel %vm5259_vm8, %v5266_v49, %v5267_v48  ;;  %v5559_v30 = vrot.slane %v5429_v19, 2  ;;  %v5561_v63 = vrot.slane %v5430_v14, 2  ;;  %v5721_v57 = vmul.f32 %v14652_v24, %v10182_v0 }
 0x1fa   : > { %v5271_v58 = vsel %vm5259_vm8, %v5269_v41, %v5270_v52  ;;  %v5390_v47 = vadd.f32 %v5268_v8, %v4977_v42  ;;  %v5562_v34 = vrot.slane %v5431_v2, 2  ;;  %v5722_v39 = vmul.f32 %v14652_v24, %v10276_v43 }
 0x1fb   : > { %v5391_v33 = vadd.f32 %v5271_v58, %v4978_v32  ;;  %v5560_v22 = vsel %vm5259_vm8, %v5558_v12, %v5559_v30  ;;  %v5723_v53 = vmul.f32 %v14652_v24, %v10184_v59  ;;  %v5850_v49 = vrot.slane %v5720_v23, 2 }
 0x1fc   : > { %v5563_v46 = vsel %vm5259_vm8, %v5561_v63, %v5562_v34  ;;  %v5682_v15 = vadd.f32 %v5560_v22, %v5390_v47  ;;  %v5851_v48 = vrot.slane %v5721_v57, 2  ;;  %v5853_v42 = vrot.slane %v5722_v39, 2 }
 0x1fd   : > { %v5683_v19 = vadd.f32 %v5563_v46, %v5391_v33  ;;  %v5854_v14 = vrot.slane %v5723_v53, 2  ;;  %v6012_v41 = vmul.f32 %v14618_v55, %v9987_v18  ;;  %v6013_v52 = vmul.f32 %v14618_v55, %v9504_v6 }
 0x1fe   : > { %v5852_v32 = vsel %vm5259_vm8, %v5850_v49, %v5851_v48  ;;  %v6014_v2 = vmul.f32 %v14618_v55, %v9990_v60  ;;  %v6015_v12 = vmul.f32 %v14618_v55, %v9484_v4  ;;  %v6304_v23 = vmul.f32 %v14623_v54, %v9990_v60 }
 0x1ff   : > { %v5855_v8 = vsel %vm5259_vm8, %v5853_v42, %v5854_v14  ;;  %v5974_v30 = vadd.f32 %v5852_v32, %v5682_v15  ;;  %v6142_v63 = vrot.slane %v6012_v41, 2  ;;  %v6143_v47 = vrot.slane %v6013_v52, 2 }
 0x200   : > { %v5975_v58 = vadd.f32 %v5855_v8, %v5683_v19  ;;  %v6145_v34 = vrot.slane %v6014_v2, 2  ;;  %v6146_v57 = vrot.slane %v6015_v12, 2  ;;  %v6305_v33 = vmul.f32 %v14623_v54, %v9484_v4 }
 0x201   : > { %v6306_v22 = vmul.f32 %v14623_v54, %v10280_v20  ;;  %v6307_v39 = vmul.f32 %v14623_v54, %v14644_v27  ;;  %v6434_v53 = vrot.slane %v6304_v23, 2  ;;  %v6144_v46 = vsel %vm5259_vm8, %v6142_v63, %v6143_v47  ;;  %v14653_v23 = vld [vmem:[#allocation28_spill] sm:$0xff] }
 0x202   : > { %v6147_v15 = vsel %vm5259_vm8, %v6145_v34, %v6146_v57  ;;  %v6596_v49 = vmul.f32 %v14624_v35, %v10280_v20  ;;  %v6597_v48 = vmul.f32 %v14624_v35, %v14644_v27  ;;  %v6266_v19 = vadd.f32 %v6144_v46, %v5974_v30  ;;  %v14654_v46 = vld [vmem:[#allocation66_spill] sm:$0xff] }
 0x203   : > { %v6267_v42 = vadd.f32 %v6147_v15, %v5975_v58  ;;  %v6435_v14 = vrot.slane %v6305_v33, 2  ;;  %v6437_v41 = vrot.slane %v6306_v22, 2  ;;  %v6438_v32 = vrot.slane %v6307_v39, 2 }
 0x204   : > { %v6598_v52 = vmul.f32 %v14624_v35, %v10282_v40  ;;  %v6599_v2 = vmul.f32 %v14624_v35, %v14645_v38  ;;  %v6726_v12 = vrot.slane %v6596_v49, 2  ;;  %v6727_v63 = vrot.slane %v6597_v48, 2 }
 0x205   : > { %v6436_v8 = vsel %vm5259_vm8, %v6434_v53, %v6435_v14  ;;  %v6888_v47 = vmul.f32 %v14653_v23, %v14630_v44  ;;  %v6889_v30 = vmul.f32 %v14653_v23, %v14595_v1  ;;  %v6439_v58 = vsel %vm5259_vm8, %v6437_v41, %v6438_v32 }
 0x206   : > { %v6558_v34 = vadd.f32 %v6436_v8, %v6266_v19  ;;  %v6729_v57 = vrot.slane %v6598_v52, 2  ;;  %v6730_v33 = vrot.slane %v6599_v2, 2  ;;  %v6559_v22 = vadd.f32 %v6439_v58, %v6267_v42  ;;  %v14655_v19 = vld [vmem:[#allocation45_spill] sm:$0xff]  ;;  %v14656_v2 = vld [vmem:[#allocation71_spill] sm:$0xff]  ;;  %v14657_v58 = vld [vmem:[#allocation30_spill] sm:$0xff] }
 0x207   : > { %v6728_v39 = vsel %vm5259_vm8, %v6726_v12, %v6727_v63  ;;  %v6890_v15 = vmul.f32 %v14653_v23, %v14654_v46  ;;  %v6891_v53 = vmul.f32 %v14653_v23, %v14598_v37  ;;  %v7018_v14 = vrot.slane %v6888_v47, 2 }
 0x208   : > { %v6731_v49 = vsel %vm5259_vm8, %v6729_v57, %v6730_v33  ;;  %v6850_v48 = vadd.f32 %v6728_v39, %v6558_v34  ;;  %v7019_v44 = vrot.slane %v6889_v30, 2  ;;  %v7180_v32 = vmul.f32 %v14655_v19, %v14654_v46  ;;  %v1532_v57 = vld [vmem:[#allocation2 + $0x30] ss:$8 sps:$4 sm:$0xff]   ;;  %v14659_v46 = vld [vmem:[#allocation4_spill] sm:$0xff] }
 0x209   : > { %v6851_v60 = vadd.f32 %v6731_v49, %v6559_v22  ;;  %v7021_v18 = vrot.slane %v6890_v15, 2  ;;  %v7022_v41 = vrot.slane %v6891_v53, 2  ;;  %v7181_v52 = vmul.f32 %v14655_v19, %v14598_v37  ;;  %v14658_v53 = vld [vmem:[#allocation79_spill] sm:$0xff] }
 0x20a   : > { %v7020_v42 = vsel %vm5259_vm8, %v7018_v14, %v7019_v44  ;;  %v7182_v12 = vmul.f32 %v14655_v19, %v14656_v2  ;;  %v7183_v8 = vmul.f32 %v14655_v19, %v14646_v16  ;;  %v7310_v30 = vrot.slane %v7180_v32, 2 }
 0x20b   : > { %v7023_v63 = vsel %vm5259_vm8, %v7021_v18, %v7022_v41  ;;  %v7142_v47 = vadd.f32 %v7020_v42, %v6850_v48  ;;  %v7472_v34 = vmul.f32 %v14657_v58, %v14656_v2  ;;  %v7311_v22 = vrot.slane %v7181_v52, 2 }
 0x20c   : > { %v7143_v33 = vadd.f32 %v7023_v63, %v6851_v60  ;;  %v7313_v44 = vrot.slane %v7182_v12, 2  ;;  %v7314_v39 = vrot.slane %v7183_v8, 2  ;;  %v7473_v15 = vmul.f32 %v14657_v58, %v14646_v16 }
 0x20d   : > { %v7474_v49 = vmul.f32 %v14657_v58, %v14658_v53  ;;  %v7475_v14 = vmul.f32 %v14657_v58, %v14647_v17  ;;  %v7602_v18 = vrot.slane %v7472_v34, 2  ;;  %v7312_v48 = vsel %vm5259_vm8, %v7310_v30, %v7311_v22  ;;  %v14660_v34 = vld [vmem:[#allocation5_spill] sm:$0xff] }
 0x20e   : > { %v7315_v41 = vsel %vm5259_vm8, %v7313_v44, %v7314_v39  ;;  %v10373_v32 = vunpack.c.l.bf16 %v1532_v57  ;;  %v10375_v60 = vunpack.c.h.bf16 %v1532_v57  ;;  %v7434_v42 = vadd.f32 %v7312_v48, %v7142_v47  ;;  %v14661_v47 = vld [vmem:[#allocation6_spill] sm:$0xff] }
 0x20f   : > { %v7435_v52 = vadd.f32 %v7315_v41, %v7143_v33  ;;  %v7603_v12 = vrot.slane %v7473_v15, 2  ;;  %v7605_v8 = vrot.slane %v7474_v49, 2  ;;  %v7606_v63 = vrot.slane %v7475_v14, 2  ;;  %v14662_v14 = vld [vmem:[#allocation18_spill] sm:$0xff] }
 0x210   : > { %v1654_v37 = vmul.f32 %v14659_v46, %v10133_v10  ;;  %v1655_v1 = vmul.f32 %v14659_v46, %v10136_v3  ;;  %v1722_v30 = vmul.f32 %v14660_v34, %v10136_v3  ;;  %v1723_v57 = vmul.f32 %v14660_v34, %v10373_v32  ;;  %v14664_v46 = vld [vmem:[#allocation62_spill] sm:$0xff] }
 0x211   : > { %v7604_v22 = vsel %vm5259_vm8, %v7602_v18, %v7603_v12  ;;  %v1790_v33 = vmul.f32 %v14661_v47, %v10373_v32  ;;  %v1791_v44 = vmul.f32 %v14661_v47, %v10375_v60  ;;  %v7607_v39 = vsel %vm5259_vm8, %v7605_v8, %v7606_v63  ;;  %v14663_v12 = vld [vmem:[#allocation19_spill] sm:$0xff] }
 0x212   : > { %v7726_v15 = vadd.f32 %v7604_v22, %v7434_v42  ;;  %v1754_v49 = vadd.f32 %v1722_v30, %v1654_v37  ;;  %v1858_v48 = vmul.f32 %v14662_v14, %v14638_v11  ;;  %v7727_v41 = vadd.f32 %v7607_v39, %v7435_v52  ;;  %v14665_v42 = vld [vmem:[#allocation20_spill] sm:$0xff]  ;;  %v14667_v30 = vld [vmem:[#allocation22_spill] sm:$0xff] }
 0x213   : > { %v1755_v4 = vadd.f32 %v1723_v57, %v1655_v1  ;;  %v1859_v18 = vmul.f32 %v14662_v14, %v14639_v9  ;;  %v1926_v6 = vmul.f32 %v14663_v12, %v14639_v9  ;;  %v1927_v47 = vmul.f32 %v14663_v12, %v14664_v46  ;;  %v14666_v52 = vld [vmem:[#allocation56_spill] sm:$0xff] }
 0x214   : > { %v7765_v36 = vadd.f32 %v10151_v56, %v7726_v15  ;;  %v1822_v34 = vadd.f32 %v1790_v33, %v1754_v49  ;;  %v1994_v37 = vmul.f32 %v14665_v42, %v14664_v46  ;;  %v7766_v8 = vadd.f32 %v10151_v56, %v7727_v41  ;;  %v2264_v49 = vld [vmem:[#allocation2 + $0x34] sm:$0x1] }
 0x215   : > { %v1823_v63 = vadd.f32 %v1791_v44, %v1755_v4  ;;  %v1995_v1 = vmul.f32 %v14665_v42, %v14666_v52  ;;  %v2062_v22 = vmul.f32 %v14667_v30, %v14640_v13  ;;  %v2063_v33 = vmul.f32 %v14667_v30, %v14641_v21  ;;  %v14668_v4 = vld [vmem:[#allocation23_spill] sm:$0xff]  ;;  %v2265_v44 = vld [vmem:[#allocation2 + $0x3c] sm:$0x1] }
 0x216   : > { %v10407_v57 = vmul.f32 0.5, %v7765_v36  ;;  %v7829_v39 = vmul.f32 0.70710677, %v7765_v36  ;;  %v1890_v15 = vadd.f32 %v1858_v48, %v1822_v34  ;;  %v10411_v12 = vmul.f32 0.5, %v7766_v8  ;;  %v14669_v42 = vld [vmem:[#allocation83_spill] sm:$0xff] }
 0x217   : > { %v7830_v14 = vmul.f32 0.70710677, %v7766_v8  ;;  %v1891_v58 = vadd.f32 %v1859_v18, %v1823_v63  ;;  %v2130_v56 = vmul.f32 %v14668_v4, %v14641_v21  ;;  %v2131_v19 = vmul.f32 %v14668_v4, %v14669_v42  ;;  %v14670_v36 = vld [vmem:[#allocation27_spill] sm:$0xff] }
 0x218   : > { %8823 = verf.f32 %v7829_v39  ;;  %v1958_v41 = vadd.f32 %v1926_v6, %v1890_v15  ;;  %v2198_v34 = vmul.f32 %v14670_v36, %v14669_v42  ;;  %v14671_v30 = vld [vmem:[#allocation75_spill] sm:$0xff]  ;;  %v10421_v23 = vunpack.c.l.bf16 %v2264_v49 }
 0x219   : > { %8825 = verf.f32 %v7830_v14  ;;  %v1959_v48 = vadd.f32 %v1927_v47, %v1891_v58  ;;  %v2199_v53 = vmul.f32 %v14670_v36, %v14671_v30  ;;  %v10423_v8 = vunpack.c.l.bf16 %v2265_v44 }
 0x21a   : > { %v2026_v18 = vadd.f32 %v1994_v37, %v1958_v41  ;;  %v2390_v63 = vmul.f32 %v9232_v62, %v10133_v10  ;;  %v2391_v6 = vmul.f32 %v9232_v62, %v10182_v0  ;;  %v2392_v15 = vmul.f32 %v9232_v62, %v10136_v3 }
 0x21b   : > { %v2027_v39 = vadd.f32 %v1995_v1, %v1959_v48  ;;  %v2393_v58 = vmul.f32 %v9232_v62, %v10184_v59  ;;  %v2683_v47 = vmul.f32 %v14642_v45, %v10136_v3  ;;  %v2684_v44 = vmul.f32 %v14642_v45, %v10184_v59 }
 0x21c   : > { %v2094_v14 = vadd.f32 %v2062_v22, %v2026_v18  ;;  %v2523_v37 = vrot.slane %v2390_v63, 1  ;;  %v2524_v49 = vrot.slane %v2391_v6, 1  ;;  %v2526_v41 = vrot.slane %v2392_v15, 1 }
 0x21d   : > { %v2095_v10 = vadd.f32 %v2063_v33, %v2027_v39  ;;  %v2527_v36 = vrot.slane %v2393_v58, 1  ;;  %v2685_v1 = vmul.f32 %v14642_v45, %v10373_v32  ;;  %v2686_v62 = vmul.f32 %v14642_v45, %v10421_v23 }
 0x21e   : > { %v2162_v48 = vadd.f32 %v2130_v56, %v2094_v14  ;;  %v2525_v4 = vsel %vm2510_vm1, %v2523_v37, %v2524_v49  ;;  %v2815_v2 = vrot.slane %v2683_v47, 1  ;;  %v2816_v18 = vrot.slane %v2684_v44, 1 }
 0x21f   : > { %v2163_v3 = vadd.f32 %v2131_v19, %v2095_v10  ;;  %v2528_v22 = vsel %vm2510_vm1, %v2526_v41, %v2527_v36  ;;  %v2818_v63 = vrot.slane %v2685_v1, 1  ;;  %v2819_v35 = vrot.slane %v2686_v62, 1 }
 0x220   : > { %v2230_v6 = vadd.f32 %v2198_v34, %v2162_v48  ;;  %v2975_v33 = vmul.f32 %v14643_v5, %v10373_v32  ;;  %v2976_v39 = vmul.f32 %v14643_v5, %v10421_v23  ;;  %v2817_v15 = vsel %vm2510_vm1, %v2815_v2, %v2816_v18 }
 0x221   : > { %v2231_v56 = vadd.f32 %v2199_v53, %v2163_v3  ;;  %v2977_v58 = vmul.f32 %v14643_v5, %v10375_v60  ;;  %v2978_v19 = vmul.f32 %v14643_v5, %v10423_v8  ;;  %v2820_v34 = vsel %vm2510_vm1, %v2818_v63, %v2819_v35 }
 0x222   : > { %v8824_v36 = vpop.eup %8823  ;;  %v2643_v47 = vadd.f32 %v2525_v4, %v2230_v6  ;;  %v3107_v62 = vrot.slane %v2975_v33, 1  ;;  %v3108_v14 = vrot.slane %v2976_v39, 1  ;;  %v3267_v48 = vmul.f32 %v9301_v25, %v14638_v11 }
 0x223   : > { %v8826_v37 = vpop.eup %8825  ;;  %v7893_v49 = vadd.f32 1.0, %v8824_v36  ;;  %v2644_v44 = vadd.f32 %v2528_v22, %v2231_v56  ;;  %v3110_v10 = vrot.slane %v2977_v58, 1  ;;  %v3111_v41 = vrot.slane %v2978_v19, 1 }
 0x224   : > { %v7894_v53 = vadd.f32 1.0, %v8826_v37  ;;  %v2935_v1 = vadd.f32 %v2817_v15, %v2643_v47  ;;  %v3109_v2 = vsel %vm2510_vm1, %v3107_v62, %v3108_v14  ;;  %v3268_v35 = vmul.f32 %v9301_v25, %v14644_v27  ;;  %v14672_v62 = vld [vmem:[#allocation63_spill] sm:$0xff] }
 0x225   : > { %v7925_v3 = vmul.f32 %v7893_v49, %v10407_v57  ;;  %v2936_v18 = vadd.f32 %v2820_v34, %v2644_v44  ;;  %v3112_v4 = vsel %vm2510_vm1, %v3110_v10, %v3111_v41  ;;  %v3269_v6 = vmul.f32 %v9301_v25, %v14639_v9 }
 0x226   : > { %v7926_v63 = vmul.f32 %v7894_v53, %v10411_v12  ;;  %v3227_v22 = vadd.f32 %v3109_v2, %v2935_v1  ;;  %v3270_v33 = vmul.f32 %v9301_v25, %v14645_v38  ;;  %v3399_v56 = vrot.slane %v3267_v48, 1 }
 0x227   : > { %v3228_v39 = vadd.f32 %v3112_v4, %v2936_v18  ;;  %v3400_v15 = vrot.slane %v3268_v35, 1  ;;  %v3559_v57 = vmul.f32 %v9304_v26, %v14639_v9  ;;  %v3402_v19 = vrot.slane %v3269_v6, 1  ;;  %v14673_v4 = vld [vmem:[#allocation57_spill] sm:$0xff] }
 0x228   : > { %v7956_v58 = vpack.c.bf16 %v7926_v63, %v7925_v3  ;;  %v3403_v36 = vrot.slane %v3270_v33, 1  ;;  %v3560_v47 = vmul.f32 %v9304_v26, %v14645_v38  ;;  %v3561_v34 = vmul.f32 %v9304_v26, %v14664_v46 }
 0x229   : > { %v3401_v12 = vsel %vm2510_vm1, %v3399_v56, %v3400_v15  ;;  %v3562_v14 = vmul.f32 %v9304_v26, %v14672_v62  ;;  %v3691_v37 = vrot.slane %v3559_v57, 1  ;;  %v3851_v41 = vmul.f32 %v9308_v29, %v14664_v46 }
 0x22a   : > { %8723 = vmatmul.mubr.bf16.vlgmr.msra.gmra.mrb[0].mxu1 %v7956_v58  ;;  %v3404_v49 = vsel %vm2510_vm1, %v3402_v19, %v3403_v36  ;;  %v3519_v44 = vadd.f32 %v3401_v12, %v3227_v22  ;;  %v3692_v10 = vrot.slane %v3560_v47, 1  ;;  %v3694_v1 = vrot.slane %v3561_v34, 1 }
 0x22b   : > { %v3520_v53 = vadd.f32 %v3404_v49, %v3228_v39  ;;  %v3695_v2 = vrot.slane %v3562_v14, 1  ;;  %v3852_v48 = vmul.f32 %v9308_v29, %v14672_v62  ;;  %v3853_v18 = vmul.f32 %v9308_v29, %v14666_v52 }
 0x22c   : > { %v3693_v3 = vsel %vm2510_vm1, %v3691_v37, %v3692_v10  ;;  %v3854_v35 = vmul.f32 %v9308_v29, %v14673_v4  ;;  %v3983_v63 = vrot.slane %v3851_v41, 1  ;;  %v4143_v39 = vmul.f32 %v9344_v50, %v14640_v13 }
 0x22d   : > { %v3696_v22 = vsel %vm2510_vm1, %v3694_v1, %v3695_v2  ;;  %v3811_v6 = vadd.f32 %v3693_v3, %v3519_v44  ;;  %v3984_v33 = vrot.slane %v3852_v48, 1  ;;  %v3986_v15 = vrot.slane %v3853_v18, 1  ;;  %v14674_v48 = vld [vmem:[#allocation84_spill] sm:$0xff] }
 0x22e   : > { %v3812_v56 = vadd.f32 %v3696_v22, %v3520_v53  ;;  %v3987_v57 = vrot.slane %v3854_v35, 1  ;;  %v4144_v58 = vmul.f32 %v9344_v50, %v14646_v16  ;;  %v4145_v36 = vmul.f32 %v9344_v50, %v14641_v21 }
 0x22f   : > { %v3985_v19 = vsel %vm2510_vm1, %v3983_v63, %v3984_v33  ;;  %v4146_v47 = vmul.f32 %v9344_v50, %v14647_v17  ;;  %v4275_v12 = vrot.slane %v4143_v39, 1  ;;  %v4435_v49 = vmul.f32 %v14591_v61, %v14641_v21  ;;  %v5013_v33 = vld [vmem:[#allocation2 + $0x30] sm:$0xe] }
 0x230   : > { %v3988_v34 = vsel %vm2510_vm1, %v3986_v15, %v3987_v57  ;;  %v4103_v14 = vadd.f32 %v3985_v19, %v3811_v6  ;;  %v4276_v37 = vrot.slane %v4144_v58, 1  ;;  %v4278_v10 = vrot.slane %v4145_v36, 1  ;;  %v5014_v58 = vld [vmem:[#allocation2 + $0x38] sm:$0xe] }
 0x231   : > { %v4104_v44 = vadd.f32 %v3988_v34, %v3812_v56  ;;  %v4279_v41 = vrot.slane %v4146_v47, 1  ;;  %v4436_v53 = vmul.f32 %v14591_v61, %v14647_v17  ;;  %v4437_v2 = vmul.f32 %v14591_v61, %v14669_v42  ;;  %v14675_v47 = vld [vmem:[#allocation77_spill] sm:$0xff] }
 0x232   : > { %v4277_v1 = vsel %vm2510_vm1, %v4275_v12, %v4276_v37  ;;  %v4438_v3 = vmul.f32 %v14591_v61, %v14674_v48  ;;  %v4567_v18 = vrot.slane %v4435_v49, 1  ;;  %v4727_v6 = vmul.f32 %v14597_v51, %v14669_v42  ;;  %v5024_v37 = vld [vmem:[#allocation2 + $0x88] sm:$0xe] }
 0x233   : > { %v4280_v35 = vsel %vm2510_vm1, %v4278_v10, %v4279_v41  ;;  %v4395_v63 = vadd.f32 %v4277_v1, %v4103_v14  ;;  %v4568_v22 = vrot.slane %v4436_v53, 1  ;;  %v4570_v56 = vrot.slane %v4437_v2, 1  ;;  %v5023_v14 = vld [vmem:[#allocation2 + $0x80] sm:$0xe] }
 0x234   : > { %v4396_v39 = vadd.f32 %v4280_v35, %v4104_v44  ;;  %v4571_v15 = vrot.slane %v4438_v3, 1  ;;  %v4728_v57 = vmul.f32 %v14597_v51, %v14674_v48  ;;  %v4729_v36 = vmul.f32 %v14597_v51, %v14671_v30 }
 0x235   : > { %v4569_v19 = vsel %vm2510_vm1, %v4567_v18, %v4568_v22  ;;  %v4730_v12 = vmul.f32 %v14597_v51, %v14675_v47  ;;  %v4859_v34 = vrot.slane %v4727_v6, 1  ;;  %v10515_v41 = vunpack.c.l.bf16 %v5013_v33 }
 0x236   : > { %v4572_v49 = vsel %vm2510_vm1, %v4570_v56, %v4571_v15  ;;  %v4687_v44 = vadd.f32 %v4569_v19, %v4395_v63  ;;  %v4860_v10 = vrot.slane %v4728_v57, 1  ;;  %v4862_v1 = vrot.slane %v4729_v36, 1 }
 0x237   : > { %v4688_v53 = vadd.f32 %v4572_v49, %v4396_v39  ;;  %v4863_v2 = vrot.slane %v4730_v12, 1  ;;  %v10517_v3 = vunpack.c.l.bf16 %v5014_v58  ;;  %v10520_v35 = vunpack.c.l.bf16 %v5023_v14 }
 0x238   : > { %v4861_v18 = vsel %vm2510_vm1, %v4859_v34, %v4860_v10  ;;  %v10522_v22 = vunpack.c.l.bf16 %v5024_v37  ;;  %v5139_v6 = vmul.f32 %v14607_v7, %v10274_v28  ;;  %v5140_v33 = vmul.f32 %v14607_v7, %v10182_v0 }
 0x239   : > { %14676 = vst [vmem:[#allocation40_spill] sm:$0xff] %v10520_v35  ;;  %v4864_v56 = vsel %vm2510_vm1, %v4862_v1, %v4863_v2  ;;  %v4979_v63 = vadd.f32 %v4861_v18, %v4687_v44  ;;  %v5141_v39 = vmul.f32 %v14607_v7, %v10276_v43  ;;  %v5142_v57 = vmul.f32 %v14607_v7, %v10184_v59 }
 0x23a   : > { %14677 = vst [vmem:[#allocation15_spill] sm:$0xff] %v10522_v22  ;;  %v4980_v15 = vadd.f32 %v4864_v56, %v4688_v53  ;;  %v5272_v58 = vrot.slane %v5139_v6, 2  ;;  %v5432_v19 = vmul.f32 %v14651_v31, %v10276_v43  ;;  %v5273_v36 = vrot.slane %v5140_v33, 2 }
 0x23b   : > { %v5275_v12 = vrot.slane %v5141_v39, 2  ;;  %v5433_v28 = vmul.f32 %v14651_v31, %v10184_v59  ;;  %v5434_v34 = vmul.f32 %v14651_v31, %v10515_v41  ;;  %v5276_v0 = vrot.slane %v5142_v57, 2 }
 0x23c   : > { %v5435_v14 = vmul.f32 %v14651_v31, %v10421_v23  ;;  %v5564_v37 = vrot.slane %v5432_v19, 2  ;;  %v5724_v49 = vmul.f32 %v14652_v24, %v10515_v41  ;;  %v5274_v44 = vsel %vm5259_vm8, %v5272_v58, %v5273_v36 }
 0x23d   : > { %v5565_v10 = vrot.slane %v5433_v28, 2  ;;  %v5567_v43 = vrot.slane %v5434_v34, 2  ;;  %v5725_v53 = vmul.f32 %v14652_v24, %v10421_v23  ;;  %v5277_v59 = vsel %vm5259_vm8, %v5275_v12, %v5276_v0 }
 0x23e   : > { %v5392_v1 = vadd.f32 %v5274_v44, %v4979_v63  ;;  %v5568_v2 = vrot.slane %v5435_v14, 2  ;;  %v5726_v18 = vmul.f32 %v14652_v24, %v10517_v3  ;;  %v5393_v6 = vadd.f32 %v5277_v59, %v4980_v15 }
 0x23f   : > { %v5566_v56 = vsel %vm5259_vm8, %v5564_v37, %v5565_v10  ;;  %v5727_v33 = vmul.f32 %v14652_v24, %v10423_v8  ;;  %v5856_v39 = vrot.slane %v5724_v49, 2  ;;  %v5857_v19 = vrot.slane %v5725_v53, 2 }
 0x240   : > { %v5569_v57 = vsel %vm5259_vm8, %v5567_v43, %v5568_v2  ;;  %v5684_v58 = vadd.f32 %v5566_v56, %v5392_v1  ;;  %v5859_v36 = vrot.slane %v5726_v18, 2  ;;  %v6016_v63 = vmul.f32 %v14618_v55, %v10280_v20 }
 0x241   : > { %v5685_v28 = vadd.f32 %v5569_v57, %v5393_v6  ;;  %v5860_v34 = vrot.slane %v5727_v33, 2  ;;  %v6017_v12 = vmul.f32 %v14618_v55, %v14644_v27  ;;  %v5858_v15 = vsel %vm5259_vm8, %v5856_v39, %v5857_v19  ;;  %v14678_v19 = vld [vmem:[#allocation43_spill] sm:$0xff] }
 0x242   : > { %v6018_v0 = vmul.f32 %v14618_v55, %v10282_v40  ;;  %v6019_v14 = vmul.f32 %v14618_v55, %v14645_v38  ;;  %v6308_v37 = vmul.f32 %v14623_v54, %v10282_v40  ;;  %v5976_v44 = vadd.f32 %v5858_v15, %v5684_v58  ;;  %v14685_v40 = vld [vmem:[#allocation76_spill] sm:$0xff]  ;;  %v14694_v27 = vld [vmem:[#allocation19_spill] sm:$0xff] }
 0x243   : > { %v5861_v49 = vsel %vm5259_vm8, %v5859_v36, %v5860_v34  ;;  %v6148_v10 = vrot.slane %v6016_v63, 2  ;;  %v6149_v43 = vrot.slane %v6017_v12, 2  ;;  %v6309_v2 = vmul.f32 %v14623_v54, %v14645_v38 }
 0x244   : > { %v5977_v53 = vadd.f32 %v5861_v49, %v5685_v28  ;;  %v6151_v59 = vrot.slane %v6018_v0, 2  ;;  %v6152_v1 = vrot.slane %v6019_v14, 2  ;;  %v6310_v6 = vmul.f32 %v14623_v54, %v10520_v35 }
 0x245   : > { %v6150_v18 = vsel %vm5259_vm8, %v6148_v10, %v6149_v43  ;;  %v6311_v56 = vmul.f32 %v14623_v54, %v14672_v62  ;;  %v6440_v33 = vrot.slane %v6308_v37, 2  ;;  %v6441_v58 = vrot.slane %v6309_v2, 2  ;;  %v14679_v43 = vld [vmem:[#allocation71_spill] sm:$0xff] }
 0x246   : > { %v6153_v39 = vsel %vm5259_vm8, %v6151_v59, %v6152_v1  ;;  %v6268_v57 = vadd.f32 %v6150_v18, %v5976_v44  ;;  %v6600_v36 = vmul.f32 %v14678_v19, %v10520_v35  ;;  %v6443_v34 = vrot.slane %v6310_v6, 2 }
 0x247   : > { %v6269_v28 = vadd.f32 %v6153_v39, %v5977_v53  ;;  %v6444_v63 = vrot.slane %v6311_v56, 2  ;;  %v6601_v12 = vmul.f32 %v14678_v19, %v14672_v62  ;;  %v6442_v15 = vsel %vm5259_vm8, %v6440_v33, %v6441_v58  ;;  %v14680_v53 = vld [vmem:[#allocation28_spill] sm:$0xff]  ;;  %v14681_v33 = vld [vmem:[#allocation79_spill] sm:$0xff] }
 0x248   : > { %v6602_v0 = vmul.f32 %v14678_v19, %v10522_v22  ;;  %v6603_v14 = vmul.f32 %v14678_v19, %v14673_v4  ;;  %v6732_v37 = vrot.slane %v6600_v36, 2  ;;  %v6560_v44 = vadd.f32 %v6442_v15, %v6268_v57 }
 0x249   : > { %v6445_v49 = vsel %vm5259_vm8, %v6443_v34, %v6444_v63  ;;  %v6733_v10 = vrot.slane %v6601_v12, 2  ;;  %v6892_v59 = vmul.f32 %v14680_v53, %v14679_v43  ;;  %v6893_v6 = vmul.f32 %v14680_v53, %v14646_v16 }
 0x24a   : > { %v6561_v1 = vadd.f32 %v6445_v49, %v6269_v28  ;;  %v6735_v2 = vrot.slane %v6602_v0, 2  ;;  %v6736_v18 = vrot.slane %v6603_v14, 2  ;;  %v6894_v39 = vmul.f32 %v14680_v53, %v14681_v33  ;;  %v14682_v28 = vld [vmem:[#allocation45_spill] sm:$0xff] }
 0x24b   : > { %v6734_v56 = vsel %vm5259_vm8, %v6732_v37, %v6733_v10  ;;  %v6895_v58 = vmul.f32 %v14680_v53, %v14647_v17  ;;  %v7024_v36 = vrot.slane %v6892_v59, 2  ;;  %v7025_v63 = vrot.slane %v6893_v6, 2  ;;  %v14683_v10 = vld [vmem:[#allocation85_spill] sm:$0xff] }
 0x24c   : > { %v6737_v57 = vsel %vm5259_vm8, %v6735_v2, %v6736_v18  ;;  %v6852_v34 = vadd.f32 %v6734_v56, %v6560_v44  ;;  %v7184_v12 = vmul.f32 %v14682_v28, %v14681_v33  ;;  %v7027_v0 = vrot.slane %v6894_v39, 2  ;;  %v10605_v39 = vld [vmem:[#allocation2 + $0x40] ss:$8 sps:$4 sm:$0xff]  }
 0x24d   : > { %v6853_v15 = vadd.f32 %v6737_v57, %v6561_v1  ;;  %v7028_v14 = vrot.slane %v6895_v58, 2  ;;  %v7185_v37 = vmul.f32 %v14682_v28, %v14647_v17  ;;  %v7026_v49 = vsel %vm5259_vm8, %v7024_v36, %v7025_v63  ;;  %v14684_v1 = vld [vmem:[#allocation30_spill] sm:$0xff] }
 0x24e   : > { %v7186_v43 = vmul.f32 %v14682_v28, %v14683_v10  ;;  %v7187_v59 = vmul.f32 %v14682_v28, %v14674_v48  ;;  %v7316_v2 = vrot.slane %v7184_v12, 2  ;;  %v7144_v18 = vadd.f32 %v7026_v49, %v6852_v34 }
 0x24f   : > { %v7029_v44 = vsel %vm5259_vm8, %v7027_v0, %v7028_v14  ;;  %v7317_v6 = vrot.slane %v7185_v37, 2  ;;  %v7476_v56 = vmul.f32 %v14684_v1, %v14683_v10  ;;  %v7477_v36 = vmul.f32 %v14684_v1, %v14674_v48  ;;  %v1545_v14 = vld [vmem:[#allocation2 + $0x98] ss:$80 sps:$4 sm:$0xff]  }
 0x250   : > { %v7145_v58 = vadd.f32 %v7029_v44, %v6853_v15  ;;  %v7319_v57 = vrot.slane %v7186_v43, 2  ;;  %v7320_v33 = vrot.slane %v7187_v59, 2  ;;  %v7478_v12 = vmul.f32 %v14684_v1, %v14685_v40 }
 0x251   : > { %v7318_v63 = vsel %vm5259_vm8, %v7316_v2, %v7317_v6  ;;  %v7479_v34 = vmul.f32 %v14684_v1, %v14675_v47  ;;  %v7608_v0 = vrot.slane %v7476_v56, 2  ;;  %v7609_v20 = vrot.slane %v7477_v36, 2  ;;  %v14688_v56 = vld [vmem:[#allocation4_spill] sm:$0xff] }
 0x252   : > { %v7321_v37 = vsel %vm5259_vm8, %v7319_v57, %v7320_v33  ;;  %v7436_v49 = vadd.f32 %v7318_v63, %v7144_v18  ;;  %v10616_v43 = vunpack.c.l.bf16 %v10605_v39  ;;  %v7611_v59 = vrot.slane %v7478_v12, 2  ;;  %v14690_v12 = vld [vmem:[#allocation6_spill] sm:$0xff] }
 0x253   : > { %v7437_v15 = vadd.f32 %v7321_v37, %v7145_v58  ;;  %v7612_v44 = vrot.slane %v7479_v34, 2  ;;  %v14098_v2 = vunpack.c.h.bf16 %v10605_v39  ;;  %v7610_v6 = vsel %vm5259_vm8, %v7608_v0, %v7609_v20  ;;  %v14689_v58 = vld [vmem:[#allocation5_spill] sm:$0xff] }
 0x254   : > { %v10620_v17 = vunpack.c.l.bf16 %v1545_v14  ;;  %v10622_v16 = vunpack.c.h.bf16 %v1545_v14  ;;  %v1656_v38 = vmul.f32 %v14688_v56, %v10373_v32  ;;  %v7728_v18 = vadd.f32 %v7610_v6, %v7436_v49  ;;  %v10641_v14 = vld [vmem:[%s13905_s4] ss:$0 sm:$0xff] }
 0x255   : > { %v7613_v33 = vsel %vm5259_vm8, %v7611_v59, %v7612_v44  ;;  %v1657_v57 = vmul.f32 %v14688_v56, %v10375_v60  ;;  %v1724_v36 = vmul.f32 %v14689_v58, %v10375_v60  ;;  %v1725_v20 = vmul.f32 %v14689_v58, %v10616_v43  ;;  %14691 = vst [vmem:[#allocation44_spill] sm:$0xff] %v10641_v14  ;;  %v14693_v59 = vld [vmem:[#allocation18_spill] sm:$0xff]  ;;  %v14700_v56 = vld [vmem:[#allocation27_spill] sm:$0xff] }
 0x256   : > { %14686 = vst [vmem:[#allocation36_spill] sm:$0xff] %v10620_v17  ;;  %14687 = vst [vmem:[#allocation42_spill] sm:$0xff] %v10622_v16  ;;  %v7729_v63 = vadd.f32 %v7613_v33, %v7437_v15  ;;  %v1792_v34 = vmul.f32 %v14690_v12, %v10616_v43  ;;  %v1793_v0 = vmul.f32 %v14690_v12, %v14098_v2 }
 0x257   : > { %v7767_v37 = vadd.f32 %v10641_v14, %v7728_v18  ;;  %v1756_v49 = vadd.f32 %v1724_v36, %v1656_v38  ;;  %v10646_v15 = vmul.f32 %v14690_v12, %v10620_v17  ;;  %v1860_v44 = vmul.f32 %v14693_v59, %v14664_v46  ;;  %v14695_v36 = vld [vmem:[#allocation60_spill] sm:$0xff] }
 0x258   : > { %v7768_v6 = vadd.f32 %v10641_v14, %v7729_v63  ;;  %v1757_v33 = vadd.f32 %v1725_v20, %v1657_v57  ;;  %v1861_v2 = vmul.f32 %v14693_v59, %v14666_v52  ;;  %v1928_v21 = vmul.f32 %v14694_v27, %v14666_v52  ;;  %v14696_v63 = vld [vmem:[#allocation20_spill] sm:$0xff]  ;;  %v14697_v59 = vld [vmem:[#allocation22_spill] sm:$0xff] }
 0x259   : > { %14692 = vst [vmem:[#allocation7_spill] sm:$0xff] %v10646_v15  ;;  %v10655_v13 = vmul.f32 0.5, %v7767_v37  ;;  %v7831_v18 = vmul.f32 0.70710677, %v7767_v37  ;;  %v1824_v38 = vadd.f32 %v1792_v34, %v1756_v49  ;;  %v1929_v9 = vmul.f32 %v14694_v27, %v14695_v36  ;;  %v2266_v37 = vld [vmem:[#allocation2 + $0x44] sm:$0x1] }
 0x25a   : > { %v10659_v15 = vmul.f32 0.5, %v7768_v6  ;;  %v7832_v11 = vmul.f32 0.70710677, %v7768_v6  ;;  %v1825_v12 = vadd.f32 %v1793_v0, %v1757_v33  ;;  %v1996_v57 = vmul.f32 %v14696_v63, %v14695_v36  ;;  %v10667_v34 = vld [vmem:[#allocation2 + $0x4c] sm:$0x1]  ;;  %v14698_v6 = vld [vmem:[#allocation23_spill] sm:$0xff] }
 0x25b   : > { %8827 = verf.f32 %v7831_v18  ;;  %v1892_v20 = vadd.f32 %v1860_v44, %v1824_v38  ;;  %v1997_v14 = vmul.f32 %v14696_v63, %v10620_v17  ;;  %v2064_v58 = vmul.f32 %v14697_v59, %v14669_v42  ;;  %v2277_v49 = vld [vmem:[#allocation2 + $0x9c] sm:$0x1]  ;;  %v2287_v18 = vld [vmem:[#allocation2 + $0xec] sm:$0x1]  ;;  %v14699_v38 = vld [vmem:[#allocation81_spill] sm:$0xff] }
 0x25c   : > { %8829 = verf.f32 %v7832_v11  ;;  %v1893_v27 = vadd.f32 %v1861_v2, %v1825_v12  ;;  %v2065_v0 = vmul.f32 %v14697_v59, %v14671_v30  ;;  %v2132_v33 = vmul.f32 %v14698_v6, %v14671_v30 }
 0x25d   : > { %v1960_v44 = vadd.f32 %v1928_v21, %v1892_v20  ;;  %v2133_v63 = vmul.f32 %v14698_v6, %v14699_v38  ;;  %v2200_v1 = vmul.f32 %v14700_v56, %v14699_v38  ;;  %v2201_v28 = vmul.f32 %v14700_v56, %v10622_v16  ;;  %v14703_v21 = vld [vmem:[#allocation12_spill] sm:$0xff] }
 0x25e   : > { %v1961_v40 = vadd.f32 %v1929_v9, %v1893_v27  ;;  %v10679_v11 = vunpack.c.l.bf16 %v2266_v37  ;;  %v10682_v12 = vunpack.c.l.bf16 %v2277_v49  ;;  %v10684_v53 = vunpack.c.l.bf16 %v2287_v18 }
 0x25f   : > { %v2028_v59 = vadd.f32 %v1996_v57, %v1960_v44  ;;  %v2394_v20 = vmul.f32 %v14703_v21, %v10373_v32  ;;  %v2395_v6 = vmul.f32 %v14703_v21, %v10421_v23  ;;  %v2396_v56 = vmul.f32 %v14703_v21, %v10375_v60 }
 0x260   : > { %14701 = vst [vmem:[#allocation8_spill] sm:$0xff] %v10682_v12  ;;  %14702 = vst [vmem:[#allocation13_spill] sm:$0xff] %v10684_v53  ;;  %v2029_v10 = vadd.f32 %v1997_v14, %v1961_v40  ;;  %v2397_v9 = vmul.f32 %v14703_v21, %v10423_v8  ;;  %v2687_v27 = vmul.f32 %v14642_v45, %v10375_v60 }
 0x261   : > { %v2096_v37 = vadd.f32 %v2064_v58, %v2028_v59  ;;  %v2529_v57 = vrot.slane %v2394_v20, 1  ;;  %v2530_v49 = vrot.slane %v2395_v6, 1  ;;  %v2688_v18 = vmul.f32 %v14642_v45, %v10423_v8 }
 0x262   : > { %v2097_v32 = vadd.f32 %v2065_v0, %v2029_v10  ;;  %v2532_v44 = vrot.slane %v2396_v56, 1  ;;  %v2533_v2 = vrot.slane %v2397_v9, 1  ;;  %v2689_v40 = vmul.f32 %v14642_v45, %v10616_v43 }
 0x263   : > { %v2164_v14 = vadd.f32 %v2132_v33, %v2096_v37  ;;  %v2531_v19 = vsel %vm2510_vm1, %v2529_v57, %v2530_v49  ;;  %v2690_v21 = vmul.f32 %v14642_v45, %v10679_v11  ;;  %v2821_v54 = vrot.slane %v2687_v27, 1 }
 0x264   : > { %v2165_v60 = vadd.f32 %v2133_v63, %v2097_v32  ;;  %v2534_v58 = vsel %vm2510_vm1, %v2532_v44, %v2533_v2  ;;  %v2822_v59 = vrot.slane %v2688_v18, 1  ;;  %v2824_v6 = vrot.slane %v2689_v40, 1 }
 0x265   : > { %v8828_v20 = vpop.eup %8827  ;;  %v2232_v22 = vadd.f32 %v2200_v1, %v2164_v14  ;;  %v2825_v10 = vrot.slane %v2690_v21, 1  ;;  %v2979_v56 = vmul.f32 %v14643_v5, %v10616_v43  ;;  %v2980_v0 = vmul.f32 %v14643_v5, %v10679_v11 }
 0x266   : > { %v8830_v33 = vpop.eup %8829  ;;  %v7895_v9 = vadd.f32 1.0, %v8828_v20  ;;  %v2233_v37 = vadd.f32 %v2201_v28, %v2165_v60  ;;  %v2823_v57 = vsel %vm2510_vm1, %v2821_v54, %v2822_v59  ;;  %v14704_v63 = vunpack.c.h.bf16 %v10605_v39 }
 0x267   : > { %v7896_v27 = vadd.f32 1.0, %v8830_v33  ;;  %v2645_v49 = vadd.f32 %v2531_v19, %v2232_v22  ;;  %v2826_v1 = vsel %vm2510_vm1, %v2824_v6, %v2825_v10  ;;  %v14705_v21 = vunpack.c.l.bf16 %v10667_v34 }
 0x268   : > { %v2981_v2 = vmul.f32 %v14643_v5, %v14704_v63  ;;  %v7927_v18 = vmul.f32 %v7895_v9, %v10655_v13  ;;  %v2646_v32 = vadd.f32 %v2534_v58, %v2233_v37  ;;  %v10719_v28 = vmul.f32 %v14643_v5, %v10682_v12 }
 0x269   : > { %v2982_v43 = vmul.f32 %v14643_v5, %v14705_v21  ;;  %v3113_v54 = vrot.slane %v2979_v56, 1  ;;  %v7928_v39 = vmul.f32 %v7896_v27, %v10659_v15  ;;  %v2937_v44 = vadd.f32 %v2823_v57, %v2645_v49  ;;  %v14707_v49 = vld [vmem:[#allocation61_spill] sm:$0xff] }
 0x26a   : > { %14706 = vst [vmem:[#allocation3_spill] sm:$0xff] %v10719_v28  ;;  %v3114_v40 = vrot.slane %v2980_v0, 1  ;;  %v3116_v14 = vrot.slane %v2981_v2, 1  ;;  %v2938_v22 = vadd.f32 %v2826_v1, %v2646_v32  ;;  %v3271_v59 = vmul.f32 %v9301_v25, %v14664_v46 }
 0x26b   : > { %v3117_v19 = vrot.slane %v2982_v43, 1  ;;  %v7957_v6 = vpack.c.bf16 %v7928_v39, %v7927_v18  ;;  %v3272_v58 = vmul.f32 %v9301_v25, %v14672_v62  ;;  %v3273_v20 = vmul.f32 %v9301_v25, %v14666_v52 }
 0x26c   : > { %v3115_v13 = vsel %vm2510_vm1, %v3113_v54, %v3114_v40  ;;  %v3274_v56 = vmul.f32 %v9301_v25, %v14673_v4  ;;  %v3405_v0 = vrot.slane %v3271_v59, 1  ;;  %v3563_v57 = vmul.f32 %v9304_v26, %v14666_v52 }
 0x26d   : > { %v3118_v15 = vsel %vm2510_vm1, %v3116_v14, %v3117_v19  ;;  %v3229_v10 = vadd.f32 %v3115_v13, %v2937_v44  ;;  %8726 = vmatprep.mubr.bf16.mxu1 %v7957_v6  ;;  %v3406_v9 = vrot.slane %v3272_v58, 1  ;;  %v3408_v37 = vrot.slane %v3273_v20, 1 }
 0x26e   : > { %v3230_v33 = vadd.f32 %v3118_v15, %v2938_v22  ;;  %v3409_v63 = vrot.slane %v3274_v56, 1  ;;  %v3564_v2 = vmul.f32 %v9304_v26, %v14673_v4  ;;  %v3565_v27 = vmul.f32 %v9304_v26, %v14695_v36 }
 0x26f   : > { %v3566_v1 = vmul.f32 %v9304_v26, %v14707_v49  ;;  %v3407_v21 = vsel %vm2510_vm1, %v3405_v0, %v3406_v9  ;;  %v3697_v43 = vrot.slane %v3563_v57, 1  ;;  %v3855_v18 = vmul.f32 %v9308_v29, %v14695_v36 }
 0x270   : > { %v3856_v32 = vmul.f32 %v9308_v29, %v14707_v49  ;;  %v3410_v54 = vsel %vm2510_vm1, %v3408_v37, %v3409_v63  ;;  %v3521_v39 = vadd.f32 %v3407_v21, %v3229_v10  ;;  %v3698_v44 = vrot.slane %v3564_v2, 1 }
 0x271   : > { %v3700_v40 = vrot.slane %v3565_v27, 1  ;;  %v3522_v14 = vadd.f32 %v3410_v54, %v3230_v33  ;;  %v3701_v22 = vrot.slane %v3566_v1, 1  ;;  %v3857_v19 = vmul.f32 %v9308_v29, %v10620_v17 }
 0x272   : > { %v3858_v59 = vmul.f32 %v9308_v29, %v10682_v12  ;;  %v3699_v6 = vsel %vm2510_vm1, %v3697_v43, %v3698_v44  ;;  %v3989_v13 = vrot.slane %v3855_v18, 1  ;;  %v3990_v58 = vrot.slane %v3856_v32, 1 }
 0x273   : > { %v4147_v20 = vmul.f32 %v9344_v50, %v14669_v42  ;;  %v3702_v15 = vsel %vm2510_vm1, %v3700_v40, %v3701_v22  ;;  %v3813_v10 = vadd.f32 %v3699_v6, %v3521_v39  ;;  %v3992_v56 = vrot.slane %v3857_v19, 1  ;;  %v14708_v40 = vld [vmem:[#allocation82_spill] sm:$0xff]  ;;  %v14746_v42 = vld [vmem:[#allocation12_spill] sm:$0xff] }
 0x274   : > { %v3993_v0 = vrot.slane %v3858_v59, 1  ;;  %v3814_v33 = vadd.f32 %v3702_v15, %v3522_v14  ;;  %v3991_v9 = vsel %vm2510_vm1, %v3989_v13, %v3990_v58  ;;  %v4148_v37 = vmul.f32 %v9344_v50, %v14674_v48  ;;  %v5015_v13 = vld [vmem:[#allocation2 + $0x40] sm:$0xe] }
 0x275   : > { %v4149_v57 = vmul.f32 %v9344_v50, %v14671_v30  ;;  %v4105_v2 = vadd.f32 %v3991_v9, %v3813_v10  ;;  %v4150_v27 = vmul.f32 %v9344_v50, %v14675_v47  ;;  %v4281_v1 = vrot.slane %v4147_v20, 1 }
 0x276   : > { %v3994_v63 = vsel %vm2510_vm1, %v3992_v56, %v3993_v0  ;;  %v4282_v43 = vrot.slane %v4148_v37, 1  ;;  %v4439_v32 = vmul.f32 %v14591_v61, %v14671_v30  ;;  %v4440_v39 = vmul.f32 %v14591_v61, %v14675_v47  ;;  %v5016_v37 = vld [vmem:[#allocation2 + $0x48] sm:$0xe] }
 0x277   : > { %v4106_v21 = vadd.f32 %v3994_v63, %v3814_v33  ;;  %v4284_v18 = vrot.slane %v4149_v57, 1  ;;  %v4285_v54 = vrot.slane %v4150_v27, 1  ;;  %v4441_v44 = vmul.f32 %v14591_v61, %v14699_v38  ;;  %v5025_v57 = vld [vmem:[#allocation2 + $0x90] sm:$0xe] }
 0x278   : > { %v4442_v14 = vmul.f32 %v14591_v61, %v14708_v40  ;;  %v4283_v22 = vsel %vm2510_vm1, %v4281_v1, %v4282_v43  ;;  %v4573_v19 = vrot.slane %v4439_v32, 1  ;;  %v4731_v59 = vmul.f32 %v14597_v51, %v14699_v38  ;;  %v10782_v43 = vld [vmem:[#allocation2 + $0x98] sm:$0xe] }
 0x279   : > { %v4732_v6 = vmul.f32 %v14597_v51, %v14708_v40  ;;  %v4286_v58 = vsel %vm2510_vm1, %v4284_v18, %v4285_v54  ;;  %v4397_v20 = vadd.f32 %v4283_v22, %v4105_v2  ;;  %v4574_v15 = vrot.slane %v4440_v39, 1  ;;  %v5035_v18 = vld [vmem:[#allocation2 + $0xe0] sm:$0xe] }
 0x27a   : > { %v4576_v10 = vrot.slane %v4441_v44, 1  ;;  %v4398_v56 = vadd.f32 %v4286_v58, %v4106_v21  ;;  %v4577_v0 = vrot.slane %v4442_v14, 1  ;;  %v4733_v33 = vmul.f32 %v14597_v51, %v10622_v16  ;;  %v5036_v44 = vld [vmem:[#allocation2 + $0xe8] sm:$0xe] }
 0x27b   : > { %v4734_v9 = vmul.f32 %v14597_v51, %v10684_v53  ;;  %v4575_v63 = vsel %vm2510_vm1, %v4573_v19, %v4574_v15  ;;  %v4865_v27 = vrot.slane %v4731_v59, 1  ;;  %v4866_v1 = vrot.slane %v4732_v6, 1 }
 0x27c   : > { %v5075_v2 = vunpack.c.l.bf16 %v5015_v13  ;;  %v4578_v32 = vsel %vm2510_vm1, %v4576_v10, %v4577_v0  ;;  %v4689_v21 = vadd.f32 %v4575_v63, %v4397_v20  ;;  %v4868_v54 = vrot.slane %v4733_v33, 1 }
 0x27d   : > { %v4869_v39 = vrot.slane %v4734_v9, 1  ;;  %v4690_v14 = vadd.f32 %v4578_v32, %v4398_v56  ;;  %v4867_v22 = vsel %vm2510_vm1, %v4865_v27, %v4866_v1  ;;  %v5076_v58 = vunpack.c.l.bf16 %v5016_v37 }
 0x27e   : > { %v10786_v60 = vunpack.c.l.bf16 %v5025_v57  ;;  %v4981_v59 = vadd.f32 %v4867_v22, %v4689_v21  ;;  %v5086_v6 = vunpack.c.l.bf16 %v10782_v43  ;;  %v10790_v15 = vunpack.c.l.bf16 %v5035_v18 }
 0x27f   : > { %v4870_v19 = vsel %vm2510_vm1, %v4868_v54, %v4869_v39  ;;  %v10792_v28 = vunpack.c.l.bf16 %v5036_v44  ;;  %v5143_v20 = vmul.f32 %v14607_v7, %v10515_v41  ;;  %v5144_v10 = vmul.f32 %v14607_v7, %v10421_v23 }
 0x280   : > { %14709 = vst [vmem:[#allocation10_spill] sm:$0xff] %v10786_v60  ;;  %14710 = vst [vmem:[#allocation46_spill] sm:$0xff] %v10790_v15  ;;  %v4982_v13 = vadd.f32 %v4870_v19, %v4690_v14  ;;  %v5145_v56 = vmul.f32 %v14607_v7, %v10517_v3  ;;  %v5146_v0 = vmul.f32 %v14607_v7, %v10423_v8 }
 0x281   : > { %14711 = vst [vmem:[#allocation35_spill] sm:$0xff] %v10792_v28  ;;  %v5436_v33 = vmul.f32 %v14651_v31, %v10517_v3  ;;  %v5437_v9 = vmul.f32 %v14651_v31, %v10423_v8  ;;  %v5278_v37 = vrot.slane %v5143_v20, 2  ;;  %v5279_v57 = vrot.slane %v5144_v10, 2 }
 0x282   : > { %v5438_v63 = vmul.f32 %v14651_v31, %v5075_v2  ;;  %v5439_v41 = vmul.f32 %v14651_v31, %v10679_v11  ;;  %v5281_v23 = vrot.slane %v5145_v56, 2  ;;  %v5282_v27 = vrot.slane %v5146_v0, 2 }
 0x283   : > { %v5570_v1 = vrot.slane %v5436_v33, 2  ;;  %v5571_v18 = vrot.slane %v5437_v9, 2  ;;  %v5280_v32 = vsel %vm5259_vm8, %v5278_v37, %v5279_v57  ;;  %v5728_v3 = vmul.f32 %v14652_v24, %v5075_v2 }
 0x284   : > { %v5573_v21 = vrot.slane %v5438_v63, 2  ;;  %v5574_v54 = vrot.slane %v5439_v41, 2  ;;  %v5283_v39 = vsel %vm5259_vm8, %v5281_v23, %v5282_v27  ;;  %v5394_v8 = vadd.f32 %v5280_v32, %v4981_v59  ;;  %v14715_v27 = vld [vmem:[#allocation15_spill] sm:$0xff] }
 0x285   : > { %v5572_v44 = vsel %vm5259_vm8, %v5570_v1, %v5571_v18  ;;  %v5729_v14 = vmul.f32 %v14652_v24, %v10679_v11  ;;  %v5395_v22 = vadd.f32 %v5283_v39, %v4982_v13  ;;  %v5730_v20 = vmul.f32 %v14652_v24, %v5076_v58  ;;  %v14725_v58 = vld [vmem:[#allocation4_spill] sm:$0xff] }
 0x286   : > { %v5575_v19 = vsel %vm5259_vm8, %v5573_v21, %v5574_v54  ;;  %v14712_v10 = vunpack.c.l.bf16 %v10667_v34  ;;  %v5686_v0 = vadd.f32 %v5572_v44, %v5394_v8  ;;  %v10823_v2 = vmul.f32 %v14652_v24, %v5086_v6  ;;  %v14716_v44 = vld [vmem:[#allocation39_spill] sm:$0xff] }
 0x287   : > { %v10827_v59 = vmul.f32 %v14652_v24, %v10792_v28  ;;  %v5862_v11 = vrot.slane %v5728_v3, 2  ;;  %v5687_v13 = vadd.f32 %v5575_v19, %v5395_v22  ;;  %v5863_v33 = vrot.slane %v5729_v14, 2 }
 0x288   : > { %v5731_v56 = vmul.f32 %v14652_v24, %v14712_v10  ;;  %14713 = vst [vmem:[#allocation125_spill] sm:$0xff] %v10823_v2  ;;  %v5865_v9 = vrot.slane %v5730_v20, 2  ;;  %v6020_v57 = vmul.f32 %v14618_v55, %v10520_v35  ;;  %v6021_v63 = vmul.f32 %v14618_v55, %v14672_v62  ;;  %v14728_v2 = vld [vmem:[#allocation6_spill] sm:$0xff] }
 0x289   : > { %14714 = vst [vmem:[#allocation126_spill] sm:$0xff] %v10827_v59  ;;  %v5864_v41 = vsel %vm5259_vm8, %v5862_v11, %v5863_v33  ;;  %v6022_v1 = vmul.f32 %v14618_v55, %v14715_v27  ;;  %v6023_v18 = vmul.f32 %v14618_v55, %v14673_v4  ;;  %v6312_v14 = vmul.f32 %v14716_v44, %v14715_v27  ;;  %v2288_v27 = vld [vmem:[#allocation2 + $0xf4] sm:$0x1] }
 0x28a   : > { %v5866_v37 = vrot.slane %v5731_v56, 2  ;;  %v5978_v32 = vadd.f32 %v5864_v41, %v5686_v0  ;;  %v6154_v54 = vrot.slane %v6020_v57, 2  ;;  %v6155_v3 = vrot.slane %v6021_v63, 2  ;;  %v14717_v56 = vld [vmem:[#allocation43_spill] sm:$0xff] }
 0x28b   : > { %v6157_v39 = vrot.slane %v6022_v1, 2  ;;  %v6158_v8 = vrot.slane %v6023_v18, 2  ;;  %v6313_v22 = vmul.f32 %v14716_v44, %v14673_v4  ;;  %v6314_v20 = vmul.f32 %v14716_v44, %v10786_v60 }
 0x28c   : > { %v5867_v23 = vsel %vm5259_vm8, %v5865_v9, %v5866_v37  ;;  %v6156_v19 = vsel %vm5259_vm8, %v6154_v54, %v6155_v3  ;;  %v6315_v10 = vmul.f32 %v14716_v44, %v14707_v49  ;;  %v6604_v0 = vmul.f32 %v14717_v56, %v10786_v60  ;;  %v14734_v60 = vld [vmem:[#allocation19_spill] sm:$0xff] }
 0x28d   : > { %v5979_v21 = vadd.f32 %v5867_v23, %v5687_v13  ;;  %v6159_v11 = vsel %vm5259_vm8, %v6157_v39, %v6158_v8  ;;  %v6270_v13 = vadd.f32 %v6156_v19, %v5978_v32  ;;  %v6446_v33 = vrot.slane %v6312_v14, 2  ;;  %v14719_v8 = vld [vmem:[#allocation28_spill] sm:$0xff] }
 0x28e   : > { %v6447_v9 = vrot.slane %v6313_v22, 2  ;;  %v6449_v57 = vrot.slane %v6314_v20, 2  ;;  %v6450_v63 = vrot.slane %v6315_v10, 2  ;;  %v6605_v41 = vmul.f32 %v14717_v56, %v14707_v49  ;;  %v14736_v49 = vld [vmem:[#allocation72_spill] sm:$0xff] }
 0x28f   : > { %v6271_v37 = vadd.f32 %v6159_v11, %v5979_v21  ;;  %v6606_v1 = vmul.f32 %v14717_v56, %v5086_v6  ;;  %v6607_v18 = vmul.f32 %v14717_v56, %v10682_v12  ;;  %v6738_v54 = vrot.slane %v6604_v0, 2  ;;  %v14718_v21 = vld [vmem:[#allocation85_spill] sm:$0xff]  ;;  %v14720_v6 = vld [vmem:[#allocation76_spill] sm:$0xff] }
 0x290   : > { %v6448_v23 = vsel %vm5259_vm8, %v6446_v33, %v6447_v9  ;;  %v6451_v32 = vsel %vm5259_vm8, %v6449_v57, %v6450_v63  ;;  %v6739_v39 = vrot.slane %v6605_v41, 2  ;;  %v6896_v14 = vmul.f32 %v14719_v8, %v14718_v21  ;;  %v14729_v12 = vld [vmem:[#allocation48_spill] sm:$0xff] }
 0x291   : > { %v6562_v3 = vadd.f32 %v6448_v23, %v6270_v13  ;;  %v6563_v22 = vadd.f32 %v6451_v32, %v6271_v37  ;;  %v6741_v19 = vrot.slane %v6606_v1, 2  ;;  %v6742_v20 = vrot.slane %v6607_v18, 2  ;;  %v14721_v37 = vld [vmem:[#allocation45_spill] sm:$0xff] }
 0x292   : > { %v6897_v10 = vmul.f32 %v14719_v8, %v14674_v48  ;;  %v6740_v43 = vsel %vm5259_vm8, %v6738_v54, %v6739_v39  ;;  %v6898_v11 = vmul.f32 %v14719_v8, %v14720_v6  ;;  %v6899_v0 = vmul.f32 %v14719_v8, %v14675_v47 }
 0x293   : > { %v7030_v33 = vrot.slane %v6896_v14, 2  ;;  %v6743_v13 = vsel %vm5259_vm8, %v6741_v19, %v6742_v20  ;;  %v6854_v9 = vadd.f32 %v6740_v43, %v6562_v3  ;;  %v7188_v63 = vmul.f32 %v14721_v37, %v14720_v6  ;;  %v1556_v43 = vld [vmem:[#allocation2 + $0xf0] sm:$0xf]  ;;  %v14741_v6 = vld [vmem:[#allocation23_spill] sm:$0xff] }
 0x294   : > { %v7031_v57 = vrot.slane %v6897_v10, 2  ;;  %v6855_v41 = vadd.f32 %v6743_v13, %v6563_v22  ;;  %v7033_v23 = vrot.slane %v6898_v11, 2  ;;  %v7034_v1 = vrot.slane %v6899_v0, 2  ;;  %v14722_v22 = vld [vmem:[#allocation30_spill] sm:$0xff] }
 0x295   : > { %v7189_v18 = vmul.f32 %v14721_v37, %v14675_v47  ;;  %v7190_v32 = vmul.f32 %v14721_v37, %v10790_v15  ;;  %v7191_v39 = vmul.f32 %v14721_v37, %v14708_v40  ;;  %v7322_v14 = vrot.slane %v7188_v63, 2 }
 0x296   : > { %v7032_v54 = vsel %vm5259_vm8, %v7030_v33, %v7031_v57  ;;  %v7035_v3 = vsel %vm5259_vm8, %v7033_v23, %v7034_v1  ;;  %v7480_v10 = vmul.f32 %v14722_v22, %v10790_v15  ;;  %v7481_v33 = vmul.f32 %v14722_v22, %v14708_v40  ;;  %v14735_v40 = vld [vmem:[#allocation44_spill] sm:$0xff] }
 0x297   : > { %v7146_v19 = vadd.f32 %v7032_v54, %v6854_v9  ;;  %v7323_v20 = vrot.slane %v7189_v18, 2  ;;  %v7147_v11 = vadd.f32 %v7035_v3, %v6855_v41  ;;  %v7325_v0 = vrot.slane %v7190_v32, 2  ;;  %v14724_v3 = vld [vmem:[#allocation50_spill] sm:$0xff] }
 0x298   : > { %v7326_v13 = vrot.slane %v7191_v39, 2  ;;  %v7482_v34 = vmul.f32 %v14722_v22, %v10792_v28  ;;  %v7483_v63 = vmul.f32 %v14722_v22, %v10684_v53  ;;  %v7614_v9 = vrot.slane %v7480_v10, 2  ;;  %v14727_v28 = vld [vmem:[#allocation5_spill] sm:$0xff] }
 0x299   : > { %v7324_v57 = vsel %vm5259_vm8, %v7322_v14, %v7323_v20  ;;  %v7615_v18 = vrot.slane %v7481_v33, 2  ;;  %v10892_v54 = vunpack.c.l.bf16 %v1556_v43  ;;  %v1659_v59 = vmul.f32 %v14725_v58, %v14724_v3  ;;  %v14726_v20 = vld [vmem:[#allocation54_spill] sm:$0xff]  ;;  %v14732_v33 = vld [vmem:[#allocation67_spill] sm:$0xff] }
 0x29a   : > { %v7327_v23 = vsel %vm5259_vm8, %v7325_v0, %v7326_v13  ;;  %v7438_v1 = vadd.f32 %v7324_v57, %v7146_v19  ;;  %v7617_v32 = vrot.slane %v7482_v34, 2  ;;  %v7618_v39 = vrot.slane %v7483_v63, 2  ;;  %v14731_v34 = vld [vmem:[#allocation18_spill] sm:$0xff] }
 0x29b   : > { %14723 = vst [vmem:[#allocation127_spill] sm:$0xff] %v10892_v54  ;;  %v7439_v41 = vadd.f32 %v7327_v23, %v7147_v11  ;;  %v7616_v14 = vsel %vm5259_vm8, %v7614_v9, %v7615_v18  ;;  %v1727_v15 = vmul.f32 %v14727_v28, %v14726_v20  ;;  %v1794_v10 = vmul.f32 %v14728_v2, %v14726_v20  ;;  %v14730_v11 = vld [vmem:[#allocation17_spill] sm:$0xff]  ;;  %v14733_v23 = vld [vmem:[#allocation108_spill] sm:$0xff] }
 0x29c   : > { %v1795_v19 = vmul.f32 %v14728_v2, %v14729_v12  ;;  %v7619_v43 = vsel %vm5259_vm8, %v7617_v32, %v7618_v39  ;;  %v7730_v0 = vadd.f32 %v7616_v14, %v7438_v1  ;;  %v1862_v13 = vmul.f32 %v14731_v34, %v14730_v11  ;;  %v14737_v1 = vld [vmem:[#allocation20_spill] sm:$0xff] }
 0x29d   : > { %v1863_v57 = vmul.f32 %v14731_v34, %v14732_v33  ;;  %v7731_v63 = vadd.f32 %v7619_v43, %v7439_v41  ;;  %v1759_v9 = vadd.f32 %v1727_v15, %v1659_v59  ;;  %v1826_v18 = vadd.f32 %v1794_v10, %v14733_v23  ;;  %v14738_v39 = vld [vmem:[#allocation64_spill] sm:$0xff]  ;;  %v14739_v59 = vld [vmem:[#allocation22_spill] sm:$0xff] }
 0x29e   : > { %v1930_v53 = vmul.f32 %v14734_v60, %v14732_v33  ;;  %v7769_v17 = vadd.f32 %v14735_v40, %v7730_v0  ;;  %v1931_v16 = vmul.f32 %v14734_v60, %v14736_v49  ;;  %v1998_v32 = vmul.f32 %v14737_v1, %v14736_v49  ;;  %v14740_v0 = vld [vmem:[#allocation89_spill] sm:$0xff] }
 0x29f   : > { %v1999_v14 = vmul.f32 %v14737_v1, %v14738_v39  ;;  %v7770_v38 = vadd.f32 %v14735_v40, %v7731_v63  ;;  %v1827_v41 = vadd.f32 %v1795_v19, %v1759_v9  ;;  %v1894_v15 = vadd.f32 %v1862_v13, %v1826_v18  ;;  %v14742_v40 = vld [vmem:[#allocation94_spill] sm:$0xff]  ;;  %v14743_v13 = vld [vmem:[#allocation27_spill] sm:$0xff] }
 0x2a0   : > { %v2066_v10 = vmul.f32 %v14739_v59, %v10892_v54  ;;  %v10921_v43 = vmul.f32 0.5, %v7769_v17  ;;  %v7833_v23 = vmul.f32 0.70710677, %v7769_v17  ;;  %v2067_v36 = vmul.f32 %v14739_v59, %v14740_v0  ;;  %v14744_v9 = vld [vmem:[#allocation86_spill] sm:$0xff] }
 0x2a1   : > { %v2134_v21 = vmul.f32 %v14741_v6, %v14740_v0  ;;  %v7802_v35 = vmul.f32 0.5, %v7770_v38  ;;  %v7834_v47 = vmul.f32 0.70710677, %v7770_v38  ;;  %v1895_v48 = vadd.f32 %v1863_v57, %v1827_v41  ;;  %v14747_v57 = vld [vmem:[#allocation51_spill] sm:$0xff] }
 0x2a2   : > { %v1962_v4 = vadd.f32 %v1930_v53, %v1894_v15  ;;  %8831 = verf.f32 %v7833_v23  ;;  %v2135_v19 = vmul.f32 %v14741_v6, %v14742_v40  ;;  %v2202_v63 = vmul.f32 %v14743_v13, %v14742_v40 }
 0x2a3   : > { %v2203_v17 = vmul.f32 %v14743_v13, %v14744_v9  ;;  %8833 = verf.f32 %v7834_v47  ;;  %v1963_v18 = vadd.f32 %v1931_v16, %v1895_v48  ;;  %v10933_v30 = vunpack.c.l.bf16 %v2288_v27 }
 0x2a4   : > { %v2030_v62 = vadd.f32 %v1998_v32, %v1962_v4  ;;  %v2400_v38 = vmul.f32 %v14746_v42, %v14724_v3  ;;  %v2401_v53 = vmul.f32 %v14746_v42, %v14747_v57  ;;  %v2691_v41 = vmul.f32 %v14642_v45, %v14724_v3  ;;  %v14748_v4 = vld [vmem:[#allocation55_spill] sm:$0xff] }
 0x2a5   : > { %14745 = vst [vmem:[#allocation50_spill] sm:$0xff] %v10933_v30  ;;  %v2692_v15 = vmul.f32 %v14642_v45, %v14747_v57  ;;  %v2031_v23 = vadd.f32 %v1999_v14, %v1963_v18  ;;  %v2693_v16 = vmul.f32 %v14642_v45, %v14726_v20  ;;  %v2694_v48 = vmul.f32 %v14642_v45, %v14748_v4 }
 0x2a6   : > { %v2098_v52 = vadd.f32 %v2066_v10, %v2030_v62  ;;  %v2538_v47 = vrot.slane %v2400_v38, 1  ;;  %v2539_v27 = vrot.slane %v2401_v53, 1  ;;  %v2827_v32 = vrot.slane %v2691_v41, 1 }
 0x2a7   : > { %v2828_v46 = vrot.slane %v2692_v15, 1  ;;  %v2099_v13 = vadd.f32 %v2067_v36, %v2031_v23  ;;  %v2830_v6 = vrot.slane %v2693_v16, 1  ;;  %v2831_v59 = vrot.slane %v2694_v48, 1  ;;  %v14750_v23 = vld [vmem:[#allocation41_spill] sm:$0xff] }
 0x2a8   : > { %v2166_v42 = vadd.f32 %v2134_v21, %v2098_v52  ;;  %v2540_v3 = vsel %vm2510_vm1, %v2538_v47, %v2539_v27  ;;  %v2983_v62 = vmul.f32 %v14643_v5, %v14726_v20  ;;  %v2984_v14 = vmul.f32 %v14643_v5, %v14748_v4  ;;  %v14749_v52 = vld [vmem:[#allocation49_spill] sm:$0xff] }
 0x2a9   : > { %v2829_v1 = vsel %vm2510_vm1, %v2827_v32, %v2828_v46  ;;  %v2167_v10 = vadd.f32 %v2135_v19, %v2099_v13  ;;  %v2832_v38 = vsel %vm2510_vm1, %v2830_v6, %v2831_v59  ;;  %v2985_v36 = vmul.f32 %v14643_v5, %v14729_v12  ;;  %v14751_v47 = vld [vmem:[#allocation37_spill] sm:$0xff] }
 0x2aa   : > { %v2234_v18 = vadd.f32 %v2202_v63, %v2166_v42  ;;  %v2986_v21 = vmul.f32 %v14643_v5, %v14749_v52  ;;  %v3119_v53 = vrot.slane %v2983_v62, 1  ;;  %v3120_v41 = vrot.slane %v2984_v14, 1  ;;  %v14752_v63 = vld [vmem:[#allocation68_spill] sm:$0xff] }
 0x2ab   : > { %v3275_v46 = vmul.f32 %v9301_v25, %v14730_v11  ;;  %v2235_v15 = vadd.f32 %v2203_v17, %v2167_v10  ;;  %v3122_v48 = vrot.slane %v2985_v36, 1  ;;  %v3276_v42 = vmul.f32 %v9301_v25, %v14751_v47 }
 0x2ac   : > { %v2647_v16 = vadd.f32 %v14750_v23, %v2234_v18  ;;  %v8832_v19 = vpop.eup %8831  ;;  %v3121_v6 = vsel %vm2510_vm1, %v3119_v53, %v3120_v41  ;;  %v3123_v59 = vrot.slane %v2986_v21, 1  ;;  %v3277_v13 = vmul.f32 %v9301_v25, %v14732_v33 }
 0x2ad   : > { %v3278_v27 = vmul.f32 %v9301_v25, %v14752_v63  ;;  %v8834_v32 = vpop.eup %8833  ;;  %v7897_v62 = vadd.f32 1.0, %v8832_v19  ;;  %v2648_v14 = vadd.f32 %v2540_v3, %v2235_v15  ;;  %v3411_v10 = vrot.slane %v3275_v46, 1 }
 0x2ae   : > { %v2939_v17 = vadd.f32 %v2829_v1, %v2647_v16  ;;  %v7898_v18 = vadd.f32 1.0, %v8834_v32  ;;  %v3124_v36 = vsel %vm2510_vm1, %v3122_v48, %v3123_v59  ;;  %v3412_v23 = vrot.slane %v3276_v42, 1 }
 0x2af   : > { %v3414_v11 = vrot.slane %v3277_v13, 1  ;;  %v7929_v5 = vmul.f32 %v7897_v62, %v10921_v43  ;;  %v2940_v53 = vadd.f32 %v2832_v38, %v2648_v14  ;;  %v3415_v41 = vrot.slane %v3278_v27, 1  ;;  %v14753_v38 = vld [vmem:[#allocation73_spill] sm:$0xff] }
 0x2b0   : > { %v3231_v21 = vadd.f32 %v3121_v6, %v2939_v17  ;;  %v7930_v45 = vmul.f32 %v7898_v18, %v7802_v35  ;;  %v3413_v60 = vsel %vm2510_vm1, %v3411_v10, %v3412_v23  ;;  %v3567_v25 = vmul.f32 %v9304_v26, %v14732_v33 }
 0x2b1   : > { %v3568_v1 = vmul.f32 %v9304_v26, %v14752_v63  ;;  %v3232_v3 = vadd.f32 %v3124_v36, %v2940_v53  ;;  %v3416_v46 = vsel %vm2510_vm1, %v3414_v11, %v3415_v41  ;;  %v3569_v16 = vmul.f32 %v9304_v26, %v14736_v49  ;;  %v14755_v41 = vld [vmem:[#allocation90_spill] sm:$0xff] }
 0x2b2   : > { %v3523_v15 = vadd.f32 %v3413_v60, %v3231_v21  ;;  %v7958_v43 = vpack.c.bf16 %v7930_v45, %v7929_v5  ;;  %v3570_v48 = vmul.f32 %v9304_v26, %v14753_v38  ;;  %v3703_v35 = vrot.slane %v3567_v25, 1  ;;  %v14754_v5 = vld [vmem:[#allocation65_spill] sm:$0xff] }
 0x2b3   : > { %v3704_v42 = vrot.slane %v3568_v1, 1  ;;  %v3524_v19 = vadd.f32 %v3416_v46, %v3232_v3  ;;  %v3706_v6 = vrot.slane %v3569_v16, 1  ;;  %v3859_v59 = vmul.f32 %v9308_v29, %v14736_v49 }
 0x2b4   : > { %v3860_v13 = vmul.f32 %v9308_v29, %v14753_v38  ;;  %8727 = vmatmul.mubr.bf16.gmra.mrb[4].mxu1 %v7958_v43  ;;  %v3707_v11 = vrot.slane %v3570_v48, 1  ;;  %v3861_v45 = vmul.f32 %v9308_v29, %v14738_v39  ;;  %v3862_v27 = vmul.f32 %v9308_v29, %v14754_v5 }
 0x2b5   : > { %v3705_v60 = vsel %vm2510_vm1, %v3703_v35, %v3704_v42  ;;  %v3995_v32 = vrot.slane %v3859_v59, 1  ;;  %v4151_v14 = vmul.f32 %v9344_v50, %v10892_v54  ;;  %v4152_v36 = vmul.f32 %v9344_v50, %v10933_v30 }
 0x2b6   : > { %v3815_v25 = vadd.f32 %v3705_v60, %v3523_v15  ;;  %v3996_v62 = vrot.slane %v3860_v13, 1  ;;  %v3708_v17 = vsel %vm2510_vm1, %v3706_v6, %v3707_v11  ;;  %v3998_v10 = vrot.slane %v3861_v45, 1  ;;  %v14756_v13 = vld [vmem:[#allocation96_spill] sm:$0xff] }
 0x2b7   : > { %v3999_v18 = vrot.slane %v3862_v27, 1  ;;  %v3816_v23 = vadd.f32 %v3708_v17, %v3524_v19  ;;  %v4153_v21 = vmul.f32 %v9344_v50, %v14740_v0  ;;  %v4154_v1 = vmul.f32 %v9344_v50, %v14755_v41 }
 0x2b8   : > { %v3997_v53 = vsel %vm2510_vm1, %v3995_v32, %v3996_v62  ;;  %v4287_v15 = vrot.slane %v4151_v14, 1  ;;  %v4288_v16 = vrot.slane %v4152_v36, 1  ;;  %v4443_v42 = vmul.f32 %v14591_v61, %v14740_v0  ;;  %v5037_v32 = vld [vmem:[#allocation2 + $0xf0] sm:$0xe]  ;;  %v5038_v62 = vld [vmem:[#allocation2 + $0xf8] sm:$0xe] }
 0x2b9   : > { %v4000_v3 = vsel %vm2510_vm1, %v3998_v10, %v3999_v18  ;;  %v4107_v46 = vadd.f32 %v3997_v53, %v3815_v25  ;;  %v4290_v48 = vrot.slane %v4153_v21, 1  ;;  %v4291_v35 = vrot.slane %v4154_v1, 1  ;;  %v14757_v53 = vld [vmem:[#allocation88_spill] sm:$0xff] }
 0x2ba   : > { %v4108_v43 = vadd.f32 %v4000_v3, %v3816_v23  ;;  %v4289_v19 = vsel %vm2510_vm1, %v4287_v15, %v4288_v16  ;;  %v4444_v6 = vmul.f32 %v14591_v61, %v14755_v41  ;;  %v4445_v59 = vmul.f32 %v14591_v61, %v14742_v40 }
 0x2bb   : > { %v4446_v60 = vmul.f32 %v14591_v61, %v14756_v13  ;;  %v4292_v11 = vsel %vm2510_vm1, %v4290_v48, %v4291_v35  ;;  %v4399_v45 = vadd.f32 %v4289_v19, %v4107_v46  ;;  %v4579_v27 = vrot.slane %v4443_v42, 1 }
 0x2bc   : > { %v4735_v25 = vmul.f32 %v14597_v51, %v14742_v40  ;;  %v4400_v14 = vadd.f32 %v4292_v11, %v4108_v43  ;;  %v4580_v17 = vrot.slane %v4444_v6, 1  ;;  %v4582_v10 = vrot.slane %v4445_v59, 1  ;;  %v14760_v6 = vld [vmem:[#allocation33_spill] sm:$0xff] }
 0x2bd   : > { %v4583_v18 = vrot.slane %v4446_v60, 1  ;;  %v4736_v36 = vmul.f32 %v14597_v51, %v14756_v13  ;;  %v4737_v23 = vmul.f32 %v14597_v51, %v14744_v9  ;;  %v4738_v21 = vmul.f32 %v14597_v51, %v14757_v53  ;;  %v14761_v60 = vld [vmem:[#allocation47_spill] sm:$0xff] }
 0x2be   : > { %v4871_v1 = vrot.slane %v4735_v25, 1  ;;  %v4581_v3 = vsel %vm2510_vm1, %v4579_v27, %v4580_v17  ;;  %v11020_v15 = vunpack.c.l.bf16 %v5037_v32  ;;  %v11022_v16 = vunpack.c.l.bf16 %v5038_v62 }
 0x2bf   : > { %v4584_v46 = vsel %vm2510_vm1, %v4582_v10, %v4583_v18  ;;  %v4691_v43 = vadd.f32 %v4581_v3, %v4399_v45  ;;  %v4872_v35 = vrot.slane %v4736_v36, 1  ;;  %v4874_v42 = vrot.slane %v4737_v23, 1 }
 0x2c0   : > { %14758 = vst [vmem:[#allocation54_spill] sm:$0xff] %v11020_v15  ;;  %14759 = vst [vmem:[#allocation48_spill] sm:$0xff] %v11022_v16  ;;  %v4692_v48 = vadd.f32 %v4584_v46, %v4400_v14  ;;  %v4875_v19 = vrot.slane %v4738_v21, 1  ;;  %v5148_v59 = vmul.f32 %v14607_v7, %v14760_v6  ;;  %v5149_v11 = vmul.f32 %v14607_v7, %v14761_v60  ;;  %v14764_v46 = vld [vmem:[#allocation38_spill] sm:$0xff] }
 0x2c1   : > { %v5150_v27 = vmul.f32 %v14607_v7, %v14747_v57  ;;  %v4873_v25 = vsel %vm2510_vm1, %v4871_v1, %v4872_v35  ;;  %v11033_v32 = vmul.f32 %v14607_v7, %v11020_v15  ;;  %v5440_v45 = vmul.f32 %v14651_v31, %v14761_v60  ;;  %v14763_v1 = vld [vmem:[#allocation24_spill] sm:$0xff] }
 0x2c2   : > { %v5441_v62 = vmul.f32 %v14651_v31, %v14747_v57  ;;  %v4876_v14 = vsel %vm2510_vm1, %v4874_v42, %v4875_v19  ;;  %v4983_v17 = vadd.f32 %v4873_v25, %v4691_v43  ;;  %v5285_v10 = vrot.slane %v5148_v59, 2 }
 0x2c3   : > { %14762 = vst [vmem:[#allocation108_spill] sm:$0xff] %v11033_v32  ;;  %v5287_v18 = vrot.slane %v5149_v11, 2  ;;  %v4984_v36 = vadd.f32 %v4876_v14, %v4692_v48  ;;  %v5288_v23 = vrot.slane %v5150_v27, 2  ;;  %v5442_v3 = vmul.f32 %v14651_v31, %v14763_v1 }
 0x2c4   : > { %v14765_v35 = vrot.slane %v14764_v46, 2  ;;  %v5443_v60 = vmul.f32 %v14651_v31, %v14748_v4  ;;  %v5576_v57 = vrot.slane %v5440_v45, 2  ;;  %v5577_v0 = vrot.slane %v5441_v62, 2 }
 0x2c5   : > { %v5289_v43 = vsel %vm5259_vm8, %v5287_v18, %v5288_v23  ;;  %v5579_v19 = vrot.slane %v5442_v3, 2  ;;  %v5732_v48 = vmul.f32 %v14652_v24, %v14763_v1  ;;  %v5733_v25 = vmul.f32 %v14652_v24, %v14748_v4  ;;  %v14767_v23 = vld [vmem:[#allocation25_spill] sm:$0xff] }
 0x2c6   : > { %v5286_v6 = vsel %vm5259_vm8, %v14765_v35, %v5285_v10  ;;  %v5397_v59 = vadd.f32 %v5289_v43, %v4984_v36  ;;  %v5578_v11 = vsel %vm5259_vm8, %v5576_v57, %v5577_v0  ;;  %v5580_v27 = vrot.slane %v5443_v60, 2  ;;  %v14766_v10 = vld [vmem:[#allocation29_spill] sm:$0xff]  ;;  %v14768_v43 = vld [vmem:[#allocation31_spill] sm:$0xff] }
 0x2c7   : > { %v5396_v42 = vadd.f32 %v5286_v6, %v4983_v17  ;;  %v5734_v46 = vmul.f32 %v14652_v24, %v14766_v10  ;;  %v5735_v45 = vmul.f32 %v14652_v24, %v14749_v52  ;;  %v5868_v62 = vrot.slane %v5732_v48, 2 }
 0x2c8   : > { %v5581_v17 = vsel %vm5259_vm8, %v5579_v19, %v5580_v27  ;;  %v5869_v18 = vrot.slane %v5733_v25, 2  ;;  %v6025_v36 = vmul.f32 %v14618_v55, %v14751_v47  ;;  %v6026_v0 = vmul.f32 %v14618_v55, %v14767_v23 }
 0x2c9   : > { %v5688_v14 = vadd.f32 %v5578_v11, %v5396_v42  ;;  %v5689_v3 = vadd.f32 %v5581_v17, %v5397_v59  ;;  %v5871_v35 = vrot.slane %v5734_v46, 2  ;;  %v5872_v6 = vrot.slane %v5735_v45, 2  ;;  %v14769_v45 = vld [vmem:[#allocation74_spill] sm:$0xff] }
 0x2ca   : > { %v6027_v60 = vmul.f32 %v14618_v55, %v14752_v63  ;;  %v5870_v57 = vsel %vm5259_vm8, %v5868_v62, %v5869_v18  ;;  %v6160_v42 = vrot.slane %v14768_v43, 2  ;;  %v6161_v48 = vrot.slane %v6025_v36, 2  ;;  %v14770_v43 = vld [vmem:[#allocation66_spill] sm:$0xff] }
 0x2cb   : > { %v6163_v11 = vrot.slane %v6026_v0, 2  ;;  %v5873_v19 = vsel %vm5259_vm8, %v5871_v35, %v5872_v6  ;;  %v5980_v27 = vadd.f32 %v5870_v57, %v5688_v14  ;;  %v6316_v21 = vmul.f32 %v14716_v44, %v14767_v23 }
 0x2cc   : > { %v6164_v25 = vrot.slane %v6027_v60, 2  ;;  %v5981_v32 = vadd.f32 %v5873_v19, %v5689_v3  ;;  %v6162_v59 = vsel %vm5259_vm8, %v6160_v42, %v6161_v48  ;;  %v6317_v46 = vmul.f32 %v14716_v44, %v14752_v63  ;;  %v11143_v63 = vld [vmem:[%s13905_s4] ss:$0 sm:$0xff] }
 0x2cd   : > { %v6318_v62 = vmul.f32 %v14716_v44, %v14769_v45  ;;  %v6272_v18 = vadd.f32 %v6162_v59, %v5980_v27  ;;  %v6319_v36 = vmul.f32 %v14716_v44, %v14753_v38  ;;  %v6452_v14 = vrot.slane %v6316_v21, 2  ;;  %14777 = vst [vmem:[#allocation44_spill] sm:$0xff] %v11143_v63 }
 0x2ce   : > { %v6165_v17 = vsel %vm5259_vm8, %v6163_v11, %v6164_v25  ;;  %v6453_v35 = vrot.slane %v6317_v46, 2  ;;  %v6608_v3 = vmul.f32 %v14717_v56, %v14769_v45  ;;  %v6609_v57 = vmul.f32 %v14717_v56, %v14753_v38 }
 0x2cf   : > { %v6273_v0 = vadd.f32 %v6165_v17, %v5981_v32  ;;  %v6455_v6 = vrot.slane %v6318_v62, 2  ;;  %v6456_v60 = vrot.slane %v6319_v36, 2  ;;  %v6610_v42 = vmul.f32 %v14717_v56, %v14770_v43 }
 0x2d0   : > { %v6611_v48 = vmul.f32 %v14717_v56, %v14754_v5  ;;  %v6454_v11 = vsel %vm5259_vm8, %v6452_v14, %v6453_v35  ;;  %v6744_v19 = vrot.slane %v6608_v3, 2  ;;  %v6900_v32 = vmul.f32 %v14719_v8, %v11020_v15 }
 0x2d1   : > { %v6901_v21 = vmul.f32 %v14719_v8, %v10933_v30  ;;  %v6457_v27 = vsel %vm5259_vm8, %v6455_v6, %v6456_v60  ;;  %v6564_v25 = vadd.f32 %v6454_v11, %v6272_v18  ;;  %v6745_v59 = vrot.slane %v6609_v57, 2  ;;  %v14771_v11 = vld [vmem:[#allocation95_spill] sm:$0xff] }
 0x2d2   : > { %v6747_v46 = vrot.slane %v6610_v42, 2  ;;  %v6565_v62 = vadd.f32 %v6457_v27, %v6273_v0  ;;  %v6748_v17 = vrot.slane %v6611_v48, 2  ;;  %v6902_v36 = vmul.f32 %v14719_v8, %v11022_v16 }
 0x2d3   : > { %v6903_v14 = vmul.f32 %v14719_v8, %v14755_v41  ;;  %v6746_v35 = vsel %vm5259_vm8, %v6744_v19, %v6745_v59  ;;  %v7036_v3 = vrot.slane %v6900_v32, 2  ;;  %v7037_v15 = vrot.slane %v6901_v21, 2 }
 0x2d4   : > { %v7192_v23 = vmul.f32 %v14721_v37, %v11022_v16  ;;  %v6749_v6 = vsel %vm5259_vm8, %v6747_v46, %v6748_v17  ;;  %v6856_v18 = vadd.f32 %v6746_v35, %v6564_v25  ;;  %v7039_v60 = vrot.slane %v6902_v36, 2  ;;  %v14773_v16 = vld [vmem:[#allocation52_spill] sm:$0xff] }
 0x2d5   : > { %v7040_v57 = vrot.slane %v6903_v14, 2  ;;  %v6857_v0 = vadd.f32 %v6749_v6, %v6565_v62  ;;  %v7038_v42 = vsel %vm5259_vm8, %v7036_v3, %v7037_v15  ;;  %v7193_v48 = vmul.f32 %v14721_v37, %v14755_v41  ;;  %v14772_v14 = vld [vmem:[#allocation87_spill] sm:$0xff]  ;;  %v14774_v41 = vld [vmem:[#allocation58_spill] sm:$0xff] }
 0x2d6   : > { %v7194_v27 = vmul.f32 %v14721_v37, %v14771_v11  ;;  %v7148_v32 = vadd.f32 %v7038_v42, %v6856_v18  ;;  %v7195_v21 = vmul.f32 %v14721_v37, %v14756_v13  ;;  %v7328_v59 = vrot.slane %v7192_v23, 2 }
 0x2d7   : > { %v7041_v19 = vsel %vm5259_vm8, %v7039_v60, %v7040_v57  ;;  %v7329_v25 = vrot.slane %v7193_v48, 2  ;;  %v7484_v62 = vmul.f32 %v14722_v22, %v14771_v11  ;;  %v7485_v36 = vmul.f32 %v14722_v22, %v14756_v13 }
 0x2d8   : > { %v7149_v46 = vadd.f32 %v7041_v19, %v6857_v0  ;;  %v7331_v17 = vrot.slane %v7194_v27, 2  ;;  %v7332_v15 = vrot.slane %v7195_v21, 2  ;;  %v7486_v35 = vmul.f32 %v14722_v22, %v14772_v14 }
 0x2d9   : > { %v7487_v3 = vmul.f32 %v14722_v22, %v14757_v53  ;;  %v7330_v6 = vsel %vm5259_vm8, %v7328_v59, %v7329_v25  ;;  %v7620_v18 = vrot.slane %v7484_v62, 2  ;;  %v1660_v23 = vmul.f32 %v14725_v58, %v14726_v20 }
 0x2da   : > { %v1661_v60 = vmul.f32 %v14725_v58, %v14729_v12  ;;  %v7333_v57 = vsel %vm5259_vm8, %v7331_v17, %v7332_v15  ;;  %v7440_v0 = vadd.f32 %v7330_v6, %v7148_v32  ;;  %v7621_v42 = vrot.slane %v7485_v36, 2  ;;  %v14775_v6 = vld [vmem:[#allocation19_spill] sm:$0xff] }
 0x2db   : > { %v7623_v48 = vrot.slane %v7486_v35, 2  ;;  %v7441_v27 = vadd.f32 %v7333_v57, %v7149_v46  ;;  %v7624_v19 = vrot.slane %v7487_v3, 2  ;;  %v1728_v21 = vmul.f32 %v14727_v28, %v14729_v12  ;;  %v14776_v57 = vld [vmem:[#allocation69_spill] sm:$0xff] }
 0x2dc   : > { %v1729_v59 = vmul.f32 %v14727_v28, %v14773_v16  ;;  %v7622_v25 = vsel %vm5259_vm8, %v7620_v18, %v7621_v42  ;;  %v1796_v62 = vmul.f32 %v14728_v2, %v14773_v16  ;;  %v1797_v30 = vmul.f32 %v14728_v2, %v14774_v41  ;;  %v14783_v2 = vld [vmem:[#allocation27_spill] sm:$0xff] }
 0x2dd   : > { %v1864_v32 = vmul.f32 %v14731_v34, %v14736_v49  ;;  %v7625_v46 = vsel %vm5259_vm8, %v7623_v48, %v7624_v19  ;;  %v7732_v17 = vadd.f32 %v7622_v25, %v7440_v0  ;;  %v1760_v15 = vadd.f32 %v1728_v21, %v1660_v23  ;;  %v14779_v21 = vld [vmem:[#allocation78_spill] sm:$0xff] }
 0x2de   : > { %v1761_v36 = vadd.f32 %v1729_v59, %v1661_v60  ;;  %v7733_v35 = vadd.f32 %v7625_v46, %v7441_v27  ;;  %v1865_v3 = vmul.f32 %v14731_v34, %v14738_v39  ;;  %v1932_v18 = vmul.f32 %v14775_v6, %v14738_v39  ;;  %v14778_v60 = vld [vmem:[#allocation20_spill] sm:$0xff]  ;;  %v14780_v25 = vld [vmem:[#allocation22_spill] sm:$0xff] }
 0x2df   : > { %v1933_v42 = vmul.f32 %v14775_v6, %v14776_v57  ;;  %v7771_v48 = vadd.f32 %v11143_v63, %v7732_v17  ;;  %v1828_v0 = vadd.f32 %v1796_v62, %v1760_v15  ;;  %v2000_v27 = vmul.f32 %v14778_v60, %v14776_v57  ;;  %v14781_v15 = vld [vmem:[#allocation23_spill] sm:$0xff]  ;;  %v14782_v34 = vld [vmem:[#allocation92_spill] sm:$0xff] }
 0x2e0   : > { %v1829_v23 = vadd.f32 %v1797_v30, %v1761_v36  ;;  %v7772_v19 = vadd.f32 %v11143_v63, %v7733_v35  ;;  %v2001_v59 = vmul.f32 %v14778_v60, %v14779_v21  ;;  %v2068_v46 = vmul.f32 %v14780_v25, %v14742_v40 }
 0x2e1   : > { %v2069_v47 = vmul.f32 %v14780_v25, %v14744_v9  ;;  %v7803_v54 = vmul.f32 0.5, %v7771_v48  ;;  %v7835_v33 = vmul.f32 0.70710677, %v7771_v48  ;;  %v1896_v6 = vadd.f32 %v1864_v32, %v1828_v0  ;;  %v14784_v25 = vld [vmem:[#allocation100_spill] sm:$0xff] }
 0x2e2   : > { %v1897_v17 = vadd.f32 %v1865_v3, %v1829_v23  ;;  %v7804_v62 = vmul.f32 0.5, %v7772_v19  ;;  %v7836_v30 = vmul.f32 0.70710677, %v7772_v19  ;;  %v2136_v36 = vmul.f32 %v14781_v15, %v14744_v9  ;;  %v14785_v32 = vld [vmem:[#allocation12_spill] sm:$0xff] }
 0x2e3   : > { %v2137_v35 = vmul.f32 %v14781_v15, %v14782_v34  ;;  %8835 = verf.f32 %v7835_v33  ;;  %v1964_v63 = vadd.f32 %v1932_v18, %v1896_v6  ;;  %v2204_v28 = vmul.f32 %v14783_v2, %v14782_v34 }
 0x2e4   : > { %v1965_v60 = vadd.f32 %v1933_v42, %v1897_v17  ;;  %8837 = verf.f32 %v7836_v30  ;;  %v2205_v48 = vmul.f32 %v14783_v2, %v14784_v25  ;;  %v2402_v3 = vmul.f32 %v14785_v32, %v14726_v20  ;;  %v14786_v17 = vld [vmem:[#allocation14_spill] sm:$0xff] }
 0x2e5   : > { %v2403_v0 = vmul.f32 %v14785_v32, %v14748_v4  ;;  %v2032_v23 = vadd.f32 %v2000_v27, %v1964_v63  ;;  %v2404_v33 = vmul.f32 %v14785_v32, %v14729_v12  ;;  %v2405_v6 = vmul.f32 %v14785_v32, %v14749_v52  ;;  %v14787_v27 = vld [vmem:[#allocation53_spill] sm:$0xff] }
 0x2e6   : > { %v2033_v19 = vadd.f32 %v2001_v59, %v1965_v60  ;;  %v2541_v18 = vrot.slane %v2402_v3, 1  ;;  %v2695_v30 = vmul.f32 %v14786_v17, %v14729_v12  ;;  %v2696_v2 = vmul.f32 %v14786_v17, %v14749_v52 }
 0x2e7   : > { %v2542_v42 = vrot.slane %v2403_v0, 1  ;;  %v2100_v20 = vadd.f32 %v2068_v46, %v2032_v23  ;;  %v2544_v58 = vrot.slane %v2404_v33, 1  ;;  %v2545_v22 = vrot.slane %v2405_v6, 1 }
 0x2e8   : > { %v2101_v15 = vadd.f32 %v2069_v47, %v2033_v19  ;;  %v2697_v60 = vmul.f32 %v14786_v17, %v14773_v16  ;;  %v2698_v59 = vmul.f32 %v14786_v17, %v14787_v27  ;;  %v2833_v3 = vrot.slane %v2695_v30, 1  ;;  %v14788_v47 = vld [vmem:[#allocation16_spill] sm:$0xff] }
 0x2e9   : > { %v2543_v63 = vsel %vm2510_vm1, %v2541_v18, %v2542_v42  ;;  %v2168_v0 = vadd.f32 %v2136_v36, %v2100_v20  ;;  %v2546_v12 = vsel %vm2510_vm1, %v2544_v58, %v2545_v22  ;;  %v2834_v37 = vrot.slane %v2696_v2, 1  ;;  %v14789_v36 = vld [vmem:[#allocation59_spill] sm:$0xff] }
 0x2ea   : > { %v2169_v32 = vadd.f32 %v2137_v35, %v2101_v15  ;;  %v2836_v14 = vrot.slane %v2697_v60, 1  ;;  %v2837_v8 = vrot.slane %v2698_v59, 1  ;;  %v2987_v46 = vmul.f32 %v14788_v47, %v14773_v16  ;;  %v14790_v60 = vld [vmem:[#allocation21_spill] sm:$0xff] }
 0x2eb   : > { %v2988_v23 = vmul.f32 %v14788_v47, %v14787_v27  ;;  %v2236_v19 = vadd.f32 %v2204_v28, %v2168_v0  ;;  %v2835_v6 = vsel %vm2510_vm1, %v2833_v3, %v2834_v37  ;;  %v2989_v18 = vmul.f32 %v14788_v47, %v14774_v41 }
 0x2ec   : > { %v2237_v33 = vadd.f32 %v2205_v48, %v2169_v32  ;;  %v2838_v15 = vsel %vm2510_vm1, %v2836_v14, %v2837_v8  ;;  %v2990_v2 = vmul.f32 %v14788_v47, %v14789_v36  ;;  %v3125_v58 = vrot.slane %v2987_v46, 1 }
 0x2ed   : > { %v3126_v22 = vrot.slane %v2988_v23, 1  ;;  %v8836_v35 = vpop.eup %8835  ;;  %v2649_v42 = vadd.f32 %v2543_v63, %v2236_v19  ;;  %v3128_v20 = vrot.slane %v2989_v18, 1  ;;  %v3279_v28 = vmul.f32 %v14790_v60, %v14736_v49  ;;  %v14812_v49 = vld [vmem:[#allocation83_spill] sm:$0xff] }
 0x2ee   : > { %v2650_v30 = vadd.f32 %v2546_v12, %v2237_v33  ;;  %v8838_v48 = vpop.eup %8837  ;;  %v7899_v32 = vadd.f32 1.0, %v8836_v35  ;;  %v3129_v59 = vrot.slane %v2990_v2, 1  ;;  %v3280_v8 = vmul.f32 %v14790_v60, %v14753_v38 }
 0x2ef   : > { %v3127_v37 = vsel %vm2510_vm1, %v3125_v58, %v3126_v22  ;;  %v7900_v14 = vadd.f32 1.0, %v8838_v48  ;;  %v2941_v3 = vadd.f32 %v2835_v6, %v2649_v42  ;;  %v3281_v46 = vmul.f32 %v14790_v60, %v14738_v39 }
 0x2f0   : > { %v2942_v0 = vadd.f32 %v2838_v15, %v2650_v30  ;;  %v7931_v63 = vmul.f32 %v7899_v32, %v7803_v54  ;;  %v3130_v12 = vsel %vm2510_vm1, %v3128_v20, %v3129_v59  ;;  %v3282_v23 = vmul.f32 %v14790_v60, %v14754_v5  ;;  %v14791_v20 = vld [vmem:[#allocation70_spill] sm:$0xff] }
 0x2f1   : > { %v3417_v19 = vrot.slane %v3279_v28, 1  ;;  %v7932_v33 = vmul.f32 %v7900_v14, %v7804_v62  ;;  %v3233_v18 = vadd.f32 %v3127_v37, %v2941_v3  ;;  %v3418_v2 = vrot.slane %v3280_v8, 1 }
 0x2f2   : > { %v3234_v58 = vadd.f32 %v3130_v12, %v2942_v0  ;;  %v3420_v22 = vrot.slane %v3281_v46, 1  ;;  %v3421_v35 = vrot.slane %v3282_v23, 1  ;;  %v3571_v6 = vmul.f32 %v9304_v26, %v14738_v39  ;;  %v14792_v12 = vld [vmem:[#allocation80_spill] sm:$0xff] }
 0x2f3   : > { %v3572_v15 = vmul.f32 %v9304_v26, %v14754_v5  ;;  %v7959_v42 = vpack.c.bf16 %v7932_v33, %v7931_v63  ;;  %v3419_v54 = vsel %vm2510_vm1, %v3417_v19, %v3418_v2  ;;  %v3573_v30 = vmul.f32 %v9304_v26, %v14776_v57 }
 0x2f4   : > { %v3574_v62 = vmul.f32 %v9304_v26, %v14791_v20  ;;  %v3422_v28 = vsel %vm2510_vm1, %v3420_v22, %v3421_v35  ;;  %v3525_v48 = vadd.f32 %v3419_v54, %v3233_v18  ;;  %v3709_v32 = vrot.slane %v3571_v6, 1 }
 0x2f5   : > { %v3710_v37 = vrot.slane %v3572_v15, 1  ;;  %8730 = vmatprep.mubr.bf16.mxu1 %v7959_v42  ;;  %v3526_v59 = vadd.f32 %v3422_v28, %v3234_v58  ;;  %v3712_v8 = vrot.slane %v3573_v30, 1  ;;  %v3863_v3 = vmul.f32 %v9308_v29, %v14776_v57 }
 0x2f6   : > { %v3713_v14 = vrot.slane %v3574_v62, 1  ;;  %v3864_v46 = vmul.f32 %v9308_v29, %v14791_v20  ;;  %v3865_v63 = vmul.f32 %v9308_v29, %v14779_v21  ;;  %v3866_v23 = vmul.f32 %v9308_v29, %v14792_v12 }
 0x2f7   : > { %v3711_v0 = vsel %vm2510_vm1, %v3709_v32, %v3710_v37  ;;  %v4001_v18 = vrot.slane %v3863_v3, 1  ;;  %v4155_v58 = vmul.f32 %v9344_v50, %v14742_v40  ;;  %v4156_v15 = vmul.f32 %v9344_v50, %v14756_v13 }
 0x2f8   : > { %v3714_v19 = vsel %vm2510_vm1, %v3712_v8, %v3713_v14  ;;  %v3817_v33 = vadd.f32 %v3711_v0, %v3525_v48  ;;  %v4002_v22 = vrot.slane %v3864_v46, 1  ;;  %v4004_v35 = vrot.slane %v3865_v63, 1  ;;  %v14793_v46 = vld [vmem:[#allocation91_spill] sm:$0xff] }
 0x2f9   : > { %v3818_v2 = vadd.f32 %v3714_v19, %v3526_v59  ;;  %v4005_v6 = vrot.slane %v3866_v23, 1  ;;  %v4157_v42 = vmul.f32 %v9344_v50, %v14744_v9  ;;  %v4158_v54 = vmul.f32 %v9344_v50, %v14757_v53 }
 0x2fa   : > { %v4293_v30 = vrot.slane %v4155_v58, 1  ;;  %v4003_v62 = vsel %vm2510_vm1, %v4001_v18, %v4002_v22  ;;  %v4447_v48 = vmul.f32 %v14591_v61, %v14744_v9  ;;  %v4448_v32 = vmul.f32 %v14591_v61, %v14757_v53 }
 0x2fb   : > { %v4006_v28 = vsel %vm2510_vm1, %v4004_v35, %v4005_v6  ;;  %v4109_v37 = vadd.f32 %v4003_v62, %v3817_v33  ;;  %v4294_v8 = vrot.slane %v4156_v15, 1  ;;  %v4296_v14 = vrot.slane %v4157_v42, 1  ;;  %v14794_v62 = vld [vmem:[#allocation102_spill] sm:$0xff] }
 0x2fc   : > { %v4110_v59 = vadd.f32 %v4006_v28, %v3818_v2  ;;  %v4297_v3 = vrot.slane %v4158_v54, 1  ;;  %v4449_v0 = vmul.f32 %v14591_v61, %v14782_v34  ;;  %v4450_v63 = vmul.f32 %v14591_v61, %v14793_v46 }
 0x2fd   : > { %v4585_v23 = vrot.slane %v4447_v48, 1  ;;  %v4295_v19 = vsel %vm2510_vm1, %v4293_v30, %v4294_v8  ;;  %v4586_v18 = vrot.slane %v4448_v32, 1  ;;  %v4739_v58 = vmul.f32 %v14597_v51, %v14782_v34 }
 0x2fe   : > { %v4740_v33 = vmul.f32 %v14597_v51, %v14793_v46  ;;  %v4298_v2 = vsel %vm2510_vm1, %v4296_v14, %v4297_v3  ;;  %v4401_v22 = vadd.f32 %v4295_v19, %v4109_v37  ;;  %v4588_v35 = vrot.slane %v4449_v0, 1 }
 0x2ff   : > { %v4589_v6 = vrot.slane %v4450_v63, 1  ;;  %v4402_v15 = vadd.f32 %v4298_v2, %v4110_v59  ;;  %v4587_v42 = vsel %vm2510_vm1, %v4585_v23, %v4586_v18  ;;  %v4741_v54 = vmul.f32 %v14597_v51, %v14784_v25 }
 0x300   : > { %v4742_v30 = vmul.f32 %v14597_v51, %v14794_v62  ;;  %v4693_v48 = vadd.f32 %v4587_v42, %v4401_v22  ;;  %v4877_v32 = vrot.slane %v4739_v58, 1  ;;  %v4878_v8 = vrot.slane %v4740_v33, 1 }
 0x301   : > { %v4590_v28 = vsel %vm2510_vm1, %v4588_v35, %v4589_v6  ;;  %v4880_v40 = vrot.slane %v4741_v54, 1  ;;  %v5151_v37 = vmul.f32 %v14607_v7, %v14763_v1  ;;  %v5152_v3 = vmul.f32 %v14607_v7, %v14748_v4  ;;  %v14795_v35 = vld [vmem:[#allocation9_spill] sm:$0xff] }
 0x302   : > { %v4694_v9 = vadd.f32 %v4590_v28, %v4402_v15  ;;  %v4881_v14 = vrot.slane %v4742_v30, 1  ;;  %v4879_v59 = vsel %vm2510_vm1, %v4877_v32, %v4878_v8  ;;  %v5153_v0 = vmul.f32 %v14607_v7, %v14766_v10  ;;  %v14796_v8 = vld [vmem:[#allocation11_spill] sm:$0xff] }
 0x303   : > { %v5154_v63 = vmul.f32 %v14607_v7, %v14749_v52  ;;  %v4985_v19 = vadd.f32 %v4879_v59, %v4693_v48  ;;  %v5290_v18 = vrot.slane %v5151_v37, 2  ;;  %v5444_v58 = vmul.f32 %v14651_v31, %v14766_v10 }
 0x304   : > { %v4882_v23 = vsel %vm2510_vm1, %v4880_v40, %v4881_v14  ;;  %v5291_v1 = vrot.slane %v5152_v3, 2  ;;  %v5293_v2 = vrot.slane %v5153_v0, 2  ;;  %v5445_v4 = vmul.f32 %v14651_v31, %v14749_v52 }
 0x305   : > { %v4986_v33 = vadd.f32 %v4882_v23, %v4694_v9  ;;  %v5294_v22 = vrot.slane %v5154_v63, 2  ;;  %v5446_v6 = vmul.f32 %v14651_v31, %v14795_v35  ;;  %v5447_v15 = vmul.f32 %v14651_v31, %v14787_v27 }
 0x306   : > { %v5582_v42 = vrot.slane %v5444_v58, 2  ;;  %v5292_v40 = vsel %vm5259_vm8, %v5290_v18, %v5291_v1  ;;  %v5736_v9 = vmul.f32 %v14652_v24, %v14795_v35  ;;  %v5737_v10 = vmul.f32 %v14652_v24, %v14787_v27 }
 0x307   : > { %v5295_v54 = vsel %vm5259_vm8, %v5293_v2, %v5294_v22  ;;  %v5398_v30 = vadd.f32 %v5292_v40, %v4985_v19  ;;  %v5583_v52 = vrot.slane %v5445_v4, 2  ;;  %v5585_v48 = vrot.slane %v5446_v6, 2 }
 0x308   : > { %v5399_v28 = vadd.f32 %v5295_v54, %v4986_v33  ;;  %v5586_v32 = vrot.slane %v5447_v15, 2  ;;  %v5738_v14 = vmul.f32 %v14652_v24, %v14796_v8  ;;  %v5739_v37 = vmul.f32 %v14652_v24, %v14789_v36 }
 0x309   : > { %v5874_v59 = vrot.slane %v5736_v9, 2  ;;  %v5584_v3 = vsel %vm5259_vm8, %v5582_v42, %v5583_v52  ;;  %v5875_v0 = vrot.slane %v5737_v10, 2  ;;  %v6028_v63 = vmul.f32 %v14618_v55, %v14769_v45 }
 0x30a   : > { %v6029_v23 = vmul.f32 %v14618_v55, %v14753_v38  ;;  %v5587_v19 = vsel %vm5259_vm8, %v5585_v48, %v5586_v32  ;;  %v5690_v18 = vadd.f32 %v5584_v3, %v5398_v30  ;;  %v5877_v58 = vrot.slane %v5738_v14, 2  ;;  %v14797_v48 = vld [vmem:[#allocation71_spill] sm:$0xff] }
 0x30b   : > { %v5878_v33 = vrot.slane %v5739_v37, 2  ;;  %v5691_v1 = vadd.f32 %v5587_v19, %v5399_v28  ;;  %v5876_v2 = vsel %vm5259_vm8, %v5874_v59, %v5875_v0  ;;  %v6030_v22 = vmul.f32 %v14618_v55, %v14770_v43  ;;  %v14811_v38 = vld [vmem:[#allocation19_spill] sm:$0xff] }
 0x30c   : > { %v6031_v4 = vmul.f32 %v14618_v55, %v14754_v5  ;;  %v5982_v15 = vadd.f32 %v5876_v2, %v5690_v18  ;;  %v6166_v42 = vrot.slane %v6028_v63, 2  ;;  %v6167_v40 = vrot.slane %v6029_v23, 2 }
 0x30d   : > { %v5879_v6 = vsel %vm5259_vm8, %v5877_v58, %v5878_v33  ;;  %v6169_v9 = vrot.slane %v6030_v22, 2  ;;  %v6320_v30 = vmul.f32 %v14716_v44, %v14770_v43  ;;  %v6321_v52 = vmul.f32 %v14716_v44, %v14754_v5  ;;  %v14798_v33 = vld [vmem:[#allocation79_spill] sm:$0xff] }
 0x30e   : > { %v5983_v54 = vadd.f32 %v5879_v6, %v5691_v1  ;;  %v6170_v10 = vrot.slane %v6031_v4, 2  ;;  %v6168_v28 = vsel %vm5259_vm8, %v6166_v42, %v6167_v40  ;;  %v6322_v32 = vmul.f32 %v14716_v44, %v14797_v48 }
 0x30f   : > { %v6323_v14 = vmul.f32 %v14716_v44, %v14791_v20  ;;  %v6274_v59 = vadd.f32 %v6168_v28, %v5982_v15  ;;  %v6458_v3 = vrot.slane %v6320_v30, 2  ;;  %v6612_v0 = vmul.f32 %v14717_v56, %v14797_v48  ;;  %v14799_v15 = vld [vmem:[#allocation28_spill] sm:$0xff] }
 0x310   : > { %v6171_v37 = vsel %vm5259_vm8, %v6169_v9, %v6170_v10  ;;  %v6459_v23 = vrot.slane %v6321_v52, 2  ;;  %v6461_v19 = vrot.slane %v6322_v32, 2  ;;  %v6613_v58 = vmul.f32 %v14717_v56, %v14791_v20  ;;  %v14800_v52 = vld [vmem:[#allocation87_spill] sm:$0xff] }
 0x311   : > { %v6275_v63 = vadd.f32 %v6171_v37, %v5983_v54  ;;  %v6462_v18 = vrot.slane %v6323_v14, 2  ;;  %v6614_v1 = vmul.f32 %v14717_v56, %v14798_v33  ;;  %v6615_v2 = vmul.f32 %v14717_v56, %v14792_v12 }
 0x312   : > { %v6750_v22 = vrot.slane %v6612_v0, 2  ;;  %v6460_v4 = vsel %vm5259_vm8, %v6458_v3, %v6459_v23  ;;  %v6904_v42 = vmul.f32 %v14799_v15, %v14771_v11  ;;  %v6905_v40 = vmul.f32 %v14799_v15, %v14756_v13  ;;  %v14801_v23 = vld [vmem:[#allocation45_spill] sm:$0xff] }
 0x313   : > { %v6463_v6 = vsel %vm5259_vm8, %v6461_v19, %v6462_v18  ;;  %v6566_v54 = vadd.f32 %v6460_v4, %v6274_v59  ;;  %v6751_v10 = vrot.slane %v6613_v58, 2  ;;  %v6753_v30 = vrot.slane %v6614_v1, 2 }
 0x314   : > { %v6567_v9 = vadd.f32 %v6463_v6, %v6275_v63  ;;  %v6754_v28 = vrot.slane %v6615_v2, 2  ;;  %v6906_v32 = vmul.f32 %v14799_v15, %v14800_v52  ;;  %v6907_v14 = vmul.f32 %v14799_v15, %v14757_v53  ;;  %v14802_v6 = vld [vmem:[#allocation93_spill] sm:$0xff] }
 0x315   : > { %v7042_v37 = vrot.slane %v6904_v42, 2  ;;  %v6752_v3 = vsel %vm5259_vm8, %v6750_v22, %v6751_v10  ;;  %v7043_v0 = vrot.slane %v6905_v40, 2  ;;  %v7196_v19 = vmul.f32 %v14801_v23, %v14800_v52 }
 0x316   : > { %v7197_v59 = vmul.f32 %v14801_v23, %v14757_v53  ;;  %v6755_v63 = vsel %vm5259_vm8, %v6753_v30, %v6754_v28  ;;  %v6858_v18 = vadd.f32 %v6752_v3, %v6566_v54  ;;  %v7045_v58 = vrot.slane %v6906_v32, 2  ;;  %v14803_v54 = vld [vmem:[#allocation30_spill] sm:$0xff] }
 0x317   : > { %v7046_v1 = vrot.slane %v6907_v14, 2  ;;  %v6859_v2 = vadd.f32 %v6755_v63, %v6567_v9  ;;  %v7044_v4 = vsel %vm5259_vm8, %v7042_v37, %v7043_v0  ;;  %v7198_v42 = vmul.f32 %v14801_v23, %v14802_v6  ;;  %v14804_v14 = vld [vmem:[#allocation101_spill] sm:$0xff]  ;;  %v14805_v63 = vld [vmem:[#allocation4_spill] sm:$0xff] }
 0x318   : > { %v7199_v22 = vmul.f32 %v14801_v23, %v14793_v46  ;;  %v7150_v10 = vadd.f32 %v7044_v4, %v6858_v18  ;;  %v7334_v52 = vrot.slane %v7196_v19, 2  ;;  %v7335_v11 = vrot.slane %v7197_v59, 2  ;;  %v14806_v4 = vld [vmem:[#allocation5_spill] sm:$0xff]  ;;  %v14821_v23 = vld [vmem:[#allocation12_spill] sm:$0xff] }
 0x319   : > { %v7047_v40 = vsel %vm5259_vm8, %v7045_v58, %v7046_v1  ;;  %v7337_v45 = vrot.slane %v7198_v42, 2  ;;  %v7488_v28 = vmul.f32 %v14803_v54, %v14802_v6  ;;  %v7489_v32 = vmul.f32 %v14803_v54, %v14793_v46 }
 0x31a   : > { %v7151_v43 = vadd.f32 %v7047_v40, %v6859_v2  ;;  %v7338_v30 = vrot.slane %v7199_v22, 2  ;;  %v7336_v9 = vsel %vm5259_vm8, %v7334_v52, %v7335_v11  ;;  %v7490_v37 = vmul.f32 %v14803_v54, %v14804_v14  ;;  %v14807_v22 = vld [vmem:[#allocation62_spill] sm:$0xff] }
 0x31b   : > { %v7491_v3 = vmul.f32 %v14803_v54, %v14794_v62  ;;  %v7442_v19 = vadd.f32 %v7336_v9, %v7150_v10  ;;  %v7626_v59 = vrot.slane %v7488_v28, 2  ;;  %v1662_v18 = vmul.f32 %v14805_v63, %v14773_v16 }
 0x31c   : > { %v7339_v0 = vsel %vm5259_vm8, %v7337_v45, %v7338_v30  ;;  %v7627_v1 = vrot.slane %v7489_v32, 2  ;;  %v7629_v2 = vrot.slane %v7490_v37, 2  ;;  %v1663_v52 = vmul.f32 %v14805_v63, %v14774_v41  ;;  %v14808_v45 = vld [vmem:[#allocation6_spill] sm:$0xff] }
 0x31d   : > { %v7443_v58 = vadd.f32 %v7339_v0, %v7151_v43  ;;  %v7630_v11 = vrot.slane %v7491_v3, 2  ;;  %v1730_v42 = vmul.f32 %v14806_v4, %v14774_v41  ;;  %v1731_v40 = vmul.f32 %v14806_v4, %v14807_v22  ;;  %v14809_v43 = vld [vmem:[#allocation56_spill] sm:$0xff]  ;;  %v14810_v32 = vld [vmem:[#allocation18_spill] sm:$0xff] }
 0x31e   : > { %v1798_v10 = vmul.f32 %v14808_v45, %v14807_v22  ;;  %v7628_v30 = vsel %vm5259_vm8, %v7626_v59, %v7627_v1  ;;  %v1799_v9 = vmul.f32 %v14808_v45, %v14809_v43  ;;  %v1866_v37 = vmul.f32 %v14810_v32, %v14776_v57  ;;  %v14813_v1 = vld [vmem:[#allocation20_spill] sm:$0xff] }
 0x31f   : > { %v7631_v28 = vsel %vm5259_vm8, %v7629_v2, %v7630_v11  ;;  %v7734_v3 = vadd.f32 %v7628_v30, %v7442_v19  ;;  %v1762_v53 = vadd.f32 %v1730_v42, %v1662_v18  ;;  %v1763_v13 = vadd.f32 %v1731_v40, %v1663_v52  ;;  %v14814_v11 = vld [vmem:[#allocation44_spill] sm:$0xff]  ;;  %v14815_v18 = vld [vmem:[#allocation75_spill] sm:$0xff]  ;;  %v14816_v42 = vld [vmem:[#allocation22_spill] sm:$0xff] }
 0x320   : > { %v7735_v0 = vadd.f32 %v7631_v28, %v7443_v58  ;;  %v1867_v5 = vmul.f32 %v14810_v32, %v14779_v21  ;;  %v1934_v39 = vmul.f32 %v14811_v38, %v14779_v21  ;;  %v1935_v59 = vmul.f32 %v14811_v38, %v14812_v49  ;;  %v14817_v28 = vld [vmem:[#allocation23_spill] sm:$0xff] }
 0x321   : > { %v2002_v2 = vmul.f32 %v14813_v1, %v14812_v49  ;;  %v7773_v45 = vadd.f32 %v14814_v11, %v7734_v3  ;;  %v1830_v19 = vadd.f32 %v1798_v10, %v1762_v53  ;;  %v1831_v58 = vadd.f32 %v1799_v9, %v1763_v13  ;;  %v14818_v13 = vld [vmem:[#allocation105_spill] sm:$0xff]  ;;  %v14819_v9 = vld [vmem:[#allocation27_spill] sm:$0xff] }
 0x322   : > { %v7774_v4 = vadd.f32 %v14814_v11, %v7735_v0  ;;  %v2003_v52 = vmul.f32 %v14813_v1, %v14815_v18  ;;  %v2070_v40 = vmul.f32 %v14816_v42, %v14782_v34  ;;  %v2071_v30 = vmul.f32 %v14816_v42, %v14784_v25  ;;  %v14820_v1 = vld [vmem:[#allocation97_spill] sm:$0xff] }
 0x323   : > { %v2138_v38 = vmul.f32 %v14817_v28, %v14784_v25  ;;  %v7805_v32 = vmul.f32 0.5, %v7773_v45  ;;  %v7837_v3 = vmul.f32 0.70710677, %v7773_v45  ;;  %v1898_v0 = vadd.f32 %v1866_v37, %v1830_v19 }
 0x324   : > { %v11375_v63 = vmul.f32 0.5, %v7774_v4  ;;  %v7838_v54 = vmul.f32 0.70710677, %v7774_v4  ;;  %v1899_v53 = vadd.f32 %v1867_v5, %v1831_v58  ;;  %v2139_v10 = vmul.f32 %v14817_v28, %v14818_v13 }
 0x325   : > { %v2206_v11 = vmul.f32 %v14819_v9, %v14818_v13  ;;  %8839 = verf.f32 %v7837_v3  ;;  %v2207_v42 = vmul.f32 %v14819_v9, %v14820_v1  ;;  %v2406_v14 = vmul.f32 %v14821_v23, %v14773_v16 }
 0x326   : > { %v2407_v15 = vmul.f32 %v14821_v23, %v14787_v27  ;;  %8841 = verf.f32 %v7838_v54  ;;  %v1966_v4 = vadd.f32 %v1934_v39, %v1898_v0  ;;  %v1967_v45 = vadd.f32 %v1935_v59, %v1899_v53  ;;  %v14822_v0 = vld [vmem:[#allocation63_spill] sm:$0xff] }
 0x327   : > { %v2408_v5 = vmul.f32 %v14821_v23, %v14774_v41  ;;  %v2409_v37 = vmul.f32 %v14821_v23, %v14789_v36  ;;  %v2547_v19 = vrot.slane %v2406_v14, 1  ;;  %v2699_v3 = vmul.f32 %v14786_v17, %v14774_v41 }
 0x328   : > { %v2548_v58 = vrot.slane %v2407_v15, 1  ;;  %v2034_v9 = vadd.f32 %v2002_v2, %v1966_v4  ;;  %v2035_v28 = vadd.f32 %v2003_v52, %v1967_v45  ;;  %v2700_v6 = vmul.f32 %v14786_v17, %v14789_v36 }
 0x329   : > { %v2550_v16 = vrot.slane %v2408_v5, 1  ;;  %v2551_v54 = vrot.slane %v2409_v37, 1  ;;  %v2701_v59 = vmul.f32 %v14786_v17, %v14807_v22  ;;  %v2702_v53 = vmul.f32 %v14786_v17, %v14822_v0 }
 0x32a   : > { %v2549_v39 = vsel %vm2510_vm1, %v2547_v19, %v2548_v58  ;;  %v2102_v14 = vadd.f32 %v2070_v40, %v2034_v9  ;;  %v2103_v15 = vadd.f32 %v2071_v30, %v2035_v28  ;;  %v2839_v23 = vrot.slane %v2699_v3, 1 }
 0x32b   : > { %v2840_v56 = vrot.slane %v2700_v6, 1  ;;  %v2552_v41 = vsel %vm2510_vm1, %v2550_v16, %v2551_v54  ;;  %v2842_v2 = vrot.slane %v2701_v59, 1  ;;  %v2843_v52 = vrot.slane %v2702_v53, 1  ;;  %v14823_v6 = vld [vmem:[#allocation57_spill] sm:$0xff] }
 0x32c   : > { %v2991_v4 = vmul.f32 %v14788_v47, %v14807_v22  ;;  %v2170_v45 = vadd.f32 %v2138_v38, %v2102_v14  ;;  %v2171_v5 = vadd.f32 %v2139_v10, %v2103_v15  ;;  %v2992_v19 = vmul.f32 %v14788_v47, %v14822_v0 }
 0x32d   : > { %v2841_v37 = vsel %vm2510_vm1, %v2839_v23, %v2840_v56  ;;  %v2844_v58 = vsel %vm2510_vm1, %v2842_v2, %v2843_v52  ;;  %v2993_v40 = vmul.f32 %v14788_v47, %v14809_v43  ;;  %v2994_v30 = vmul.f32 %v14788_v47, %v14823_v6 }
 0x32e   : > { %v3131_v28 = vrot.slane %v2991_v4, 1  ;;  %v2238_v9 = vadd.f32 %v2206_v11, %v2170_v45  ;;  %v2239_v3 = vadd.f32 %v2207_v42, %v2171_v5  ;;  %v3132_v16 = vrot.slane %v2992_v19, 1 }
 0x32f   : > { %v3283_v38 = vmul.f32 %v14790_v60, %v14776_v57  ;;  %v8840_v10 = vpop.eup %8839  ;;  %v3134_v56 = vrot.slane %v2993_v40, 1  ;;  %v3135_v23 = vrot.slane %v2994_v30, 1  ;;  %v3284_v54 = vmul.f32 %v14790_v60, %v14791_v20 }
 0x330   : > { %v3285_v59 = vmul.f32 %v14790_v60, %v14779_v21  ;;  %v8842_v53 = vpop.eup %8841  ;;  %v7901_v14 = vadd.f32 1.0, %v8840_v10  ;;  %v2651_v15 = vadd.f32 %v2549_v39, %v2238_v9  ;;  %v2652_v2 = vadd.f32 %v2552_v41, %v2239_v3 }
 0x331   : > { %v3133_v11 = vsel %vm2510_vm1, %v3131_v28, %v3132_v16  ;;  %v7902_v42 = vadd.f32 1.0, %v8842_v53  ;;  %v3136_v52 = vsel %vm2510_vm1, %v3134_v56, %v3135_v23  ;;  %v3286_v4 = vmul.f32 %v14790_v60, %v14792_v12 }
 0x332   : > { %v3423_v45 = vrot.slane %v3283_v38, 1  ;;  %v7933_v5 = vmul.f32 %v7901_v14, %v7805_v32  ;;  %v2943_v19 = vadd.f32 %v2841_v37, %v2651_v15  ;;  %v2944_v40 = vadd.f32 %v2844_v58, %v2652_v2  ;;  %v14824_v58 = vld [vmem:[#allocation84_spill] sm:$0xff]  ;;  %v14825_v14 = vld [vmem:[#allocation77_spill] sm:$0xff] }
 0x333   : > { %v3424_v30 = vrot.slane %v3284_v54, 1  ;;  %v7934_v57 = vmul.f32 %v7902_v42, %v11375_v63  ;;  %v3426_v47 = vrot.slane %v3285_v59, 1  ;;  %v3427_v17 = vrot.slane %v3286_v4, 1 }
 0x334   : > { %v3575_v39 = vmul.f32 %v9304_v26, %v14779_v21  ;;  %v3235_v41 = vadd.f32 %v3133_v11, %v2943_v19  ;;  %v3236_v28 = vadd.f32 %v3136_v52, %v2944_v40  ;;  %v3576_v3 = vmul.f32 %v9304_v26, %v14792_v12 }
 0x335   : > { %v3425_v9 = vsel %vm2510_vm1, %v3423_v45, %v3424_v30  ;;  %v7960_v16 = vpack.c.bf16 %v7934_v57, %v7933_v5  ;;  %v3428_v32 = vsel %vm2510_vm1, %v3426_v47, %v3427_v17  ;;  %v3577_v37 = vmul.f32 %v9304_v26, %v14812_v49 }
 0x336   : > { %v3578_v63 = vmul.f32 %v9304_v26, %v14824_v58  ;;  %v3527_v38 = vadd.f32 %v3425_v9, %v3235_v41  ;;  %v3528_v10 = vadd.f32 %v3428_v32, %v3236_v28  ;;  %v3715_v56 = vrot.slane %v3575_v39, 1 }
 0x337   : > { %v3716_v23 = vrot.slane %v3576_v3, 1  ;;  %8731 = vmatmul.mubr.bf16.gmra.mrb[8].mxu1 %v7960_v16  ;;  %v3718_v54 = vrot.slane %v3577_v37, 1  ;;  %v3867_v53 = vmul.f32 %v9308_v29, %v14812_v49  ;;  %v3868_v57 = vmul.f32 %v9308_v29, %v14824_v58 }
 0x338   : > { %v3719_v59 = vrot.slane %v3578_v63, 1  ;;  %v3869_v47 = vmul.f32 %v9308_v29, %v14815_v18  ;;  %v3870_v15 = vmul.f32 %v9308_v29, %v14825_v14  ;;  %v4159_v2 = vmul.f32 %v9344_v50, %v14782_v34 }
 0x339   : > { %v3717_v17 = vsel %vm2510_vm1, %v3715_v56, %v3716_v23  ;;  %v4007_v52 = vrot.slane %v3867_v53, 1  ;;  %v4008_v4 = vrot.slane %v3868_v57, 1  ;;  %v4160_v40 = vmul.f32 %v9344_v50, %v14793_v46 }
 0x33a   : > { %v3720_v11 = vsel %vm2510_vm1, %v3718_v54, %v3719_v59  ;;  %v3819_v42 = vadd.f32 %v3717_v17, %v3527_v38  ;;  %v4010_v5 = vrot.slane %v3869_v47, 1  ;;  %v4011_v19 = vrot.slane %v3870_v15, 1  ;;  %v14826_v54 = vld [vmem:[#allocation107_spill] sm:$0xff] }
 0x33b   : > { %v3820_v45 = vadd.f32 %v3720_v11, %v3528_v10  ;;  %v4009_v30 = vsel %vm2510_vm1, %v4007_v52, %v4008_v4  ;;  %v4161_v39 = vmul.f32 %v9344_v50, %v14784_v25  ;;  %v4162_v41 = vmul.f32 %v9344_v50, %v14794_v62 }
 0x33c   : > { %v4299_v28 = vrot.slane %v4159_v2, 1  ;;  %v4012_v9 = vsel %vm2510_vm1, %v4010_v5, %v4011_v19  ;;  %v4111_v3 = vadd.f32 %v4009_v30, %v3819_v42  ;;  %v4300_v16 = vrot.slane %v4160_v40, 1  ;;  %v14827_v5 = vld [vmem:[#allocation98_spill] sm:$0xff] }
 0x33d   : > { %v4451_v32 = vmul.f32 %v14591_v61, %v14784_v25  ;;  %v4112_v37 = vadd.f32 %v4012_v9, %v3820_v45  ;;  %v4302_v63 = vrot.slane %v4161_v39, 1  ;;  %v4303_v38 = vrot.slane %v4162_v41, 1  ;;  %v14852_v25 = vld [vmem:[#allocation22_spill] sm:$0xff] }
 0x33e   : > { %v4452_v10 = vmul.f32 %v14591_v61, %v14794_v62  ;;  %v4301_v56 = vsel %vm2510_vm1, %v4299_v28, %v4300_v16  ;;  %v4453_v23 = vmul.f32 %v14591_v61, %v14818_v13  ;;  %v4454_v59 = vmul.f32 %v14591_v61, %v14826_v54 }
 0x33f   : > { %v4591_v53 = vrot.slane %v4451_v32, 1  ;;  %v4304_v57 = vsel %vm2510_vm1, %v4302_v63, %v4303_v38  ;;  %v4403_v17 = vadd.f32 %v4301_v56, %v4111_v3  ;;  %v4743_v15 = vmul.f32 %v14597_v51, %v14818_v13 }
 0x340   : > { %v4592_v47 = vrot.slane %v4452_v10, 1  ;;  %v4404_v2 = vadd.f32 %v4304_v57, %v4112_v37  ;;  %v4594_v11 = vrot.slane %v4453_v23, 1  ;;  %v4595_v42 = vrot.slane %v4454_v59, 1 }
 0x341   : > { %v4744_v52 = vmul.f32 %v14597_v51, %v14826_v54  ;;  %v4745_v45 = vmul.f32 %v14597_v51, %v14820_v1  ;;  %v4746_v19 = vmul.f32 %v14597_v51, %v14827_v5  ;;  %v4883_v40 = vrot.slane %v4743_v15, 1  ;;  %v14828_v15 = vld [vmem:[#allocation40_spill] sm:$0xff] }
 0x342   : > { %v4593_v4 = vsel %vm2510_vm1, %v4591_v53, %v4592_v47  ;;  %v4596_v30 = vsel %vm2510_vm1, %v4594_v11, %v4595_v42  ;;  %v5155_v28 = vmul.f32 %v14607_v7, %v14795_v35  ;;  %v5156_v32 = vmul.f32 %v14607_v7, %v14787_v27 }
 0x343   : > { %v4695_v39 = vadd.f32 %v4593_v4, %v4403_v17  ;;  %v4884_v41 = vrot.slane %v4744_v52, 1  ;;  %v4696_v9 = vadd.f32 %v4596_v30, %v4404_v2  ;;  %v4886_v3 = vrot.slane %v4745_v45, 1 }
 0x344   : > { %v4887_v16 = vrot.slane %v4746_v19, 1  ;;  %v5157_v63 = vmul.f32 %v14607_v7, %v14796_v8  ;;  %v5158_v38 = vmul.f32 %v14607_v7, %v14789_v36  ;;  %v5296_v10 = vrot.slane %v5155_v28, 2 }
 0x345   : > { %v4885_v37 = vsel %vm2510_vm1, %v4883_v40, %v4884_v41  ;;  %v5297_v59 = vrot.slane %v5156_v32, 2  ;;  %v5448_v35 = vmul.f32 %v14651_v31, %v14796_v8  ;;  %v5449_v27 = vmul.f32 %v14651_v31, %v14789_v36  ;;  %v14829_v41 = vld [vmem:[#allocation15_spill] sm:$0xff] }
 0x346   : > { %v4888_v56 = vsel %vm2510_vm1, %v4886_v3, %v4887_v16  ;;  %v4987_v23 = vadd.f32 %v4885_v37, %v4695_v39  ;;  %v5299_v57 = vrot.slane %v5157_v63, 2  ;;  %v5300_v17 = vrot.slane %v5158_v38, 2 }
 0x347   : > { %v4988_v53 = vadd.f32 %v4888_v56, %v4696_v9  ;;  %v5298_v47 = vsel %vm5259_vm8, %v5296_v10, %v5297_v59  ;;  %v5450_v2 = vmul.f32 %v14651_v31, %v14828_v15  ;;  %v5451_v11 = vmul.f32 %v14651_v31, %v14822_v0 }
 0x348   : > { %v5588_v42 = vrot.slane %v5448_v35, 2  ;;  %v5301_v52 = vsel %vm5259_vm8, %v5299_v57, %v5300_v17  ;;  %v5400_v4 = vadd.f32 %v5298_v47, %v4987_v23  ;;  %v5589_v45 = vrot.slane %v5449_v27, 2 }
 0x349   : > { %v5740_v8 = vmul.f32 %v14652_v24, %v14828_v15  ;;  %v5401_v19 = vadd.f32 %v5301_v52, %v4988_v53  ;;  %v5591_v40 = vrot.slane %v5450_v2, 2  ;;  %v5592_v30 = vrot.slane %v5451_v11, 2 }
 0x34a   : > { %v5741_v36 = vmul.f32 %v14652_v24, %v14822_v0  ;;  %v5590_v39 = vsel %vm5259_vm8, %v5588_v42, %v5589_v45  ;;  %v5742_v28 = vmul.f32 %v14652_v24, %v14829_v41  ;;  %v5743_v9 = vmul.f32 %v14652_v24, %v14823_v6 }
 0x34b   : > { %v5880_v3 = vrot.slane %v5740_v8, 2  ;;  %v5593_v16 = vsel %vm5259_vm8, %v5591_v40, %v5592_v30  ;;  %v5692_v32 = vadd.f32 %v5590_v39, %v5400_v4  ;;  %v6032_v63 = vmul.f32 %v14618_v55, %v14797_v48  ;;  %v14830_v8 = vld [vmem:[#allocation85_spill] sm:$0xff]  ;;  %v14843_v48 = vld [vmem:[#allocation60_spill] sm:$0xff] }
 0x34c   : > { %v5881_v37 = vrot.slane %v5741_v36, 2  ;;  %v5693_v38 = vadd.f32 %v5593_v16, %v5401_v19  ;;  %v5883_v10 = vrot.slane %v5742_v28, 2  ;;  %v5884_v56 = vrot.slane %v5743_v9, 2  ;;  %v14831_v9 = vld [vmem:[#allocation43_spill] sm:$0xff] }
 0x34d   : > { %v6033_v23 = vmul.f32 %v14618_v55, %v14791_v20  ;;  %v6034_v35 = vmul.f32 %v14618_v55, %v14798_v33  ;;  %v6035_v53 = vmul.f32 %v14618_v55, %v14792_v12  ;;  %v6172_v57 = vrot.slane %v6032_v63, 2 }
 0x34e   : > { %v5882_v59 = vsel %vm5259_vm8, %v5880_v3, %v5881_v37  ;;  %v5885_v17 = vsel %vm5259_vm8, %v5883_v10, %v5884_v56  ;;  %v6324_v2 = vmul.f32 %v14716_v44, %v14798_v33  ;;  %v6325_v4 = vmul.f32 %v14716_v44, %v14792_v12  ;;  %v14832_v10 = vld [vmem:[#allocation76_spill] sm:$0xff]  ;;  %v14842_v33 = vld [vmem:[#allocation5_spill] sm:$0xff] }
 0x34f   : > { %v5984_v27 = vadd.f32 %v5882_v59, %v5692_v32  ;;  %v6173_v47 = vrot.slane %v6033_v23, 2  ;;  %v5985_v11 = vadd.f32 %v5885_v17, %v5693_v38  ;;  %v6175_v42 = vrot.slane %v6034_v35, 2  ;;  %v14833_v17 = vld [vmem:[#allocation93_spill] sm:$0xff] }
 0x350   : > { %v6176_v52 = vrot.slane %v6035_v53, 2  ;;  %v6326_v19 = vmul.f32 %v14716_v44, %v14830_v8  ;;  %v6327_v40 = vmul.f32 %v14716_v44, %v14824_v58  ;;  %v6464_v30 = vrot.slane %v6324_v2, 2 }
 0x351   : > { %v6174_v45 = vsel %vm5259_vm8, %v6172_v57, %v6173_v47  ;;  %v6465_v28 = vrot.slane %v6325_v4, 2  ;;  %v6616_v3 = vmul.f32 %v14831_v9, %v14830_v8  ;;  %v6617_v63 = vmul.f32 %v14831_v9, %v14824_v58 }
 0x352   : > { %v6177_v36 = vsel %vm5259_vm8, %v6175_v42, %v6176_v52  ;;  %v6276_v39 = vadd.f32 %v6174_v45, %v5984_v27  ;;  %v6467_v32 = vrot.slane %v6326_v19, 2  ;;  %v6468_v37 = vrot.slane %v6327_v40, 2  ;;  %v14834_v27 = vld [vmem:[#allocation28_spill] sm:$0xff]  ;;  %v14835_v45 = vld [vmem:[#allocation101_spill] sm:$0xff] }
 0x353   : > { %v6277_v16 = vadd.f32 %v6177_v36, %v5985_v11  ;;  %v6466_v38 = vsel %vm5259_vm8, %v6464_v30, %v6465_v28  ;;  %v6618_v56 = vmul.f32 %v14831_v9, %v14832_v10  ;;  %v6619_v23 = vmul.f32 %v14831_v9, %v14825_v14 }
 0x354   : > { %v6756_v59 = vrot.slane %v6616_v3, 2  ;;  %v6469_v35 = vsel %vm5259_vm8, %v6467_v32, %v6468_v37  ;;  %v6568_v53 = vadd.f32 %v6466_v38, %v6276_v39  ;;  %v6757_v57 = vrot.slane %v6617_v63, 2  ;;  %v14836_v3 = vld [vmem:[#allocation45_spill] sm:$0xff] }
 0x355   : > { %v6908_v47 = vmul.f32 %v14834_v27, %v14833_v17  ;;  %v6569_v2 = vadd.f32 %v6469_v35, %v6277_v16  ;;  %v6759_v11 = vrot.slane %v6618_v56, 2  ;;  %v6760_v42 = vrot.slane %v6619_v23, 2  ;;  %v14837_v23 = vld [vmem:[#allocation106_spill] sm:$0xff] }
 0x356   : > { %v6909_v52 = vmul.f32 %v14834_v27, %v14793_v46  ;;  %v6758_v4 = vsel %vm5259_vm8, %v6756_v59, %v6757_v57  ;;  %v6910_v19 = vmul.f32 %v14834_v27, %v14835_v45  ;;  %v6911_v40 = vmul.f32 %v14834_v27, %v14794_v62  ;;  %v14851_v46 = vld [vmem:[#allocation42_spill] sm:$0xff] }
 0x357   : > { %v7048_v30 = vrot.slane %v6908_v47, 2  ;;  %v6761_v36 = vsel %vm5259_vm8, %v6759_v11, %v6760_v42  ;;  %v6860_v39 = vadd.f32 %v6758_v4, %v6568_v53  ;;  %v7200_v16 = vmul.f32 %v14836_v3, %v14835_v45 }
 0x358   : > { %v7049_v28 = vrot.slane %v6909_v52, 2  ;;  %v6861_v32 = vadd.f32 %v6761_v36, %v6569_v2  ;;  %v7051_v37 = vrot.slane %v6910_v19, 2  ;;  %v7052_v63 = vrot.slane %v6911_v40, 2  ;;  %v14838_v2 = vld [vmem:[#allocation30_spill] sm:$0xff] }
 0x359   : > { %v7201_v38 = vmul.f32 %v14836_v3, %v14794_v62  ;;  %v7202_v59 = vmul.f32 %v14836_v3, %v14837_v23  ;;  %v7203_v35 = vmul.f32 %v14836_v3, %v14826_v54  ;;  %v7340_v57 = vrot.slane %v7200_v16, 2  ;;  %v1565_v52 = vld [vmem:[#allocation2 + $0x138] sm:$0xf] }
 0x35a   : > { %v7050_v56 = vsel %vm5259_vm8, %v7048_v30, %v7049_v28  ;;  %v7053_v53 = vsel %vm5259_vm8, %v7051_v37, %v7052_v63  ;;  %v7492_v42 = vmul.f32 %v14838_v2, %v14837_v23  ;;  %v7493_v30 = vmul.f32 %v14838_v2, %v14826_v54  ;;  %v14839_v28 = vld [vmem:[#allocation99_spill] sm:$0xff] }
 0x35b   : > { %v7152_v47 = vadd.f32 %v7050_v56, %v6860_v39  ;;  %v7341_v11 = vrot.slane %v7201_v38, 2  ;;  %v7153_v4 = vadd.f32 %v7053_v53, %v6861_v32  ;;  %v7343_v19 = vrot.slane %v7202_v59, 2  ;;  %v14841_v53 = vld [vmem:[#allocation4_spill] sm:$0xff] }
 0x35c   : > { %v7344_v40 = vrot.slane %v7203_v35, 2  ;;  %v7494_v45 = vmul.f32 %v14838_v2, %v14839_v28  ;;  %v7495_v16 = vmul.f32 %v14838_v2, %v14827_v5  ;;  %v7632_v39 = vrot.slane %v7492_v42, 2 }
 0x35d   : > { %v7342_v36 = vsel %vm5259_vm8, %v7340_v57, %v7341_v11  ;;  %v7633_v38 = vrot.slane %v7493_v30, 2  ;;  %v11562_v56 = vunpack.c.l.bf16 %v1565_v52  ;;  %v1664_v17 = vmul.f32 %v14841_v53, %v14807_v22 }
 0x35e   : > { %v7345_v37 = vsel %vm5259_vm8, %v7343_v19, %v7344_v40  ;;  %v7444_v63 = vadd.f32 %v7342_v36, %v7152_v47  ;;  %v7635_v59 = vrot.slane %v7494_v45, 2  ;;  %v7636_v35 = vrot.slane %v7495_v16, 2  ;;  %v14844_v45 = vld [vmem:[#allocation6_spill] sm:$0xff] }
 0x35f   : > { %14840 = vst [vmem:[#allocation51_spill] sm:$0xff] %v11562_v56  ;;  %v7445_v32 = vadd.f32 %v7345_v37, %v7153_v4  ;;  %v7634_v57 = vsel %vm5259_vm8, %v7632_v39, %v7633_v38  ;;  %v1665_v11 = vmul.f32 %v14841_v53, %v14809_v43  ;;  %v1732_v42 = vmul.f32 %v14842_v33, %v14809_v43  ;;  %v14845_v40 = vld [vmem:[#allocation18_spill] sm:$0xff]  ;;  %v11583_v38 = vld [vmem:[%s13905_s4] ss:$0 sm:$0xff] }
 0x360   : > { %v1733_v47 = vmul.f32 %v14842_v33, %v14843_v48  ;;  %v7637_v52 = vsel %vm5259_vm8, %v7635_v59, %v7636_v35  ;;  %v7736_v19 = vadd.f32 %v7634_v57, %v7444_v63  ;;  %v1800_v4 = vmul.f32 %v14844_v45, %v14843_v48  ;;  %14846 = vst [vmem:[#allocation55_spill] sm:$0xff] %v11583_v38  ;;  %v14847_v63 = vld [vmem:[#allocation19_spill] sm:$0xff]  ;;  %v14848_v57 = vld [vmem:[#allocation81_spill] sm:$0xff] }
 0x361   : > { %v1868_v30 = vmul.f32 %v14845_v40, %v14812_v49  ;;  %v7737_v36 = vadd.f32 %v7637_v52, %v7445_v32  ;;  %v1764_v16 = vadd.f32 %v1732_v42, %v1664_v17  ;;  %v1869_v37 = vmul.f32 %v14845_v40, %v14815_v18  ;;  %v14849_v32 = vld [vmem:[#allocation20_spill] sm:$0xff] }
 0x362   : > { %v1765_v39 = vadd.f32 %v1733_v47, %v1665_v11  ;;  %v7775_v59 = vadd.f32 %v11583_v38, %v7736_v19  ;;  %v1936_v35 = vmul.f32 %v14847_v63, %v14815_v18  ;;  %v1937_v62 = vmul.f32 %v14847_v63, %v14848_v57  ;;  %v14850_v47 = vld [vmem:[#allocation7_spill] sm:$0xff] }
 0x363   : > { %v2004_v17 = vmul.f32 %v14849_v32, %v14848_v57  ;;  %v7776_v11 = vadd.f32 %v11583_v38, %v7737_v36  ;;  %v1832_v42 = vadd.f32 %v1800_v4, %v1764_v16  ;;  %v2005_v12 = vmul.f32 %v14849_v32, %v14851_v46  ;;  %v2297_v4 = vld [vmem:[#allocation2 + $0x13c] sm:$0x1]  ;;  %v14853_v16 = vld [vmem:[#allocation23_spill] sm:$0xff] }
 0x364   : > { %v1833_v52 = vadd.f32 %v14850_v47, %v1765_v39  ;;  %v11596_v20 = vmul.f32 0.5, %v7775_v59  ;;  %v7839_v19 = vmul.f32 0.70710677, %v7775_v59  ;;  %v2072_v34 = vmul.f32 %v14852_v25, %v14818_v13  ;;  %v14854_v47 = vld [vmem:[#allocation103_spill] sm:$0xff] }
 0x365   : > { %v2073_v21 = vmul.f32 %v14852_v25, %v14820_v1  ;;  %v11602_v63 = vmul.f32 0.5, %v7776_v11  ;;  %v7840_v40 = vmul.f32 0.70710677, %v7776_v11  ;;  %v1900_v45 = vadd.f32 %v1868_v30, %v1832_v42  ;;  %v14855_v59 = vld [vmem:[#allocation27_spill] sm:$0xff]  ;;  %v14857_v30 = vld [vmem:[#allocation12_spill] sm:$0xff] }
 0x366   : > { %v1901_v36 = vadd.f32 %v1869_v37, %v1833_v52  ;;  %8843 = verf.f32 %v7839_v19  ;;  %v2140_v39 = vmul.f32 %v14853_v16, %v14820_v1  ;;  %v2141_v32 = vmul.f32 %v14853_v16, %v14854_v47 }
 0x367   : > { %v2208_v38 = vmul.f32 %v14855_v59, %v14854_v47  ;;  %8845 = verf.f32 %v7840_v40  ;;  %v1968_v33 = vadd.f32 %v1936_v35, %v1900_v45  ;;  %v2209_v25 = vmul.f32 %v14855_v59, %v11562_v56 }
 0x368   : > { %v1969_v53 = vadd.f32 %v1937_v62, %v1901_v36  ;;  %v11612_v11 = vunpack.c.l.bf16 %v2297_v4  ;;  %v2410_v37 = vmul.f32 %v14857_v30, %v14807_v22  ;;  %v2411_v42 = vmul.f32 %v14857_v30, %v14822_v0  ;;  %v14858_v62 = vld [vmem:[#allocation14_spill] sm:$0xff] }
 0x369   : > { %v2412_v52 = vmul.f32 %v14857_v30, %v14809_v43  ;;  %v2036_v19 = vadd.f32 %v2004_v17, %v1968_v33  ;;  %v2413_v45 = vmul.f32 %v14857_v30, %v14823_v6  ;;  %v2703_v40 = vmul.f32 %v14858_v62, %v14809_v43  ;;  %v14859_v33 = vld [vmem:[#allocation61_spill] sm:$0xff] }
 0x36a   : > { %14856 = vst [vmem:[#allocation49_spill] sm:$0xff] %v11612_v11  ;;  %v2037_v16 = vadd.f32 %v2005_v12, %v1969_v53  ;;  %v2553_v35 = vrot.slane %v2410_v37, 1  ;;  %v2554_v36 = vrot.slane %v2411_v42, 1  ;;  %v2704_v22 = vmul.f32 %v14858_v62, %v14823_v6 }
 0x36b   : > { %v2556_v4 = vrot.slane %v2412_v52, 1  ;;  %v2104_v59 = vadd.f32 %v2072_v34, %v2036_v19  ;;  %v2557_v3 = vrot.slane %v2413_v45, 1  ;;  %v2705_v28 = vmul.f32 %v14858_v62, %v14843_v48 }
 0x36c   : > { %v2105_v2 = vadd.f32 %v2073_v21, %v2037_v16  ;;  %v2555_v12 = vsel %vm2510_vm1, %v2553_v35, %v2554_v36  ;;  %v2706_v53 = vmul.f32 %v14858_v62, %v14859_v33  ;;  %v2845_v17 = vrot.slane %v2703_v40, 1  ;;  %v14860_v21 = vld [vmem:[#allocation16_spill] sm:$0xff] }
 0x36d   : > { %v2846_v30 = vrot.slane %v2704_v22, 1  ;;  %v2172_v43 = vadd.f32 %v2140_v39, %v2104_v59  ;;  %v2558_v42 = vsel %vm2510_vm1, %v2556_v4, %v2557_v3  ;;  %v2848_v52 = vrot.slane %v2705_v28, 1  ;;  %v14861_v36 = vld [vmem:[#allocation36_spill] sm:$0xff] }
 0x36e   : > { %v2173_v37 = vadd.f32 %v2141_v32, %v2105_v2  ;;  %v2849_v34 = vrot.slane %v2706_v53, 1  ;;  %v2995_v16 = vmul.f32 %v14860_v21, %v14843_v48  ;;  %v2996_v19 = vmul.f32 %v14860_v21, %v14859_v33 }
 0x36f   : > { %v2847_v27 = vsel %vm2510_vm1, %v2845_v17, %v2846_v30  ;;  %v2240_v45 = vadd.f32 %v2208_v38, %v2172_v43  ;;  %v2997_v40 = vmul.f32 %v14860_v21, %v14861_v36  ;;  %v3287_v2 = vmul.f32 %v14790_v60, %v14812_v49 }
 0x370   : > { %v2241_v35 = vadd.f32 %v2209_v25, %v2173_v37  ;;  %v8844_v32 = vpop.eup %8843  ;;  %v2850_v3 = vsel %vm2510_vm1, %v2848_v52, %v2849_v34  ;;  %v3137_v28 = vrot.slane %v2995_v16, 1  ;;  %v3138_v39 = vrot.slane %v2996_v19, 1  ;;  %v14862_v16 = vld [vmem:[#allocation3_spill] sm:$0xff] }
 0x371   : > { %v3288_v59 = vmul.f32 %v14790_v60, %v14824_v58  ;;  %v8846_v48 = vpop.eup %8845  ;;  %v7903_v30 = vadd.f32 1.0, %v8844_v32  ;;  %v2653_v4 = vadd.f32 %v2555_v12, %v2240_v45  ;;  %v3140_v38 = vrot.slane %v2997_v40, 1 }
 0x372   : > { %v2654_v22 = vadd.f32 %v2558_v42, %v2241_v35  ;;  %v7904_v25 = vadd.f32 1.0, %v8846_v48  ;;  %v3139_v53 = vsel %vm2510_vm1, %v3137_v28, %v3138_v39  ;;  %v3289_v17 = vmul.f32 %v14790_v60, %v14815_v18 }
 0x373   : > { %v3290_v43 = vmul.f32 %v14790_v60, %v14825_v14  ;;  %v7935_v37 = vmul.f32 %v7903_v30, %v11596_v20  ;;  %v2945_v52 = vadd.f32 %v2847_v27, %v2653_v4  ;;  %v14863_v19 = vrot.slane %v14862_v16, 1 }
 0x374   : > { %v2946_v34 = vadd.f32 %v2850_v3, %v2654_v22  ;;  %v7936_v12 = vmul.f32 %v7904_v25, %v11602_v63  ;;  %v3429_v42 = vrot.slane %v3287_v2, 1  ;;  %v3430_v45 = vrot.slane %v3288_v59, 1  ;;  %v14864_v59 = vld [vmem:[#allocation82_spill] sm:$0xff] }
 0x375   : > { %v3142_v36 = vsel %vm2510_vm1, %v3140_v38, %v14863_v19  ;;  %v3432_v35 = vrot.slane %v3289_v17, 1  ;;  %v3237_v40 = vadd.f32 %v3139_v53, %v2945_v52  ;;  %v3433_v28 = vrot.slane %v3290_v43, 1  ;;  %v14865_v52 = vld [vmem:[#allocation13_spill] sm:$0xff] }
 0x376   : > { %v3238_v32 = vadd.f32 %v3142_v36, %v2946_v34  ;;  %v3579_v39 = vmul.f32 %v9304_v26, %v14815_v18  ;;  %v7961_v48 = vpack.c.bf16 %v7936_v12, %v7935_v37  ;;  %v3431_v20 = vsel %vm2510_vm1, %v3429_v42, %v3430_v45 }
 0x377   : > { %v3580_v27 = vmul.f32 %v9304_v26, %v14825_v14  ;;  %v3581_v3 = vmul.f32 %v9304_v26, %v14848_v57  ;;  %v3434_v63 = vsel %vm2510_vm1, %v3432_v35, %v3433_v28  ;;  %v3529_v2 = vadd.f32 %v3431_v20, %v3237_v40 }
 0x378   : > { %v3582_v30 = vmul.f32 %v9304_v26, %v14864_v59  ;;  %v3721_v4 = vrot.slane %v3579_v39, 1  ;;  %8734 = vmatprep.mubr.bf16.mxu1 %v7961_v48  ;;  %v3530_v22 = vadd.f32 %v3434_v63, %v3238_v32  ;;  %v3871_v53 = vmul.f32 %v9308_v29, %v14848_v57 }
 0x379   : > { %v3722_v38 = vrot.slane %v3580_v27, 1  ;;  %v3724_v25 = vrot.slane %v3581_v3, 1  ;;  %v3872_v43 = vmul.f32 %v9308_v29, %v14864_v59  ;;  %v3873_v37 = vmul.f32 %v9308_v29, %v14851_v46  ;;  %v14896_v46 = vld [vmem:[#allocation22_spill] sm:$0xff] }
 0x37a   : > { %v3725_v17 = vrot.slane %v3582_v30, 1  ;;  %v3874_v34 = vmul.f32 %v9308_v29, %v14865_v52  ;;  %v4013_v19 = vrot.slane %v3871_v53, 1  ;;  %v4163_v36 = vmul.f32 %v9344_v50, %v14818_v13 }
 0x37b   : > { %v3723_v16 = vsel %vm2510_vm1, %v3721_v4, %v3722_v38  ;;  %v4164_v12 = vmul.f32 %v9344_v50, %v14826_v54  ;;  %v4014_v35 = vrot.slane %v3872_v43, 1  ;;  %v4016_v40 = vrot.slane %v3873_v37, 1 }
 0x37c   : > { %v3726_v42 = vsel %vm2510_vm1, %v3724_v25, %v3725_v17  ;;  %v3821_v45 = vadd.f32 %v3723_v16, %v3529_v2  ;;  %v4017_v28 = vrot.slane %v3874_v34, 1  ;;  %v4165_v39 = vmul.f32 %v9344_v50, %v14820_v1  ;;  %v14866_v34 = vld [vmem:[#allocation104_spill] sm:$0xff] }
 0x37d   : > { %v3822_v32 = vadd.f32 %v3726_v42, %v3530_v22  ;;  %v4166_v48 = vmul.f32 %v9344_v50, %v14827_v5  ;;  %v4015_v20 = vsel %vm2510_vm1, %v4013_v19, %v4014_v35  ;;  %v4305_v27 = vrot.slane %v4163_v36, 1  ;;  %v5045_v36 = vld [vmem:[#allocation2 + $0x130] sm:$0xe] }
 0x37e   : > { %v4306_v3 = vrot.slane %v4164_v12, 1  ;;  %v4455_v63 = vmul.f32 %v14591_v61, %v14820_v1  ;;  %v4018_v30 = vsel %vm2510_vm1, %v4016_v40, %v4017_v28  ;;  %v4113_v2 = vadd.f32 %v4015_v20, %v3821_v45  ;;  %v5046_v12 = vld [vmem:[#allocation2 + $0x138] sm:$0xe] }
 0x37f   : > { %v4308_v4 = vrot.slane %v4165_v39, 1  ;;  %v4309_v38 = vrot.slane %v4166_v48, 1  ;;  %v4114_v22 = vadd.f32 %v4018_v30, %v3822_v32  ;;  %v4456_v53 = vmul.f32 %v14591_v61, %v14827_v5 }
 0x380   : > { %v4307_v25 = vsel %vm2510_vm1, %v4305_v27, %v4306_v3  ;;  %v4457_v17 = vmul.f32 %v14591_v61, %v14854_v47  ;;  %v4458_v16 = vmul.f32 %v14591_v61, %v14866_v34  ;;  %v4597_v19 = vrot.slane %v4455_v63, 1 }
 0x381   : > { %v4310_v43 = vsel %vm2510_vm1, %v4308_v4, %v4309_v38  ;;  %v4405_v37 = vadd.f32 %v4307_v25, %v4113_v2  ;;  %v4598_v45 = vrot.slane %v4456_v53, 1  ;;  %v4747_v40 = vmul.f32 %v14597_v51, %v14854_v47 }
 0x382   : > { %v4406_v42 = vadd.f32 %v4310_v43, %v4114_v22  ;;  %v4600_v35 = vrot.slane %v4457_v17, 1  ;;  %v4601_v32 = vrot.slane %v4458_v16, 1  ;;  %v4748_v28 = vmul.f32 %v14597_v51, %v14866_v34 }
 0x383   : > { %v4749_v39 = vmul.f32 %v14597_v51, %v11562_v56  ;;  %v4750_v48 = vmul.f32 %v14597_v51, %v11612_v11  ;;  %v4599_v20 = vsel %vm2510_vm1, %v4597_v19, %v4598_v45  ;;  %v4889_v27 = vrot.slane %v4747_v40, 1 }
 0x384   : > { %v11703_v3 = vunpack.c.l.bf16 %v5045_v36  ;;  %v11705_v63 = vunpack.c.l.bf16 %v5046_v12  ;;  %v4602_v30 = vsel %vm2510_vm1, %v4600_v35, %v4601_v32  ;;  %v4697_v2 = vadd.f32 %v4599_v20, %v4405_v37 }
 0x385   : > { %v4890_v4 = vrot.slane %v4748_v28, 1  ;;  %v4892_v38 = vrot.slane %v4749_v39, 1  ;;  %v4698_v22 = vadd.f32 %v4602_v30, %v4406_v42  ;;  %v4893_v25 = vrot.slane %v4750_v48, 1  ;;  %v14869_v28 = vld [vmem:[#allocation10_spill] sm:$0xff] }
 0x386   : > { %14867 = vst [vmem:[#allocation41_spill] sm:$0xff] %v11703_v3  ;;  %14868 = vst [vmem:[#allocation33_spill] sm:$0xff] %v11705_v63  ;;  %v5159_v53 = vmul.f32 %v14607_v7, %v14828_v15  ;;  %v5160_v17 = vmul.f32 %v14607_v7, %v14822_v0  ;;  %v5161_v16 = vmul.f32 %v14607_v7, %v14829_v41 }
 0x387   : > { %v4891_v43 = vsel %vm2510_vm1, %v4889_v27, %v4890_v4  ;;  %v5162_v19 = vmul.f32 %v14607_v7, %v14823_v6  ;;  %v5452_v37 = vmul.f32 %v14651_v31, %v14829_v41  ;;  %v4894_v36 = vsel %vm2510_vm1, %v4892_v38, %v4893_v25 }
 0x388   : > { %v4989_v12 = vadd.f32 %v4891_v43, %v4697_v2  ;;  %v5302_v42 = vrot.slane %v5159_v53, 2  ;;  %v5303_v45 = vrot.slane %v5160_v17, 2  ;;  %v4990_v15 = vadd.f32 %v4894_v36, %v4698_v22  ;;  %v14870_v53 = vld [vmem:[#allocation8_spill] sm:$0xff] }
 0x389   : > { %v5305_v35 = vrot.slane %v5161_v16, 2  ;;  %v5306_v40 = vrot.slane %v5162_v19, 2  ;;  %v5453_v0 = vmul.f32 %v14651_v31, %v14823_v6  ;;  %v5454_v39 = vmul.f32 %v14651_v31, %v14869_v28 }
 0x38a   : > { %v5304_v32 = vsel %vm5259_vm8, %v5302_v42, %v5303_v45  ;;  %v5455_v48 = vmul.f32 %v14651_v31, %v14859_v33  ;;  %v5594_v41 = vrot.slane %v5452_v37, 2  ;;  %v5744_v2 = vmul.f32 %v14652_v24, %v14869_v28  ;;  %v14872_v28 = vld [vmem:[#allocation125_spill] sm:$0xff] }
 0x38b   : > { %v5307_v20 = vsel %vm5259_vm8, %v5305_v35, %v5306_v40  ;;  %v5402_v27 = vadd.f32 %v5304_v32, %v4989_v12  ;;  %v5595_v30 = vrot.slane %v5453_v0, 2  ;;  %v5597_v38 = vrot.slane %v5454_v39, 2 }
 0x38c   : > { %v5403_v4 = vadd.f32 %v5307_v20, %v4990_v15  ;;  %v5598_v22 = vrot.slane %v5455_v48, 2  ;;  %v5745_v6 = vmul.f32 %v14652_v24, %v14859_v33  ;;  %v5747_v17 = vmul.f32 %v14652_v24, %v14870_v53 }
 0x38d   : > { %v5596_v25 = vsel %vm5259_vm8, %v5594_v41, %v5595_v30  ;;  %v11737_v43 = vmul.f32 %v14652_v24, %v11705_v63  ;;  %v5886_v16 = vrot.slane %v5744_v2, 2  ;;  %v6036_v12 = vmul.f32 %v14618_v55, %v14830_v8 }
 0x38e   : > { %v5599_v19 = vsel %vm5259_vm8, %v5597_v38, %v5598_v22  ;;  %v5694_v37 = vadd.f32 %v5596_v25, %v5402_v27  ;;  %v5887_v36 = vrot.slane %v5745_v6, 2  ;;  %v5890_v45 = vrot.slane %v5747_v17, 2  ;;  %v14874_v6 = vld [vmem:[#allocation46_spill] sm:$0xff] }
 0x38f   : > { %14871 = vst [vmem:[#allocation47_spill] sm:$0xff] %v11737_v43  ;;  %v5695_v42 = vadd.f32 %v5599_v19, %v5403_v4  ;;  %v6037_v15 = vmul.f32 %v14618_v55, %v14824_v58  ;;  %v6038_v40 = vmul.f32 %v14618_v55, %v14832_v10  ;;  %v6039_v0 = vmul.f32 %v14618_v55, %v14825_v14 }
 0x390   : > { %v5888_v35 = vsel %vm5259_vm8, %v5886_v16, %v5887_v36  ;;  %v6178_v32 = vrot.slane %v6036_v12, 2  ;;  %v14873_v39 = vrot.slane %v14872_v28, 2  ;;  %v6328_v27 = vmul.f32 %v14716_v44, %v14832_v10 }
 0x391   : > { %v5986_v41 = vadd.f32 %v5888_v35, %v5694_v37  ;;  %v6179_v20 = vrot.slane %v6037_v15, 2  ;;  %v6181_v2 = vrot.slane %v6038_v40, 2  ;;  %v6182_v4 = vrot.slane %v6039_v0, 2  ;;  %v14875_v40 = vld [vmem:[#allocation35_spill] sm:$0xff] }
 0x392   : > { %v5891_v48 = vsel %vm5259_vm8, %v14873_v39, %v5890_v45  ;;  %v6329_v38 = vmul.f32 %v14716_v44, %v14825_v14  ;;  %v6330_v25 = vmul.f32 %v14716_v44, %v14874_v6  ;;  %v6331_v53 = vmul.f32 %v14716_v44, %v14864_v59  ;;  %v14900_v14 = vld [vmem:[#allocation27_spill] sm:$0xff] }
 0x393   : > { %v5987_v30 = vadd.f32 %v5891_v48, %v5695_v42  ;;  %v6180_v22 = vsel %vm5259_vm8, %v6178_v32, %v6179_v20  ;;  %v6470_v17 = vrot.slane %v6328_v27, 2  ;;  %v6183_v16 = vsel %vm5259_vm8, %v6181_v2, %v6182_v4  ;;  %v14876_v20 = vld [vmem:[#allocation28_spill] sm:$0xff] }
 0x394   : > { %v6278_v19 = vadd.f32 %v6180_v22, %v5986_v41  ;;  %v6471_v37 = vrot.slane %v6329_v38, 2  ;;  %v6620_v36 = vmul.f32 %v14831_v9, %v14874_v6  ;;  %v6473_v42 = vrot.slane %v6330_v25, 2  ;;  %v14877_v25 = vld [vmem:[#allocation99_spill] sm:$0xff] }
 0x395   : > { %v6279_v12 = vadd.f32 %v6183_v16, %v5987_v30  ;;  %v6474_v45 = vrot.slane %v6331_v53, 2  ;;  %v6621_v15 = vmul.f32 %v14831_v9, %v14864_v59  ;;  %v6622_v0 = vmul.f32 %v14831_v9, %v14875_v40 }
 0x396   : > { %v6472_v35 = vsel %vm5259_vm8, %v6470_v17, %v6471_v37  ;;  %v6623_v32 = vmul.f32 %v14831_v9, %v14865_v52  ;;  %v6762_v28 = vrot.slane %v6620_v36, 2  ;;  %v6912_v27 = vmul.f32 %v14876_v20, %v14837_v23  ;;  %v14891_v52 = vld [vmem:[#allocation89_spill] sm:$0xff] }
 0x397   : > { %v6475_v39 = vsel %vm5259_vm8, %v6473_v42, %v6474_v45  ;;  %v6570_v48 = vadd.f32 %v6472_v35, %v6278_v19  ;;  %v6763_v41 = vrot.slane %v6621_v15, 2  ;;  %v6765_v2 = vrot.slane %v6622_v0, 2 }
 0x398   : > { %v6571_v30 = vadd.f32 %v6475_v39, %v6279_v12  ;;  %v6766_v4 = vrot.slane %v6623_v32, 2  ;;  %v6913_v38 = vmul.f32 %v14876_v20, %v14826_v54  ;;  %v6914_v53 = vmul.f32 %v14876_v20, %v14877_v25  ;;  %v14878_v12 = vld [vmem:[#allocation45_spill] sm:$0xff] }
 0x399   : > { %v6764_v22 = vsel %vm5259_vm8, %v6762_v28, %v6763_v41  ;;  %v6915_v17 = vmul.f32 %v14876_v20, %v14827_v5  ;;  %v7054_v16 = vrot.slane %v6912_v27, 2  ;;  %v7204_v42 = vmul.f32 %v14878_v12, %v14877_v25 }
 0x39a   : > { %v6767_v19 = vsel %vm5259_vm8, %v6765_v2, %v6766_v4  ;;  %v6862_v37 = vadd.f32 %v6764_v22, %v6570_v48  ;;  %v7055_v36 = vrot.slane %v6913_v38, 2  ;;  %v7057_v15 = vrot.slane %v6914_v53, 2  ;;  %v1566_v4 = vld [vmem:[#allocation2 + $0x140] sm:$0xf] }
 0x39b   : > { %v6863_v45 = vadd.f32 %v6767_v19, %v6571_v30  ;;  %v7058_v35 = vrot.slane %v6915_v17, 2  ;;  %v7205_v40 = vmul.f32 %v14878_v12, %v14827_v5  ;;  %v7206_v32 = vmul.f32 %v14878_v12, %v11703_v3  ;;  %v14879_v30 = vld [vmem:[#allocation30_spill] sm:$0xff] }
 0x39c   : > { %v7056_v0 = vsel %vm5259_vm8, %v7054_v16, %v7055_v36  ;;  %v7207_v28 = vmul.f32 %v14878_v12, %v14866_v34  ;;  %v7346_v39 = vrot.slane %v7204_v42, 2  ;;  %v7496_v2 = vmul.f32 %v14879_v30, %v11703_v3  ;;  %v14885_v3 = vld [vmem:[#allocation72_spill] sm:$0xff] }
 0x39d   : > { %v7059_v48 = vsel %vm5259_vm8, %v7057_v15, %v7058_v35  ;;  %v7154_v41 = vadd.f32 %v7056_v0, %v6862_v37  ;;  %v7347_v27 = vrot.slane %v7205_v40, 2  ;;  %v7349_v22 = vrot.slane %v7206_v32, 2 }
 0x39e   : > { %v7155_v38 = vadd.f32 %v7059_v48, %v6863_v45  ;;  %v7350_v53 = vrot.slane %v7207_v28, 2  ;;  %v7497_v17 = vmul.f32 %v14879_v30, %v14866_v34  ;;  %v7498_v19 = vmul.f32 %v14879_v30, %v11705_v63  ;;  %v14881_v28 = vld [vmem:[#allocation17_spill] sm:$0xff]  ;;  %v14882_v48 = vld [vmem:[#allocation4_spill] sm:$0xff] }
 0x39f   : > { %v7348_v16 = vsel %vm5259_vm8, %v7346_v39, %v7347_v27  ;;  %v7499_v36 = vmul.f32 %v14879_v30, %v11612_v11  ;;  %v7638_v37 = vrot.slane %v7496_v2, 2  ;;  %v11803_v40 = vunpack.c.l.bf16 %v1566_v4  ;;  %v14883_v27 = vld [vmem:[#allocation67_spill] sm:$0xff]  ;;  %v14884_v63 = vld [vmem:[#allocation5_spill] sm:$0xff] }
 0x3a0   : > { %v7351_v42 = vsel %vm5259_vm8, %v7349_v22, %v7350_v53  ;;  %v7446_v15 = vadd.f32 %v7348_v16, %v7154_v41  ;;  %v7639_v35 = vrot.slane %v7497_v17, 2  ;;  %v7641_v0 = vrot.slane %v7498_v19, 2  ;;  %v14887_v17 = vld [vmem:[#allocation64_spill] sm:$0xff]  ;;  %v14890_v11 = vld [vmem:[#allocation55_spill] sm:$0xff] }
 0x3a1   : > { %14880 = vst [vmem:[#allocation24_spill] sm:$0xff] %v11803_v40  ;;  %v7447_v45 = vadd.f32 %v7351_v42, %v7155_v38  ;;  %v7642_v32 = vrot.slane %v7499_v36, 2  ;;  %v1666_v33 = vmul.f32 %v14882_v48, %v14881_v28  ;;  %v1667_v43 = vmul.f32 %v14882_v48, %v14883_v27  ;;  %v14886_v38 = vld [vmem:[#allocation6_spill] sm:$0xff]  ;;  %v14888_v42 = vld [vmem:[#allocation127_spill] sm:$0xff] }
 0x3a2   : > { %v7640_v39 = vsel %vm5259_vm8, %v7638_v37, %v7639_v35  ;;  %v1734_v2 = vmul.f32 %v14884_v63, %v14883_v27  ;;  %v1735_v41 = vmul.f32 %v14884_v63, %v14885_v3  ;;  %v1802_v53 = vmul.f32 %v14886_v38, %v14885_v3  ;;  %v14889_v35 = vld [vmem:[#allocation18_spill] sm:$0xff] }
 0x3a3   : > { %v7643_v4 = vsel %vm5259_vm8, %v7641_v0, %v7642_v32  ;;  %v7738_v22 = vadd.f32 %v7640_v39, %v7446_v15  ;;  %v1803_v16 = vmul.f32 %v14886_v38, %v14887_v17  ;;  %v1870_v6 = vmul.f32 %v14889_v35, %v14888_v42  ;;  %v14892_v0 = vld [vmem:[#allocation19_spill] sm:$0xff]  ;;  %v14893_v32 = vld [vmem:[#allocation94_spill] sm:$0xff] }
 0x3a4   : > { %v7739_v19 = vadd.f32 %v7643_v4, %v7447_v45  ;;  %v1766_v36 = vadd.f32 %v1734_v2, %v1666_v33  ;;  %v1767_v37 = vadd.f32 %v1735_v41, %v1667_v43  ;;  %v1871_v59 = vmul.f32 %v14889_v35, %v14891_v52  ;;  %v14894_v43 = vld [vmem:[#allocation20_spill] sm:$0xff]  ;;  %v14895_v4 = vld [vmem:[#allocation86_spill] sm:$0xff] }
 0x3a5   : > { %v7777_v34 = vadd.f32 %v14890_v11, %v7738_v22  ;;  %v1938_v15 = vmul.f32 %v14892_v0, %v14891_v52  ;;  %v1939_v39 = vmul.f32 %v14892_v0, %v14893_v32  ;;  %v2006_v33 = vmul.f32 %v14894_v43, %v14893_v32 }
 0x3a6   : > { %v7778_v56 = vadd.f32 %v14890_v11, %v7739_v19  ;;  %v1834_v47 = vadd.f32 %v1802_v53, %v1766_v36  ;;  %v1835_v45 = vadd.f32 %v1803_v16, %v1767_v37  ;;  %v2007_v22 = vmul.f32 %v14894_v43, %v14895_v4  ;;  %v2298_v11 = vld [vmem:[#allocation2 + $0x144] sm:$0x1] }
 0x3a7   : > { %v11831_v2 = vmul.f32 0.5, %v7777_v34  ;;  %v7841_v41 = vmul.f32 0.70710677, %v7777_v34  ;;  %v2074_v57 = vmul.f32 %v14896_v46, %v11803_v40  ;;  %v14897_v53 = vld [vmem:[#allocation111_spill] sm:$0xff] }
 0x3a8   : > { %v11837_v25 = vmul.f32 0.5, %v7778_v56  ;;  %v7842_v23 = vmul.f32 0.70710677, %v7778_v56  ;;  %v1902_v10 = vadd.f32 %v1870_v6, %v1834_v47  ;;  %v1903_v8 = vadd.f32 %v1871_v59, %v1835_v45  ;;  %v14898_v19 = vld [vmem:[#allocation23_spill] sm:$0xff]  ;;  %v14901_v56 = vld [vmem:[#allocation109_spill] sm:$0xff]  ;;  %v14903_v6 = vld [vmem:[#allocation12_spill] sm:$0xff] }
 0x3a9   : > { %8847 = verf.f32 %v7841_v41  ;;  %v2075_v16 = vmul.f32 %v14896_v46, %v14897_v53  ;;  %v2142_v36 = vmul.f32 %v14898_v19, %v14897_v53  ;;  %v14899_v34 = vld [vmem:[#allocation115_spill] sm:$0xff]  ;;  %v2211_v47 = vmul.f32 %v14900_v14, %v14901_v56  ;;  %v14904_v41 = vld [vmem:[#allocation37_spill] sm:$0xff] }
 0x3aa   : > { %v2143_v37 = vmul.f32 %v14898_v19, %v14899_v34  ;;  %8849 = verf.f32 %v7842_v23  ;;  %v1970_v5 = vadd.f32 %v1938_v15, %v1902_v10  ;;  %v1971_v54 = vadd.f32 %v1939_v39, %v1903_v8  ;;  %v14905_v8 = vld [vmem:[#allocation68_spill] sm:$0xff] }
 0x3ab   : > { %v2210_v58 = vmul.f32 %v14900_v14, %v14899_v34  ;;  %v11849_v59 = vunpack.c.l.bf16 %v2298_v11  ;;  %v2414_v45 = vmul.f32 %v14903_v6, %v14881_v28  ;;  %v2415_v1 = vmul.f32 %v14903_v6, %v14904_v41 }
 0x3ac   : > { %v2038_v13 = vadd.f32 %v2006_v33, %v1970_v5  ;;  %v2039_v18 = vadd.f32 %v2007_v22, %v1971_v54  ;;  %v2416_v10 = vmul.f32 %v14903_v6, %v14883_v27  ;;  %v2417_v23 = vmul.f32 %v14903_v6, %v14905_v8  ;;  %v14906_v33 = vld [vmem:[#allocation73_spill] sm:$0xff] }
 0x3ad   : > { %14902 = vst [vmem:[#allocation38_spill] sm:$0xff] %v11849_v59  ;;  %v2559_v15 = vrot.slane %v2414_v45, 1  ;;  %v2560_v39 = vrot.slane %v2415_v1, 1  ;;  %v2707_v11 = vmul.f32 %v14858_v62, %v14883_v27  ;;  %v2708_v49 = vmul.f32 %v14858_v62, %v14905_v8 }
 0x3ae   : > { %v2106_v28 = vadd.f32 %v2074_v57, %v2038_v13  ;;  %v2107_v14 = vadd.f32 %v2075_v16, %v2039_v18  ;;  %v2562_v19 = vrot.slane %v2416_v10, 1  ;;  %v2563_v46 = vrot.slane %v2417_v23, 1 }
 0x3af   : > { %v2561_v54 = vsel %vm2510_vm1, %v2559_v15, %v2560_v39  ;;  %v2709_v5 = vmul.f32 %v14858_v62, %v14885_v3  ;;  %v2710_v22 = vmul.f32 %v14858_v62, %v14906_v33  ;;  %v2851_v45 = vrot.slane %v2707_v11, 1 }
 0x3b0   : > { %v2174_v1 = vadd.f32 %v2142_v36, %v2106_v28  ;;  %v2175_v6 = vadd.f32 %v2143_v37, %v2107_v14  ;;  %v2564_v27 = vsel %vm2510_vm1, %v2562_v19, %v2563_v46  ;;  %v2852_v43 = vrot.slane %v2708_v49, 1  ;;  %v14907_v46 = vld [vmem:[#allocation65_spill] sm:$0xff] }
 0x3b1   : > { %v2854_v0 = vrot.slane %v2709_v5, 1  ;;  %v2855_v35 = vrot.slane %v2710_v22, 1  ;;  %v2999_v18 = vmul.f32 %v14860_v21, %v14885_v3  ;;  %v3000_v13 = vmul.f32 %v14860_v21, %v14906_v33 }
 0x3b2   : > { %v2242_v57 = vadd.f32 %v2210_v58, %v2174_v1  ;;  %v2243_v16 = vadd.f32 %v2211_v47, %v2175_v6  ;;  %v2853_v10 = vsel %vm2510_vm1, %v2851_v45, %v2852_v43  ;;  %v3001_v23 = vmul.f32 %v14860_v21, %v14887_v17  ;;  %v14908_v45 = vld [vmem:[#allocation50_spill] sm:$0xff] }
 0x3b3   : > { %v8848_v36 = vpop.eup %8847  ;;  %v2856_v14 = vsel %vm2510_vm1, %v2854_v0, %v2855_v35  ;;  %v3002_v49 = vmul.f32 %v14860_v21, %v14907_v46  ;;  %v3143_v19 = vrot.slane %v2999_v18, 1  ;;  %v3144_v37 = vrot.slane %v3000_v13, 1  ;;  %v14909_v13 = vld [vmem:[#allocation90_spill] sm:$0xff] }
 0x3b4   : > { %v8850_v15 = vpop.eup %8849  ;;  %v7905_v39 = vadd.f32 1.0, %v8848_v36  ;;  %v2655_v11 = vadd.f32 %v2561_v54, %v2242_v57  ;;  %v2656_v28 = vadd.f32 %v2564_v27, %v2243_v16  ;;  %v3146_v5 = vrot.slane %v3001_v23, 1 }
 0x3b5   : > { %v7906_v58 = vadd.f32 1.0, %v8850_v15  ;;  %v3145_v47 = vsel %vm2510_vm1, %v3143_v19, %v3144_v37  ;;  %v3147_v43 = vrot.slane %v3002_v49, 1  ;;  %v3291_v6 = vmul.f32 %v14790_v60, %v14888_v42  ;;  %v14919_v42 = vld [vmem:[#allocation25_spill] sm:$0xff] }
 0x3b6   : > { %v7937_v22 = vmul.f32 %v7905_v39, %v11831_v2  ;;  %v2947_v35 = vadd.f32 %v2853_v10, %v2655_v11  ;;  %v2948_v0 = vadd.f32 %v2856_v14, %v2656_v28  ;;  %v3292_v1 = vmul.f32 %v14790_v60, %v14908_v45 }
 0x3b7   : > { %v7938_v18 = vmul.f32 %v7906_v58, %v11837_v25  ;;  %v3148_v54 = vsel %vm2510_vm1, %v3146_v5, %v3147_v43  ;;  %v3293_v27 = vmul.f32 %v14790_v60, %v14891_v52  ;;  %v3294_v57 = vmul.f32 %v14790_v60, %v14909_v13  ;;  %v14911_v5 = vld [vmem:[#allocation96_spill] sm:$0xff] }
 0x3b8   : > { %v3239_v16 = vadd.f32 %v3145_v47, %v2947_v35  ;;  %v3240_v23 = vadd.f32 %v3148_v54, %v2948_v0  ;;  %v11893_v2 = vmul.f32 %v14790_v60, %v11849_v59  ;;  %v3435_v10 = vrot.slane %v3291_v6, 1 }
 0x3b9   : > { %v7962_v36 = vpack.c.bf16 %v7938_v18, %v7937_v22  ;;  %v3436_v14 = vrot.slane %v3292_v1, 1  ;;  %v3438_v49 = vrot.slane %v3293_v27, 1  ;;  %v3439_v19 = vrot.slane %v3294_v57, 1  ;;  %v14912_v57 = vld [vmem:[#allocation88_spill] sm:$0xff] }
 0x3ba   : > { %14910 = vst [vmem:[#allocation29_spill] sm:$0xff] %v11893_v2  ;;  %v3583_v37 = vmul.f32 %v9304_v26, %v14891_v52  ;;  %v3584_v15 = vmul.f32 %v9304_v26, %v14909_v13  ;;  %v3585_v39 = vmul.f32 %v9304_v26, %v14893_v32  ;;  %v3586_v58 = vmul.f32 %v9304_v26, %v14911_v5  ;;  %v14915_v2 = vld [vmem:[#allocation110_spill] sm:$0xff] }
 0x3bb   : > { %8735 = vmatmul.mubr.bf16.gmra.mrb[12].mxu1 %v7962_v36  ;;  %v3437_v11 = vsel %vm2510_vm1, %v3435_v10, %v3436_v14  ;;  %v3440_v28 = vsel %vm2510_vm1, %v3438_v49, %v3439_v19  ;;  %v3875_v47 = vmul.f32 %v9308_v29, %v14893_v32  ;;  %v3876_v18 = vmul.f32 %v9308_v29, %v14911_v5 }
 0x3bc   : > { %v3531_v43 = vadd.f32 %v3437_v11, %v3239_v16  ;;  %v3532_v6 = vadd.f32 %v3440_v28, %v3240_v23  ;;  %v3727_v22 = vrot.slane %v3583_v37, 1  ;;  %v3728_v35 = vrot.slane %v3584_v15, 1 }
 0x3bd   : > { %v3730_v0 = vrot.slane %v3585_v39, 1  ;;  %v3731_v1 = vrot.slane %v3586_v58, 1  ;;  %v3877_v54 = vmul.f32 %v9308_v29, %v14895_v4  ;;  %v3878_v10 = vmul.f32 %v9308_v29, %v14912_v57  ;;  %v14913_v58 = vld [vmem:[#allocation112_spill] sm:$0xff] }
 0x3be   : > { %v3729_v27 = vsel %vm2510_vm1, %v3727_v22, %v3728_v35  ;;  %v4019_v36 = vrot.slane %v3875_v47, 1  ;;  %v4167_v16 = vmul.f32 %v9344_v50, %v11803_v40  ;;  %v4020_v49 = vrot.slane %v3876_v18, 1 }
 0x3bf   : > { %v3732_v23 = vsel %vm2510_vm1, %v3730_v0, %v3731_v1  ;;  %v3823_v14 = vadd.f32 %v3729_v27, %v3531_v43  ;;  %v4022_v19 = vrot.slane %v3877_v54, 1  ;;  %v4023_v15 = vrot.slane %v3878_v10, 1 }
 0x3c0   : > { %v3824_v37 = vadd.f32 %v3732_v23, %v3532_v6  ;;  %v4168_v39 = vmul.f32 %v9344_v50, %v11849_v59  ;;  %v4169_v11 = vmul.f32 %v9344_v50, %v14897_v53  ;;  %v4021_v28 = vsel %vm2510_vm1, %v4019_v36, %v4020_v49  ;;  %v14914_v23 = vld [vmem:[#allocation116_spill] sm:$0xff] }
 0x3c1   : > { %v4170_v47 = vmul.f32 %v9344_v50, %v14913_v58  ;;  %v4311_v22 = vrot.slane %v4167_v16, 1  ;;  %v4459_v35 = vmul.f32 %v14591_v61, %v14897_v53  ;;  %v4024_v43 = vsel %vm2510_vm1, %v4022_v19, %v4023_v15 }
 0x3c2   : > { %v4115_v0 = vadd.f32 %v4021_v28, %v3823_v14  ;;  %v4312_v6 = vrot.slane %v4168_v39, 1  ;;  %v4314_v1 = vrot.slane %v4169_v11, 1  ;;  %v4116_v18 = vadd.f32 %v4024_v43, %v3824_v37  ;;  %v11937_v14 = vld [vmem:[#allocation2 + $0x140] sm:$0xe] }
 0x3c3   : > { %v4315_v54 = vrot.slane %v4170_v47, 1  ;;  %v4460_v27 = vmul.f32 %v14591_v61, %v14913_v58  ;;  %v4461_v10 = vmul.f32 %v14591_v61, %v14899_v34  ;;  %v4462_v16 = vmul.f32 %v14591_v61, %v14914_v23 }
 0x3c4   : > { %v4313_v36 = vsel %vm2510_vm1, %v4311_v22, %v4312_v6  ;;  %v4603_v49 = vrot.slane %v4459_v35, 1  ;;  %v4751_v19 = vmul.f32 %v14597_v51, %v14899_v34  ;;  %v4752_v43 = vmul.f32 %v14597_v51, %v14914_v23  ;;  %v5048_v6 = vld [vmem:[#allocation2 + $0x148] sm:$0xe]  ;;  %v5049_v35 = vld [vmem:[#allocation2 + $0x150] sm:$0xe] }
 0x3c5   : > { %v4316_v37 = vsel %vm2510_vm1, %v4314_v1, %v4315_v54  ;;  %v4407_v15 = vadd.f32 %v4313_v36, %v4115_v0  ;;  %v4604_v39 = vrot.slane %v4460_v27, 1  ;;  %v4606_v11 = vrot.slane %v4461_v10, 1  ;;  %v5050_v1 = vld [vmem:[#allocation2 + $0x158] sm:$0xe] }
 0x3c6   : > { %v4408_v28 = vadd.f32 %v4316_v37, %v4116_v18  ;;  %v4607_v47 = vrot.slane %v4462_v16, 1  ;;  %v4753_v22 = vmul.f32 %v14597_v51, %v14901_v56  ;;  %v4754_v53 = vmul.f32 %v14597_v51, %v14915_v2 }
 0x3c7   : > { %v4605_v25 = vsel %vm2510_vm1, %v4603_v49, %v4604_v39  ;;  %v4895_v40 = vrot.slane %v4751_v19, 1  ;;  %v4896_v27 = vrot.slane %v4752_v43, 1  ;;  %v11949_v37 = vunpack.c.l.bf16 %v5048_v6 }
 0x3c8   : > { %v4608_v18 = vsel %vm2510_vm1, %v4606_v11, %v4607_v47  ;;  %v4699_v54 = vadd.f32 %v4605_v25, %v4407_v15  ;;  %v4898_v10 = vrot.slane %v4753_v22, 1  ;;  %v4899_v16 = vrot.slane %v4754_v53, 1 }
 0x3c9   : > { %v4700_v36 = vadd.f32 %v4608_v18, %v4408_v28  ;;  %14916 = vst [vmem:[#allocation31_spill] sm:$0xff] %v11949_v37  ;;  %v11951_v52 = vunpack.c.l.bf16 %v5049_v35  ;;  %v4897_v49 = vsel %vm2510_vm1, %v4895_v40, %v4896_v27  ;;  %v11954_v39 = vunpack.c.l.bf16 %v5050_v1  ;;  %v14921_v18 = vld [vmem:[#allocation26_spill] sm:$0xff] }
 0x3ca   : > { %v5164_v19 = vmul.f32 %v14607_v7, %v14904_v41  ;;  %v5165_v0 = vmul.f32 %v14607_v7, %v14919_v42  ;;  %v4900_v25 = vsel %vm2510_vm1, %v4898_v10, %v4899_v16  ;;  %v4991_v15 = vadd.f32 %v4897_v49, %v4699_v54  ;;  %v14920_v41 = vld [vmem:[#allocation74_spill] sm:$0xff] }
 0x3cb   : > { %14917 = vst [vmem:[#allocation52_spill] sm:$0xff] %v11951_v52  ;;  %14918 = vst [vmem:[#allocation58_spill] sm:$0xff] %v11954_v39  ;;  %v5166_v53 = vmul.f32 %v14607_v7, %v14905_v8  ;;  %v5456_v11 = vmul.f32 %v14651_v31, %v14919_v42  ;;  %v4992_v28 = vadd.f32 %v4900_v25, %v4700_v36  ;;  %v14922_v54 = vrot.slane %v14921_v18, 2 }
 0x3cc   : > { %v5309_v47 = vrot.slane %v5164_v19, 2  ;;  %v5311_v40 = vrot.slane %v5165_v0, 2  ;;  %v5457_v43 = vmul.f32 %v14651_v31, %v14905_v8  ;;  %v5458_v6 = vmul.f32 %v14651_v31, %v14920_v41 }
 0x3cd   : > { %v5312_v22 = vrot.slane %v5166_v53, 2  ;;  %v5459_v35 = vmul.f32 %v14651_v31, %v14906_v33  ;;  %v5600_v1 = vrot.slane %v5456_v11, 2  ;;  %v5748_v42 = vmul.f32 %v14652_v24, %v14920_v41  ;;  %v14923_v53 = vld [vmem:[#allocation66_spill] sm:$0xff] }
 0x3ce   : > { %v5310_v27 = vsel %vm5259_vm8, %v14922_v54, %v5309_v47  ;;  %v5601_v10 = vrot.slane %v5457_v43, 2  ;;  %v5749_v0 = vmul.f32 %v14652_v24, %v14906_v33  ;;  %v5603_v16 = vrot.slane %v5458_v6, 2 }
 0x3cf   : > { %v5313_v8 = vsel %vm5259_vm8, %v5311_v40, %v5312_v22  ;;  %v5404_v36 = vadd.f32 %v5310_v27, %v4991_v15  ;;  %v5604_v49 = vrot.slane %v5459_v35, 2  ;;  %v5750_v11 = vmul.f32 %v14652_v24, %v14923_v53  ;;  %v14924_v15 = vld [vmem:[#allocation54_spill] sm:$0xff]  ;;  %v14925_v35 = vld [vmem:[#allocation48_spill] sm:$0xff] }
 0x3d0   : > { %v5405_v19 = vadd.f32 %v5313_v8, %v4992_v28  ;;  %v5602_v25 = vsel %vm5259_vm8, %v5600_v1, %v5601_v10  ;;  %v5751_v47 = vmul.f32 %v14652_v24, %v14907_v46  ;;  %v5892_v54 = vrot.slane %v5748_v42, 2 }
 0x3d1   : > { %v5605_v43 = vsel %vm5259_vm8, %v5603_v16, %v5604_v49  ;;  %v5696_v18 = vadd.f32 %v5602_v25, %v5404_v36  ;;  %v5893_v31 = vrot.slane %v5749_v0, 2  ;;  %v5895_v41 = vrot.slane %v5750_v11, 2 }
 0x3d2   : > { %v5697_v7 = vadd.f32 %v5605_v43, %v5405_v19  ;;  %v5896_v40 = vrot.slane %v5751_v47, 2  ;;  %v6040_v22 = vmul.f32 %v14618_v55, %v14924_v15  ;;  %v6041_v6 = vmul.f32 %v14618_v55, %v14908_v45 }
 0x3d3   : > { %v5894_v28 = vsel %vm5259_vm8, %v5892_v54, %v5893_v31  ;;  %v6042_v1 = vmul.f32 %v14618_v55, %v14925_v35  ;;  %v6043_v27 = vmul.f32 %v14618_v55, %v14909_v13  ;;  %v14926_v0 = vunpack.c.l.bf16 %v11937_v14 }
 0x3d4   : > { %v5897_v10 = vsel %vm5259_vm8, %v5895_v41, %v5896_v40  ;;  %v5988_v42 = vadd.f32 %v5894_v28, %v5696_v18  ;;  %v6184_v36 = vrot.slane %v6040_v22, 2  ;;  %v6185_v31 = vrot.slane %v6041_v6, 2  ;;  %v14928_v41 = vld [vmem:[#allocation95_spill] sm:$0xff] }
 0x3d5   : > { %v11998_v8 = vmul.f32 %v14618_v55, %v14926_v0  ;;  %v5989_v16 = vadd.f32 %v5897_v10, %v5697_v7  ;;  %v6187_v49 = vrot.slane %v6042_v1, 2  ;;  %v6188_v19 = vrot.slane %v6043_v27, 2  ;;  %v14929_v0 = vld [vmem:[#allocation87_spill] sm:$0xff] }
 0x3d6   : > { %v6332_v11 = vmul.f32 %v14716_v44, %v14925_v35  ;;  %v6333_v47 = vmul.f32 %v14716_v44, %v14909_v13  ;;  %v6334_v43 = vmul.f32 %v14716_v44, %v14928_v41  ;;  %v6186_v18 = vsel %vm5259_vm8, %v6184_v36, %v6185_v31 }
 0x3d7   : > { %14927 = vst [vmem:[#allocation53_spill] sm:$0xff] %v11998_v8  ;;  %v6189_v54 = vsel %vm5259_vm8, %v6187_v49, %v6188_v19  ;;  %v6335_v7 = vmul.f32 %v14716_v44, %v14911_v5  ;;  %v6624_v40 = vmul.f32 %v14831_v9, %v14928_v41  ;;  %v6280_v15 = vadd.f32 %v6186_v18, %v5988_v42 }
 0x3d8   : > { %v6281_v22 = vadd.f32 %v6189_v54, %v5989_v16  ;;  %v6476_v28 = vrot.slane %v6332_v11, 2  ;;  %v6477_v6 = vrot.slane %v6333_v47, 2  ;;  %v6479_v1 = vrot.slane %v6334_v43, 2 }
 0x3d9   : > { %v6480_v27 = vrot.slane %v6335_v7, 2  ;;  %v6625_v10 = vmul.f32 %v14831_v9, %v14911_v5  ;;  %v6626_v36 = vmul.f32 %v14831_v9, %v14929_v0  ;;  %v6627_v49 = vmul.f32 %v14831_v9, %v14912_v57 }
 0x3da   : > { %v6478_v31 = vsel %vm5259_vm8, %v6476_v28, %v6477_v6  ;;  %v6768_v19 = vrot.slane %v6624_v40, 2  ;;  %v14930_v25 = vunpack.c.l.bf16 %v11937_v14  ;;  %v6917_v7 = vmul.f32 %v14876_v20, %v11849_v59  ;;  %v14939_v59 = vld [vmem:[#allocation22_spill] sm:$0xff] }
 0x3db   : > { %v6481_v16 = vsel %vm5259_vm8, %v6479_v1, %v6480_v27  ;;  %v6572_v11 = vadd.f32 %v6478_v31, %v6280_v15  ;;  %v6769_v47 = vrot.slane %v6625_v10, 2  ;;  %v6771_v43 = vrot.slane %v6626_v36, 2 }
 0x3dc   : > { %v6916_v42 = vmul.f32 %v14876_v20, %v14930_v25  ;;  %v6573_v18 = vadd.f32 %v6481_v16, %v6281_v22  ;;  %v6772_v54 = vrot.slane %v6627_v49, 2  ;;  %v6918_v28 = vmul.f32 %v14876_v20, %v11949_v37 }
 0x3dd   : > { %v6770_v6 = vsel %vm5259_vm8, %v6768_v19, %v6769_v47  ;;  %v6919_v14 = vmul.f32 %v14876_v20, %v14913_v58  ;;  %v7208_v25 = vmul.f32 %v14878_v12, %v11949_v37  ;;  %v7061_v22 = vrot.slane %v6917_v7, 2  ;;  %v12075_v37 = vld [vmem:[%s13905_s4] ss:$0 sm:$0xff] }
 0x3de   : > { %v7060_v40 = vrot.slane %v6916_v42, 2  ;;  %v6773_v15 = vsel %vm5259_vm8, %v6771_v43, %v6772_v54  ;;  %v6864_v1 = vadd.f32 %v6770_v6, %v6572_v11  ;;  %v7063_v27 = vrot.slane %v6918_v28, 2  ;;  %14935 = vst [vmem:[#allocation59_spill] sm:$0xff] %v12075_v37 }
 0x3df   : > { %v6865_v10 = vadd.f32 %v6773_v15, %v6573_v18  ;;  %v7064_v36 = vrot.slane %v6919_v14, 2  ;;  %v7209_v31 = vmul.f32 %v14878_v12, %v14913_v58  ;;  %v7210_v49 = vmul.f32 %v14878_v12, %v11951_v52 }
 0x3e0   : > { %v7062_v19 = vsel %vm5259_vm8, %v7060_v40, %v7061_v22  ;;  %v7211_v42 = vmul.f32 %v14878_v12, %v14914_v23  ;;  %v7352_v16 = vrot.slane %v7208_v25, 2  ;;  %v7500_v47 = vmul.f32 %v14879_v30, %v11951_v52 }
 0x3e1   : > { %v7065_v11 = vsel %vm5259_vm8, %v7063_v27, %v7064_v36  ;;  %v7156_v43 = vadd.f32 %v7062_v19, %v6864_v1  ;;  %v7353_v18 = vrot.slane %v7209_v31, 2  ;;  %v7355_v54 = vrot.slane %v7210_v49, 2 }
 0x3e2   : > { %v7157_v7 = vadd.f32 %v7065_v11, %v6865_v10  ;;  %v7356_v28 = vrot.slane %v7211_v42, 2  ;;  %v7501_v6 = vmul.f32 %v14879_v30, %v14914_v23  ;;  %v7502_v14 = vmul.f32 %v14879_v30, %v11954_v39  ;;  %v14931_v11 = vld [vmem:[#allocation69_spill] sm:$0xff] }
 0x3e3   : > { %v7354_v40 = vsel %vm5259_vm8, %v7352_v16, %v7353_v18  ;;  %v7503_v25 = vmul.f32 %v14879_v30, %v14915_v2  ;;  %v7644_v15 = vrot.slane %v7500_v47, 2  ;;  %v1668_v22 = vmul.f32 %v14882_v48, %v14885_v3 }
 0x3e4   : > { %v7357_v1 = vsel %vm5259_vm8, %v7355_v54, %v7356_v28  ;;  %v7448_v27 = vadd.f32 %v7354_v40, %v7156_v43  ;;  %v7645_v10 = vrot.slane %v7501_v6, 2  ;;  %v7647_v36 = vrot.slane %v7502_v14, 2  ;;  %v14932_v54 = vld [vmem:[#allocation78_spill] sm:$0xff] }
 0x3e5   : > { %v7449_v31 = vadd.f32 %v7357_v1, %v7157_v7  ;;  %v7648_v49 = vrot.slane %v7503_v25, 2  ;;  %v1669_v19 = vmul.f32 %v14882_v48, %v14887_v17  ;;  %v1736_v42 = vmul.f32 %v14884_v63, %v14887_v17  ;;  %v14933_v14 = vld [vmem:[#allocation18_spill] sm:$0xff] }
 0x3e6   : > { %v7646_v16 = vsel %vm5259_vm8, %v7644_v15, %v7645_v10  ;;  %v1737_v47 = vmul.f32 %v14884_v63, %v14931_v11  ;;  %v1804_v18 = vmul.f32 %v14886_v38, %v14931_v11  ;;  %v1805_v43 = vmul.f32 %v14886_v38, %v14932_v54  ;;  %v14934_v10 = vld [vmem:[#allocation19_spill] sm:$0xff]  ;;  %v14945_v48 = vld [vmem:[#allocation70_spill] sm:$0xff] }
 0x3e7   : > { %v7649_v7 = vsel %vm5259_vm8, %v7647_v36, %v7648_v49  ;;  %v7740_v28 = vadd.f32 %v7646_v16, %v7448_v27  ;;  %v1768_v6 = vadd.f32 %v1736_v42, %v1668_v22  ;;  %v1872_v40 = vmul.f32 %v14933_v14, %v14893_v32  ;;  %v14936_v22 = vld [vmem:[#allocation92_spill] sm:$0xff] }
 0x3e8   : > { %v7741_v25 = vadd.f32 %v7649_v7, %v7449_v31  ;;  %v1769_v1 = vadd.f32 %v1737_v47, %v1669_v19  ;;  %v1873_v15 = vmul.f32 %v14933_v14, %v14895_v4  ;;  %v1940_v8 = vmul.f32 %v14934_v10, %v14895_v4  ;;  %v14937_v31 = vld [vmem:[#allocation20_spill] sm:$0xff]  ;;  %v14940_v14 = vld [vmem:[#allocation23_spill] sm:$0xff] }
 0x3e9   : > { %v7779_v36 = vadd.f32 %v12075_v37, %v7740_v28  ;;  %v1836_v27 = vadd.f32 %v1804_v18, %v1768_v6  ;;  %v1941_v49 = vmul.f32 %v14934_v10, %v14936_v22  ;;  %v2008_v19 = vmul.f32 %v14937_v31, %v14936_v22  ;;  %v14938_v47 = vld [vmem:[#allocation100_spill] sm:$0xff] }
 0x3ea   : > { %v7780_v42 = vadd.f32 %v12075_v37, %v7741_v25  ;;  %v1837_v16 = vadd.f32 %v1805_v43, %v1769_v1  ;;  %v2009_v7 = vmul.f32 %v14937_v31, %v14938_v47  ;;  %v2076_v35 = vmul.f32 %v14939_v59, %v14899_v34  ;;  %v14941_v25 = vld [vmem:[#allocation113_spill] sm:$0xff]  ;;  %v14942_v31 = vld [vmem:[#allocation27_spill] sm:$0xff] }
 0x3eb   : > { %v7811_v58 = vmul.f32 0.5, %v7779_v36  ;;  %v7843_v13 = vmul.f32 0.70710677, %v7779_v36  ;;  %v1904_v45 = vadd.f32 %v1872_v40, %v1836_v27  ;;  %v2077_v18 = vmul.f32 %v14939_v59, %v14901_v56  ;;  %v14943_v40 = vld [vmem:[#allocation119_spill] sm:$0xff]  ;;  %v14944_v59 = vld [vmem:[#allocation12_spill] sm:$0xff] }
 0x3ec   : > { %v7812_v28 = vmul.f32 0.5, %v7780_v42  ;;  %v7844_v6 = vmul.f32 0.70710677, %v7780_v42  ;;  %v1905_v10 = vadd.f32 %v1873_v15, %v1837_v16  ;;  %v2144_v38 = vmul.f32 %v14940_v14, %v14901_v56 }
 0x3ed   : > { %8851 = verf.f32 %v7843_v13  ;;  %v1972_v43 = vadd.f32 %v1940_v8, %v1904_v45  ;;  %v2145_v1 = vmul.f32 %v14940_v14, %v14941_v25  ;;  %v2212_v37 = vmul.f32 %v14942_v31, %v14941_v25 }
 0x3ee   : > { %8853 = verf.f32 %v7844_v6  ;;  %v1973_v36 = vadd.f32 %v1941_v49, %v1905_v10  ;;  %v2213_v27 = vmul.f32 %v14942_v31, %v14943_v40  ;;  %v2418_v42 = vmul.f32 %v14944_v59, %v14885_v3 }
 0x3ef   : > { %v2040_v15 = vadd.f32 %v2008_v19, %v1972_v43  ;;  %v2419_v16 = vmul.f32 %v14944_v59, %v14906_v33  ;;  %v2420_v45 = vmul.f32 %v14944_v59, %v14887_v17  ;;  %v2421_v13 = vmul.f32 %v14944_v59, %v14907_v46 }
 0x3f0   : > { %v2041_v8 = vadd.f32 %v2009_v7, %v1973_v36  ;;  %v2565_v14 = vrot.slane %v2418_v42, 1  ;;  %v2711_v10 = vmul.f32 %v14858_v62, %v14887_v17  ;;  %v2712_v49 = vmul.f32 %v14858_v62, %v14907_v46 }
 0x3f1   : > { %v2108_v6 = vadd.f32 %v2076_v35, %v2040_v15  ;;  %v2566_v3 = vrot.slane %v2419_v16, 1  ;;  %v2568_v19 = vrot.slane %v2420_v45, 1  ;;  %v2569_v43 = vrot.slane %v2421_v13, 1 }
 0x3f2   : > { %v2109_v31 = vadd.f32 %v2077_v18, %v2041_v8  ;;  %v2713_v63 = vmul.f32 %v14858_v62, %v14931_v11  ;;  %v2714_v30 = vmul.f32 %v14858_v62, %v14945_v48  ;;  %v2857_v59 = vrot.slane %v2711_v10, 1  ;;  %v14946_v8 = vld [vmem:[#allocation80_spill] sm:$0xff] }
 0x3f3   : > { %v2176_v7 = vadd.f32 %v2144_v38, %v2108_v6  ;;  %v2567_v36 = vsel %vm2510_vm1, %v2565_v14, %v2566_v3  ;;  %v2570_v17 = vsel %vm2510_vm1, %v2568_v19, %v2569_v43  ;;  %v2858_v42 = vrot.slane %v2712_v49, 1 }
 0x3f4   : > { %v2177_v12 = vadd.f32 %v2145_v1, %v2109_v31  ;;  %v2860_v39 = vrot.slane %v2713_v63, 1  ;;  %v2861_v35 = vrot.slane %v2714_v30, 1  ;;  %v3003_v15 = vmul.f32 %v14860_v21, %v14931_v11 }
 0x3f5   : > { %v2244_v18 = vadd.f32 %v2212_v37, %v2176_v7  ;;  %v2859_v16 = vsel %vm2510_vm1, %v2857_v59, %v2858_v42  ;;  %v3004_v45 = vmul.f32 %v14860_v21, %v14945_v48  ;;  %v3005_v38 = vmul.f32 %v14860_v21, %v14932_v54 }
 0x3f6   : > { %v2245_v13 = vadd.f32 %v2213_v27, %v2177_v12  ;;  %v2862_v14 = vsel %vm2510_vm1, %v2860_v39, %v2861_v35  ;;  %v3006_v31 = vmul.f32 %v14860_v21, %v14946_v8  ;;  %v3149_v63 = vrot.slane %v3003_v15, 1 }
 0x3f7   : > { %v8852_v30 = vpop.eup %8851  ;;  %v2657_v1 = vadd.f32 %v2567_v36, %v2244_v18  ;;  %v3150_v10 = vrot.slane %v3004_v45, 1  ;;  %v3152_v49 = vrot.slane %v3005_v38, 1  ;;  %v3295_v59 = vmul.f32 %v14790_v60, %v14893_v32  ;;  %v14971_v32 = vld [vmem:[#allocation105_spill] sm:$0xff] }
 0x3f8   : > { %v8854_v37 = vpop.eup %8853  ;;  %v7907_v6 = vadd.f32 1.0, %v8852_v30  ;;  %v2658_v3 = vadd.f32 %v2570_v17, %v2245_v13  ;;  %v3153_v19 = vrot.slane %v3006_v31, 1  ;;  %v3296_v12 = vmul.f32 %v14790_v60, %v14911_v5 }
 0x3f9   : > { %v7908_v27 = vadd.f32 1.0, %v8854_v37  ;;  %v2949_v39 = vadd.f32 %v2859_v16, %v2657_v1  ;;  %v3151_v43 = vsel %vm2510_vm1, %v3149_v63, %v3150_v10  ;;  %v3297_v7 = vmul.f32 %v14790_v60, %v14895_v4 }
 0x3fa   : > { %v7939_v36 = vmul.f32 %v7907_v6, %v7811_v58  ;;  %v2950_v42 = vadd.f32 %v2862_v14, %v2658_v3  ;;  %v3154_v35 = vsel %vm2510_vm1, %v3152_v49, %v3153_v19  ;;  %v3298_v15 = vmul.f32 %v14790_v60, %v14912_v57  ;;  %v14947_v49 = vld [vmem:[#allocation91_spill] sm:$0xff] }
 0x3fb   : > { %v7940_v18 = vmul.f32 %v7908_v27, %v7812_v28  ;;  %v3241_v17 = vadd.f32 %v3151_v43, %v2949_v39  ;;  %v3441_v45 = vrot.slane %v3295_v59, 1  ;;  %v3442_v38 = vrot.slane %v3296_v12, 1 }
 0x3fc   : > { %v3242_v13 = vadd.f32 %v3154_v35, %v2950_v42  ;;  %v3444_v31 = vrot.slane %v3297_v7, 1  ;;  %v3445_v30 = vrot.slane %v3298_v15, 1  ;;  %v3587_v16 = vmul.f32 %v9304_v26, %v14895_v4  ;;  %v14948_v7 = vld [vmem:[#allocation102_spill] sm:$0xff] }
 0x3fd   : > { %v7963_v63 = vpack.c.bf16 %v7940_v18, %v7939_v36  ;;  %v3443_v1 = vsel %vm2510_vm1, %v3441_v45, %v3442_v38  ;;  %v3588_v58 = vmul.f32 %v9304_v26, %v14912_v57  ;;  %v3589_v14 = vmul.f32 %v9304_v26, %v14936_v22 }
 0x3fe   : > { %v3446_v28 = vsel %vm2510_vm1, %v3444_v31, %v3445_v30  ;;  %v3533_v10 = vadd.f32 %v3443_v1, %v3241_v17  ;;  %v3590_v59 = vmul.f32 %v9304_v26, %v14947_v49  ;;  %v3733_v37 = vrot.slane %v3587_v16, 1 }
 0x3ff   : > { %8738 = vmatprep.mubr.bf16.mxu1 %v7963_v63  ;;  %v3534_v6 = vadd.f32 %v3446_v28, %v3242_v13  ;;  %v3734_v3 = vrot.slane %v3588_v58, 1  ;;  %v3736_v19 = vrot.slane %v3589_v14, 1  ;;  %v3879_v12 = vmul.f32 %v9308_v29, %v14936_v22 }
 0x400   : > { %v3737_v27 = vrot.slane %v3590_v59, 1  ;;  %v3880_v39 = vmul.f32 %v9308_v29, %v14947_v49  ;;  %v3881_v43 = vmul.f32 %v9308_v29, %v14938_v47  ;;  %v3882_v36 = vmul.f32 %v9308_v29, %v14948_v7 }
 0x401   : > { %v3735_v42 = vsel %vm2510_vm1, %v3733_v37, %v3734_v3  ;;  %v4025_v35 = vrot.slane %v3879_v12, 1  ;;  %v4171_v15 = vmul.f32 %v9344_v50, %v14899_v34  ;;  %v4172_v18 = vmul.f32 %v9344_v50, %v14914_v23  ;;  %v14970_v34 = vld [vmem:[#allocation19_spill] sm:$0xff] }
 0x402   : > { %v3738_v17 = vsel %vm2510_vm1, %v3736_v19, %v3737_v27  ;;  %v3825_v45 = vadd.f32 %v3735_v42, %v3533_v10  ;;  %v4026_v38 = vrot.slane %v3880_v39, 1  ;;  %v4028_v13 = vrot.slane %v3881_v43, 1 }
 0x403   : > { %v3826_v31 = vadd.f32 %v3738_v17, %v3534_v6  ;;  %v4029_v30 = vrot.slane %v3882_v36, 1  ;;  %v4173_v16 = vmul.f32 %v9344_v50, %v14901_v56  ;;  %v4174_v63 = vmul.f32 %v9344_v50, %v14915_v2  ;;  %v14949_v36 = vld [vmem:[#allocation114_spill] sm:$0xff] }
 0x404   : > { %v4027_v1 = vsel %vm2510_vm1, %v4025_v35, %v4026_v38  ;;  %v4317_v58 = vrot.slane %v4171_v15, 1  ;;  %v4318_v14 = vrot.slane %v4172_v18, 1  ;;  %v4463_v28 = vmul.f32 %v14591_v61, %v14901_v56  ;;  %v5051_v15 = vld [vmem:[#allocation2 + $0x160] sm:$0xe]  ;;  %v5052_v18 = vld [vmem:[#allocation2 + $0x168] sm:$0xe] }
 0x405   : > { %v4030_v59 = vsel %vm2510_vm1, %v4028_v13, %v4029_v30  ;;  %v4117_v10 = vadd.f32 %v4027_v1, %v3825_v45  ;;  %v4320_v37 = vrot.slane %v4173_v16, 1  ;;  %v4321_v3 = vrot.slane %v4174_v63, 1  ;;  %v14950_v63 = vld [vmem:[#allocation120_spill] sm:$0xff] }
 0x406   : > { %v4118_v6 = vadd.f32 %v4030_v59, %v3826_v31  ;;  %v4319_v19 = vsel %vm2510_vm1, %v4317_v58, %v4318_v14  ;;  %v4464_v12 = vmul.f32 %v14591_v61, %v14915_v2  ;;  %v4465_v27 = vmul.f32 %v14591_v61, %v14941_v25 }
 0x407   : > { %v4322_v39 = vsel %vm2510_vm1, %v4320_v37, %v4321_v3  ;;  %v4409_v43 = vadd.f32 %v4319_v19, %v4117_v10  ;;  %v4466_v42 = vmul.f32 %v14591_v61, %v14949_v36  ;;  %v4609_v35 = vrot.slane %v4463_v28, 1 }
 0x408   : > { %v4410_v17 = vadd.f32 %v4322_v39, %v4118_v6  ;;  %v4610_v45 = vrot.slane %v4464_v12, 1  ;;  %v4612_v38 = vrot.slane %v4465_v27, 1  ;;  %v4755_v13 = vmul.f32 %v14597_v51, %v14941_v25  ;;  %v14953_v27 = vld [vmem:[#allocation74_spill] sm:$0xff]  ;;  %v14954_v39 = vld [vmem:[#allocation32_spill] sm:$0xff] }
 0x409   : > { %v4613_v31 = vrot.slane %v4466_v42, 1  ;;  %v4756_v30 = vmul.f32 %v14597_v51, %v14949_v36  ;;  %v4757_v16 = vmul.f32 %v14597_v51, %v14943_v40  ;;  %v4758_v1 = vmul.f32 %v14597_v51, %v14950_v63 }
 0x40a   : > { %v4611_v58 = vsel %vm2510_vm1, %v4609_v35, %v4610_v45  ;;  %v4901_v14 = vrot.slane %v4755_v13, 1  ;;  %v12184_v28 = vunpack.c.l.bf16 %v5051_v15  ;;  %v12186_v59 = vunpack.c.l.bf16 %v5052_v18 }
 0x40b   : > { %v4614_v10 = vsel %vm2510_vm1, %v4612_v38, %v4613_v31  ;;  %v4701_v37 = vadd.f32 %v4611_v58, %v4409_v43  ;;  %v4902_v3 = vrot.slane %v4756_v30, 1  ;;  %v4904_v6 = vrot.slane %v4757_v16, 1  ;;  %v14955_v43 = vld [vmem:[#allocation34_spill] sm:$0xff] }
 0x40c   : > { %14951 = vst [vmem:[#allocation21_spill] sm:$0xff] %v12184_v28  ;;  %14952 = vst [vmem:[#allocation9_spill] sm:$0xff] %v12186_v59  ;;  %v4702_v19 = vadd.f32 %v4614_v10, %v4410_v17  ;;  %v4905_v12 = vrot.slane %v4758_v1, 1  ;;  %v5167_v42 = vmul.f32 %v14954_v39, %v14953_v27  ;;  %v5168_v56 = vmul.f32 %v14954_v39, %v14906_v33 }
 0x40d   : > { %v4903_v35 = vsel %vm2510_vm1, %v4901_v14, %v4902_v3  ;;  %v5169_v15 = vmul.f32 %v14954_v39, %v14923_v53  ;;  %v5170_v18 = vmul.f32 %v14954_v39, %v14907_v46  ;;  %v5460_v45 = vmul.f32 %v14955_v43, %v14923_v53  ;;  %v14956_v14 = vld [vmem:[#allocation71_spill] sm:$0xff] }
 0x40e   : > { %v4906_v17 = vsel %vm2510_vm1, %v4904_v6, %v4905_v12  ;;  %v4993_v38 = vadd.f32 %v4903_v35, %v4701_v37  ;;  %v5314_v13 = vrot.slane %v5167_v42, 2  ;;  %v5315_v31 = vrot.slane %v5168_v56, 2 }
 0x40f   : > { %v4994_v30 = vadd.f32 %v4906_v17, %v4702_v19  ;;  %v5317_v16 = vrot.slane %v5169_v15, 2  ;;  %v5318_v1 = vrot.slane %v5170_v18, 2  ;;  %v5461_v33 = vmul.f32 %v14955_v43, %v14907_v46  ;;  %v14957_v15 = vld [vmem:[#allocation79_spill] sm:$0xff] }
 0x410   : > { %v5316_v58 = vsel %vm5259_vm8, %v5314_v13, %v5315_v31  ;;  %v5462_v10 = vmul.f32 %v14955_v43, %v14956_v14  ;;  %v5463_v3 = vmul.f32 %v14955_v43, %v14945_v48  ;;  %v5606_v53 = vrot.slane %v5460_v45, 2 }
 0x411   : > { %v5319_v6 = vsel %vm5259_vm8, %v5317_v16, %v5318_v1  ;;  %v5406_v37 = vadd.f32 %v5316_v58, %v4993_v38  ;;  %v5607_v12 = vrot.slane %v5461_v33, 2  ;;  %v5752_v56 = vmul.f32 %v14652_v24, %v14956_v14 }
 0x412   : > { %v5407_v19 = vadd.f32 %v5319_v6, %v4994_v30  ;;  %v5609_v27 = vrot.slane %v5462_v10, 2  ;;  %v5610_v42 = vrot.slane %v5463_v3, 2  ;;  %v5753_v46 = vmul.f32 %v14652_v24, %v14945_v48 }
 0x413   : > { %v5608_v35 = vsel %vm5259_vm8, %v5606_v53, %v5607_v12  ;;  %v5754_v18 = vmul.f32 %v14652_v24, %v14957_v15  ;;  %v5755_v45 = vmul.f32 %v14652_v24, %v14946_v8  ;;  %v5898_v17 = vrot.slane %v5752_v56, 2 }
 0x414   : > { %v5611_v38 = vsel %vm5259_vm8, %v5609_v27, %v5610_v42  ;;  %v5698_v13 = vadd.f32 %v5608_v35, %v5406_v37  ;;  %v5899_v31 = vrot.slane %v5753_v46, 2  ;;  %v6044_v30 = vmul.f32 %v14618_v55, %v14928_v41 }
 0x415   : > { %v5699_v16 = vadd.f32 %v5611_v38, %v5407_v19  ;;  %v5901_v1 = vrot.slane %v5754_v18, 2  ;;  %v5902_v33 = vrot.slane %v5755_v45, 2  ;;  %v6045_v58 = vmul.f32 %v14618_v55, %v14911_v5  ;;  %v14958_v45 = vld [vmem:[#allocation93_spill] sm:$0xff] }
 0x416   : > { %v5900_v10 = vsel %vm5259_vm8, %v5898_v17, %v5899_v31  ;;  %v6046_v3 = vmul.f32 %v14618_v55, %v14929_v0  ;;  %v6047_v53 = vmul.f32 %v14618_v55, %v14912_v57  ;;  %v6190_v6 = vrot.slane %v6044_v30, 2 }
 0x417   : > { %v5903_v37 = vsel %vm5259_vm8, %v5901_v1, %v5902_v33  ;;  %v5990_v12 = vadd.f32 %v5900_v10, %v5698_v13  ;;  %v6191_v56 = vrot.slane %v6045_v58, 2  ;;  %v6336_v19 = vmul.f32 %v14716_v44, %v14929_v0  ;;  %v14964_v0 = vld [vmem:[#allocation5_spill] sm:$0xff] }
 0x418   : > { %v5991_v27 = vadd.f32 %v5903_v37, %v5699_v16  ;;  %v6193_v42 = vrot.slane %v6046_v3, 2  ;;  %v6194_v46 = vrot.slane %v6047_v53, 2  ;;  %v6337_v35 = vmul.f32 %v14716_v44, %v14912_v57  ;;  %v14969_v57 = vld [vmem:[#allocation59_spill] sm:$0xff] }
 0x419   : > { %v6192_v18 = vsel %vm5259_vm8, %v6190_v6, %v6191_v56  ;;  %v6338_v17 = vmul.f32 %v14716_v44, %v14958_v45  ;;  %v6339_v38 = vmul.f32 %v14716_v44, %v14947_v49  ;;  %v6482_v31 = vrot.slane %v6336_v19, 2  ;;  %v14959_v6 = vld [vmem:[#allocation101_spill] sm:$0xff] }
 0x41a   : > { %v6195_v13 = vsel %vm5259_vm8, %v6193_v42, %v6194_v46  ;;  %v6282_v30 = vadd.f32 %v6192_v18, %v5990_v12  ;;  %v6483_v1 = vrot.slane %v6337_v35, 2  ;;  %v6628_v16 = vmul.f32 %v14831_v9, %v14958_v45 }
 0x41b   : > { %v6283_v33 = vadd.f32 %v6195_v13, %v5991_v27  ;;  %v6485_v58 = vrot.slane %v6338_v17, 2  ;;  %v6486_v10 = vrot.slane %v6339_v38, 2  ;;  %v6629_v3 = vmul.f32 %v14831_v9, %v14947_v49  ;;  %v14960_v13 = vld [vmem:[#allocation58_spill] sm:$0xff] }
 0x41c   : > { %v6484_v53 = vsel %vm5259_vm8, %v6482_v31, %v6483_v1  ;;  %v6630_v37 = vmul.f32 %v14831_v9, %v14959_v6  ;;  %v6631_v56 = vmul.f32 %v14831_v9, %v14948_v7  ;;  %v6774_v19 = vrot.slane %v6628_v16, 2 }
 0x41d   : > { %v6487_v12 = vsel %vm5259_vm8, %v6485_v58, %v6486_v10  ;;  %v6574_v42 = vadd.f32 %v6484_v53, %v6282_v30  ;;  %v6775_v46 = vrot.slane %v6629_v3, 2  ;;  %v6920_v27 = vmul.f32 %v14876_v20, %v11951_v52 }
 0x41e   : > { %v6575_v35 = vadd.f32 %v6487_v12, %v6283_v33  ;;  %v6777_v18 = vrot.slane %v6630_v37, 2  ;;  %v6778_v17 = vrot.slane %v6631_v56, 2  ;;  %v6921_v38 = vmul.f32 %v14876_v20, %v14914_v23  ;;  %v14961_v33 = vld [vmem:[#allocation45_spill] sm:$0xff] }
 0x41f   : > { %v6776_v31 = vsel %vm5259_vm8, %v6774_v19, %v6775_v46  ;;  %v6922_v1 = vmul.f32 %v14876_v20, %v14960_v13  ;;  %v6923_v16 = vmul.f32 %v14876_v20, %v14915_v2  ;;  %v7066_v58 = vrot.slane %v6920_v27, 2 }
 0x420   : > { %v6779_v30 = vsel %vm5259_vm8, %v6777_v18, %v6778_v17  ;;  %v6866_v10 = vadd.f32 %v6776_v31, %v6574_v42  ;;  %v7067_v3 = vrot.slane %v6921_v38, 2  ;;  %v7212_v53 = vmul.f32 %v14961_v33, %v14960_v13 }
 0x421   : > { %v6867_v37 = vadd.f32 %v6779_v30, %v6575_v35  ;;  %v7069_v56 = vrot.slane %v6922_v1, 2  ;;  %v7070_v12 = vrot.slane %v6923_v16, 2  ;;  %v7213_v19 = vmul.f32 %v14961_v33, %v14915_v2  ;;  %v14962_v35 = vld [vmem:[#allocation30_spill] sm:$0xff]  ;;  %v14965_v2 = vld [vmem:[#allocation83_spill] sm:$0xff] }
 0x422   : > { %v7068_v46 = vsel %vm5259_vm8, %v7066_v58, %v7067_v3  ;;  %v7214_v52 = vmul.f32 %v14961_v33, %v12184_v28  ;;  %v7215_v27 = vmul.f32 %v14961_v33, %v14949_v36  ;;  %v7358_v18 = vrot.slane %v7212_v53, 2  ;;  %v14978_v33 = vld [vmem:[#allocation117_spill] sm:$0xff] }
 0x423   : > { %v7071_v42 = vsel %vm5259_vm8, %v7069_v56, %v7070_v12  ;;  %v7158_v17 = vadd.f32 %v7068_v46, %v6866_v10  ;;  %v7359_v38 = vrot.slane %v7213_v19, 2  ;;  %v7504_v31 = vmul.f32 %v14962_v35, %v12184_v28  ;;  %v14980_v28 = vld [vmem:[#allocation84_spill] sm:$0xff] }
 0x424   : > { %v7159_v1 = vadd.f32 %v7071_v42, %v6867_v37  ;;  %v7361_v16 = vrot.slane %v7214_v52, 2  ;;  %v7362_v30 = vrot.slane %v7215_v27, 2  ;;  %v7505_v58 = vmul.f32 %v14962_v35, %v14949_v36  ;;  %v14963_v37 = vld [vmem:[#allocation4_spill] sm:$0xff] }
 0x425   : > { %v7360_v3 = vsel %vm5259_vm8, %v7358_v18, %v7359_v38  ;;  %v7506_v13 = vmul.f32 %v14962_v35, %v12186_v59  ;;  %v7507_v53 = vmul.f32 %v14962_v35, %v14950_v63  ;;  %v7650_v56 = vrot.slane %v7504_v31, 2 }
 0x426   : > { %v7363_v10 = vsel %vm5259_vm8, %v7361_v16, %v7362_v30  ;;  %v7450_v12 = vadd.f32 %v7360_v3, %v7158_v17  ;;  %v7651_v19 = vrot.slane %v7505_v58, 2  ;;  %v1670_v52 = vmul.f32 %v14963_v37, %v14931_v11  ;;  %v14966_v17 = vld [vmem:[#allocation6_spill] sm:$0xff] }
 0x427   : > { %v7451_v46 = vadd.f32 %v7363_v10, %v7159_v1  ;;  %v7653_v27 = vrot.slane %v7506_v13, 2  ;;  %v7654_v42 = vrot.slane %v7507_v53, 2  ;;  %v1671_v18 = vmul.f32 %v14963_v37, %v14932_v54  ;;  %v14967_v1 = vld [vmem:[#allocation75_spill] sm:$0xff]  ;;  %v14968_v3 = vld [vmem:[#allocation18_spill] sm:$0xff] }
 0x428   : > { %v7652_v38 = vsel %vm5259_vm8, %v7650_v56, %v7651_v19  ;;  %v1738_v41 = vmul.f32 %v14964_v0, %v14932_v54  ;;  %v1739_v31 = vmul.f32 %v14964_v0, %v14965_v2  ;;  %v1806_v16 = vmul.f32 %v14966_v17, %v14965_v2 }
 0x429   : > { %v7655_v30 = vsel %vm5259_vm8, %v7653_v27, %v7654_v42  ;;  %v7742_v58 = vadd.f32 %v7652_v38, %v7450_v12  ;;  %v1807_v13 = vmul.f32 %v14966_v17, %v14967_v1  ;;  %v1874_v53 = vmul.f32 %v14968_v3, %v14936_v22  ;;  %v14972_v27 = vld [vmem:[#allocation20_spill] sm:$0xff] }
 0x42a   : > { %v7743_v10 = vadd.f32 %v7655_v30, %v7451_v46  ;;  %v1770_v56 = vadd.f32 %v1738_v41, %v1670_v52  ;;  %v1771_v19 = vadd.f32 %v1739_v31, %v1671_v18  ;;  %v1875_v23 = vmul.f32 %v14968_v3, %v14938_v47  ;;  %v14973_v41 = vld [vmem:[#allocation97_spill] sm:$0xff]  ;;  %v14974_v30 = vld [vmem:[#allocation22_spill] sm:$0xff] }
 0x42b   : > { %v7781_v5 = vadd.f32 %v14969_v57, %v7742_v58  ;;  %v1942_v4 = vmul.f32 %v14970_v34, %v14938_v47  ;;  %v1943_v12 = vmul.f32 %v14970_v34, %v14971_v32  ;;  %v2010_v42 = vmul.f32 %v14972_v27, %v14971_v32 }
 0x42c   : > { %v7782_v38 = vadd.f32 %v14969_v57, %v7743_v10  ;;  %v1838_v17 = vadd.f32 %v1806_v16, %v1770_v56  ;;  %v1839_v46 = vadd.f32 %v1807_v13, %v1771_v19  ;;  %v2011_v52 = vmul.f32 %v14972_v27, %v14973_v41  ;;  %v14975_v57 = vld [vmem:[#allocation23_spill] sm:$0xff] }
 0x42d   : > { %v7813_v18 = vmul.f32 0.5, %v7781_v5  ;;  %v7845_v31 = vmul.f32 0.70710677, %v7781_v5  ;;  %v2078_v58 = vmul.f32 %v14974_v30, %v14941_v25  ;;  %v2079_v3 = vmul.f32 %v14974_v30, %v14943_v40  ;;  %v14976_v13 = vld [vmem:[#allocation123_spill] sm:$0xff] }
 0x42e   : > { %v12311_v0 = vmul.f32 0.5, %v7782_v38  ;;  %v7846_v34 = vmul.f32 0.70710677, %v7782_v38  ;;  %v1906_v37 = vadd.f32 %v1874_v53, %v1838_v17  ;;  %v1907_v35 = vadd.f32 %v1875_v23, %v1839_v46  ;;  %v14977_v5 = vld [vmem:[#allocation27_spill] sm:$0xff]  ;;  %v14979_v38 = vld [vmem:[#allocation12_spill] sm:$0xff] }
 0x42f   : > { %8855 = verf.f32 %v7845_v31  ;;  %v2146_v16 = vmul.f32 %v14975_v57, %v14943_v40  ;;  %v2147_v10 = vmul.f32 %v14975_v57, %v14976_v13  ;;  %v2214_v56 = vmul.f32 %v14977_v5, %v14976_v13 }
 0x430   : > { %8857 = verf.f32 %v7846_v34  ;;  %v1974_v19 = vadd.f32 %v1942_v4, %v1906_v37  ;;  %v1975_v27 = vadd.f32 %v1943_v12, %v1907_v35  ;;  %v2215_v30 = vmul.f32 %v14977_v5, %v14978_v33 }
 0x431   : > { %v2422_v17 = vmul.f32 %v14979_v38, %v14931_v11  ;;  %v2423_v23 = vmul.f32 %v14979_v38, %v14945_v48  ;;  %v2424_v53 = vmul.f32 %v14979_v38, %v14932_v54  ;;  %v2425_v46 = vmul.f32 %v14979_v38, %v14946_v8 }
 0x432   : > { %v2042_v31 = vadd.f32 %v2010_v42, %v1974_v19  ;;  %v2043_v57 = vadd.f32 %v2011_v52, %v1975_v27  ;;  %v2715_v4 = vmul.f32 %v14858_v62, %v14932_v54  ;;  %v2716_v34 = vmul.f32 %v14858_v62, %v14946_v8 }
 0x433   : > { %v2571_v35 = vrot.slane %v2422_v17, 1  ;;  %v2572_v37 = vrot.slane %v2423_v23, 1  ;;  %v2574_v11 = vrot.slane %v2424_v53, 1  ;;  %v2575_v12 = vrot.slane %v2425_v46, 1 }
 0x434   : > { %v2110_v5 = vadd.f32 %v2078_v58, %v2042_v31  ;;  %v2111_v59 = vadd.f32 %v2079_v3, %v2043_v57  ;;  %v2717_v20 = vmul.f32 %v14858_v62, %v14965_v2  ;;  %v2718_v38 = vmul.f32 %v14858_v62, %v14980_v28 }
 0x435   : > { %v2573_v27 = vsel %vm2510_vm1, %v2571_v35, %v2572_v37  ;;  %v2576_v42 = vsel %vm2510_vm1, %v2574_v11, %v2575_v12  ;;  %v2863_v54 = vrot.slane %v2715_v4, 1  ;;  %v2864_v52 = vrot.slane %v2716_v34, 1  ;;  %v14981_v34 = vld [vmem:[#allocation77_spill] sm:$0xff] }
 0x436   : > { %v2178_v19 = vadd.f32 %v2146_v16, %v2110_v5  ;;  %v2179_v9 = vadd.f32 %v2147_v10, %v2111_v59  ;;  %v2866_v17 = vrot.slane %v2717_v20, 1  ;;  %v2867_v23 = vrot.slane %v2718_v38, 1 }
 0x437   : > { %v2865_v53 = vsel %vm2510_vm1, %v2863_v54, %v2864_v52  ;;  %v3007_v3 = vmul.f32 %v14860_v21, %v14965_v2  ;;  %v3008_v58 = vmul.f32 %v14860_v21, %v14980_v28  ;;  %v3009_v57 = vmul.f32 %v14860_v21, %v14967_v1 }
 0x438   : > { %v2246_v46 = vadd.f32 %v2214_v56, %v2178_v19  ;;  %v2247_v31 = vadd.f32 %v2215_v30, %v2179_v9  ;;  %v2868_v4 = vsel %vm2510_vm1, %v2866_v17, %v2867_v23  ;;  %v3010_v59 = vmul.f32 %v14860_v21, %v14981_v34 }
 0x439   : > { %v8856_v20 = vpop.eup %8855  ;;  %v3155_v16 = vrot.slane %v3007_v3, 1  ;;  %v3156_v10 = vrot.slane %v3008_v58, 1  ;;  %v3158_v5 = vrot.slane %v3009_v57, 1  ;;  %v3299_v38 = vmul.f32 %v14790_v60, %v14936_v22  ;;  %v15010_v22 = vld [vmem:[#allocation22_spill] sm:$0xff] }
 0x43a   : > { %v8858_v35 = vpop.eup %8857  ;;  %v7909_v37 = vadd.f32 1.0, %v8856_v20  ;;  %v2659_v11 = vadd.f32 %v2573_v27, %v2246_v46  ;;  %v2660_v12 = vadd.f32 %v2576_v42, %v2247_v31  ;;  %v3159_v54 = vrot.slane %v3010_v59, 1 }
 0x43b   : > { %v7910_v52 = vadd.f32 1.0, %v8858_v35  ;;  %v3157_v9 = vsel %vm2510_vm1, %v3155_v16, %v3156_v10  ;;  %v3300_v30 = vmul.f32 %v14790_v60, %v14947_v49  ;;  %v3301_v56 = vmul.f32 %v14790_v60, %v14938_v47 }
 0x43c   : > { %v7941_v19 = vmul.f32 %v7909_v37, %v7813_v18  ;;  %v2951_v17 = vadd.f32 %v2865_v53, %v2659_v11  ;;  %v2952_v23 = vadd.f32 %v2868_v4, %v2660_v12  ;;  %v3160_v3 = vsel %vm2510_vm1, %v3158_v5, %v3159_v54  ;;  %v14982_v5 = vld [vmem:[#allocation107_spill] sm:$0xff] }
 0x43d   : > { %v7942_v58 = vmul.f32 %v7910_v52, %v12311_v0  ;;  %v3302_v27 = vmul.f32 %v14790_v60, %v14948_v7  ;;  %v3447_v42 = vrot.slane %v3299_v38, 1  ;;  %v3448_v57 = vrot.slane %v3300_v30, 1 }
 0x43e   : > { %v3243_v46 = vadd.f32 %v3157_v9, %v2951_v17  ;;  %v3244_v31 = vadd.f32 %v3160_v3, %v2952_v23  ;;  %v3450_v59 = vrot.slane %v3301_v56, 1  ;;  %v3591_v20 = vmul.f32 %v9304_v26, %v14938_v47  ;;  %v14983_v17 = vld [vmem:[#allocation98_spill] sm:$0xff]  ;;  %v12531_v47 = vld [vmem:[%s13905_s4] ss:$0 sm:$0xff] }
 0x43f   : > { %v7964_v16 = vpack.c.bf16 %v7942_v58, %v7941_v19  ;;  %v3449_v18 = vsel %vm2510_vm1, %v3447_v42, %v3448_v57  ;;  %v3451_v53 = vrot.slane %v3302_v27, 1  ;;  %v3592_v4 = vmul.f32 %v9304_v26, %v14948_v7  ;;  %15007 = vst [vmem:[#allocation44_spill] sm:$0xff] %v12531_v47 }
 0x440   : > { %v3535_v10 = vadd.f32 %v3449_v18, %v3243_v46  ;;  %v3593_v0 = vmul.f32 %v9304_v26, %v14971_v32  ;;  %v3594_v38 = vmul.f32 %v9304_v26, %v14982_v5  ;;  %v3739_v35 = vrot.slane %v3591_v20, 1 }
 0x441   : > { %8739 = vmatmul.mubr.bf16.gmra.mrb[16].mxu1 %v7964_v16  ;;  %v3452_v37 = vsel %vm2510_vm1, %v3450_v59, %v3451_v53  ;;  %v3740_v11 = vrot.slane %v3592_v4, 1  ;;  %v3883_v12 = vmul.f32 %v9308_v29, %v14971_v32  ;;  %v3884_v54 = vmul.f32 %v9308_v29, %v14982_v5 }
 0x442   : > { %v3536_v52 = vadd.f32 %v3452_v37, %v3244_v31  ;;  %v3742_v9 = vrot.slane %v3593_v0, 1  ;;  %v3743_v30 = vrot.slane %v3594_v38, 1  ;;  %v3885_v56 = vmul.f32 %v9308_v29, %v14973_v41 }
 0x443   : > { %v3741_v19 = vsel %vm2510_vm1, %v3739_v35, %v3740_v11  ;;  %v3886_v23 = vmul.f32 %v9308_v29, %v14983_v17  ;;  %v4031_v3 = vrot.slane %v3883_v12, 1  ;;  %v4032_v58 = vrot.slane %v3884_v54, 1 }
 0x444   : > { %v3744_v27 = vsel %vm2510_vm1, %v3742_v9, %v3743_v30  ;;  %v3827_v42 = vadd.f32 %v3741_v19, %v3535_v10  ;;  %v4034_v57 = vrot.slane %v3885_v56, 1  ;;  %v4175_v46 = vmul.f32 %v9344_v50, %v14941_v25  ;;  %v14984_v30 = vld [vmem:[#allocation124_spill] sm:$0xff] }
 0x445   : > { %v3828_v31 = vadd.f32 %v3744_v27, %v3536_v52  ;;  %v4033_v59 = vsel %vm2510_vm1, %v4031_v3, %v4032_v58  ;;  %v4035_v20 = vrot.slane %v3886_v23, 1  ;;  %v4176_v16 = vmul.f32 %v9344_v50, %v14949_v36 }
 0x446   : > { %v4119_v18 = vadd.f32 %v4033_v59, %v3827_v42  ;;  %v4177_v53 = vmul.f32 %v9344_v50, %v14943_v40  ;;  %v4178_v4 = vmul.f32 %v9344_v50, %v14950_v63  ;;  %v4323_v0 = vrot.slane %v4175_v46, 1  ;;  %v5054_v46 = vld [vmem:[#allocation2 + $0x178] sm:$0xe] }
 0x447   : > { %v4036_v10 = vsel %vm2510_vm1, %v4034_v57, %v4035_v20  ;;  %v4324_v38 = vrot.slane %v4176_v16, 1  ;;  %v4467_v35 = vmul.f32 %v14591_v61, %v14943_v40  ;;  %v4468_v37 = vmul.f32 %v14591_v61, %v14950_v63  ;;  %v5053_v57 = vld [vmem:[#allocation2 + $0x170] sm:$0xe] }
 0x448   : > { %v4120_v11 = vadd.f32 %v4036_v10, %v3828_v31  ;;  %v4326_v12 = vrot.slane %v4177_v53, 1  ;;  %v4327_v54 = vrot.slane %v4178_v4, 1  ;;  %v4469_v52 = vmul.f32 %v14591_v61, %v14976_v13 }
 0x449   : > { %v4325_v9 = vsel %vm2510_vm1, %v4323_v0, %v4324_v38  ;;  %v4470_v56 = vmul.f32 %v14591_v61, %v14984_v30  ;;  %v4615_v19 = vrot.slane %v4467_v35, 1  ;;  %v4616_v23 = vrot.slane %v4468_v37, 1  ;;  %v14985_v0 = vld [vmem:[#allocation118_spill] sm:$0xff] }
 0x44a   : > { %v4328_v3 = vsel %vm2510_vm1, %v4326_v12, %v4327_v54  ;;  %v4411_v58 = vadd.f32 %v4325_v9, %v4119_v18  ;;  %v4618_v27 = vrot.slane %v4469_v52, 1  ;;  %v4759_v42 = vmul.f32 %v14597_v51, %v14976_v13 }
 0x44b   : > { %v4412_v31 = vadd.f32 %v4328_v3, %v4120_v11  ;;  %v4617_v59 = vsel %vm2510_vm1, %v4615_v19, %v4616_v23  ;;  %v4619_v20 = vrot.slane %v4470_v56, 1  ;;  %v4760_v16 = vmul.f32 %v14597_v51, %v14984_v30 }
 0x44c   : > { %v4703_v53 = vadd.f32 %v4617_v59, %v4411_v58  ;;  %v4761_v4 = vmul.f32 %v14597_v51, %v14978_v33  ;;  %v4762_v18 = vmul.f32 %v14597_v51, %v14985_v0  ;;  %v4907_v10 = vrot.slane %v4759_v42, 1 }
 0x44d   : > { %v4620_v38 = vsel %vm2510_vm1, %v4618_v27, %v4619_v20  ;;  %v4908_v35 = vrot.slane %v4760_v16, 1  ;;  %v12410_v37 = vunpack.c.l.bf16 %v5053_v57  ;;  %v12412_v11 = vunpack.c.l.bf16 %v5054_v46  ;;  %v14988_v20 = vld [vmem:[#allocation85_spill] sm:$0xff] }
 0x44e   : > { %v4704_v12 = vadd.f32 %v4620_v38, %v4412_v31  ;;  %v4910_v54 = vrot.slane %v4761_v4, 1  ;;  %v4911_v52 = vrot.slane %v4762_v18, 1  ;;  %v5171_v9 = vmul.f32 %v14954_v39, %v14956_v14 }
 0x44f   : > { %14986 = vst [vmem:[#allocation11_spill] sm:$0xff] %v12410_v37  ;;  %14987 = vst [vmem:[#allocation62_spill] sm:$0xff] %v12412_v11  ;;  %v4909_v56 = vsel %vm2510_vm1, %v4907_v10, %v4908_v35  ;;  %v5172_v19 = vmul.f32 %v14954_v39, %v14945_v48  ;;  %v5173_v23 = vmul.f32 %v14954_v39, %v14957_v15 }
 0x450   : > { %v5174_v3 = vmul.f32 %v14954_v39, %v14946_v8  ;;  %v4912_v58 = vsel %vm2510_vm1, %v4910_v54, %v4911_v52  ;;  %v4995_v27 = vadd.f32 %v4909_v56, %v4703_v53  ;;  %v5320_v42 = vrot.slane %v5171_v9, 2  ;;  %v14989_v9 = vld [vmem:[#allocation76_spill] sm:$0xff] }
 0x451   : > { %v5464_v57 = vmul.f32 %v14955_v43, %v14957_v15  ;;  %v4996_v46 = vadd.f32 %v4912_v58, %v4704_v12  ;;  %v5321_v14 = vrot.slane %v5172_v19, 2  ;;  %v5323_v31 = vrot.slane %v5173_v23, 2 }
 0x452   : > { %v5324_v59 = vrot.slane %v5174_v3, 2  ;;  %v5465_v48 = vmul.f32 %v14955_v43, %v14946_v8  ;;  %v5466_v16 = vmul.f32 %v14955_v43, %v14988_v20  ;;  %v5467_v4 = vmul.f32 %v14955_v43, %v14980_v28 }
 0x453   : > { %v5612_v18 = vrot.slane %v5464_v57, 2  ;;  %v5322_v53 = vsel %vm5259_vm8, %v5320_v42, %v5321_v14  ;;  %v5756_v15 = vmul.f32 %v14652_v24, %v14988_v20  ;;  %v5757_v38 = vmul.f32 %v14652_v24, %v14980_v28 }
 0x454   : > { %v5325_v10 = vsel %vm5259_vm8, %v5323_v31, %v5324_v59  ;;  %v5408_v35 = vadd.f32 %v5322_v53, %v4995_v27  ;;  %v5613_v8 = vrot.slane %v5465_v48, 2  ;;  %v5615_v54 = vrot.slane %v5466_v16, 2 }
 0x455   : > { %v5409_v12 = vadd.f32 %v5325_v10, %v4996_v46  ;;  %v5616_v52 = vrot.slane %v5467_v4, 2  ;;  %v5758_v56 = vmul.f32 %v14652_v24, %v14989_v9  ;;  %v5759_v19 = vmul.f32 %v14652_v24, %v14981_v34 }
 0x456   : > { %v5904_v23 = vrot.slane %v5756_v15, 2  ;;  %v5614_v3 = vsel %vm5259_vm8, %v5612_v18, %v5613_v8  ;;  %v5905_v58 = vrot.slane %v5757_v38, 2  ;;  %v6048_v42 = vmul.f32 %v14618_v55, %v14958_v45 }
 0x457   : > { %v6049_v27 = vmul.f32 %v14618_v55, %v14947_v49  ;;  %v5617_v57 = vsel %vm5259_vm8, %v5615_v54, %v5616_v52  ;;  %v5700_v46 = vadd.f32 %v5614_v3, %v5408_v35  ;;  %v5907_v14 = vrot.slane %v5758_v56, 2  ;;  %v14990_v56 = vld [vmem:[#allocation106_spill] sm:$0xff] }
 0x458   : > { %v5908_v31 = vrot.slane %v5759_v19, 2  ;;  %v5701_v59 = vadd.f32 %v5617_v57, %v5409_v12  ;;  %v5906_v48 = vsel %vm5259_vm8, %v5904_v23, %v5905_v58  ;;  %v6050_v16 = vmul.f32 %v14618_v55, %v14959_v6  ;;  %v15004_v49 = vld [vmem:[#allocation18_spill] sm:$0xff] }
 0x459   : > { %v6051_v4 = vmul.f32 %v14618_v55, %v14948_v7  ;;  %v5992_v53 = vadd.f32 %v5906_v48, %v5700_v46  ;;  %v6196_v10 = vrot.slane %v6048_v42, 2  ;;  %v6197_v15 = vrot.slane %v6049_v27, 2  ;;  %v14991_v27 = vld [vmem:[#allocation43_spill] sm:$0xff] }
 0x45a   : > { %v5909_v18 = vsel %vm5259_vm8, %v5907_v14, %v5908_v31  ;;  %v6199_v8 = vrot.slane %v6050_v16, 2  ;;  %v6340_v35 = vmul.f32 %v14716_v44, %v14959_v6  ;;  %v6341_v52 = vmul.f32 %v14716_v44, %v14948_v7  ;;  %v14992_v16 = vld [vmem:[#allocation99_spill] sm:$0xff]  ;;  %v14995_v6 = vld [vmem:[#allocation9_spill] sm:$0xff] }
 0x45b   : > { %v5993_v38 = vadd.f32 %v5909_v18, %v5701_v59  ;;  %v6200_v54 = vrot.slane %v6051_v4, 2  ;;  %v6198_v12 = vsel %vm5259_vm8, %v6196_v10, %v6197_v15  ;;  %v6342_v19 = vmul.f32 %v14716_v44, %v14990_v56 }
 0x45c   : > { %v6343_v23 = vmul.f32 %v14716_v44, %v14982_v5  ;;  %v6284_v58 = vadd.f32 %v6198_v12, %v5992_v53  ;;  %v6488_v42 = vrot.slane %v6340_v35, 2  ;;  %v6632_v57 = vmul.f32 %v14991_v27, %v14990_v56 }
 0x45d   : > { %v6201_v3 = vsel %vm5259_vm8, %v6199_v8, %v6200_v54  ;;  %v6489_v14 = vrot.slane %v6341_v52, 2  ;;  %v6491_v31 = vrot.slane %v6342_v19, 2  ;;  %v6633_v48 = vmul.f32 %v14991_v27, %v14982_v5  ;;  %v14993_v8 = vld [vmem:[#allocation21_spill] sm:$0xff]  ;;  %v14994_v54 = vld [vmem:[#allocation28_spill] sm:$0xff] }
 0x45e   : > { %v6285_v46 = vadd.f32 %v6201_v3, %v5993_v38  ;;  %v6492_v59 = vrot.slane %v6343_v23, 2  ;;  %v6634_v4 = vmul.f32 %v14991_v27, %v14992_v16  ;;  %v6635_v18 = vmul.f32 %v14991_v27, %v14983_v17  ;;  %v15016_v27 = vld [vmem:[#allocation82_spill] sm:$0xff] }
 0x45f   : > { %v6780_v10 = vrot.slane %v6632_v57, 2  ;;  %v6490_v53 = vsel %vm5259_vm8, %v6488_v42, %v6489_v14  ;;  %v6924_v38 = vmul.f32 %v14994_v54, %v14993_v8  ;;  %v6925_v35 = vmul.f32 %v14994_v54, %v14949_v36 }
 0x460   : > { %v6493_v15 = vsel %vm5259_vm8, %v6491_v31, %v6492_v59  ;;  %v6576_v12 = vadd.f32 %v6490_v53, %v6284_v58  ;;  %v6781_v19 = vrot.slane %v6633_v48, 2  ;;  %v6783_v23 = vrot.slane %v6634_v4, 2  ;;  %v14996_v59 = vld [vmem:[#allocation45_spill] sm:$0xff] }
 0x461   : > { %v6577_v52 = vadd.f32 %v6493_v15, %v6285_v46  ;;  %v6784_v3 = vrot.slane %v6635_v18, 2  ;;  %v6926_v45 = vmul.f32 %v14994_v54, %v14995_v6  ;;  %v6927_v57 = vmul.f32 %v14994_v54, %v14950_v63 }
 0x462   : > { %v7072_v42 = vrot.slane %v6924_v38, 2  ;;  %v6782_v14 = vsel %vm5259_vm8, %v6780_v10, %v6781_v19  ;;  %v7073_v31 = vrot.slane %v6925_v35, 2  ;;  %v7216_v8 = vmul.f32 %v14996_v59, %v14995_v6 }
 0x463   : > { %v7217_v58 = vmul.f32 %v14996_v59, %v14950_v63  ;;  %v6785_v46 = vsel %vm5259_vm8, %v6783_v23, %v6784_v3  ;;  %v6868_v48 = vadd.f32 %v6782_v14, %v6576_v12  ;;  %v7075_v4 = vrot.slane %v6926_v45, 2  ;;  %v1575_v63 = vld [vmem:[#allocation2 + $0x188] sm:$0xf]  ;;  %v14997_v45 = vld [vmem:[#allocation30_spill] sm:$0xff] }
 0x464   : > { %v7076_v18 = vrot.slane %v6927_v57, 2  ;;  %v6869_v53 = vadd.f32 %v6785_v46, %v6577_v52  ;;  %v7074_v15 = vsel %vm5259_vm8, %v7072_v42, %v7073_v31  ;;  %v7218_v38 = vmul.f32 %v14996_v59, %v12410_v37 }
 0x465   : > { %v7219_v10 = vmul.f32 %v14996_v59, %v14984_v30  ;;  %v7160_v19 = vadd.f32 %v7074_v15, %v6868_v48  ;;  %v7364_v6 = vrot.slane %v7216_v8, 2  ;;  %v7365_v36 = vrot.slane %v7217_v58, 2 }
 0x466   : > { %v7077_v35 = vsel %vm5259_vm8, %v7075_v4, %v7076_v18  ;;  %v7367_v23 = vrot.slane %v7218_v38, 2  ;;  %v7508_v52 = vmul.f32 %v14997_v45, %v12410_v37  ;;  %v7509_v57 = vmul.f32 %v14997_v45, %v14984_v30  ;;  %v15000_v38 = vld [vmem:[#allocation5_spill] sm:$0xff] }
 0x467   : > { %v7161_v7 = vadd.f32 %v7077_v35, %v6869_v53  ;;  %v7368_v12 = vrot.slane %v7219_v10, 2  ;;  %v7366_v3 = vsel %vm5259_vm8, %v7364_v6, %v7365_v36  ;;  %v7510_v42 = vmul.f32 %v14997_v45, %v12412_v11  ;;  %v14999_v36 = vld [vmem:[#allocation4_spill] sm:$0xff]  ;;  %v15001_v35 = vld [vmem:[#allocation81_spill] sm:$0xff] }
 0x468   : > { %v7511_v14 = vmul.f32 %v14997_v45, %v14985_v0  ;;  %v7452_v31 = vadd.f32 %v7366_v3, %v7160_v19  ;;  %v7656_v58 = vrot.slane %v7508_v52, 2  ;;  %v12504_v46 = vunpack.c.l.bf16 %v1575_v63  ;;  %v15003_v52 = vld [vmem:[#allocation42_spill] sm:$0xff]  ;;  %v15013_v45 = vld [vmem:[#allocation27_spill] sm:$0xff] }
 0x469   : > { %v7369_v8 = vsel %vm5259_vm8, %v7367_v23, %v7368_v12  ;;  %v7657_v4 = vrot.slane %v7509_v57, 2  ;;  %v7659_v18 = vrot.slane %v7510_v42, 2  ;;  %v1672_v6 = vmul.f32 %v14999_v36, %v14965_v2 }
 0x46a   : > { %14998 = vst [vmem:[#allocation56_spill] sm:$0xff] %v12504_v46  ;;  %v7453_v48 = vadd.f32 %v7369_v8, %v7161_v7  ;;  %v7660_v53 = vrot.slane %v7511_v14, 2  ;;  %v1673_v15 = vmul.f32 %v14999_v36, %v14967_v1  ;;  %v1740_v10 = vmul.f32 %v15000_v38, %v14967_v1  ;;  %v15002_v7 = vld [vmem:[#allocation6_spill] sm:$0xff] }
 0x46b   : > { %v1741_v23 = vmul.f32 %v15000_v38, %v15001_v35  ;;  %v7658_v19 = vsel %vm5259_vm8, %v7656_v58, %v7657_v4  ;;  %v1808_v12 = vmul.f32 %v15002_v7, %v15001_v35  ;;  %v1809_v3 = vmul.f32 %v15002_v7, %v15003_v52  ;;  %v15005_v58 = vld [vmem:[#allocation19_spill] sm:$0xff]  ;;  %v2307_v7 = vld [vmem:[#allocation2 + $0x18c] sm:$0x1] }
 0x46c   : > { %v7661_v63 = vsel %vm5259_vm8, %v7659_v18, %v7660_v53  ;;  %v7744_v57 = vadd.f32 %v7658_v19, %v7452_v31  ;;  %v1772_v14 = vadd.f32 %v1740_v10, %v1672_v6  ;;  %v1876_v40 = vmul.f32 %v15004_v49, %v14971_v32  ;;  %v15006_v18 = vld [vmem:[#allocation103_spill] sm:$0xff]  ;;  %v15008_v10 = vld [vmem:[#allocation20_spill] sm:$0xff] }
 0x46d   : > { %v7745_v42 = vadd.f32 %v7661_v63, %v7453_v48  ;;  %v1773_v8 = vadd.f32 %v1741_v23, %v1673_v15  ;;  %v1877_v25 = vmul.f32 %v15004_v49, %v14973_v41  ;;  %v1944_v4 = vmul.f32 %v15005_v58, %v14973_v41  ;;  %v15009_v19 = vld [vmem:[#allocation51_spill] sm:$0xff] }
 0x46e   : > { %v1945_v53 = vmul.f32 %v15005_v58, %v15006_v18  ;;  %v7783_v31 = vadd.f32 %v12531_v47, %v7744_v57  ;;  %v1840_v6 = vadd.f32 %v1808_v12, %v1772_v14  ;;  %v2012_v23 = vmul.f32 %v15008_v10, %v15006_v18  ;;  %v15011_v14 = vld [vmem:[#allocation23_spill] sm:$0xff] }
 0x46f   : > { %v7784_v48 = vadd.f32 %v12531_v47, %v7745_v42  ;;  %v1841_v15 = vadd.f32 %v1809_v3, %v1773_v8  ;;  %v2013_v63 = vmul.f32 %v15008_v10, %v15009_v19  ;;  %v2080_v58 = vmul.f32 %v15010_v22, %v14976_v13  ;;  %v15012_v47 = vld [vmem:[#allocation121_spill] sm:$0xff] }
 0x470   : > { %v2081_v49 = vmul.f32 %v15010_v22, %v14978_v33  ;;  %v7815_v38 = vmul.f32 0.5, %v7783_v31  ;;  %v7847_v57 = vmul.f32 0.70710677, %v7783_v31  ;;  %v1908_v12 = vadd.f32 %v1876_v40, %v1840_v6 }
 0x471   : > { %v12543_v36 = vmul.f32 0.5, %v7784_v48  ;;  %v7848_v42 = vmul.f32 0.70710677, %v7784_v48  ;;  %v1909_v3 = vadd.f32 %v1877_v25, %v1841_v15  ;;  %v2148_v8 = vmul.f32 %v15011_v14, %v14978_v33  ;;  %v15015_v25 = vld [vmem:[#allocation12_spill] sm:$0xff] }
 0x472   : > { %v2149_v10 = vmul.f32 %v15011_v14, %v15012_v47  ;;  %8859 = verf.f32 %v7847_v57  ;;  %v2216_v59 = vmul.f32 %v15013_v45, %v15012_v47  ;;  %v2217_v22 = vmul.f32 %v15013_v45, %v12504_v46 }
 0x473   : > { %v12553_v11 = vunpack.c.l.bf16 %v2307_v7  ;;  %8861 = verf.f32 %v7848_v42  ;;  %v1976_v31 = vadd.f32 %v1944_v4, %v1908_v12  ;;  %v1977_v48 = vadd.f32 %v1945_v53, %v1909_v3 }
 0x474   : > { %v2426_v40 = vmul.f32 %v15015_v25, %v14965_v2  ;;  %v2427_v6 = vmul.f32 %v15015_v25, %v14980_v28  ;;  %v2428_v15 = vmul.f32 %v15015_v25, %v14967_v1  ;;  %v2429_v57 = vmul.f32 %v15015_v25, %v14981_v34 }
 0x475   : > { %15014 = vst [vmem:[#allocation63_spill] sm:$0xff] %v12553_v11  ;;  %v2719_v45 = vmul.f32 %v14858_v62, %v14967_v1  ;;  %v2044_v7 = vadd.f32 %v2012_v23, %v1976_v31  ;;  %v2045_v14 = vadd.f32 %v2013_v63, %v1977_v48  ;;  %v2720_v4 = vmul.f32 %v14858_v62, %v14981_v34 }
 0x476   : > { %v2577_v42 = vrot.slane %v2426_v40, 1  ;;  %v2578_v53 = vrot.slane %v2427_v6, 1  ;;  %v2580_v2 = vrot.slane %v2428_v15, 1  ;;  %v2581_v12 = vrot.slane %v2429_v57, 1 }
 0x477   : > { %v2721_v3 = vmul.f32 %v14858_v62, %v15001_v35  ;;  %v2112_v54 = vadd.f32 %v2080_v58, %v2044_v7  ;;  %v2113_v37 = vadd.f32 %v2081_v49, %v2045_v14  ;;  %v2722_v25 = vmul.f32 %v14858_v62, %v15016_v27  ;;  %v15017_v58 = vld [vmem:[#allocation13_spill] sm:$0xff] }
 0x478   : > { %v2869_v44 = vrot.slane %v2719_v45, 1  ;;  %v2579_v1 = vsel %vm2510_vm1, %v2577_v42, %v2578_v53  ;;  %v2582_v23 = vsel %vm2510_vm1, %v2580_v2, %v2581_v12  ;;  %v2870_v63 = vrot.slane %v2720_v4, 1 }
 0x479   : > { %v2872_v31 = vrot.slane %v2721_v3, 1  ;;  %v2180_v48 = vadd.f32 %v2148_v8, %v2112_v54  ;;  %v2181_v40 = vadd.f32 %v2149_v10, %v2113_v37  ;;  %v2873_v6 = vrot.slane %v2722_v25, 1 }
 0x47a   : > { %v3011_v15 = vmul.f32 %v14860_v21, %v15001_v35  ;;  %v2871_v57 = vsel %vm2510_vm1, %v2869_v44, %v2870_v63  ;;  %v3012_v49 = vmul.f32 %v14860_v21, %v15016_v27  ;;  %v3013_v45 = vmul.f32 %v14860_v21, %v15003_v52 }
 0x47b   : > { %v3014_v14 = vmul.f32 %v14860_v21, %v15017_v58  ;;  %v2248_v7 = vadd.f32 %v2216_v59, %v2180_v48  ;;  %v2249_v42 = vadd.f32 %v2217_v22, %v2181_v40  ;;  %v2874_v54 = vsel %vm2510_vm1, %v2872_v31, %v2873_v6 }
 0x47c   : > { %v3161_v37 = vrot.slane %v3011_v15, 1  ;;  %v8860_v10 = vpop.eup %8859  ;;  %v3162_v8 = vrot.slane %v3012_v49, 1  ;;  %v3164_v25 = vrot.slane %v3013_v45, 1  ;;  %v3303_v44 = vmul.f32 %v14790_v60, %v14971_v32 }
 0x47d   : > { %v3165_v35 = vrot.slane %v3014_v14, 1  ;;  %v8862_v4 = vpop.eup %8861  ;;  %v7911_v53 = vadd.f32 1.0, %v8860_v10  ;;  %v2661_v2 = vadd.f32 %v2579_v1, %v2248_v7  ;;  %v2662_v12 = vadd.f32 %v2582_v23, %v2249_v42 }
 0x47e   : > { %v3304_v52 = vmul.f32 %v14790_v60, %v14982_v5  ;;  %v7912_v3 = vadd.f32 1.0, %v8862_v4  ;;  %v3163_v22 = vsel %vm2510_vm1, %v3161_v37, %v3162_v8  ;;  %v3305_v63 = vmul.f32 %v14790_v60, %v14973_v41  ;;  %v15018_v8 = vld [vmem:[#allocation104_spill] sm:$0xff] }
 0x47f   : > { %v3166_v59 = vsel %vm2510_vm1, %v3164_v25, %v3165_v35  ;;  %v7943_v31 = vmul.f32 %v7911_v53, %v7815_v38  ;;  %v2953_v48 = vadd.f32 %v2871_v57, %v2661_v2  ;;  %v2954_v40 = vadd.f32 %v2874_v54, %v2662_v12 }
 0x480   : > { %v3306_v6 = vmul.f32 %v14790_v60, %v14983_v17  ;;  %v7944_v1 = vmul.f32 %v7912_v3, %v12543_v36  ;;  %v3453_v23 = vrot.slane %v3303_v44, 1  ;;  %v3454_v15 = vrot.slane %v3304_v52, 1 }
 0x481   : > { %v3456_v49 = vrot.slane %v3305_v63, 1  ;;  %v3245_v45 = vadd.f32 %v3163_v22, %v2953_v48  ;;  %v3246_v14 = vadd.f32 %v3166_v59, %v2954_v40  ;;  %v3595_v42 = vmul.f32 %v9304_v26, %v14973_v41  ;;  %v15019_v22 = vld [vmem:[#allocation49_spill] sm:$0xff]  ;;  %v15055_v41 = vld [vmem:[#allocation12_spill] sm:$0xff] }
 0x482   : > { %v3457_v7 = vrot.slane %v3306_v6, 1  ;;  %v7965_v37 = vpack.c.bf16 %v7944_v1, %v7943_v31  ;;  %v3455_v10 = vsel %vm2510_vm1, %v3453_v23, %v3454_v15  ;;  %v3596_v38 = vmul.f32 %v9304_v26, %v14983_v17 }
 0x483   : > { %v3597_v57 = vmul.f32 %v9304_v26, %v15006_v18  ;;  %v3537_v54 = vadd.f32 %v3455_v10, %v3245_v45  ;;  %v3598_v25 = vmul.f32 %v9304_v26, %v15018_v8  ;;  %v3745_v35 = vrot.slane %v3595_v42, 1 }
 0x484   : > { %v3458_v36 = vsel %vm2510_vm1, %v3456_v49, %v3457_v7  ;;  %8742 = vmatprep.mubr.bf16.mxu1 %v7965_v37  ;;  %v3746_v4 = vrot.slane %v3596_v38, 1  ;;  %v3887_v2 = vmul.f32 %v9308_v29, %v15006_v18  ;;  %v3888_v52 = vmul.f32 %v9308_v29, %v15018_v8 }
 0x485   : > { %v3538_v44 = vadd.f32 %v3458_v36, %v3246_v14  ;;  %v3748_v53 = vrot.slane %v3597_v57, 1  ;;  %v3749_v12 = vrot.slane %v3598_v25, 1  ;;  %v3889_v3 = vmul.f32 %v9308_v29, %v15009_v19 }
 0x486   : > { %v3890_v59 = vmul.f32 %v9308_v29, %v15019_v22  ;;  %v3747_v63 = vsel %vm2510_vm1, %v3745_v35, %v3746_v4  ;;  %v12615_v31 = vmul.f32 %v9308_v29, %v12553_v11  ;;  %v4037_v48 = vrot.slane %v3887_v2, 1 }
 0x487   : > { %v4179_v40 = vmul.f32 %v9344_v50, %v14976_v13  ;;  %v3750_v6 = vsel %vm2510_vm1, %v3748_v53, %v3749_v12  ;;  %v3829_v1 = vadd.f32 %v3747_v63, %v3537_v54  ;;  %v4038_v23 = vrot.slane %v3888_v52, 1  ;;  %v15021_v52 = vld [vmem:[#allocation122_spill] sm:$0xff] }
 0x488   : > { %15020 = vst [vmem:[#allocation57_spill] sm:$0xff] %v12615_v31  ;;  %v4040_v15 = vrot.slane %v3889_v3, 1  ;;  %v3830_v49 = vadd.f32 %v3750_v6, %v3538_v44  ;;  %v4041_v45 = vrot.slane %v3890_v59, 1  ;;  %v4180_v7 = vmul.f32 %v9344_v50, %v14984_v30 }
 0x489   : > { %v4039_v42 = vsel %vm2510_vm1, %v4037_v48, %v4038_v23  ;;  %v4181_v37 = vmul.f32 %v9344_v50, %v14978_v33  ;;  %v4182_v10 = vmul.f32 %v9344_v50, %v14985_v0  ;;  %v4329_v38 = vrot.slane %v4179_v40, 1 }
 0x48a   : > { %v4042_v57 = vsel %vm2510_vm1, %v4040_v15, %v4041_v45  ;;  %v4121_v36 = vadd.f32 %v4039_v42, %v3829_v1  ;;  %v4330_v54 = vrot.slane %v4180_v7, 1  ;;  %v4471_v25 = vmul.f32 %v14591_v61, %v14978_v33  ;;  %v5055_v1 = vld [vmem:[#allocation2 + $0x180] sm:$0xe]  ;;  %v12643_v7 = vld [vmem:[#allocation2 + $0x188] sm:$0xe] }
 0x48b   : > { %v4122_v35 = vadd.f32 %v4042_v57, %v3830_v49  ;;  %v4332_v44 = vrot.slane %v4181_v37, 1  ;;  %v4333_v4 = vrot.slane %v4182_v10, 1  ;;  %v4472_v53 = vmul.f32 %v14591_v61, %v14985_v0 }
 0x48c   : > { %v4331_v2 = vsel %vm2510_vm1, %v4329_v38, %v4330_v54  ;;  %v4473_v12 = vmul.f32 %v14591_v61, %v15012_v47  ;;  %v4474_v3 = vmul.f32 %v14591_v61, %v15021_v52  ;;  %v4621_v59 = vrot.slane %v4471_v25, 1 }
 0x48d   : > { %v4334_v63 = vsel %vm2510_vm1, %v4332_v44, %v4333_v4  ;;  %v4413_v48 = vadd.f32 %v4331_v2, %v4121_v36  ;;  %v4622_v40 = vrot.slane %v4472_v53, 1  ;;  %v4763_v6 = vmul.f32 %v14597_v51, %v15012_v47  ;;  %v15048_v47 = vld [vmem:[#allocation115_spill] sm:$0xff] }
 0x48e   : > { %v4414_v23 = vadd.f32 %v4334_v63, %v4122_v35  ;;  %v4624_v15 = vrot.slane %v4473_v12, 1  ;;  %v4625_v49 = vrot.slane %v4474_v3, 1  ;;  %v4764_v45 = vmul.f32 %v14597_v51, %v15021_v52 }
 0x48f   : > { %v4623_v42 = vsel %vm2510_vm1, %v4621_v59, %v4622_v40  ;;  %v4765_v37 = vmul.f32 %v14597_v51, %v12504_v46  ;;  %v4766_v10 = vmul.f32 %v14597_v51, %v12553_v11  ;;  %v4913_v38 = vrot.slane %v4763_v6, 1 }
 0x490   : > { %v4626_v57 = vsel %vm2510_vm1, %v4624_v15, %v4625_v49  ;;  %v4705_v36 = vadd.f32 %v4623_v42, %v4413_v48  ;;  %v4914_v54 = vrot.slane %v4764_v45, 1  ;;  %v12651_v25 = vunpack.c.l.bf16 %v5055_v1  ;;  %v15023_v45 = vld [vmem:[#allocation46_spill] sm:$0xff] }
 0x491   : > { %v4706_v35 = vadd.f32 %v4626_v57, %v4414_v23  ;;  %v4916_v44 = vrot.slane %v4765_v37, 1  ;;  %v4917_v4 = vrot.slane %v4766_v10, 1  ;;  %v5116_v53 = vunpack.c.l.bf16 %v12643_v7 }
 0x492   : > { %15022 = vst [vmem:[#allocation40_spill] sm:$0xff] %v12651_v25  ;;  %v4915_v2 = vsel %vm2510_vm1, %v4913_v38, %v4914_v54  ;;  %v5175_v12 = vmul.f32 %v14954_v39, %v14988_v20  ;;  %v5176_v3 = vmul.f32 %v14954_v39, %v14980_v28  ;;  %v5177_v59 = vmul.f32 %v14954_v39, %v14989_v9 }
 0x493   : > { %v4918_v63 = vsel %vm2510_vm1, %v4916_v44, %v4917_v4  ;;  %v4997_v48 = vadd.f32 %v4915_v2, %v4705_v36  ;;  %v5178_v40 = vmul.f32 %v14954_v39, %v14981_v34  ;;  %v5468_v6 = vmul.f32 %v14955_v43, %v14989_v9 }
 0x494   : > { %v4998_v1 = vadd.f32 %v4918_v63, %v4706_v35  ;;  %v5326_v23 = vrot.slane %v5175_v12, 2  ;;  %v5327_v15 = vrot.slane %v5176_v3, 2  ;;  %v5329_v49 = vrot.slane %v5177_v59, 2 }
 0x495   : > { %v5330_v20 = vrot.slane %v5178_v40, 2  ;;  %v5469_v28 = vmul.f32 %v14955_v43, %v14981_v34  ;;  %v5470_v42 = vmul.f32 %v14955_v43, %v15023_v45  ;;  %v5471_v37 = vmul.f32 %v14955_v43, %v15016_v27 }
 0x496   : > { %v5328_v10 = vsel %vm5259_vm8, %v5326_v23, %v5327_v15  ;;  %v5618_v38 = vrot.slane %v5468_v6, 2  ;;  %v5760_v9 = vmul.f32 %v14652_v24, %v15023_v45  ;;  %v5761_v57 = vmul.f32 %v14652_v24, %v15016_v27 }
 0x497   : > { %v5331_v36 = vsel %vm5259_vm8, %v5329_v49, %v5330_v20  ;;  %v5410_v54 = vadd.f32 %v5328_v10, %v4997_v48  ;;  %v5619_v35 = vrot.slane %v5469_v28, 2  ;;  %v5621_v34 = vrot.slane %v5470_v42, 2  ;;  %v15024_v20 = vld [vmem:[#allocation126_spill] sm:$0xff] }
 0x498   : > { %v5411_v44 = vadd.f32 %v5331_v36, %v4998_v1  ;;  %v5622_v4 = vrot.slane %v5471_v37, 2  ;;  %v5763_v2 = vmul.f32 %v14652_v24, %v15017_v58  ;;  %v5910_v12 = vrot.slane %v5760_v9, 2 }
 0x499   : > { %v5620_v3 = vsel %vm5259_vm8, %v5618_v38, %v5619_v35  ;;  %v5911_v59 = vrot.slane %v5761_v57, 2  ;;  %v6052_v63 = vmul.f32 %v14618_v55, %v14990_v56  ;;  %v6053_v27 = vmul.f32 %v14618_v55, %v14982_v5  ;;  %v15026_v57 = vld [vmem:[#allocation39_spill] sm:$0xff]  ;;  %v12796_v56 = vld [vmem:[#allocation2 + $0x194] sm:$0x1] }
 0x49a   : > { %v5623_v40 = vsel %vm5259_vm8, %v5621_v34, %v5622_v4  ;;  %v5702_v48 = vadd.f32 %v5620_v3, %v5410_v54  ;;  %v5914_v6 = vrot.slane %v5763_v2, 2  ;;  %v6054_v1 = vmul.f32 %v14618_v55, %v14992_v16  ;;  %v15027_v34 = vld [vmem:[#allocation41_spill] sm:$0xff]  ;;  %v15028_v2 = vld [vmem:[#allocation43_spill] sm:$0xff] }
 0x49b   : > { %v5703_v23 = vadd.f32 %v5623_v40, %v5411_v44  ;;  %v5912_v58 = vsel %vm5259_vm8, %v5910_v12, %v5911_v59  ;;  %v6055_v15 = vmul.f32 %v14618_v55, %v14983_v17  ;;  %v6202_v49 = vrot.slane %v6052_v63, 2  ;;  %v15054_v5 = vld [vmem:[#allocation27_spill] sm:$0xff] }
 0x49c   : > { %v15025_v28 = vrot.slane %v15024_v20, 2  ;;  %v5994_v42 = vadd.f32 %v5912_v58, %v5702_v48  ;;  %v6203_v37 = vrot.slane %v6053_v27, 2  ;;  %v6205_v10 = vrot.slane %v6054_v1, 2  ;;  %v15029_v58 = vld [vmem:[#allocation33_spill] sm:$0xff] }
 0x49d   : > { %v6206_v9 = vrot.slane %v6055_v15, 2  ;;  %v6344_v36 = vmul.f32 %v15026_v57, %v14992_v16  ;;  %v6345_v54 = vmul.f32 %v15026_v57, %v14983_v17  ;;  %v6346_v44 = vmul.f32 %v15026_v57, %v15027_v34 }
 0x49e   : > { %v5915_v45 = vsel %vm5259_vm8, %v15025_v28, %v5914_v6  ;;  %v6204_v35 = vsel %vm5259_vm8, %v6202_v49, %v6203_v37  ;;  %v6347_v4 = vmul.f32 %v15026_v57, %v15018_v8  ;;  %v6636_v12 = vmul.f32 %v15028_v2, %v15027_v34 }
 0x49f   : > { %v5995_v38 = vadd.f32 %v5915_v45, %v5703_v23  ;;  %v6207_v3 = vsel %vm5259_vm8, %v6205_v10, %v6206_v9  ;;  %v6286_v59 = vadd.f32 %v6204_v35, %v5994_v42  ;;  %v6494_v63 = vrot.slane %v6344_v36, 2  ;;  %v15031_v35 = vld [vmem:[#allocation11_spill] sm:$0xff] }
 0x4a0   : > { %v6495_v27 = vrot.slane %v6345_v54, 2  ;;  %v6497_v48 = vrot.slane %v6346_v44, 2  ;;  %v6498_v6 = vrot.slane %v6347_v4, 2  ;;  %v6637_v1 = vmul.f32 %v15028_v2, %v15018_v8  ;;  %v15032_v44 = vld [vmem:[#allocation28_spill] sm:$0xff] }
 0x4a1   : > { %v6287_v40 = vadd.f32 %v6207_v3, %v5995_v38  ;;  %v6638_v15 = vmul.f32 %v15028_v2, %v15029_v58  ;;  %v6639_v49 = vmul.f32 %v15028_v2, %v15019_v22  ;;  %v12716_v20 = vmul.f32 %v15028_v2, %v5116_v53 }
 0x4a2   : > { %v6496_v23 = vsel %vm5259_vm8, %v6494_v63, %v6495_v27  ;;  %v6499_v28 = vsel %vm5259_vm8, %v6497_v48, %v6498_v6  ;;  %v6786_v42 = vrot.slane %v6636_v12, 2  ;;  %v6787_v37 = vrot.slane %v6637_v1, 2  ;;  %v15033_v63 = vld [vmem:[#allocation62_spill] sm:$0xff]  ;;  %v15034_v48 = vld [vmem:[#allocation45_spill] sm:$0xff] }
 0x4a3   : > { %15030 = vst [vmem:[#allocation15_spill] sm:$0xff] %v12716_v20  ;;  %v6578_v45 = vadd.f32 %v6496_v23, %v6286_v59  ;;  %v6579_v10 = vadd.f32 %v6499_v28, %v6287_v40  ;;  %v6789_v38 = vrot.slane %v6638_v15, 2  ;;  %v6790_v9 = vrot.slane %v6639_v49, 2 }
 0x4a4   : > { %v6788_v54 = vsel %vm5259_vm8, %v6786_v42, %v6787_v37  ;;  %v6928_v4 = vmul.f32 %v15032_v44, %v15031_v35  ;;  %v6929_v3 = vmul.f32 %v15032_v44, %v14984_v30  ;;  %v6930_v27 = vmul.f32 %v15032_v44, %v15033_v63 }
 0x4a5   : > { %v6791_v59 = vsel %vm5259_vm8, %v6789_v38, %v6790_v9  ;;  %v6870_v12 = vadd.f32 %v6788_v54, %v6578_v45  ;;  %v6931_v40 = vmul.f32 %v15032_v44, %v14985_v0  ;;  %v7220_v6 = vmul.f32 %v15034_v48, %v15033_v63  ;;  %v15035_v9 = vld [vmem:[#allocation30_spill] sm:$0xff] }
 0x4a6   : > { %v6871_v1 = vadd.f32 %v6791_v59, %v6579_v10  ;;  %v7078_v23 = vrot.slane %v6928_v4, 2  ;;  %v7079_v58 = vrot.slane %v6929_v3, 2  ;;  %v7081_v15 = vrot.slane %v6930_v27, 2  ;;  %v12743_v4 = vld [vmem:[#allocation2 + $0x190] ss:$8 sps:$4 sm:$0xff]  }
 0x4a7   : > { %v7082_v49 = vrot.slane %v6931_v40, 2  ;;  %v7221_v28 = vmul.f32 %v15034_v48, %v14985_v0  ;;  %v7222_v42 = vmul.f32 %v15034_v48, %v12651_v25  ;;  %v7223_v45 = vmul.f32 %v15034_v48, %v15021_v52  ;;  %v2309_v0 = vld [vmem:[#allocation2 + $0x19c] sm:$0x1] }
 0x4a8   : > { %v7080_v37 = vsel %vm5259_vm8, %v7078_v23, %v7079_v58  ;;  %v7370_v38 = vrot.slane %v7220_v6, 2  ;;  %v7512_v54 = vmul.f32 %v15035_v9, %v12651_v25  ;;  %v7513_v10 = vmul.f32 %v15035_v9, %v15021_v52  ;;  %v1578_v58 = vld [vmem:[#allocation2 + $0x1a0] ss:$8 sps:$4 sm:$0xff]  }
 0x4a9   : > { %v7083_v3 = vsel %vm5259_vm8, %v7081_v15, %v7082_v49  ;;  %v7162_v27 = vadd.f32 %v7080_v37, %v6870_v12  ;;  %v7371_v59 = vrot.slane %v7221_v28, 2  ;;  %v7373_v40 = vrot.slane %v7222_v42, 2 }
 0x4aa   : > { %v7163_v36 = vadd.f32 %v7083_v3, %v6871_v1  ;;  %v7374_v14 = vrot.slane %v7223_v45, 2  ;;  %v7514_v23 = vmul.f32 %v15035_v9, %v5116_v53  ;;  %v7515_v6 = vmul.f32 %v15035_v9, %v12553_v11  ;;  %v15046_v11 = vld [vmem:[#allocation111_spill] sm:$0xff] }
 0x4ab   : > { %v7372_v20 = vsel %vm5259_vm8, %v7370_v38, %v7371_v59  ;;  %v7662_v25 = vrot.slane %v7512_v54, 2  ;;  %v7663_v34 = vrot.slane %v7513_v10, 2  ;;  %v12756_v53 = vunpack.c.h.bf16 %v12743_v4  ;;  %v15036_v54 = vld [vmem:[#allocation127_spill] sm:$0xff]  ;;  %v15037_v10 = vld [vmem:[#allocation4_spill] sm:$0xff] }
 0x4ac   : > { %v7375_v12 = vsel %vm5259_vm8, %v7373_v40, %v7374_v14  ;;  %v7454_v15 = vadd.f32 %v7372_v20, %v7162_v27  ;;  %v7665_v49 = vrot.slane %v7514_v23, 2  ;;  %v7666_v1 = vrot.slane %v7515_v6, 2  ;;  %v15038_v20 = vld [vmem:[#allocation89_spill] sm:$0xff]  ;;  %v15041_v40 = vld [vmem:[#allocation44_spill] sm:$0xff]  ;;  %v15042_v6 = vld [vmem:[#allocation6_spill] sm:$0xff] }
 0x4ad   : > { %v7455_v28 = vadd.f32 %v7375_v12, %v7163_v36  ;;  %v7664_v7 = vsel %vm5259_vm8, %v7662_v25, %v7663_v34  ;;  %v12758_v42 = vunpack.c.l.bf16 %v1578_v58  ;;  %v12761_v38 = vunpack.c.h.bf16 %v1578_v58  ;;  %v15039_v36 = vld [vmem:[#allocation5_spill] sm:$0xff]  ;;  %v15040_v34 = vld [vmem:[#allocation94_spill] sm:$0xff] }
 0x4ae   : > { %v7667_v45 = vsel %vm5259_vm8, %v7665_v49, %v7666_v1  ;;  %v7746_v37 = vadd.f32 %v7664_v7, %v7454_v15  ;;  %v1674_v3 = vmul.f32 %v15037_v10, %v15036_v54  ;;  %v1675_v27 = vmul.f32 %v15037_v10, %v15038_v20  ;;  %v15043_v58 = vld [vmem:[#allocation86_spill] sm:$0xff]  ;;  %v15044_v49 = vld [vmem:[#allocation24_spill] sm:$0xff] }
 0x4af   : > { %v7747_v14 = vadd.f32 %v7667_v45, %v7455_v28  ;;  %v1742_v25 = vmul.f32 %v15039_v36, %v15038_v20  ;;  %v1743_v59 = vmul.f32 %v15039_v36, %v15040_v34  ;;  %v1810_v12 = vmul.f32 %v15042_v6, %v15040_v34  ;;  %v15045_v1 = vld [vmem:[#allocation18_spill] sm:$0xff] }
 0x4b0   : > { %v7785_v23 = vadd.f32 %v15041_v40, %v7746_v37  ;;  %v1811_v15 = vmul.f32 %v15042_v6, %v15043_v58  ;;  %v1878_v28 = vmul.f32 %v15045_v1, %v15044_v49  ;;  %v1879_v52 = vmul.f32 %v15045_v1, %v15046_v11  ;;  %v15047_v37 = vld [vmem:[#allocation19_spill] sm:$0xff] }
 0x4b1   : > { %v7786_v7 = vadd.f32 %v15041_v40, %v7747_v14  ;;  %v1774_v45 = vadd.f32 %v1742_v25, %v1674_v3  ;;  %v1775_v31 = vadd.f32 %v1743_v59, %v1675_v27  ;;  %v1946_v46 = vmul.f32 %v15047_v37, %v15046_v11  ;;  %v15049_v3 = vld [vmem:[#allocation20_spill] sm:$0xff]  ;;  %v15050_v27 = vld [vmem:[#allocation109_spill] sm:$0xff]  ;;  %v15052_v40 = vld [vmem:[#allocation22_spill] sm:$0xff] }
 0x4b2   : > { %v12781_v22 = vmul.f32 0.5, %v7785_v23  ;;  %v7849_v8 = vmul.f32 0.70710677, %v7785_v23  ;;  %v1947_v19 = vmul.f32 %v15047_v37, %v15048_v47  ;;  %v2014_v14 = vmul.f32 %v15049_v3, %v15048_v47 }
 0x4b3   : > { %v12787_v18 = vmul.f32 0.5, %v7786_v7  ;;  %v7850_v63 = vmul.f32 0.70710677, %v7786_v7  ;;  %v1842_v35 = vadd.f32 %v1810_v12, %v1774_v45  ;;  %v1843_v16 = vadd.f32 %v1811_v15, %v1775_v31  ;;  %v2311_v12 = vld [vmem:[#allocation2 + $0x1ac] sm:$0x1]  ;;  %v15053_v15 = vld [vmem:[#allocation23_spill] sm:$0xff] }
 0x4b4   : > { %8863 = verf.f32 %v7849_v8  ;;  %v2015_v25 = vmul.f32 %v15049_v3, %v15050_v27  ;;  %v15051_v59 = vunpack.c.l.bf16 %v12743_v4  ;;  %v2083_v31 = vmul.f32 %v15052_v40, %v12756_v53  ;;  %v2310_v8 = vld [vmem:[#allocation2 + $0x1a4] sm:$0x1] }
 0x4b5   : > { %8865 = verf.f32 %v7850_v63  ;;  %v1910_v30 = vadd.f32 %v1878_v28, %v1842_v35  ;;  %v1911_v17 = vadd.f32 %v1879_v52, %v1843_v16  ;;  %v2150_v7 = vmul.f32 %v15053_v15, %v12756_v53 }
 0x4b6   : > { %v2082_v23 = vmul.f32 %v15052_v40, %v15051_v59  ;;  %v2151_v45 = vmul.f32 %v15053_v15, %v12758_v42  ;;  %v2218_v59 = vmul.f32 %v15054_v5, %v12758_v42  ;;  %v2219_v33 = vmul.f32 %v15054_v5, %v12761_v38  ;;  %v15056_v15 = vld [vmem:[#allocation50_spill] sm:$0xff] }
 0x4b7   : > { %v1978_v63 = vadd.f32 %v1946_v46, %v1910_v30  ;;  %v1979_v35 = vadd.f32 %v1947_v19, %v1911_v17  ;;  %v12809_v52 = vunpack.c.l.bf16 %v2309_v0  ;;  %v12811_v28 = vunpack.c.l.bf16 %v2310_v8  ;;  %v15057_v17 = vld [vmem:[#allocation90_spill] sm:$0xff] }
 0x4b8   : > { %v12813_v13 = vunpack.c.l.bf16 %v2311_v12  ;;  %v2430_v32 = vmul.f32 %v15055_v41, %v15036_v54  ;;  %v2431_v40 = vmul.f32 %v15055_v41, %v15056_v15  ;;  %v2432_v30 = vmul.f32 %v15055_v41, %v15038_v20 }
 0x4b9   : > { %v2046_v3 = vadd.f32 %v2014_v14, %v1978_v63  ;;  %v2047_v37 = vadd.f32 %v2015_v25, %v1979_v35  ;;  %v2433_v46 = vmul.f32 %v15055_v41, %v15057_v17  ;;  %v2723_v8 = vmul.f32 %v14858_v62, %v15038_v20  ;;  %v15058_v63 = vld [vmem:[#allocation96_spill] sm:$0xff] }
 0x4ba   : > { %v2583_v0 = vrot.slane %v2430_v32, 1  ;;  %v2584_v19 = vrot.slane %v2431_v40, 1  ;;  %v2724_v12 = vmul.f32 %v14858_v62, %v15057_v17  ;;  %v2586_v5 = vrot.slane %v2432_v30, 1 }
 0x4bb   : > { %v2114_v54 = vadd.f32 %v2082_v23, %v2046_v3  ;;  %v2115_v16 = vadd.f32 %v2083_v31, %v2047_v37  ;;  %v2587_v1 = vrot.slane %v2433_v46, 1  ;;  %v2725_v25 = vmul.f32 %v14858_v62, %v15040_v34 }
 0x4bc   : > { %v2585_v14 = vsel %vm2510_vm1, %v2583_v0, %v2584_v19  ;;  %v2726_v35 = vmul.f32 %v14858_v62, %v15058_v63  ;;  %v2875_v32 = vrot.slane %v2723_v8, 1  ;;  %v2876_v6 = vrot.slane %v2724_v12, 1 }
 0x4bd   : > { %v2182_v40 = vadd.f32 %v2150_v7, %v2114_v54  ;;  %v2183_v41 = vadd.f32 %v2151_v45, %v2115_v16  ;;  %v2588_v20 = vsel %vm2510_vm1, %v2586_v5, %v2587_v1  ;;  %v2878_v10 = vrot.slane %v2725_v25, 1  ;;  %v15059_v1 = vld [vmem:[#allocation88_spill] sm:$0xff] }
 0x4be   : > { %v8864_v36 = vpop.eup %8863  ;;  %v2879_v3 = vrot.slane %v2726_v35, 1  ;;  %v3015_v37 = vmul.f32 %v14860_v21, %v15040_v34  ;;  %v3016_v23 = vmul.f32 %v14860_v21, %v15058_v63  ;;  %v2877_v19 = vsel %vm2510_vm1, %v2875_v32, %v2876_v6 }
 0x4bf   : > { %v8866_v31 = vpop.eup %8865  ;;  %v7913_v30 = vadd.f32 1.0, %v8864_v36  ;;  %v2250_v46 = vadd.f32 %v2218_v59, %v2182_v40  ;;  %v2251_v0 = vadd.f32 %v2219_v33, %v2183_v41  ;;  %v3017_v5 = vmul.f32 %v14860_v21, %v15043_v58 }
 0x4c0   : > { %v7914_v7 = vadd.f32 1.0, %v8866_v31  ;;  %v2880_v45 = vsel %vm2510_vm1, %v2878_v10, %v2879_v3  ;;  %v3018_v16 = vmul.f32 %v14860_v21, %v15059_v1  ;;  %v3167_v25 = vrot.slane %v3015_v37, 1 }
 0x4c1   : > { %v7945_v8 = vmul.f32 %v7913_v30, %v12781_v22  ;;  %v2663_v12 = vadd.f32 %v2585_v14, %v2250_v46  ;;  %v2664_v54 = vadd.f32 %v2588_v20, %v2251_v0  ;;  %v3168_v59 = vrot.slane %v3016_v23, 1  ;;  %v15060_v14 = vld [vmem:[#allocation112_spill] sm:$0xff] }
 0x4c2   : > { %v7946_v36 = vmul.f32 %v7914_v7, %v12787_v18  ;;  %v3170_v33 = vrot.slane %v3017_v5, 1  ;;  %v3171_v41 = vrot.slane %v3018_v16, 1  ;;  %v3307_v10 = vmul.f32 %v14790_v60, %v15044_v49  ;;  %v15063_v5 = vld [vmem:[#allocation116_spill] sm:$0xff] }
 0x4c3   : > { %v2955_v6 = vadd.f32 %v2877_v19, %v2663_v12  ;;  %v2956_v35 = vadd.f32 %v2880_v45, %v2664_v54  ;;  %v3309_v32 = vmul.f32 %v14790_v60, %v15046_v11  ;;  %v3169_v3 = vsel %vm2510_vm1, %v3167_v25, %v3168_v59  ;;  %v15061_v19 = vld [vmem:[#allocation29_spill] sm:$0xff] }
 0x4c4   : > { %v7966_v40 = vpack.c.bf16 %v7946_v36, %v7945_v8  ;;  %v3172_v22 = vsel %vm2510_vm1, %v3170_v33, %v3171_v41  ;;  %v3310_v20 = vmul.f32 %v14790_v60, %v15060_v14  ;;  %v3459_v23 = vrot.slane %v3307_v10, 1  ;;  %v15064_v10 = vld [vmem:[#allocation110_spill] sm:$0xff] }
 0x4c5   : > { %v3247_v18 = vadd.f32 %v3169_v3, %v2955_v6  ;;  %v3248_v37 = vadd.f32 %v3172_v22, %v2956_v35  ;;  %v3462_v31 = vrot.slane %v3309_v32, 1  ;;  %v3599_v49 = vmul.f32 %v9304_v26, %v15046_v11 }
 0x4c6   : > { %8743 = vmatmul.mubr.bf16.gmra.mrb[20].mxu1 %v7966_v40  ;;  %v3463_v30 = vrot.slane %v3310_v20, 1  ;;  %v3600_v46 = vmul.f32 %v9304_v26, %v15060_v14  ;;  %v3601_v0 = vmul.f32 %v9304_v26, %v15048_v47  ;;  %v15062_v7 = vrot.slane %v15061_v19, 1 }
 0x4c7   : > { %v3602_v16 = vmul.f32 %v9304_v26, %v15063_v5  ;;  %v3891_v8 = vmul.f32 %v9308_v29, %v15048_v47  ;;  %v3892_v12 = vmul.f32 %v9308_v29, %v15063_v5  ;;  %v3751_v25 = vrot.slane %v3599_v49, 1 }
 0x4c8   : > { %v3461_v45 = vsel %vm2510_vm1, %v3459_v23, %v15062_v7  ;;  %v3464_v11 = vsel %vm2510_vm1, %v3462_v31, %v3463_v30  ;;  %v3752_v36 = vrot.slane %v3600_v46, 1  ;;  %v3754_v33 = vrot.slane %v3601_v0, 1 }
 0x4c9   : > { %v3539_v54 = vadd.f32 %v3461_v45, %v3247_v18  ;;  %v3540_v59 = vadd.f32 %v3464_v11, %v3248_v37  ;;  %v3755_v41 = vrot.slane %v3602_v16, 1  ;;  %v3893_v6 = vmul.f32 %v9308_v29, %v15050_v27 }
 0x4ca   : > { %v3753_v35 = vsel %vm2510_vm1, %v3751_v25, %v3752_v36  ;;  %v3894_v32 = vmul.f32 %v9308_v29, %v15064_v10  ;;  %v4043_v40 = vrot.slane %v3891_v8, 1  ;;  %v4044_v3 = vrot.slane %v3892_v12, 1 }
 0x4cb   : > { %v3756_v22 = vsel %vm2510_vm1, %v3754_v33, %v3755_v41  ;;  %v3831_v20 = vadd.f32 %v3753_v35, %v3539_v54  ;;  %v4046_v23 = vrot.slane %v3893_v6, 1  ;;  %v15065_v18 = vunpack.c.l.bf16 %v12743_v4 }
 0x4cc   : > { %v3832_v31 = vadd.f32 %v3756_v22, %v3540_v59  ;;  %v4045_v30 = vsel %vm2510_vm1, %v4043_v40, %v4044_v3  ;;  %v4047_v49 = vrot.slane %v3894_v32, 1  ;;  %v15066_v46 = vunpack.c.l.bf16 %v12796_v56  ;;  %v12899_v22 = vld [vmem:[#allocation2 + $0x190] sm:$0xe] }
 0x4cd   : > { %v4183_v37 = vmul.f32 %v9344_v50, %v15065_v18  ;;  %v4123_v19 = vadd.f32 %v4045_v30, %v3831_v20  ;;  %v4185_v7 = vmul.f32 %v9344_v50, %v12756_v53  ;;  %v4186_v45 = vmul.f32 %v9344_v50, %v12809_v52  ;;  %v12901_v20 = vld [vmem:[#allocation2 + $0x198] sm:$0xe]  ;;  %v5059_v30 = vld [vmem:[#allocation2 + $0x1a0] sm:$0xe] }
 0x4ce   : > { %v4184_v0 = vmul.f32 %v9344_v50, %v15066_v46  ;;  %v4048_v4 = vsel %vm2510_vm1, %v4046_v23, %v4047_v49  ;;  %v4475_v12 = vmul.f32 %v14591_v61, %v12756_v53  ;;  %v4476_v11 = vmul.f32 %v14591_v61, %v12809_v52 }
 0x4cf   : > { %v4335_v16 = vrot.slane %v4183_v37, 1  ;;  %v4124_v54 = vadd.f32 %v4048_v4, %v3832_v31  ;;  %v4338_v25 = vrot.slane %v4185_v7, 1  ;;  %v4339_v36 = vrot.slane %v4186_v45, 1  ;;  %v5060_v7 = vld [vmem:[#allocation2 + $0x1a8] sm:$0xe] }
 0x4d0   : > { %v4336_v8 = vrot.slane %v4184_v0, 1  ;;  %v4477_v59 = vmul.f32 %v14591_v61, %v12758_v42  ;;  %v4478_v41 = vmul.f32 %v14591_v61, %v12811_v28  ;;  %v4627_v6 = vrot.slane %v4475_v12, 1 }
 0x4d1   : > { %v4628_v35 = vrot.slane %v4476_v11, 1  ;;  %v4340_v32 = vsel %vm2510_vm1, %v4338_v25, %v4339_v36  ;;  %v4767_v3 = vmul.f32 %v14597_v51, %v12758_v42  ;;  %v4768_v31 = vmul.f32 %v14597_v51, %v12811_v28 }
 0x4d2   : > { %v4337_v33 = vsel %vm2510_vm1, %v4335_v16, %v4336_v8  ;;  %v4630_v53 = vrot.slane %v4477_v59, 1  ;;  %v4416_v23 = vadd.f32 %v4340_v32, %v4124_v54  ;;  %v4631_v37 = vrot.slane %v4478_v41, 1  ;;  %v15069_v41 = vld [vmem:[#allocation48_spill] sm:$0xff] }
 0x4d3   : > { %v4415_v40 = vadd.f32 %v4337_v33, %v4123_v19  ;;  %v4629_v18 = vsel %vm2510_vm1, %v4627_v6, %v4628_v35  ;;  %v4769_v46 = vmul.f32 %v14597_v51, %v12761_v38  ;;  %v4770_v0 = vmul.f32 %v14597_v51, %v12813_v13 }
 0x4d4   : > { %v4919_v19 = vrot.slane %v4767_v3, 1  ;;  %v4632_v45 = vsel %vm2510_vm1, %v4630_v53, %v4631_v37  ;;  %v4920_v16 = vrot.slane %v4768_v31, 1  ;;  %v5117_v4 = vunpack.c.l.bf16 %v12899_v22 }
 0x4d5   : > { %v4707_v49 = vadd.f32 %v4629_v18, %v4415_v40  ;;  %v4708_v12 = vadd.f32 %v4632_v45, %v4416_v23  ;;  %v4922_v11 = vrot.slane %v4769_v46, 1  ;;  %v4923_v54 = vrot.slane %v4770_v0, 1  ;;  %v15071_v0 = vld [vmem:[#allocation108_spill] sm:$0xff] }
 0x4d6   : > { %v12913_v25 = vunpack.c.l.bf16 %v5059_v30  ;;  %v4921_v36 = vsel %vm2510_vm1, %v4919_v19, %v4920_v16  ;;  %v12916_v59 = vunpack.c.l.bf16 %v5060_v7  ;;  %v5180_v33 = vmul.f32 %v14954_v39, %v15056_v15  ;;  %v15070_v15 = vld [vmem:[#allocation95_spill] sm:$0xff] }
 0x4d7   : > { %v5181_v6 = vmul.f32 %v14954_v39, %v15069_v41  ;;  %v4924_v35 = vsel %vm2510_vm1, %v4922_v11, %v4923_v54  ;;  %v4999_v32 = vadd.f32 %v4921_v36, %v4707_v49  ;;  %v5182_v40 = vmul.f32 %v14954_v39, %v15057_v17 }
 0x4d8   : > { %15067 = vst [vmem:[#allocation60_spill] sm:$0xff] %v12913_v25  ;;  %15068 = vst [vmem:[#allocation7_spill] sm:$0xff] %v12916_v59  ;;  %v5472_v53 = vmul.f32 %v14955_v43, %v15069_v41  ;;  %v5000_v3 = vadd.f32 %v4924_v35, %v4708_v12  ;;  %v5333_v23 = vrot.slane %v5180_v33, 2  ;;  %v5473_v37 = vmul.f32 %v14955_v43, %v15057_v17 }
 0x4d9   : > { %v5335_v18 = vrot.slane %v5181_v6, 2  ;;  %v5336_v31 = vrot.slane %v5182_v40, 2  ;;  %v5474_v30 = vmul.f32 %v14955_v43, %v15070_v15  ;;  %v5475_v46 = vmul.f32 %v14955_v43, %v15058_v63  ;;  %v15073_v6 = vld [vmem:[#allocation87_spill] sm:$0xff] }
 0x4da   : > { %v5624_v49 = vrot.slane %v5472_v53, 2  ;;  %v15072_v19 = vrot.slane %v15071_v0, 2  ;;  %v5625_v45 = vrot.slane %v5473_v37, 2  ;;  %v5764_v16 = vmul.f32 %v14652_v24, %v15070_v15 }
 0x4db   : > { %v5765_v12 = vmul.f32 %v14652_v24, %v15058_v63  ;;  %v5337_v17 = vsel %vm5259_vm8, %v5335_v18, %v5336_v31  ;;  %v5627_v54 = vrot.slane %v5474_v30, 2  ;;  %v5628_v36 = vrot.slane %v5475_v46, 2  ;;  %v15075_v30 = vld [vmem:[#allocation31_spill] sm:$0xff] }
 0x4dc   : > { %v5334_v7 = vsel %vm5259_vm8, %v15072_v19, %v5333_v23  ;;  %v5413_v33 = vadd.f32 %v5337_v17, %v5000_v3  ;;  %v5626_v41 = vsel %vm5259_vm8, %v5624_v49, %v5625_v45  ;;  %v5766_v35 = vmul.f32 %v14652_v24, %v15073_v6 }
 0x4dd   : > { %v5412_v11 = vadd.f32 %v5334_v7, %v4999_v32  ;;  %v5767_v40 = vmul.f32 %v14652_v24, %v15059_v1  ;;  %v5629_v53 = vsel %vm5259_vm8, %v5627_v54, %v5628_v36  ;;  %v5916_v37 = vrot.slane %v5764_v16, 2  ;;  %v15074_v32 = vld [vmem:[#allocation38_spill] sm:$0xff] }
 0x4de   : > { %v5917_v0 = vrot.slane %v5765_v12, 2  ;;  %v5705_v19 = vadd.f32 %v5629_v53, %v5413_v33  ;;  %v5919_v8 = vrot.slane %v5766_v35, 2  ;;  %v6057_v31 = vmul.f32 %v14618_v55, %v15074_v32  ;;  %v15076_v33 = vld [vmem:[#allocation52_spill] sm:$0xff]  ;;  %v15077_v35 = vld [vmem:[#allocation53_spill] sm:$0xff] }
 0x4df   : > { %v5704_v23 = vadd.f32 %v5626_v41, %v5412_v11  ;;  %v5920_v18 = vrot.slane %v5767_v40, 2  ;;  %v6058_v46 = vmul.f32 %v14618_v55, %v15075_v30  ;;  %v6059_v49 = vmul.f32 %v14618_v55, %v15060_v14 }
 0x4e0   : > { %v5918_v3 = vsel %vm5259_vm8, %v5916_v37, %v5917_v0  ;;  %v6348_v7 = vmul.f32 %v15026_v57, %v15075_v30  ;;  %v6209_v12 = vrot.slane %v6057_v31, 2  ;;  %v6349_v17 = vmul.f32 %v15026_v57, %v15060_v14 }
 0x4e1   : > { %v5921_v45 = vsel %vm5259_vm8, %v5919_v8, %v5920_v18  ;;  %v5996_v16 = vadd.f32 %v5918_v3, %v5704_v23  ;;  %v6211_v54 = vrot.slane %v6058_v46, 2  ;;  %v6212_v36 = vrot.slane %v6059_v49, 2  ;;  %v15079_v49 = vld [vmem:[#allocation58_spill] sm:$0xff] }
 0x4e2   : > { %v5997_v11 = vadd.f32 %v5921_v45, %v5705_v19  ;;  %v6350_v41 = vmul.f32 %v15026_v57, %v15076_v33  ;;  %v15078_v40 = vrot.slane %v15077_v35, 2  ;;  %v6351_v37 = vmul.f32 %v15026_v57, %v15063_v5 }
 0x4e3   : > { %v6500_v0 = vrot.slane %v6348_v7, 2  ;;  %v6501_v8 = vrot.slane %v6349_v17, 2  ;;  %v6213_v23 = vsel %vm5259_vm8, %v6211_v54, %v6212_v36  ;;  %v6640_v14 = vmul.f32 %v15028_v2, %v15076_v33 }
 0x4e4   : > { %v6210_v53 = vsel %vm5259_vm8, %v15078_v40, %v6209_v12  ;;  %v6503_v32 = vrot.slane %v6350_v41, 2  ;;  %v6289_v19 = vadd.f32 %v6213_v23, %v5997_v11  ;;  %v6504_v3 = vrot.slane %v6351_v37, 2 }
 0x4e5   : > { %v6288_v18 = vadd.f32 %v6210_v53, %v5996_v16  ;;  %v6502_v31 = vsel %vm5259_vm8, %v6500_v0, %v6501_v8  ;;  %v6641_v30 = vmul.f32 %v15028_v2, %v15063_v5  ;;  %v6642_v45 = vmul.f32 %v15028_v2, %v15079_v49 }
 0x4e6   : > { %v6643_v7 = vmul.f32 %v15028_v2, %v15064_v10  ;;  %v6792_v12 = vrot.slane %v6640_v14, 2  ;;  %v6505_v16 = vsel %vm5259_vm8, %v6503_v32, %v6504_v3  ;;  %v6932_v11 = vmul.f32 %v15032_v44, %v5117_v4 }
 0x4e7   : > { %v6580_v46 = vadd.f32 %v6502_v31, %v6288_v18  ;;  %v6793_v17 = vrot.slane %v6641_v30, 2  ;;  %v15080_v54 = vunpack.c.l.bf16 %v12796_v56  ;;  %v6581_v41 = vadd.f32 %v6505_v16, %v6289_v19 }
 0x4e8   : > { %v6795_v35 = vrot.slane %v6642_v45, 2  ;;  %v6796_v40 = vrot.slane %v6643_v7, 2  ;;  %v15081_v53 = vunpack.c.l.bf16 %v12901_v20  ;;  %v6935_v8 = vmul.f32 %v15032_v44, %v12809_v52 }
 0x4e9   : > { %v6933_v36 = vmul.f32 %v15032_v44, %v15080_v54  ;;  %v6794_v0 = vsel %vm5259_vm8, %v6792_v12, %v6793_v17  ;;  %v7084_v23 = vrot.slane %v6932_v11, 2  ;;  %v7225_v30 = vmul.f32 %v15034_v48, %v12809_v52  ;;  %v1580_v54 = vld [vmem:[#allocation2 + $0x1b0] ss:$8 sps:$4 sm:$0xff]  }
 0x4ea   : > { %v6934_v37 = vmul.f32 %v15032_v44, %v15081_v53  ;;  %v6797_v4 = vsel %vm5259_vm8, %v6795_v35, %v6796_v40  ;;  %v6872_v18 = vadd.f32 %v6794_v0, %v6580_v46  ;;  %v15082_v32 = vmov %v15081_v53 }
 0x4eb   : > { %v7085_v22 = vrot.slane %v6933_v36, 2  ;;  %v7224_v14 = vmul.f32 %v15034_v48, %v15082_v32  ;;  %v6873_v19 = vadd.f32 %v6797_v4, %v6581_v41  ;;  %v7088_v3 = vrot.slane %v6935_v8, 2 }
 0x4ec   : > { %v7087_v56 = vrot.slane %v6934_v37, 2  ;;  %v7226_v7 = vmul.f32 %v15034_v48, %v12913_v25  ;;  %v7227_v12 = vmul.f32 %v15034_v48, %v12811_v28  ;;  %v7377_v20 = vrot.slane %v7225_v30, 2 }
 0x4ed   : > { %v7086_v31 = vsel %vm5259_vm8, %v7084_v23, %v7085_v22  ;;  %v7376_v46 = vrot.slane %v7224_v14, 2  ;;  %v7516_v17 = vmul.f32 %v15035_v9, %v12913_v25  ;;  %v7517_v11 = vmul.f32 %v15035_v9, %v12811_v28  ;;  %v15098_v25 = vld [vmem:[#allocation91_spill] sm:$0xff] }
 0x4ee   : > { %v7164_v45 = vadd.f32 %v7086_v31, %v6872_v18  ;;  %v7089_v16 = vsel %vm5259_vm8, %v7087_v56, %v7088_v3  ;;  %v7379_v52 = vrot.slane %v7226_v7, 2  ;;  %v7380_v41 = vrot.slane %v7227_v12, 2  ;;  %v15083_v31 = vld [vmem:[#allocation4_spill] sm:$0xff]  ;;  %v15084_v7 = vld [vmem:[#allocation5_spill] sm:$0xff] }
 0x4ef   : > { %v7165_v36 = vadd.f32 %v7089_v16, %v6873_v19  ;;  %v7518_v35 = vmul.f32 %v15035_v9, %v12916_v59  ;;  %v7378_v40 = vsel %vm5259_vm8, %v7376_v46, %v7377_v20  ;;  %v7519_v53 = vmul.f32 %v15035_v9, %v12813_v13  ;;  %v15085_v46 = vld [vmem:[#allocation92_spill] sm:$0xff]  ;;  %v15086_v20 = vld [vmem:[#allocation6_spill] sm:$0xff] }
 0x4f0   : > { %v7668_v37 = vrot.slane %v7516_v17, 2  ;;  %v7669_v0 = vrot.slane %v7517_v11, 2  ;;  %v7381_v8 = vsel %vm5259_vm8, %v7379_v52, %v7380_v41  ;;  %v7456_v23 = vadd.f32 %v7378_v40, %v7164_v45  ;;  %v15087_v11 = vld [vmem:[#allocation100_spill] sm:$0xff]  ;;  %v13032_v52 = vld [vmem:[%s13905_s4] ss:$0 sm:$0xff]  ;;  %v15089_v40 = vld [vmem:[#allocation18_spill] sm:$0xff] }
 0x4f1   : > { %v7671_v22 = vrot.slane %v7518_v35, 2  ;;  %v13011_v4 = vunpack.c.l.bf16 %v1580_v54  ;;  %v7457_v18 = vadd.f32 %v7381_v8, %v7165_v36  ;;  %v7672_v32 = vrot.slane %v7519_v53, 2  ;;  %15088 = vst [vmem:[#allocation14_spill] sm:$0xff] %v13032_v52  ;;  %v15090_v8 = vld [vmem:[#allocation19_spill] sm:$0xff] }
 0x4f2   : > { %v7670_v56 = vsel %vm5259_vm8, %v7668_v37, %v7669_v0  ;;  %v13014_v14 = vunpack.c.h.bf16 %v1580_v54  ;;  %v1676_v3 = vmul.f32 %v15083_v31, %v15040_v34  ;;  %v1677_v30 = vmul.f32 %v15083_v31, %v15043_v58  ;;  %v2312_v31 = vld [vmem:[#allocation2 + $0x1b4] sm:$0x1] }
 0x4f3   : > { %v7748_v19 = vadd.f32 %v7670_v56, %v7456_v23  ;;  %v1744_v12 = vmul.f32 %v15084_v7, %v15043_v58  ;;  %v7673_v45 = vsel %vm5259_vm8, %v7671_v22, %v7672_v32  ;;  %v1745_v16 = vmul.f32 %v15084_v7, %v15085_v46  ;;  %v15091_v22 = vld [vmem:[#allocation113_spill] sm:$0xff] }
 0x4f4   : > { %v1812_v17 = vmul.f32 %v15086_v20, %v15085_v46  ;;  %v1813_v54 = vmul.f32 %v15086_v20, %v15087_v11  ;;  %v7749_v36 = vadd.f32 %v7673_v45, %v7457_v18  ;;  %v1880_v53 = vmul.f32 %v15089_v40, %v15048_v47 }
 0x4f5   : > { %v7787_v41 = vadd.f32 %v13032_v52, %v7748_v19  ;;  %v1776_v35 = vadd.f32 %v1744_v12, %v1676_v3  ;;  %v1777_v37 = vadd.f32 %v1745_v16, %v1677_v30  ;;  %v1881_v0 = vmul.f32 %v15089_v40, %v15050_v27  ;;  %v15092_v12 = vld [vmem:[#allocation20_spill] sm:$0xff]  ;;  %v15093_v30 = vld [vmem:[#allocation119_spill] sm:$0xff]  ;;  %v15094_v40 = vld [vmem:[#allocation22_spill] sm:$0xff] }
 0x4f6   : > { %v1948_v23 = vmul.f32 %v15090_v8, %v15050_v27  ;;  %v1949_v18 = vmul.f32 %v15090_v8, %v15091_v22  ;;  %v7788_v56 = vadd.f32 %v13032_v52, %v7749_v36  ;;  %v2016_v20 = vmul.f32 %v15092_v12, %v15091_v22  ;;  %v2313_v52 = vld [vmem:[#allocation2 + $0x1bc] sm:$0x1] }
 0x4f7   : > { %v13044_v32 = vmul.f32 0.5, %v7787_v41  ;;  %v7851_v45 = vmul.f32 0.70710677, %v7787_v41  ;;  %v1844_v19 = vadd.f32 %v1812_v17, %v1776_v35  ;;  %v1845_v3 = vadd.f32 %v1813_v54, %v1777_v37  ;;  %v15095_v54 = vld [vmem:[#allocation23_spill] sm:$0xff] }
 0x4f8   : > { %v2017_v16 = vmul.f32 %v15092_v12, %v15093_v30  ;;  %v2084_v7 = vmul.f32 %v15094_v40, %v12758_v42  ;;  %v13052_v9 = vmul.f32 0.5, %v7788_v56  ;;  %v7852_v8 = vmul.f32 0.70710677, %v7788_v56  ;;  %v15096_v12 = vld [vmem:[#allocation27_spill] sm:$0xff] }
 0x4f9   : > { %8867 = verf.f32 %v7851_v45  ;;  %v1912_v36 = vadd.f32 %v1880_v53, %v1844_v19  ;;  %v1913_v48 = vadd.f32 %v1881_v0, %v1845_v3  ;;  %v2085_v17 = vmul.f32 %v15094_v40, %v12761_v38  ;;  %v15097_v19 = vld [vmem:[#allocation12_spill] sm:$0xff] }
 0x4fa   : > { %v2152_v41 = vmul.f32 %v15095_v54, %v12761_v38  ;;  %v2153_v35 = vmul.f32 %v15095_v54, %v13011_v4  ;;  %8869 = verf.f32 %v7852_v8  ;;  %v2220_v59 = vmul.f32 %v15096_v12, %v13011_v4 }
 0x4fb   : > { %v1980_v37 = vadd.f32 %v1948_v23, %v1912_v36  ;;  %v2221_v56 = vmul.f32 %v15096_v12, %v13014_v14  ;;  %v1981_v53 = vadd.f32 %v1949_v18, %v1913_v48  ;;  %v13064_v45 = vunpack.c.l.bf16 %v2312_v31 }
 0x4fc   : > { %v13066_v0 = vunpack.c.l.bf16 %v2313_v52  ;;  %v2434_v3 = vmul.f32 %v15097_v19, %v15040_v34  ;;  %v2435_v54 = vmul.f32 %v15097_v19, %v15058_v63  ;;  %v2436_v8 = vmul.f32 %v15097_v19, %v15043_v58 }
 0x4fd   : > { %v2048_v40 = vadd.f32 %v2016_v20, %v1980_v37  ;;  %v2437_v23 = vmul.f32 %v15097_v19, %v15059_v1  ;;  %v2049_v36 = vadd.f32 %v2017_v16, %v1981_v53  ;;  %v2727_v48 = vmul.f32 %v14858_v62, %v15043_v58 }
 0x4fe   : > { %v2589_v12 = vrot.slane %v2434_v3, 1  ;;  %v2728_v31 = vmul.f32 %v14858_v62, %v15059_v1  ;;  %v2590_v34 = vrot.slane %v2435_v54, 1  ;;  %v2592_v20 = vrot.slane %v2436_v8, 1 }
 0x4ff   : > { %v2116_v52 = vadd.f32 %v2084_v7, %v2048_v40  ;;  %v2593_v18 = vrot.slane %v2437_v23, 1  ;;  %v2117_v37 = vadd.f32 %v2085_v17, %v2049_v36  ;;  %v2729_v44 = vmul.f32 %v14858_v62, %v15085_v46 }
 0x500   : > { %v2730_v2 = vmul.f32 %v14858_v62, %v15098_v25  ;;  %v2881_v19 = vrot.slane %v2727_v48, 1  ;;  %v2591_v53 = vsel %vm2510_vm1, %v2589_v12, %v2590_v34  ;;  %v2882_v3 = vrot.slane %v2728_v31, 1 }
 0x501   : > { %v2184_v16 = vadd.f32 %v2152_v41, %v2116_v52  ;;  %v2594_v58 = vsel %vm2510_vm1, %v2592_v20, %v2593_v18  ;;  %v2185_v57 = vadd.f32 %v2153_v35, %v2117_v37  ;;  %v2884_v49 = vrot.slane %v2729_v44, 1  ;;  %v15099_v35 = vld [vmem:[#allocation102_spill] sm:$0xff] }
 0x502   : > { %v2885_v7 = vrot.slane %v2730_v2, 1  ;;  %v3019_v40 = vmul.f32 %v14860_v21, %v15085_v46  ;;  %v2883_v8 = vsel %vm2510_vm1, %v2881_v19, %v2882_v3  ;;  %v3020_v23 = vmul.f32 %v14860_v21, %v15098_v25 }
 0x503   : > { %v8868_v17 = vpop.eup %8867  ;;  %v2252_v54 = vadd.f32 %v2220_v59, %v2184_v16  ;;  %v3021_v41 = vmul.f32 %v14860_v21, %v15087_v11  ;;  %v2253_v36 = vadd.f32 %v2221_v56, %v2185_v57  ;;  %v3022_v2 = vmul.f32 %v14860_v21, %v15099_v35 }
 0x504   : > { %v7915_v12 = vadd.f32 1.0, %v8868_v17  ;;  %v2886_v48 = vsel %vm2510_vm1, %v2884_v49, %v2885_v7  ;;  %v8870_v44 = vpop.eup %8869  ;;  %v3173_v52 = vrot.slane %v3019_v40, 1  ;;  %v3174_v34 = vrot.slane %v3020_v23, 1 }
 0x505   : > { %v2665_v31 = vadd.f32 %v2591_v53, %v2252_v54  ;;  %v3176_v59 = vrot.slane %v3021_v41, 1  ;;  %v7916_v20 = vadd.f32 1.0, %v8870_v44  ;;  %v2666_v18 = vadd.f32 %v2594_v58, %v2253_v36  ;;  %v15100_v44 = vld [vmem:[#allocation114_spill] sm:$0xff] }
 0x506   : > { %v7947_v19 = vmul.f32 %v7915_v12, %v13044_v32  ;;  %v3177_v37 = vrot.slane %v3022_v2, 1  ;;  %v3175_v3 = vsel %vm2510_vm1, %v3173_v52, %v3174_v34  ;;  %v3311_v57 = vmul.f32 %v14790_v60, %v15048_v47 }
 0x507   : > { %v2957_v16 = vadd.f32 %v2883_v8, %v2665_v31  ;;  %v3312_v49 = vmul.f32 %v14790_v60, %v15063_v5  ;;  %v7948_v56 = vmul.f32 %v7916_v20, %v13052_v9  ;;  %v2958_v53 = vadd.f32 %v2886_v48, %v2666_v18 }
 0x508   : > { %v3178_v7 = vsel %vm2510_vm1, %v3176_v59, %v3177_v37  ;;  %v3313_v40 = vmul.f32 %v14790_v60, %v15050_v27  ;;  %v3314_v58 = vmul.f32 %v14790_v60, %v15064_v10  ;;  %v3465_v17 = vrot.slane %v3311_v57, 1 }
 0x509   : > { %v3249_v32 = vadd.f32 %v3175_v3, %v2957_v16  ;;  %v3466_v54 = vrot.slane %v3312_v49, 1  ;;  %v7967_v8 = vpack.c.bf16 %v7948_v56, %v7947_v19  ;;  %v3250_v23 = vadd.f32 %v3178_v7, %v2958_v53  ;;  %v15101_v3 = vld [vmem:[#allocation120_spill] sm:$0xff] }
 0x50a   : > { %v3468_v47 = vrot.slane %v3313_v40, 1  ;;  %v3603_v41 = vmul.f32 %v9304_v26, %v15050_v27  ;;  %v3469_v12 = vrot.slane %v3314_v58, 1  ;;  %v3604_v36 = vmul.f32 %v9304_v26, %v15064_v10 }
 0x50b   : > { %v3467_v9 = vsel %vm2510_vm1, %v3465_v17, %v3466_v54  ;;  %v3605_v48 = vmul.f32 %v9304_v26, %v15091_v22  ;;  %8746 = vmatprep.mubr.bf16.mxu1 %v7967_v8  ;;  %v3606_v31 = vmul.f32 %v9304_v26, %v15100_v44  ;;  %v3895_v34 = vmul.f32 %v9308_v29, %v15091_v22 }
 0x50c   : > { %v3541_v2 = vadd.f32 %v3467_v9, %v3249_v32  ;;  %v3757_v52 = vrot.slane %v3603_v41, 1  ;;  %v3470_v27 = vsel %vm2510_vm1, %v3468_v47, %v3469_v12  ;;  %v3758_v59 = vrot.slane %v3604_v36, 1 }
 0x50d   : > { %v3760_v20 = vrot.slane %v3605_v48, 1  ;;  %v3896_v19 = vmul.f32 %v9308_v29, %v15100_v44  ;;  %v3542_v18 = vadd.f32 %v3470_v27, %v3250_v23  ;;  %v3761_v37 = vrot.slane %v3606_v31, 1 }
 0x50e   : > { %v3897_v16 = vmul.f32 %v9308_v29, %v15093_v30  ;;  %v3898_v57 = vmul.f32 %v9308_v29, %v15101_v3  ;;  %v3759_v49 = vsel %vm2510_vm1, %v3757_v52, %v3758_v59  ;;  %v4049_v56 = vrot.slane %v3895_v34, 1 }
 0x50f   : > { %v4050_v53 = vrot.slane %v3896_v19, 1  ;;  %v4187_v7 = vmul.f32 %v9344_v50, %v12758_v42  ;;  %v3762_v40 = vsel %vm2510_vm1, %v3760_v20, %v3761_v37  ;;  %v3833_v32 = vadd.f32 %v3759_v49, %v3541_v2 }
 0x510   : > { %v4052_v58 = vrot.slane %v3897_v16, 1  ;;  %v4053_v17 = vrot.slane %v3898_v57, 1  ;;  %v3834_v54 = vadd.f32 %v3762_v40, %v3542_v18  ;;  %v4188_v23 = vmul.f32 %v9344_v50, %v12811_v28 }
 0x511   : > { %v4051_v8 = vsel %vm2510_vm1, %v4049_v56, %v4050_v53  ;;  %v4189_v47 = vmul.f32 %v9344_v50, %v12761_v38  ;;  %v4190_v42 = vmul.f32 %v9344_v50, %v12813_v13  ;;  %v4341_v12 = vrot.slane %v4187_v7, 1 }
 0x512   : > { %v4054_v41 = vsel %vm2510_vm1, %v4052_v58, %v4053_v17  ;;  %v4125_v9 = vadd.f32 %v4051_v8, %v3833_v32  ;;  %v4342_v48 = vrot.slane %v4188_v23, 1  ;;  %v4479_v31 = vmul.f32 %v14591_v61, %v12761_v38  ;;  %v5061_v38 = vld [vmem:[#allocation2 + $0x1b0] sm:$0xe]  ;;  %v5062_v58 = vld [vmem:[#allocation2 + $0x1b8] sm:$0xe] }
 0x513   : > { %v4126_v36 = vadd.f32 %v4054_v41, %v3834_v54  ;;  %v4344_v2 = vrot.slane %v4189_v47, 1  ;;  %v4345_v52 = vrot.slane %v4190_v42, 1  ;;  %v4480_v34 = vmul.f32 %v14591_v61, %v12813_v13 }
 0x514   : > { %v4481_v27 = vmul.f32 %v14591_v61, %v13011_v4  ;;  %v4482_v59 = vmul.f32 %v14591_v61, %v13064_v45  ;;  %v4343_v20 = vsel %vm2510_vm1, %v4341_v12, %v4342_v48  ;;  %v4633_v19 = vrot.slane %v4479_v31, 1 }
 0x515   : > { %v4771_v18 = vmul.f32 %v14597_v51, %v13011_v4  ;;  %v4772_v37 = vmul.f32 %v14597_v51, %v13064_v45  ;;  %v4346_v16 = vsel %vm2510_vm1, %v4344_v2, %v4345_v52  ;;  %v4417_v57 = vadd.f32 %v4343_v20, %v4125_v9 }
 0x516   : > { %v4634_v49 = vrot.slane %v4480_v34, 1  ;;  %v4636_v56 = vrot.slane %v4481_v27, 1  ;;  %v4418_v53 = vadd.f32 %v4346_v16, %v4126_v36  ;;  %v4637_v7 = vrot.slane %v4482_v59, 1  ;;  %v15104_v16 = vld [vmem:[#allocation93_spill] sm:$0xff] }
 0x517   : > { %v4773_v40 = vmul.f32 %v14597_v51, %v13014_v14  ;;  %v4774_v32 = vmul.f32 %v14597_v51, %v13066_v0  ;;  %v4925_v54 = vrot.slane %v4771_v18, 1  ;;  %v4926_v8 = vrot.slane %v4772_v37, 1 }
 0x518   : > { %v4635_v17 = vsel %vm2510_vm1, %v4633_v19, %v4634_v49  ;;  %v13157_v23 = vunpack.c.l.bf16 %v5061_v38  ;;  %v4638_v47 = vsel %vm2510_vm1, %v4636_v56, %v4637_v7  ;;  %v13161_v48 = vunpack.c.l.bf16 %v5062_v58 }
 0x519   : > { %v4709_v41 = vadd.f32 %v4635_v17, %v4417_v57  ;;  %v4928_v9 = vrot.slane %v4773_v40, 1  ;;  %v4929_v42 = vrot.slane %v4774_v32, 1  ;;  %v4710_v12 = vadd.f32 %v4638_v47, %v4418_v53 }
 0x51a   : > { %15102 = vst [vmem:[#allocation61_spill] sm:$0xff] %v13157_v23  ;;  %v4927_v36 = vsel %vm2510_vm1, %v4925_v54, %v4926_v8  ;;  %15103 = vst [vmem:[#allocation16_spill] sm:$0xff] %v13161_v48  ;;  %v5183_v2 = vmul.f32 %v14954_v39, %v15070_v15  ;;  %v5184_v34 = vmul.f32 %v14954_v39, %v15058_v63  ;;  %v15105_v54 = vld [vmem:[#allocation101_spill] sm:$0xff] }
 0x51b   : > { %v4930_v31 = vsel %vm2510_vm1, %v4928_v9, %v4929_v42  ;;  %v5001_v52 = vadd.f32 %v4927_v36, %v4709_v41  ;;  %v5185_v27 = vmul.f32 %v14954_v39, %v15073_v6  ;;  %v5186_v20 = vmul.f32 %v14954_v39, %v15059_v1 }
 0x51c   : > { %v5002_v59 = vadd.f32 %v4930_v31, %v4710_v12  ;;  %v5338_v19 = vrot.slane %v5183_v2, 2  ;;  %v5476_v18 = vmul.f32 %v14955_v43, %v15073_v6  ;;  %v5339_v37 = vrot.slane %v5184_v34, 2 }
 0x51d   : > { %v5341_v38 = vrot.slane %v5185_v27, 2  ;;  %v5477_v15 = vmul.f32 %v14955_v43, %v15059_v1  ;;  %v5478_v57 = vmul.f32 %v14955_v43, %v15104_v16  ;;  %v5342_v63 = vrot.slane %v5186_v20, 2 }
 0x51e   : > { %v5479_v49 = vmul.f32 %v14955_v43, %v15098_v25  ;;  %v5630_v56 = vrot.slane %v5476_v18, 2  ;;  %v5768_v53 = vmul.f32 %v14652_v24, %v15104_v16  ;;  %v5340_v7 = vsel %vm5259_vm8, %v5338_v19, %v5339_v37  ;;  %v15106_v19 = vld [vmem:[#allocation58_spill] sm:$0xff] }
 0x51f   : > { %v5631_v40 = vrot.slane %v5477_v15, 2  ;;  %v5633_v6 = vrot.slane %v5478_v57, 2  ;;  %v5769_v32 = vmul.f32 %v14652_v24, %v15098_v25  ;;  %v5343_v1 = vsel %vm5259_vm8, %v5341_v38, %v5342_v63  ;;  %v15107_v38 = vld [vmem:[#allocation39_spill] sm:$0xff] }
 0x520   : > { %v5414_v58 = vadd.f32 %v5340_v7, %v5001_v52  ;;  %v5634_v17 = vrot.slane %v5479_v49, 2  ;;  %v5770_v8 = vmul.f32 %v14652_v24, %v15105_v54  ;;  %v5415_v47 = vadd.f32 %v5343_v1, %v5002_v59 }
 0x521   : > { %v5632_v41 = vsel %vm5259_vm8, %v5630_v56, %v5631_v40  ;;  %v5771_v9 = vmul.f32 %v14652_v24, %v15099_v35  ;;  %v5922_v42 = vrot.slane %v5768_v53, 2  ;;  %v5923_v2 = vrot.slane %v5769_v32, 2 }
 0x522   : > { %v5635_v12 = vsel %vm5259_vm8, %v5633_v6, %v5634_v17  ;;  %v5706_v36 = vadd.f32 %v5632_v41, %v5414_v58  ;;  %v5925_v31 = vrot.slane %v5770_v8, 2  ;;  %v6060_v52 = vmul.f32 %v14618_v55, %v15076_v33  ;;  %v15108_v6 = vld [vmem:[#allocation21_spill] sm:$0xff]  ;;  %v15109_v41 = vld [vmem:[#allocation43_spill] sm:$0xff] }
 0x523   : > { %v5707_v34 = vadd.f32 %v5635_v12, %v5415_v47  ;;  %v5926_v27 = vrot.slane %v5771_v9, 2  ;;  %v6061_v20 = vmul.f32 %v14618_v55, %v15063_v5  ;;  %v5924_v59 = vsel %vm5259_vm8, %v5922_v42, %v5923_v2 }
 0x524   : > { %v6062_v18 = vmul.f32 %v14618_v55, %v15106_v19  ;;  %v6063_v37 = vmul.f32 %v14618_v55, %v15064_v10  ;;  %v6352_v15 = vmul.f32 %v15107_v38, %v15106_v19  ;;  %v5998_v63 = vadd.f32 %v5924_v59, %v5706_v36 }
 0x525   : > { %v5927_v57 = vsel %vm5259_vm8, %v5925_v31, %v5926_v27  ;;  %v6214_v49 = vrot.slane %v6060_v52, 2  ;;  %v6215_v56 = vrot.slane %v6061_v20, 2  ;;  %v6353_v5 = vmul.f32 %v15107_v38, %v15064_v10  ;;  %v15110_v31 = vld [vmem:[#allocation9_spill] sm:$0xff] }
 0x526   : > { %v5999_v33 = vadd.f32 %v5927_v57, %v5707_v34  ;;  %v6217_v53 = vrot.slane %v6062_v18, 2  ;;  %v6218_v7 = vrot.slane %v6063_v37, 2  ;;  %v6354_v32 = vmul.f32 %v15107_v38, %v15108_v6  ;;  %v15111_v18 = vld [vmem:[#allocation60_spill] sm:$0xff] }
 0x527   : > { %v6216_v40 = vsel %vm5259_vm8, %v6214_v49, %v6215_v56  ;;  %v6355_v1 = vmul.f32 %v15107_v38, %v15100_v44  ;;  %v6506_v58 = vrot.slane %v6352_v15, 2  ;;  %v6507_v47 = vrot.slane %v6353_v5, 2  ;;  %v15112_v37 = vld [vmem:[#allocation28_spill] sm:$0xff] }
 0x528   : > { %v6219_v17 = vsel %vm5259_vm8, %v6217_v53, %v6218_v7  ;;  %v6290_v8 = vadd.f32 %v6216_v40, %v5998_v63  ;;  %v6644_v9 = vmul.f32 %v15109_v41, %v15108_v6  ;;  %v6509_v12 = vrot.slane %v6354_v32, 2  ;;  %v15113_v53 = vld [vmem:[#allocation7_spill] sm:$0xff] }
 0x529   : > { %v6291_v42 = vadd.f32 %v6219_v17, %v5999_v33  ;;  %v6510_v36 = vrot.slane %v6355_v1, 2  ;;  %v6645_v10 = vmul.f32 %v15109_v41, %v15100_v44  ;;  %v6508_v2 = vsel %vm5259_vm8, %v6506_v58, %v6507_v47  ;;  %v15114_v17 = vld [vmem:[#allocation45_spill] sm:$0xff] }
 0x52a   : > { %v6646_v34 = vmul.f32 %v15109_v41, %v15110_v31  ;;  %v6647_v27 = vmul.f32 %v15109_v41, %v15101_v3  ;;  %v6798_v52 = vrot.slane %v6644_v9, 2  ;;  %v6582_v59 = vadd.f32 %v6508_v2, %v6290_v8 }
 0x52b   : > { %v6511_v20 = vsel %vm5259_vm8, %v6509_v12, %v6510_v36  ;;  %v6799_v19 = vrot.slane %v6645_v10, 2  ;;  %v6936_v15 = vmul.f32 %v15112_v37, %v15111_v18  ;;  %v6937_v56 = vmul.f32 %v15112_v37, %v12811_v28 }
 0x52c   : > { %v6583_v57 = vadd.f32 %v6511_v20, %v6291_v42  ;;  %v6801_v63 = vrot.slane %v6646_v34, 2  ;;  %v6802_v49 = vrot.slane %v6647_v27, 2  ;;  %v6938_v7 = vmul.f32 %v15112_v37, %v15113_v53  ;;  %v15115_v20 = vld [vmem:[#allocation30_spill] sm:$0xff] }
 0x52d   : > { %v6800_v33 = vsel %vm5259_vm8, %v6798_v52, %v6799_v19  ;;  %v6939_v5 = vmul.f32 %v15112_v37, %v12813_v13  ;;  %v7090_v40 = vrot.slane %v6936_v15, 2  ;;  %v7091_v58 = vrot.slane %v6937_v56, 2 }
 0x52e   : > { %v6803_v32 = vsel %vm5259_vm8, %v6801_v63, %v6802_v49  ;;  %v6874_v1 = vadd.f32 %v6800_v33, %v6582_v59  ;;  %v7228_v8 = vmul.f32 %v15114_v17, %v15113_v53  ;;  %v7093_v9 = vrot.slane %v6938_v7, 2 }
 0x52f   : > { %v6875_v47 = vadd.f32 %v6803_v32, %v6583_v57  ;;  %v7094_v42 = vrot.slane %v6939_v5, 2  ;;  %v7229_v28 = vmul.f32 %v15114_v17, %v12813_v13  ;;  %v7092_v12 = vsel %vm5259_vm8, %v7090_v40, %v7091_v58  ;;  %v1582_v57 = vld [vmem:[#allocation2 + $0x1c0] ss:$8 sps:$4 sm:$0xff]  }
 0x530   : > { %v7230_v36 = vmul.f32 %v15114_v17, %v13157_v23  ;;  %v7231_v10 = vmul.f32 %v15114_v17, %v13064_v45  ;;  %v7382_v2 = vrot.slane %v7228_v8, 2  ;;  %v7166_v27 = vadd.f32 %v7092_v12, %v6874_v1  ;;  %v15117_v12 = vld [vmem:[#allocation5_spill] sm:$0xff] }
 0x531   : > { %v7095_v34 = vsel %vm5259_vm8, %v7093_v9, %v7094_v42  ;;  %v7383_v52 = vrot.slane %v7229_v28, 2  ;;  %v7520_v59 = vmul.f32 %v15115_v20, %v13157_v23  ;;  %v7521_v13 = vmul.f32 %v15115_v20, %v13064_v45  ;;  %v15116_v9 = vld [vmem:[#allocation4_spill] sm:$0xff]  ;;  %v15131_v23 = vld [vmem:[#allocation107_spill] sm:$0xff] }
 0x532   : > { %v7167_v19 = vadd.f32 %v7095_v34, %v6875_v47  ;;  %v7385_v18 = vrot.slane %v7230_v36, 2  ;;  %v7386_v15 = vrot.slane %v7231_v10, 2  ;;  %v7522_v49 = vmul.f32 %v15115_v20, %v13161_v48  ;;  %v15118_v34 = vld [vmem:[#allocation105_spill] sm:$0xff] }
 0x533   : > { %v7384_v63 = vsel %vm5259_vm8, %v7382_v2, %v7383_v52  ;;  %v7523_v56 = vmul.f32 %v15115_v20, %v13066_v0  ;;  %v7674_v33 = vrot.slane %v7520_v59, 2  ;;  %v7675_v5 = vrot.slane %v7521_v13, 2  ;;  %v15119_v52 = vld [vmem:[#allocation6_spill] sm:$0xff] }
 0x534   : > { %v7387_v53 = vsel %vm5259_vm8, %v7385_v18, %v7386_v15  ;;  %v7458_v7 = vadd.f32 %v7384_v63, %v7166_v27  ;;  %v13252_v40 = vunpack.c.l.bf16 %v1582_v57  ;;  %v7677_v1 = vrot.slane %v7522_v49, 2  ;;  %v15120_v15 = vld [vmem:[#allocation97_spill] sm:$0xff]  ;;  %v15122_v49 = vld [vmem:[#allocation14_spill] sm:$0xff] }
 0x535   : > { %v7459_v32 = vadd.f32 %v7387_v53, %v7167_v19  ;;  %v7678_v58 = vrot.slane %v7523_v56, 2  ;;  %v13254_v8 = vunpack.c.h.bf16 %v1582_v57  ;;  %v7676_v47 = vsel %vm5259_vm8, %v7674_v33, %v7675_v5  ;;  %v15121_v57 = vld [vmem:[#allocation18_spill] sm:$0xff] }
 0x536   : > { %v1678_v42 = vmul.f32 %v15116_v9, %v15085_v46  ;;  %v1679_v28 = vmul.f32 %v15116_v9, %v15087_v11  ;;  %v1746_v36 = vmul.f32 %v15117_v12, %v15087_v11  ;;  %v7750_v2 = vadd.f32 %v7676_v47, %v7458_v7  ;;  %v15123_v7 = vld [vmem:[#allocation19_spill] sm:$0xff] }
 0x537   : > { %v7679_v10 = vsel %vm5259_vm8, %v7677_v1, %v7678_v58  ;;  %v1747_v27 = vmul.f32 %v15117_v12, %v15118_v34  ;;  %v1814_v59 = vmul.f32 %v15119_v52, %v15118_v34  ;;  %v1815_v13 = vmul.f32 %v15119_v52, %v15120_v15 }
 0x538   : > { %v7751_v19 = vadd.f32 %v7679_v10, %v7459_v32  ;;  %v1778_v18 = vadd.f32 %v1746_v36, %v1678_v42  ;;  %v1882_v63 = vmul.f32 %v15121_v57, %v15091_v22  ;;  %v7789_v56 = vadd.f32 %v15122_v49, %v7750_v2  ;;  %v15124_v32 = vld [vmem:[#allocation123_spill] sm:$0xff]  ;;  %v15125_v42 = vld [vmem:[#allocation20_spill] sm:$0xff] }
 0x539   : > { %v1779_v33 = vadd.f32 %v1747_v27, %v1679_v28  ;;  %v1883_v53 = vmul.f32 %v15121_v57, %v15093_v30  ;;  %v1950_v5 = vmul.f32 %v15123_v7, %v15093_v30  ;;  %v1951_v47 = vmul.f32 %v15123_v7, %v15124_v32  ;;  %v15126_v28 = vld [vmem:[#allocation117_spill] sm:$0xff]  ;;  %v2314_v57 = vld [vmem:[#allocation2 + $0x1c4] sm:$0x1] }
 0x53a   : > { %v7790_v1 = vadd.f32 %v15122_v49, %v7751_v19  ;;  %v1846_v58 = vadd.f32 %v1814_v59, %v1778_v18  ;;  %v2018_v36 = vmul.f32 %v15125_v42, %v15124_v32  ;;  %v13282_v10 = vmul.f32 0.5, %v7789_v56  ;;  %v15127_v59 = vld [vmem:[#allocation22_spill] sm:$0xff]  ;;  %v2315_v18 = vld [vmem:[#allocation2 + $0x1cc] sm:$0x1] }
 0x53b   : > { %v7853_v52 = vmul.f32 0.70710677, %v7789_v56  ;;  %v1847_v2 = vadd.f32 %v1815_v13, %v1779_v33  ;;  %v2019_v27 = vmul.f32 %v15125_v42, %v15126_v28  ;;  %v2086_v19 = vmul.f32 %v15127_v59, %v13011_v4  ;;  %v15128_v56 = vld [vmem:[#allocation23_spill] sm:$0xff] }
 0x53c   : > { %v13286_v12 = vmul.f32 0.5, %v7790_v1  ;;  %v7854_v9 = vmul.f32 0.70710677, %v7790_v1  ;;  %v1914_v20 = vadd.f32 %v1882_v63, %v1846_v58  ;;  %v2087_v7 = vmul.f32 %v15127_v59, %v13014_v14  ;;  %v15129_v1 = vld [vmem:[#allocation27_spill] sm:$0xff]  ;;  %v15130_v59 = vld [vmem:[#allocation12_spill] sm:$0xff] }
 0x53d   : > { %8871 = verf.f32 %v7853_v52  ;;  %v1915_v49 = vadd.f32 %v1883_v53, %v1847_v2  ;;  %v2154_v13 = vmul.f32 %v15128_v56, %v13014_v14  ;;  %v2155_v42 = vmul.f32 %v15128_v56, %v13252_v40 }
 0x53e   : > { %8873 = verf.f32 %v7854_v9  ;;  %v1982_v33 = vadd.f32 %v1950_v5, %v1914_v20  ;;  %v2222_v63 = vmul.f32 %v15129_v1, %v13252_v40  ;;  %v2223_v17 = vmul.f32 %v15129_v1, %v13254_v8 }
 0x53f   : > { %v1983_v58 = vadd.f32 %v1951_v47, %v1915_v49  ;;  %v13300_v52 = vunpack.c.l.bf16 %v2314_v57  ;;  %v13302_v53 = vunpack.c.l.bf16 %v2315_v18  ;;  %v2438_v48 = vmul.f32 %v15130_v59, %v15085_v46 }
 0x540   : > { %v2050_v2 = vadd.f32 %v2018_v36, %v1982_v33  ;;  %v2439_v20 = vmul.f32 %v15130_v59, %v15098_v25  ;;  %v2440_v9 = vmul.f32 %v15130_v59, %v15087_v11  ;;  %v2441_v47 = vmul.f32 %v15130_v59, %v15099_v35 }
 0x541   : > { %v2051_v5 = vadd.f32 %v2019_v27, %v1983_v58  ;;  %v2731_v57 = vmul.f32 %v14858_v62, %v15087_v11  ;;  %v2732_v18 = vmul.f32 %v14858_v62, %v15099_v35  ;;  %v2595_v49 = vrot.slane %v2438_v48, 1 }
 0x542   : > { %v2118_v36 = vadd.f32 %v2086_v19, %v2050_v2  ;;  %v2596_v33 = vrot.slane %v2439_v20, 1  ;;  %v2598_v46 = vrot.slane %v2440_v9, 1  ;;  %v2599_v56 = vrot.slane %v2441_v47, 1 }
 0x543   : > { %v2119_v1 = vadd.f32 %v2087_v7, %v2051_v5  ;;  %v2733_v37 = vmul.f32 %v14858_v62, %v15118_v34  ;;  %v2734_v27 = vmul.f32 %v14858_v62, %v15131_v23  ;;  %v2887_v41 = vrot.slane %v2731_v57, 1 }
 0x544   : > { %v2186_v58 = vadd.f32 %v2154_v13, %v2118_v36  ;;  %v2597_v59 = vsel %vm2510_vm1, %v2595_v49, %v2596_v33  ;;  %v2888_v11 = vrot.slane %v2732_v18, 1  ;;  %v2600_v31 = vsel %vm2510_vm1, %v2598_v46, %v2599_v56 }
 0x545   : > { %v2187_v38 = vadd.f32 %v2155_v42, %v2119_v1  ;;  %v2890_v19 = vrot.slane %v2733_v37, 1  ;;  %v2891_v48 = vrot.slane %v2734_v27, 1  ;;  %v3023_v20 = vmul.f32 %v14860_v21, %v15118_v34  ;;  %v15132_v1 = vld [vmem:[#allocation98_spill] sm:$0xff] }
 0x546   : > { %v2254_v2 = vadd.f32 %v2222_v63, %v2186_v58  ;;  %v2889_v7 = vsel %vm2510_vm1, %v2887_v41, %v2888_v11  ;;  %v3024_v9 = vmul.f32 %v14860_v21, %v15131_v23  ;;  %v3025_v42 = vmul.f32 %v14860_v21, %v15120_v15 }
 0x547   : > { %v8872_v5 = vpop.eup %8871  ;;  %v2255_v13 = vadd.f32 %v2223_v17, %v2187_v38  ;;  %v2892_v47 = vsel %vm2510_vm1, %v2890_v19, %v2891_v48  ;;  %v3026_v37 = vmul.f32 %v14860_v21, %v15132_v1  ;;  %v3179_v41 = vrot.slane %v3023_v20, 1 }
 0x548   : > { %v8874_v56 = vpop.eup %8873  ;;  %v7917_v63 = vadd.f32 1.0, %v8872_v5  ;;  %v2667_v57 = vadd.f32 %v2597_v59, %v2254_v2  ;;  %v3180_v18 = vrot.slane %v3024_v9, 1  ;;  %v3182_v33 = vrot.slane %v3025_v42, 1 }
 0x549   : > { %v7918_v36 = vadd.f32 1.0, %v8874_v56  ;;  %v2668_v49 = vadd.f32 %v2600_v31, %v2255_v13  ;;  %v3183_v46 = vrot.slane %v3026_v37, 1  ;;  %v3315_v58 = vmul.f32 %v14790_v60, %v15091_v22  ;;  %v15133_v56 = vld [vmem:[#allocation124_spill] sm:$0xff] }
 0x54a   : > { %v7949_v27 = vmul.f32 %v7917_v63, %v13282_v10  ;;  %v2959_v38 = vadd.f32 %v2889_v7, %v2667_v57  ;;  %v3181_v17 = vsel %vm2510_vm1, %v3179_v41, %v3180_v18  ;;  %v3316_v59 = vmul.f32 %v14790_v60, %v15100_v44 }
 0x54b   : > { %v7950_v11 = vmul.f32 %v7918_v36, %v13286_v12  ;;  %v2960_v19 = vadd.f32 %v2892_v47, %v2668_v49  ;;  %v3184_v48 = vsel %vm2510_vm1, %v3182_v33, %v3183_v46  ;;  %v3317_v31 = vmul.f32 %v14790_v60, %v15093_v30 }
 0x54c   : > { %v3251_v2 = vadd.f32 %v3181_v17, %v2959_v38  ;;  %v3318_v10 = vmul.f32 %v14790_v60, %v15101_v3  ;;  %v3471_v7 = vrot.slane %v3315_v58, 1  ;;  %v3472_v5 = vrot.slane %v3316_v59, 1  ;;  %v15134_v58 = vld [vmem:[#allocation118_spill] sm:$0xff] }
 0x54d   : > { %v7968_v20 = vpack.c.bf16 %v7950_v11, %v7949_v27  ;;  %v3252_v9 = vadd.f32 %v3184_v48, %v2960_v19  ;;  %v3607_v22 = vmul.f32 %v9304_v26, %v15093_v30  ;;  %v3474_v12 = vrot.slane %v3317_v31, 1 }
 0x54e   : > { %v3475_v13 = vrot.slane %v3318_v10, 1  ;;  %v3608_v47 = vmul.f32 %v9304_v26, %v15101_v3  ;;  %v3609_v42 = vmul.f32 %v9304_v26, %v15124_v32  ;;  %v3473_v37 = vsel %vm2510_vm1, %v3471_v7, %v3472_v5 }
 0x54f   : > { %8747 = vmatmul.mubr.bf16.gmra.mrb[24].mxu1 %v7968_v20  ;;  %v3610_v63 = vmul.f32 %v9304_v26, %v15133_v56  ;;  %v3763_v57 = vrot.slane %v3607_v22, 1  ;;  %v3899_v41 = vmul.f32 %v9308_v29, %v15124_v32  ;;  %v3543_v18 = vadd.f32 %v3473_v37, %v3251_v2 }
 0x550   : > { %v3476_v30 = vsel %vm2510_vm1, %v3474_v12, %v3475_v13  ;;  %v3764_v36 = vrot.slane %v3608_v47, 1  ;;  %v3766_v49 = vrot.slane %v3609_v42, 1  ;;  %v3900_v27 = vmul.f32 %v9308_v29, %v15133_v56  ;;  %v13375_v47 = vpop.f32.mrb[0].mxu1 }
 0x551   : > { %v3544_v33 = vadd.f32 %v3476_v30, %v3252_v9  ;;  %v3767_v46 = vrot.slane %v3610_v63, 1  ;;  %v3901_v38 = vmul.f32 %v9308_v29, %v15126_v28  ;;  %v3902_v11 = vmul.f32 %v9308_v29, %v15134_v58  ;;  %15135 = vst [vmem:[#allocation36_spill] sm:$0xff] %v13375_v47 }
 0x552   : > { %v3765_v17 = vsel %vm2510_vm1, %v3763_v57, %v3764_v36  ;;  %v4055_v19 = vrot.slane %v3899_v41, 1  ;;  %v4191_v48 = vmul.f32 %v9344_v50, %v13011_v4  ;;  %v4056_v31 = vrot.slane %v3900_v27, 1  ;;  %v13378_v41 = vpop.f32.mrb[1].mxu1 }
 0x553   : > { %v3768_v59 = vsel %vm2510_vm1, %v3766_v49, %v3767_v46  ;;  %v3835_v2 = vadd.f32 %v3765_v17, %v3543_v18  ;;  %v4058_v10 = vrot.slane %v3901_v38, 1  ;;  %v4059_v20 = vrot.slane %v3902_v11, 1  ;;  %15136 = vst [vmem:[#allocation3_spill] sm:$0xff] %v13378_v41  ;;  %v5063_v17 = vld [vmem:[#allocation2 + $0x1c0] sm:$0xe] }
 0x554   : > { %v3836_v7 = vadd.f32 %v3768_v59, %v3544_v33  ;;  %v4192_v9 = vmul.f32 %v9344_v50, %v13064_v45  ;;  %v4193_v5 = vmul.f32 %v9344_v50, %v13014_v14  ;;  %v4057_v22 = vsel %vm2510_vm1, %v4055_v19, %v4056_v31  ;;  %v13384_v33 = vpop.f32.mrb[2].mxu1  ;;  %v2316_v41 = vld [vmem:[#allocation2 + $0x1d4] sm:$0x1] }
 0x555   : > { %v4194_v12 = vmul.f32 %v9344_v50, %v13066_v0  ;;  %v4347_v13 = vrot.slane %v4191_v48, 1  ;;  %v4483_v4 = vmul.f32 %v14591_v61, %v13014_v14  ;;  %v4060_v42 = vsel %vm2510_vm1, %v4058_v10, %v4059_v20  ;;  %15137 = vst [vmem:[#allocation10_spill] sm:$0xff] %v13384_v33  ;;  %v13391_v11 = vpop.f32.mrb[3].mxu1 }
 0x556   : > { %v4127_v37 = vadd.f32 %v4057_v22, %v3835_v2  ;;  %v4348_v63 = vrot.slane %v4192_v9, 1  ;;  %v4350_v57 = vrot.slane %v4193_v5, 1  ;;  %v4128_v30 = vadd.f32 %v4060_v42, %v3836_v7  ;;  %15138 = vst [vmem:[#allocation8_spill] sm:$0xff] %v13391_v11  ;;  %v13394_v31 = vpop.f32.mrb[4].mxu1  ;;  %v5064_v5 = vld [vmem:[#allocation2 + $0x1c8] sm:$0xe] }
 0x557   : > { %v4351_v18 = vrot.slane %v4194_v12, 1  ;;  %v4484_v36 = vmul.f32 %v14591_v61, %v13066_v0  ;;  %v4485_v49 = vmul.f32 %v14591_v61, %v13252_v40  ;;  %v4486_v46 = vmul.f32 %v14591_v61, %v13300_v52  ;;  %15139 = vst [vmem:[#allocation125_spill] sm:$0xff] %v13394_v31  ;;  %v13400_v22 = vpop.f32.mrb[5].mxu1  ;;  %v15174_v31 = vld [vmem:[#allocation18_spill] sm:$0xff] }
 0x558   : > { %v4349_v14 = vsel %vm2510_vm1, %v4347_v13, %v4348_v63  ;;  %v4639_v27 = vrot.slane %v4483_v4, 1  ;;  %v4775_v38 = vmul.f32 %v14597_v51, %v13252_v40  ;;  %v4776_v20 = vmul.f32 %v14597_v51, %v13300_v52  ;;  %15140 = vst [vmem:[#allocation35_spill] sm:$0xff] %v13400_v22 }
 0x559   : > { %v4352_v19 = vsel %vm2510_vm1, %v4350_v57, %v4351_v18  ;;  %v4419_v48 = vadd.f32 %v4349_v14, %v4127_v37  ;;  %v4640_v59 = vrot.slane %v4484_v36, 1  ;;  %v4642_v2 = vrot.slane %v4485_v49, 1  ;;  %v13407_v37 = vpop.f32.mrb[6].mxu1 }
 0x55a   : > { %v4420_v10 = vadd.f32 %v4352_v19, %v4128_v30  ;;  %v4643_v7 = vrot.slane %v4486_v46, 1  ;;  %v4777_v9 = vmul.f32 %v14597_v51, %v13254_v8  ;;  %v4778_v13 = vmul.f32 %v14597_v51, %v13302_v53  ;;  %15142 = vst [vmem:[#allocation67_spill] sm:$0xff] %v13407_v37  ;;  %v13410_v36 = vpop.f32.mrb[7].mxu1 }
 0x55b   : > { %v4641_v12 = vsel %vm2510_vm1, %v4639_v27, %v4640_v59  ;;  %v4931_v4 = vrot.slane %v4775_v38, 1  ;;  %v13405_v42 = vunpack.c.l.bf16 %v5063_v17  ;;  %v4932_v30 = vrot.slane %v4776_v20, 1  ;;  %15143 = vst [vmem:[#allocation72_spill] sm:$0xff] %v13410_v36  ;;  %v13416_v19 = vpop.f32.mrb[8].mxu1  ;;  %v15166_v36 = vld [vmem:[#allocation16_spill] sm:$0xff] }
 0x55c   : > { %v4644_v63 = vsel %vm2510_vm1, %v4642_v2, %v4643_v7  ;;  %v4711_v57 = vadd.f32 %v4641_v12, %v4419_v48  ;;  %v4934_v18 = vrot.slane %v4777_v9, 1  ;;  %v4935_v14 = vrot.slane %v4778_v13, 1  ;;  %15145 = vst [vmem:[#allocation55_spill] sm:$0xff] %v13416_v19  ;;  %v13425_v2 = vpop.f32.mrb[9].mxu1 }
 0x55d   : > { %15141 = vst [vmem:[#allocation17_spill] sm:$0xff] %v13405_v42  ;;  %v4712_v49 = vadd.f32 %v4644_v63, %v4420_v10  ;;  %v13412_v46 = vunpack.c.l.bf16 %v5064_v5  ;;  %v5187_v27 = vmul.f32 %v14954_v39, %v15104_v16  ;;  %v4933_v38 = vsel %vm2510_vm1, %v4931_v4, %v4932_v30  ;;  %15146 = vst [vmem:[#allocation37_spill] sm:$0xff] %v13425_v2  ;;  %v13430_v9 = vpop.f32.mrb[10].mxu1  ;;  %v15149_v30 = vld [vmem:[#allocation106_spill] sm:$0xff] }
 0x55e   : > { %v5188_v17 = vmul.f32 %v14954_v39, %v15098_v25  ;;  %v5189_v48 = vmul.f32 %v14954_v39, %v15105_v54  ;;  %v5190_v59 = vmul.f32 %v14954_v39, %v15099_v35  ;;  %v4936_v10 = vsel %vm2510_vm1, %v4934_v18, %v4935_v14  ;;  %15147 = vst [vmem:[#allocation68_spill] sm:$0xff] %v13430_v9  ;;  %v13432_v4 = vpop.f32.mrb[11].mxu1 }
 0x55f   : > { %15144 = vst [vmem:[#allocation64_spill] sm:$0xff] %v13412_v46  ;;  %v5003_v7 = vadd.f32 %v4933_v38, %v4711_v57  ;;  %v5344_v20 = vrot.slane %v5187_v27, 2  ;;  %v5480_v16 = vmul.f32 %v14955_v43, %v15105_v54  ;;  %v5004_v5 = vadd.f32 %v4936_v10, %v4712_v49  ;;  %15148 = vst [vmem:[#allocation73_spill] sm:$0xff] %v13432_v4  ;;  %v13440_v14 = vpop.f32.mrb[12].mxu1 }
 0x560   : > { %v5345_v12 = vrot.slane %v5188_v17, 2  ;;  %v5347_v25 = vrot.slane %v5189_v48, 2  ;;  %v5348_v13 = vrot.slane %v5190_v59, 2  ;;  %v5481_v63 = vmul.f32 %v14955_v43, %v15099_v35  ;;  %15150 = vst [vmem:[#allocation65_spill] sm:$0xff] %v13440_v14  ;;  %v13448_v35 = vpop.f32.mrb[13].mxu1  ;;  %v15153_v14 = vld [vmem:[#allocation99_spill] sm:$0xff] }
 0x561   : > { %v5482_v2 = vmul.f32 %v14955_v43, %v15149_v30  ;;  %v5483_v57 = vmul.f32 %v14955_v43, %v15131_v23  ;;  %v5636_v18 = vrot.slane %v5480_v16, 2  ;;  %v5772_v27 = vmul.f32 %v14652_v24, %v15149_v30  ;;  %15151 = vst [vmem:[#allocation25_spill] sm:$0xff] %v13448_v35  ;;  %v13450_v4 = vpop.f32.mrb[14].mxu1 }
 0x562   : > { %v5346_v54 = vsel %vm5259_vm8, %v5344_v20, %v5345_v12  ;;  %v5349_v49 = vsel %vm5259_vm8, %v5347_v25, %v5348_v13  ;;  %v5773_v38 = vmul.f32 %v14652_v24, %v15131_v23  ;;  %v5637_v59 = vrot.slane %v5481_v63, 2  ;;  %15152 = vst [vmem:[#allocation26_spill] sm:$0xff] %v13450_v4  ;;  %v13456_v13 = vpop.f32.mrb[15].mxu1 }
 0x563   : > { %v5416_v17 = vadd.f32 %v5346_v54, %v5003_v7  ;;  %v5417_v48 = vadd.f32 %v5349_v49, %v5004_v5  ;;  %v5639_v10 = vrot.slane %v5482_v2, 2  ;;  %v5640_v16 = vrot.slane %v5483_v57, 2  ;;  %15154 = vst [vmem:[#allocation66_spill] sm:$0xff] %v13456_v13  ;;  %v13463_v5 = vpop.f32.mrb[16].mxu1 }
 0x564   : > { %v5774_v20 = vmul.f32 %v14652_v24, %v15153_v14  ;;  %v5775_v12 = vmul.f32 %v14652_v24, %v15132_v1  ;;  %v5928_v25 = vrot.slane %v5772_v27, 2  ;;  %v5638_v9 = vsel %vm5259_vm8, %v5636_v18, %v5637_v59  ;;  %15155 = vst [vmem:[#allocation54_spill] sm:$0xff] %v13463_v5  ;;  %v13466_v4 = vpop.f32.mrb[17].mxu1  ;;  %v15157_v18 = vld [vmem:[#allocation9_spill] sm:$0xff] }
 0x565   : > { %v5929_v19 = vrot.slane %v5773_v38, 2  ;;  %v6064_v7 = vmul.f32 %v14618_v55, %v15108_v6  ;;  %v6065_v2 = vmul.f32 %v14618_v55, %v15100_v44  ;;  %v5641_v63 = vsel %vm5259_vm8, %v5639_v10, %v5640_v16  ;;  %15156 = vst [vmem:[#allocation69_spill] sm:$0xff] %v13466_v4  ;;  %v13473_v59 = vpop.f32.mrb[18].mxu1  ;;  %v15161_v4 = vld [vmem:[#allocation11_spill] sm:$0xff] }
 0x566   : > { %v5708_v57 = vadd.f32 %v5638_v9, %v5416_v17  ;;  %v5931_v54 = vrot.slane %v5774_v20, 2  ;;  %v5932_v49 = vrot.slane %v5775_v12, 2  ;;  %v5709_v27 = vadd.f32 %v5641_v63, %v5417_v48  ;;  %15158 = vst [vmem:[#allocation78_spill] sm:$0xff] %v13473_v59  ;;  %v13476_v17 = vpop.f32.mrb[19].mxu1 }
 0x567   : > { %v5930_v13 = vsel %vm5259_vm8, %v5928_v25, %v5929_v19  ;;  %v6066_v38 = vmul.f32 %v14618_v55, %v15157_v18  ;;  %v6067_v6 = vmul.f32 %v14618_v55, %v15101_v3  ;;  %v6220_v10 = vrot.slane %v6064_v7, 2  ;;  %15159 = vst [vmem:[#allocation70_spill] sm:$0xff] %v13476_v17  ;;  %v15160_v19 = vld [vmem:[#allocation39_spill] sm:$0xff] }
 0x568   : > { %v5933_v44 = vsel %vm5259_vm8, %v5931_v54, %v5932_v49  ;;  %v6000_v5 = vadd.f32 %v5930_v13, %v5708_v57  ;;  %v6221_v9 = vrot.slane %v6065_v2, 2  ;;  %v6356_v12 = vmul.f32 %v15160_v19, %v15157_v18  ;;  %v15162_v54 = vld [vmem:[#allocation43_spill] sm:$0xff] }
 0x569   : > { %v6001_v16 = vadd.f32 %v5933_v44, %v5709_v27  ;;  %v6223_v20 = vrot.slane %v6066_v38, 2  ;;  %v6224_v48 = vrot.slane %v6067_v6, 2  ;;  %v6357_v63 = vmul.f32 %v15160_v19, %v15101_v3  ;;  %v15163_v44 = vld [vmem:[#allocation62_spill] sm:$0xff] }
 0x56a   : > { %v6222_v25 = vsel %vm5259_vm8, %v6220_v10, %v6221_v9  ;;  %v6358_v59 = vmul.f32 %v15160_v19, %v15161_v4  ;;  %v6359_v13 = vmul.f32 %v15160_v19, %v15133_v56  ;;  %v6512_v57 = vrot.slane %v6356_v12, 2  ;;  %v15165_v12 = vld [vmem:[#allocation28_spill] sm:$0xff] }
 0x56b   : > { %v6225_v7 = vsel %vm5259_vm8, %v6223_v20, %v6224_v48  ;;  %v6292_v2 = vadd.f32 %v6222_v25, %v6000_v5  ;;  %v6648_v49 = vmul.f32 %v15162_v54, %v15161_v4  ;;  %v6513_v18 = vrot.slane %v6357_v63, 2  ;;  %v15164_v48 = vld [vmem:[#allocation61_spill] sm:$0xff] }
 0x56c   : > { %v6293_v27 = vadd.f32 %v6225_v7, %v6001_v16  ;;  %v6515_v38 = vrot.slane %v6358_v59, 2  ;;  %v6516_v6 = vrot.slane %v6359_v13, 2  ;;  %v6649_v3 = vmul.f32 %v15162_v54, %v15133_v56 }
 0x56d   : > { %v6650_v10 = vmul.f32 %v15162_v54, %v15163_v44  ;;  %v6651_v9 = vmul.f32 %v15162_v54, %v15134_v58  ;;  %v6804_v17 = vrot.slane %v6648_v49, 2  ;;  %v6514_v5 = vsel %vm5259_vm8, %v6512_v57, %v6513_v18 }
 0x56e   : > { %v6517_v20 = vsel %vm5259_vm8, %v6515_v38, %v6516_v6  ;;  %v6940_v16 = vmul.f32 %v15165_v12, %v15164_v48  ;;  %v6941_v59 = vmul.f32 %v15165_v12, %v13064_v45  ;;  %v6584_v25 = vadd.f32 %v6514_v5, %v6292_v2  ;;  %v15167_v6 = vld [vmem:[#allocation45_spill] sm:$0xff] }
 0x56f   : > { %v6585_v63 = vadd.f32 %v6517_v20, %v6293_v27  ;;  %v6805_v13 = vrot.slane %v6649_v3, 2  ;;  %v6807_v7 = vrot.slane %v6650_v10, 2  ;;  %v6808_v35 = vrot.slane %v6651_v9, 2 }
 0x570   : > { %v6942_v37 = vmul.f32 %v15165_v12, %v15166_v36  ;;  %v6943_v49 = vmul.f32 %v15165_v12, %v13066_v0  ;;  %v7096_v57 = vrot.slane %v6940_v16, 2  ;;  %v7097_v38 = vrot.slane %v6941_v59, 2 }
 0x571   : > { %v6806_v18 = vsel %vm5259_vm8, %v6804_v17, %v6805_v13  ;;  %v7232_v48 = vmul.f32 %v15167_v6, %v15166_v36  ;;  %v7233_v45 = vmul.f32 %v15167_v6, %v13066_v0  ;;  %v6809_v2 = vsel %vm5259_vm8, %v6807_v7, %v6808_v35  ;;  %v13518_v0 = vld [vmem:[#allocation2 + $0x1d0] ss:$8 sps:$4 sm:$0xff]  }
 0x572   : > { %v6876_v27 = vadd.f32 %v6806_v18, %v6584_v25  ;;  %v7099_v3 = vrot.slane %v6942_v37, 2  ;;  %v7100_v10 = vrot.slane %v6943_v49, 2  ;;  %v6877_v9 = vadd.f32 %v6809_v2, %v6585_v63  ;;  %v15168_v63 = vld [vmem:[#allocation30_spill] sm:$0xff] }
 0x573   : > { %v7098_v5 = vsel %vm5259_vm8, %v7096_v57, %v7097_v38  ;;  %v7234_v20 = vmul.f32 %v15167_v6, %v13405_v42  ;;  %v7235_v17 = vmul.f32 %v15167_v6, %v13300_v52  ;;  %v7388_v59 = vrot.slane %v7232_v48, 2  ;;  %v15182_v6 = vld [vmem:[#allocation27_spill] sm:$0xff] }
 0x574   : > { %v7101_v16 = vsel %vm5259_vm8, %v7099_v3, %v7100_v10  ;;  %v7168_v36 = vadd.f32 %v7098_v5, %v6876_v27  ;;  %v7389_v13 = vrot.slane %v7233_v45, 2  ;;  %v7524_v7 = vmul.f32 %v15168_v63, %v13405_v42 }
 0x575   : > { %v7169_v35 = vadd.f32 %v7101_v16, %v6877_v9  ;;  %v7391_v25 = vrot.slane %v7234_v20, 2  ;;  %v7392_v37 = vrot.slane %v7235_v17, 2  ;;  %v7525_v57 = vmul.f32 %v15168_v63, %v13300_v52  ;;  %v15169_v17 = vld [vmem:[#allocation4_spill] sm:$0xff]  ;;  %v15173_v20 = vld [vmem:[#allocation51_spill] sm:$0xff] }
 0x576   : > { %v7390_v49 = vsel %vm5259_vm8, %v7388_v59, %v7389_v13  ;;  %v7526_v18 = vmul.f32 %v15168_v63, %v13412_v46  ;;  %v7527_v38 = vmul.f32 %v15168_v63, %v13302_v53  ;;  %v7680_v2 = vrot.slane %v7524_v7, 2  ;;  %v15170_v13 = vld [vmem:[#allocation5_spill] sm:$0xff]  ;;  %v15171_v7 = vld [vmem:[#allocation103_spill] sm:$0xff]  ;;  %v13577_v63 = vld [vmem:[#allocation2 + $0x1dc] sm:$0x1] }
 0x577   : > { %v7393_v48 = vsel %vm5259_vm8, %v7391_v25, %v7392_v37  ;;  %v7460_v45 = vadd.f32 %v7390_v49, %v7168_v36  ;;  %v13531_v27 = vunpack.c.l.bf16 %v13518_v0  ;;  %v7681_v10 = vrot.slane %v7525_v57, 2  ;;  %v15172_v49 = vld [vmem:[#allocation6_spill] sm:$0xff] }
 0x578   : > { %v7461_v3 = vadd.f32 %v7393_v48, %v7169_v35  ;;  %v7683_v9 = vrot.slane %v7526_v18, 2  ;;  %v7684_v5 = vrot.slane %v7527_v38, 2  ;;  %v1680_v16 = vmul.f32 %v15169_v17, %v15118_v34 }
 0x579   : > { %v1681_v59 = vmul.f32 %v15169_v17, %v15120_v15  ;;  %v1748_v25 = vmul.f32 %v15170_v13, %v15120_v15  ;;  %v7682_v36 = vsel %vm5259_vm8, %v7680_v2, %v7681_v10  ;;  %v1749_v35 = vmul.f32 %v15170_v13, %v15171_v7  ;;  %v15175_v10 = vld [vmem:[#allocation19_spill] sm:$0xff] }
 0x57a   : > { %v7685_v37 = vsel %vm5259_vm8, %v7683_v9, %v7684_v5  ;;  %v1816_v57 = vmul.f32 %v15172_v49, %v15171_v7  ;;  %v7752_v18 = vadd.f32 %v7682_v36, %v7460_v45  ;;  %v1817_v22 = vmul.f32 %v15172_v49, %v15173_v20  ;;  %v13557_v5 = vld [vmem:[%s13905_s4] ss:$0 sm:$0xff]  ;;  %v15178_v36 = vld [vmem:[#allocation20_spill] sm:$0xff]  ;;  %v15180_v49 = vld [vmem:[#allocation22_spill] sm:$0xff] }
 0x57b   : > { %v7753_v38 = vadd.f32 %v7685_v37, %v7461_v3  ;;  %v1780_v48 = vadd.f32 %v1748_v25, %v1680_v16  ;;  %v1781_v17 = vadd.f32 %v1749_v35, %v1681_v59  ;;  %v1884_v11 = vmul.f32 %v15174_v31, %v15124_v32  ;;  %15176 = vst [vmem:[#allocation80_spill] sm:$0xff] %v13557_v5  ;;  %v15177_v59 = vld [vmem:[#allocation121_spill] sm:$0xff]  ;;  %v15179_v37 = vld [vmem:[#allocation56_spill] sm:$0xff] }
 0x57c   : > { %v1885_v2 = vmul.f32 %v15174_v31, %v15126_v28  ;;  %v1952_v9 = vmul.f32 %v15175_v10, %v15126_v28  ;;  %v7791_v45 = vadd.f32 %v13557_v5, %v7752_v18  ;;  %v1953_v13 = vmul.f32 %v15175_v10, %v15177_v59 }
 0x57d   : > { %v7792_v3 = vadd.f32 %v13557_v5, %v7753_v38  ;;  %v1848_v16 = vadd.f32 %v1816_v57, %v1780_v48  ;;  %v1849_v25 = vadd.f32 %v1817_v22, %v1781_v17  ;;  %v2020_v31 = vmul.f32 %v15178_v36, %v15177_v59  ;;  %v15181_v17 = vld [vmem:[#allocation23_spill] sm:$0xff] }
 0x57e   : > { %v2021_v35 = vmul.f32 %v15178_v36, %v15179_v37  ;;  %v2088_v33 = vmul.f32 %v15180_v49, %v13252_v40  ;;  %v13569_v47 = vmul.f32 0.5, %v7791_v45  ;;  %v7855_v38 = vmul.f32 0.70710677, %v7791_v45 }
 0x57f   : > { %v13571_v18 = vmul.f32 0.5, %v7792_v3  ;;  %v7856_v57 = vmul.f32 0.70710677, %v7792_v3  ;;  %v1916_v48 = vadd.f32 %v1884_v11, %v1848_v16  ;;  %v1917_v5 = vadd.f32 %v1885_v2, %v1849_v25 }
 0x580   : > { %v2089_v22 = vmul.f32 %v15180_v49, %v13254_v8  ;;  %v2156_v10 = vmul.f32 %v15181_v17, %v13254_v8  ;;  %8875 = verf.f32 %v7855_v38  ;;  %v2157_v36 = vmul.f32 %v15181_v17, %v13531_v27  ;;  %v15184_v49 = vld [vmem:[#allocation12_spill] sm:$0xff] }
 0x581   : > { %v2224_v46 = vmul.f32 %v15182_v6, %v13531_v27  ;;  %v15183_v45 = vunpack.c.h.bf16 %v13518_v0  ;;  %8877 = verf.f32 %v7856_v57  ;;  %v1984_v2 = vadd.f32 %v1952_v9, %v1916_v48 }
 0x582   : > { %v1985_v3 = vadd.f32 %v1953_v13, %v1917_v5  ;;  %v13586_v16 = vunpack.c.l.bf16 %v2316_v41  ;;  %v2442_v38 = vmul.f32 %v15184_v49, %v15118_v34  ;;  %v2443_v17 = vmul.f32 %v15184_v49, %v15131_v23 }
 0x583   : > { %v2225_v11 = vmul.f32 %v15182_v6, %v15183_v45  ;;  %v2444_v12 = vmul.f32 %v15184_v49, %v15120_v15  ;;  %v2052_v42 = vadd.f32 %v2020_v31, %v1984_v2  ;;  %v2445_v6 = vmul.f32 %v15184_v49, %v15132_v1 }
 0x584   : > { %v2053_v54 = vadd.f32 %v2021_v35, %v1985_v3  ;;  %v2735_v41 = vmul.f32 %v14858_v62, %v15120_v15  ;;  %v2601_v9 = vrot.slane %v2442_v38, 1  ;;  %v2602_v5 = vrot.slane %v2443_v17, 1  ;;  %v15185_v35 = vld [vmem:[#allocation104_spill] sm:$0xff] }
 0x585   : > { %v2604_v13 = vrot.slane %v2444_v12, 1  ;;  %v2736_v34 = vmul.f32 %v14858_v62, %v15132_v1  ;;  %v2120_v57 = vadd.f32 %v2088_v33, %v2052_v42  ;;  %v2605_v45 = vrot.slane %v2445_v6, 1 }
 0x586   : > { %v2121_v48 = vadd.f32 %v2089_v22, %v2053_v54  ;;  %v2737_v25 = vmul.f32 %v14858_v62, %v15171_v7  ;;  %v2603_v31 = vsel %vm2510_vm1, %v2601_v9, %v2602_v5  ;;  %v2738_v2 = vmul.f32 %v14858_v62, %v15185_v35 }
 0x587   : > { %v2893_v3 = vrot.slane %v2735_v41, 1  ;;  %v2894_v49 = vrot.slane %v2736_v34, 1  ;;  %v2188_v15 = vadd.f32 %v2156_v10, %v2120_v57  ;;  %v2606_v12 = vsel %vm2510_vm1, %v2604_v13, %v2605_v45  ;;  %v15186_v41 = vld [vmem:[#allocation49_spill] sm:$0xff] }
 0x588   : > { %v2189_v38 = vadd.f32 %v2157_v36, %v2121_v48  ;;  %v2896_v17 = vrot.slane %v2737_v25, 1  ;;  %v2897_v33 = vrot.slane %v2738_v2, 1  ;;  %v3027_v42 = vmul.f32 %v14860_v21, %v15171_v7 }
 0x589   : > { %v2895_v19 = vsel %vm2510_vm1, %v2893_v3, %v2894_v49  ;;  %v3028_v54 = vmul.f32 %v14860_v21, %v15185_v35  ;;  %v2256_v22 = vadd.f32 %v2224_v46, %v2188_v15  ;;  %v3029_v62 = vmul.f32 %v14860_v21, %v15173_v20 }
 0x58a   : > { %v2257_v6 = vadd.f32 %v2225_v11, %v2189_v38  ;;  %v3030_v10 = vmul.f32 %v14860_v21, %v15186_v41  ;;  %v8876_v36 = vpop.eup %8875  ;;  %v2898_v25 = vsel %vm2510_vm1, %v2896_v17, %v2897_v33  ;;  %v3185_v9 = vrot.slane %v3027_v42, 1 }
 0x58b   : > { %v3186_v5 = vrot.slane %v3028_v54, 1  ;;  %v3319_v13 = vmul.f32 %v14790_v60, %v15124_v32  ;;  %v8878_v7 = vpop.eup %8877  ;;  %v7919_v34 = vadd.f32 1.0, %v8876_v36  ;;  %v2669_v57 = vadd.f32 %v2603_v31, %v2256_v22 }
 0x58c   : > { %v2670_v48 = vadd.f32 %v2606_v12, %v2257_v6  ;;  %v3188_v46 = vrot.slane %v3029_v62, 1  ;;  %v7920_v11 = vadd.f32 1.0, %v8878_v7  ;;  %v3189_v20 = vrot.slane %v3030_v10, 1  ;;  %v15187_v10 = vld [vmem:[#allocation122_spill] sm:$0xff] }
 0x58d   : > { %v3187_v45 = vsel %vm2510_vm1, %v3185_v9, %v3186_v5  ;;  %v3320_v21 = vmul.f32 %v14790_v60, %v15133_v56  ;;  %v7951_v2 = vmul.f32 %v7919_v34, %v13569_v47  ;;  %v2961_v3 = vadd.f32 %v2895_v19, %v2669_v57 }
 0x58e   : > { %v2962_v49 = vadd.f32 %v2898_v25, %v2670_v48  ;;  %v3321_v15 = vmul.f32 %v14790_v60, %v15126_v28  ;;  %v7952_v32 = vmul.f32 %v7920_v11, %v13571_v18  ;;  %v3190_v31 = vsel %vm2510_vm1, %v3188_v46, %v3189_v20 }
 0x58f   : > { %v3322_v38 = vmul.f32 %v14790_v60, %v15134_v58  ;;  %v3477_v12 = vrot.slane %v3319_v13, 1  ;;  %v3253_v17 = vadd.f32 %v3187_v45, %v2961_v3  ;;  %v3478_v42 = vrot.slane %v3320_v21, 1 }
 0x590   : > { %v3254_v33 = vadd.f32 %v3190_v31, %v2962_v49  ;;  %v3480_v54 = vrot.slane %v3321_v15, 1  ;;  %v7969_v22 = vpack.c.bf16 %v7952_v32, %v7951_v2  ;;  %v3611_v47 = vmul.f32 %v9304_v26, %v15126_v28  ;;  %v15188_v31 = vld [vmem:[#allocation57_spill] sm:$0xff] }
 0x591   : > { %v3481_v6 = vrot.slane %v3322_v38, 1  ;;  %v3612_v19 = vmul.f32 %v9304_v26, %v15134_v58  ;;  %v3479_v18 = vsel %vm2510_vm1, %v3477_v12, %v3478_v42  ;;  %v3613_v62 = vmul.f32 %v9304_v26, %v15177_v59 }
 0x592   : > { %v3614_v60 = vmul.f32 %v9304_v26, %v15187_v10  ;;  %v3903_v36 = vmul.f32 %v9308_v29, %v15177_v59  ;;  %8750 = vmatprep.mubr.bf16.mxu1 %v7969_v22  ;;  %v3545_v9 = vadd.f32 %v3479_v18, %v3253_v17  ;;  %v3769_v5 = vrot.slane %v3611_v47, 1 }
 0x593   : > { %v3482_v25 = vsel %vm2510_vm1, %v3480_v54, %v3481_v6  ;;  %v3770_v28 = vrot.slane %v3612_v19, 1  ;;  %v3772_v7 = vrot.slane %v3613_v62, 1  ;;  %v3904_v57 = vmul.f32 %v9308_v29, %v15187_v10  ;;  %v13669_v62 = vld [vmem:[#allocation2 + $0x1d0] sm:$0xe] }
 0x594   : > { %v3546_v13 = vadd.f32 %v3482_v25, %v3254_v33  ;;  %v3773_v34 = vrot.slane %v3614_v60, 1  ;;  %v3905_v26 = vmul.f32 %v9308_v29, %v15179_v37  ;;  %v4061_v46 = vrot.slane %v3903_v36, 1  ;;  %v13671_v60 = vld [vmem:[#allocation2 + $0x1d8] sm:$0xe] }
 0x595   : > { %v3771_v48 = vsel %vm2510_vm1, %v3769_v5, %v3770_v28  ;;  %v4195_v59 = vmul.f32 %v9344_v50, %v13252_v40  ;;  %v4062_v20 = vrot.slane %v3904_v57, 1  ;;  %v4196_v21 = vmul.f32 %v9344_v50, %v13300_v52 }
 0x596   : > { %v3774_v11 = vsel %vm2510_vm1, %v3772_v7, %v3773_v34  ;;  %v3837_v45 = vadd.f32 %v3771_v48, %v3545_v9  ;;  %v4064_v3 = vrot.slane %v3905_v26, 1  ;;  %v4197_v49 = vmul.f32 %v9344_v50, %v13254_v8 }
 0x597   : > { %v3838_v2 = vadd.f32 %v3774_v11, %v3546_v13  ;;  %v4198_v15 = vmul.f32 %v9344_v50, %v13302_v53  ;;  %v4063_v29 = vsel %vm2510_vm1, %v4061_v46, %v4062_v20  ;;  %v4353_v37 = vrot.slane %v4195_v59, 1 }
 0x598   : > { %v4354_v32 = vrot.slane %v4196_v21, 1  ;;  %v4487_v40 = vmul.f32 %v14591_v61, %v13254_v8  ;;  %v15189_v38 = vrot.slane %v15188_v31, 1  ;;  %v4129_v17 = vadd.f32 %v4063_v29, %v3837_v45 }
 0x599   : > { %v4356_v33 = vrot.slane %v4197_v49, 1  ;;  %v4357_v42 = vrot.slane %v4198_v15, 1  ;;  %v4488_v50 = vmul.f32 %v14591_v61, %v13302_v53  ;;  %v4489_v6 = vmul.f32 %v14591_v61, %v13531_v27  ;;  %v13673_v36 = vpop.f32.mrb[20].mxu1 }
 0x59a   : > { %v4066_v12 = vsel %vm2510_vm1, %v4064_v3, %v15189_v38  ;;  %v4355_v22 = vsel %vm2510_vm1, %v4353_v37, %v4354_v32  ;;  %v4490_v8 = vmul.f32 %v14591_v61, %v13586_v16  ;;  %v4645_v18 = vrot.slane %v4487_v40, 1  ;;  %v13677_v13 = vpop.f32.mrb[21].mxu1 }
 0x59b   : > { %v4130_v54 = vadd.f32 %v4066_v12, %v3838_v2  ;;  %v4358_v47 = vsel %vm2510_vm1, %v4356_v33, %v4357_v42  ;;  %v4421_v19 = vadd.f32 %v4355_v22, %v4129_v17  ;;  %v4646_v9 = vrot.slane %v4488_v50, 1  ;;  %v13687_v46 = vpop.f32.mrb[22].mxu1  ;;  %v15192_v50 = vld [vmem:[#allocation41_spill] sm:$0xff] }
 0x59c   : > { %v4648_v5 = vrot.slane %v4489_v6, 1  ;;  %v4779_v28 = vmul.f32 %v14597_v51, %v13531_v27  ;;  %v4649_v7 = vrot.slane %v4490_v8, 1  ;;  %v4780_v34 = vmul.f32 %v14597_v51, %v13586_v16  ;;  %v13692_v20 = vpop.f32.mrb[23].mxu1 }
 0x59d   : > { %v4422_v25 = vadd.f32 %v4358_v47, %v4130_v54  ;;  %v15190_v61 = vunpack.c.h.bf16 %v13518_v0  ;;  %v15191_v48 = vunpack.c.l.bf16 %v13577_v63  ;;  %v4647_v59 = vsel %vm2510_vm1, %v4645_v18, %v4646_v9 }
 0x59e   : > { %v4937_v11 = vrot.slane %v4779_v28, 1  ;;  %v5125_v27 = vunpack.c.l.bf16 %v13669_v62  ;;  %v5126_v45 = vunpack.c.l.bf16 %v13671_v60  ;;  %v4650_v21 = vsel %vm2510_vm1, %v4648_v5, %v4649_v7  ;;  %v15207_v60 = vld [vmem:[#allocation36_spill] sm:$0xff] }
 0x59f   : > { %v4781_v57 = vmul.f32 %v14597_v51, %v15190_v61  ;;  %v4782_v26 = vmul.f32 %v14597_v51, %v15191_v48  ;;  %v4713_v0 = vadd.f32 %v4647_v59, %v4421_v19  ;;  %v4938_v2 = vrot.slane %v4780_v34, 1 }
 0x5a0   : > { %v4714_v49 = vadd.f32 %v4650_v21, %v4422_v25  ;;  %v5191_v51 = vmul.f32 %v14954_v39, %v15149_v30  ;;  %v5192_v29 = vmul.f32 %v14954_v39, %v15131_v23  ;;  %v5193_v32 = vmul.f32 %v14954_v39, %v15153_v14 }
 0x5a1   : > { %v4940_v3 = vrot.slane %v4781_v57, 1  ;;  %v4941_v15 = vrot.slane %v4782_v26, 1  ;;  %v4939_v37 = vsel %vm2510_vm1, %v4937_v11, %v4938_v2  ;;  %v5194_v40 = vmul.f32 %v14954_v39, %v15132_v1 }
 0x5a2   : > { %v5484_v31 = vmul.f32 %v14955_v43, %v15153_v14  ;;  %v5005_v12 = vadd.f32 %v4939_v37, %v4713_v0  ;;  %v5350_v17 = vrot.slane %v5191_v51, 2  ;;  %v5351_v33 = vrot.slane %v5192_v29, 2 }
 0x5a3   : > { %v4942_v38 = vsel %vm2510_vm1, %v4940_v3, %v4941_v15  ;;  %v5353_v42 = vrot.slane %v5193_v32, 2  ;;  %v5354_v54 = vrot.slane %v5194_v40, 2  ;;  %v5485_v23 = vmul.f32 %v14955_v43, %v15132_v1  ;;  %v15194_v3 = vld [vmem:[#allocation47_spill] sm:$0xff]  ;;  %v15196_v40 = vld [vmem:[#allocation40_spill] sm:$0xff] }
 0x5a4   : > { %v5006_v30 = vadd.f32 %v4942_v38, %v4714_v49  ;;  %v5352_v22 = vsel %vm5259_vm8, %v5350_v17, %v5351_v33  ;;  %v5486_v6 = vmul.f32 %v14955_v43, %v15192_v50  ;;  %v5487_v39 = vmul.f32 %v14955_v43, %v15185_v35 }
 0x5a5   : > { %v5642_v14 = vrot.slane %v5484_v31, 2  ;;  %v5355_v47 = vsel %vm5259_vm8, %v5353_v42, %v5354_v54  ;;  %v5418_v19 = vadd.f32 %v5352_v22, %v5005_v12  ;;  %v5643_v8 = vrot.slane %v5485_v23, 2  ;;  %v15197_v54 = vld [vmem:[#allocation43_spill] sm:$0xff] }
 0x5a6   : > { %v5776_v18 = vmul.f32 %v14652_v24, %v15192_v50  ;;  %v5419_v25 = vadd.f32 %v5355_v47, %v5006_v30  ;;  %v5645_v9 = vrot.slane %v5486_v6, 2  ;;  %v5646_v5 = vrot.slane %v5487_v39, 2  ;;  %v15198_v50 = vld [vmem:[#allocation63_spill] sm:$0xff]  ;;  %v15199_v39 = vld [vmem:[#allocation17_spill] sm:$0xff] }
 0x5a7   : > { %v5777_v1 = vmul.f32 %v14652_v24, %v15185_v35  ;;  %v5644_v28 = vsel %vm5259_vm8, %v5642_v14, %v5643_v8  ;;  %v5779_v7 = vmul.f32 %v14652_v24, %v15186_v41  ;;  %v6068_v34 = vmul.f32 %v14618_v55, %v15161_v4  ;;  %v15193_v4 = vld [vmem:[#allocation39_spill] sm:$0xff]  ;;  %v15200_v14 = vld [vmem:[#allocation28_spill] sm:$0xff] }
 0x5a8   : > { %v5934_v43 = vrot.slane %v5776_v18, 2  ;;  %v5647_v61 = vsel %vm5259_vm8, %v5645_v9, %v5646_v5  ;;  %v5710_v57 = vadd.f32 %v5644_v28, %v5418_v19  ;;  %v6069_v26 = vmul.f32 %v14618_v55, %v15133_v56 }
 0x5a9   : > { %v5935_v48 = vrot.slane %v5777_v1, 2  ;;  %v5711_v59 = vadd.f32 %v5647_v61, %v5419_v25  ;;  %v5938_v11 = vrot.slane %v5779_v7, 2  ;;  %v6070_v35 = vmul.f32 %v14618_v55, %v15163_v44  ;;  %v15201_v25 = vld [vmem:[#allocation64_spill] sm:$0xff] }
 0x5aa   : > { %v6071_v21 = vmul.f32 %v14618_v55, %v15134_v58  ;;  %v6226_v41 = vrot.slane %v6068_v34, 2  ;;  %v6227_v0 = vrot.slane %v6069_v26, 2  ;;  %v6360_v2 = vmul.f32 %v15193_v4, %v15163_v44 }
 0x5ab   : > { %v5936_v24 = vsel %vm5259_vm8, %v5934_v43, %v5935_v48  ;;  %v15195_v49 = vrot.slane %v15194_v3, 2  ;;  %v6229_v51 = vrot.slane %v6070_v35, 2  ;;  %v6361_v55 = vmul.f32 %v15193_v4, %v15134_v58  ;;  %v15202_v48 = vld [vmem:[#allocation15_spill] sm:$0xff] }
 0x5ac   : > { %v6002_v56 = vadd.f32 %v5936_v24, %v5710_v57  ;;  %v6230_v29 = vrot.slane %v6071_v21, 2  ;;  %v6228_v32 = vsel %vm5259_vm8, %v6226_v41, %v6227_v0  ;;  %v6362_v31 = vmul.f32 %v15193_v4, %v15196_v40 }
 0x5ad   : > { %v5939_v15 = vsel %vm5259_vm8, %v15195_v49, %v5938_v11  ;;  %v6363_v44 = vmul.f32 %v15193_v4, %v15187_v10  ;;  %v6518_v17 = vrot.slane %v6360_v2, 2  ;;  %v6519_v30 = vrot.slane %v6361_v55, 2  ;;  %v15204_v11 = vld [vmem:[#allocation45_spill] sm:$0xff] }
 0x5ae   : > { %v6003_v37 = vadd.f32 %v5939_v15, %v5711_v59  ;;  %v6231_v38 = vsel %vm5259_vm8, %v6229_v51, %v6230_v29  ;;  %v6294_v12 = vadd.f32 %v6228_v32, %v6002_v56  ;;  %v6521_v42 = vrot.slane %v6362_v31, 2  ;;  %v15205_v51 = vld [vmem:[#allocation30_spill] sm:$0xff] }
 0x5af   : > { %v6652_v23 = vmul.f32 %v15197_v54, %v15196_v40  ;;  %v6522_v22 = vrot.slane %v6363_v44, 2  ;;  %v6653_v58 = vmul.f32 %v15197_v54, %v15187_v10  ;;  %v6655_v6 = vmul.f32 %v15197_v54, %v15198_v50 }
 0x5b0   : > { %v6295_v33 = vadd.f32 %v6231_v38, %v6003_v37  ;;  %v6944_v47 = vmul.f32 %v15200_v14, %v15199_v39  ;;  %v6520_v19 = vsel %vm5259_vm8, %v6518_v17, %v6519_v30  ;;  %v6945_v18 = vmul.f32 %v15200_v14, %v13300_v52 }
 0x5b1   : > { %v6810_v8 = vrot.slane %v6652_v23, 2  ;;  %v6946_v9 = vmul.f32 %v15200_v14, %v15201_v25  ;;  %v6523_v5 = vsel %vm5259_vm8, %v6521_v42, %v6522_v22  ;;  %v6586_v1 = vadd.f32 %v6520_v19, %v6294_v12 }
 0x5b2   : > { %v6811_v28 = vrot.slane %v6653_v58, 2  ;;  %v6814_v10 = vrot.slane %v6655_v6, 2  ;;  %v6587_v7 = vadd.f32 %v6523_v5, %v6295_v33  ;;  %v6947_v43 = vmul.f32 %v15200_v14, %v13302_v53  ;;  %v15208_v33 = vld [vmem:[#allocation3_spill] sm:$0xff]  ;;  %v15209_v58 = vld [vmem:[#allocation10_spill] sm:$0xff]  ;;  %v15210_v6 = vld [vmem:[#allocation8_spill] sm:$0xff] }
 0x5b3   : > { %v7102_v34 = vrot.slane %v6944_v47, 2  ;;  %v7103_v61 = vrot.slane %v6945_v18, 2  ;;  %v15203_v26 = vrot.slane %v15202_v48, 2  ;;  %v7105_v59 = vrot.slane %v6946_v9, 2  ;;  %v15211_v14 = vld [vmem:[#allocation125_spill] sm:$0xff]  ;;  %v15214_v5 = vld [vmem:[#allocation72_spill] sm:$0xff] }
 0x5b4   : > { %v6812_v57 = vsel %vm5259_vm8, %v6810_v8, %v6811_v28  ;;  %v7236_v35 = vmul.f32 %v15204_v11, %v15201_v25  ;;  %v7106_v0 = vrot.slane %v6947_v43, 2  ;;  %v7237_v4 = vmul.f32 %v15204_v11, %v13302_v53  ;;  %v13785_v53 = vld [vmem:[%s13907_s6] ss:$0 sm:$0xff]  ;;  %v15216_v43 = vld [vmem:[#allocation37_spill] sm:$0xff] }
 0x5b5   : > { %v6815_v52 = vsel %vm5259_vm8, %v15203_v26, %v6814_v10  ;;  %v6878_v21 = vadd.f32 %v6812_v57, %v6586_v1  ;;  %v7104_v41 = vsel %vm5259_vm8, %v7102_v34, %v7103_v61  ;;  %v7238_v2 = vmul.f32 %v15204_v11, %v5125_v27  ;;  %v15212_v8 = vld [vmem:[#allocation35_spill] sm:$0xff]  ;;  %v15217_v61 = vld [vmem:[#allocation68_spill] sm:$0xff] }
 0x5b6   : > { %v6879_v24 = vadd.f32 %v6815_v52, %v6587_v7  ;;  %v7239_v3 = vmul.f32 %v15204_v11, %v13586_v16  ;;  %v7394_v49 = vrot.slane %v7236_v35, 2  ;;  %v7107_v15 = vsel %vm5259_vm8, %v7105_v59, %v7106_v0  ;;  %v15213_v25 = vld [vmem:[#allocation67_spill] sm:$0xff]  ;;  %v15218_v26 = vld [vmem:[#allocation80_spill] sm:$0xff]  ;;  %v15219_v59 = vld [vmem:[#allocation73_spill] sm:$0xff] }
 0x5b7   : > { %v7170_v56 = vadd.f32 %v7104_v41, %v6878_v21  ;;  %v7528_v29 = vmul.f32 %v15205_v51, %v5125_v27  ;;  %v7529_v37 = vmul.f32 %v15205_v51, %v13586_v16  ;;  %v7395_v55 = vrot.slane %v7237_v4, 2  ;;  %v15215_v10 = vld [vmem:[#allocation55_spill] sm:$0xff]  ;;  %v15220_v35 = vld [vmem:[#allocation65_spill] sm:$0xff]  ;;  %v15222_v0 = vld [vmem:[#allocation26_spill] sm:$0xff] }
 0x5b8   : > { %v7171_v32 = vadd.f32 %v7107_v15, %v6879_v24  ;;  %v7397_v40 = vrot.slane %v7238_v2, 2  ;;  %v7398_v31 = vrot.slane %v7239_v3, 2  ;;  %v7530_v38 = vmul.f32 %v15205_v51, %v5126_v45  ;;  %v15221_v24 = vld [vmem:[#allocation25_spill] sm:$0xff]  ;;  %v15223_v2 = vld [vmem:[#allocation66_spill] sm:$0xff] }
 0x5b9   : > { %v15206_v62 = vunpack.c.l.bf16 %v13577_v63  ;;  %v7686_v12 = vrot.slane %v7528_v29, 2  ;;  %v7687_v44 = vrot.slane %v7529_v37, 2  ;;  %v7396_v16 = vsel %vm5259_vm8, %v7394_v49, %v7395_v55  ;;  %v15224_v49 = vld [vmem:[#allocation54_spill] sm:$0xff]  ;;  %v15225_v29 = vld [vmem:[#allocation69_spill] sm:$0xff] }
 0x5ba   : > { %v7399_v17 = vsel %vm5259_vm8, %v7397_v40, %v7398_v31  ;;  %v8210_v45 = vadd.f32 %v15207_v60, %v13785_v53  ;;  %v8208_v63 = vadd.f32 %v13785_v53, %v15208_v33  ;;  %v7462_v30 = vadd.f32 %v7396_v16, %v7170_v56  ;;  %v15227_v40 = vld [vmem:[#allocation70_spill] sm:$0xff] }
 0x5bb   : > { %v7531_v27 = vmul.f32 %v15205_v51, %v15206_v62  ;;  %v7463_v42 = vadd.f32 %v7399_v17, %v7171_v32  ;;  %v7688_v54 = vsel %vm5259_vm8, %v7686_v12, %v7687_v44  ;;  %v7689_v23 = vrot.slane %v7530_v38, 2  ;;  %v15226_v32 = vld [vmem:[#allocation78_spill] sm:$0xff] }
 0x5bc   : > { %8242 = vst [vmem:[%s13796_s20 + $0x10] sm:$0xff] %v8210_v45  ;;  %8240 = vst [vmem:[%s13796_s20] sm:$0xff] %v8208_v63  ;;  %v8211_v50 = vadd.f32 %v15209_v58, %v13785_v53  ;;  %v8209_v39 = vadd.f32 %v13785_v53, %v15210_v6  ;;  %v8214_v47 = vadd.f32 %v15211_v14, %v13785_v53 }
 0x5bd   : > { %v7690_v22 = vrot.slane %v7531_v27, 2  ;;  %v7754_v19 = vadd.f32 %v7688_v54, %v7462_v30  ;;  %v8212_v18 = vadd.f32 %v13785_v53, %v15212_v8  ;;  %v8215_v9 = vadd.f32 %v15213_v25, %v13785_v53 }
 0x5be   : > { %v8213_v1 = vadd.f32 %v13785_v53, %v15214_v5  ;;  %8243 = vst [vmem:[%s13796_s20 + $0x18] sm:$0xff] %v8211_v50  ;;  %8241 = vst [vmem:[%s13796_s20 + $0x8] sm:$0xff] %v8209_v39  ;;  %v8218_v7 = vadd.f32 %v15215_v10, %v13785_v53  ;;  %v8216_v34 = vadd.f32 %v13785_v53, %v15216_v43 }
 0x5bf   : > { %v7691_v28 = vsel %vm5259_vm8, %v7689_v23, %v7690_v22  ;;  %8246 = vst [vmem:[%s13796_s20 + $0x30] sm:$0xff] %v8214_v47  ;;  %v8219_v57 = vadd.f32 %v15217_v61, %v13785_v53  ;;  %v7793_v52 = vadd.f32 %v15218_v26, %v7754_v19  ;;  %8244 = vst [vmem:[%s13796_s20 + $0x20] sm:$0xff] %v8212_v18 }
 0x5c0   : > { %v7755_v48 = vadd.f32 %v7691_v28, %v7463_v42  ;;  %8247 = vst [vmem:[%s13796_s20 + $0x38] sm:$0xff] %v8215_v9  ;;  %8245 = vst [vmem:[%s13796_s20 + $0x28] sm:$0xff] %v8213_v1  ;;  %v8217_v11 = vadd.f32 %v13785_v53, %v15219_v59  ;;  %v8222_v21 = vadd.f32 %v15220_v35, %v13785_v53 }
 0x5c1   : > { %8250 = vst [vmem:[%s13796_s20 + $0x50] sm:$0xff] %v8218_v7  ;;  %8248 = vst [vmem:[%s13796_s20 + $0x40] sm:$0xff] %v8216_v34  ;;  %v8220_v41 = vadd.f32 %v13785_v53, %v15221_v24  ;;  %v8223_v4 = vadd.f32 %v15222_v0, %v13785_v53  ;;  %v8221_v3 = vadd.f32 %v13785_v53, %v15223_v2  ;;  %v7857_v51 = vmul.f32 0.70710677, %v7793_v52 }
 0x5c2   : > { %8251 = vst [vmem:[%s13796_s20 + $0x58] sm:$0xff] %v8219_v57  ;;  %v8226_v15 = vadd.f32 %v15224_v49, %v13785_v53  ;;  %v7794_v56 = vadd.f32 %v15218_v26, %v7755_v48  ;;  %8249 = vst [vmem:[%s13796_s20 + $0x48] sm:$0xff] %v8217_v11  ;;  %v8224_v37 = vadd.f32 %v13785_v53, %v15225_v29  ;;  %v7825_v16 = vmul.f32 0.5, %v7793_v52 }
 0x5c3   : > { %8254 = vst [vmem:[%s13796_s20 + $0x70] sm:$0xff] %v8222_v21  ;;  %8252 = vst [vmem:[%s13796_s20 + $0x60] sm:$0xff] %v8220_v41  ;;  %v8227_v55 = vadd.f32 %v15226_v32, %v13785_v53  ;;  %v8225_v31 = vadd.f32 %v13785_v53, %v15227_v40  ;;  %v8230_v38 = vadd.f32 %v13673_v36, %v13785_v53  ;;  %8879 = verf.f32 %v7857_v51 }
 0x5c4   : > { %8255 = vst [vmem:[%s13796_s20 + $0x78] sm:$0xff] %v8223_v4  ;;  %8253 = vst [vmem:[%s13796_s20 + $0x68] sm:$0xff] %v8221_v3  ;;  %v8228_v62 = vadd.f32 %v13785_v53, %v13677_v13  ;;  %v7858_v27 = vmul.f32 0.70710677, %v7794_v56  ;;  %v8231_v12 = vadd.f32 %v13687_v46, %v13785_v53  ;;  %v8229_v44 = vadd.f32 %v13785_v53, %v13692_v20 }
 0x5c5   : > { %8258 = vst [vmem:[%s13796_s20 + $0x90] sm:$0xff] %v8226_v15  ;;  %8256 = vst [vmem:[%s13796_s20 + $0x80] sm:$0xff] %v8224_v37  ;;  %v7826_v60 = vmul.f32 0.5, %v7794_v56 }
 0x5c6   : > { %8259 = vst [vmem:[%s13796_s20 + $0x98] sm:$0xff] %v8227_v55  ;;  %8257 = vst [vmem:[%s13796_s20 + $0x88] sm:$0xff] %v8225_v31  ;;  %8881 = verf.f32 %v7858_v27 }
 0x5c7   : > { %8262 = vst [vmem:[%s13796_s20 + $0xb0] sm:$0xff] %v8230_v38  ;;  %8260 = vst [vmem:[%s13796_s20 + $0xa0] sm:$0xff] %v8228_v62 }
 0x5c8   : > { %8263 = vst [vmem:[%s13796_s20 + $0xb8] sm:$0xff] %v8231_v12  ;;  %8261 = vst [vmem:[%s13796_s20 + $0xa8] sm:$0xff] %v8229_v44 }
 0x5cd   : > { %v8880_v36 = vpop.eup %8879 }
 0x5ce   : > { %v7921_v13 = vadd.f32 1.0, %v8880_v36 }
 0x5d0   : > { %v8882_v17 = vpop.eup %8881  ;;  %v7953_v46 = vmul.f32 %v7921_v13, %v7825_v16 }
 0x5d1   : > { %v7922_v45 = vadd.f32 1.0, %v8882_v17 }
 0x5d3   : > { %v7954_v33 = vmul.f32 %v7922_v45, %v7826_v60 }
 0x5d5   : > { %v7970_v63 = vpack.c.bf16 %v7954_v33, %v7953_v46 }
 0x5d7   : > { %8751 = vmatmul.mubr.bf16.gmra.mrb[28].mxu1 %v7970_v63 }
 0x622   : > { %v8748_v30 = vpop.f32.mrb[24].mxu1 }
 0x623   : > { %v8234_v20 = vadd.f32 %v8748_v30, %v13785_v53  ;;  %v8167_v42 = vpop.f32.mrb[25].mxu1 }
 0x624   : > { %v8232_v54 = vadd.f32 %v13785_v53, %v8167_v42  ;;  %v8749_v23 = vpop.f32.mrb[26].mxu1 }
 0x625   : > { %8266 = vst [vmem:[%s13796_s20 + $0xd0] sm:$0xff] %v8234_v20  ;;  %v8235_v22 = vadd.f32 %v8749_v23, %v13785_v53  ;;  %v8170_v58 = vpop.f32.mrb[27].mxu1 }
 0x626   : > { %8264 = vst [vmem:[%s13796_s20 + $0xc0] sm:$0xff] %v8232_v54  ;;  %v8233_v50 = vadd.f32 %v13785_v53, %v8170_v58 }
 0x627   : > { %8267 = vst [vmem:[%s13796_s20 + $0xd8] sm:$0xff] %v8235_v22 }
 0x628   : > { %8265 = vst [vmem:[%s13796_s20 + $0xc8] sm:$0xff] %v8233_v50 }
 0x6aa   : > { %v8752_v6 = vpop.f32.mrb[28].mxu1 }
 0x6ab   : > { %v8238_v39 = vadd.f32 %v8752_v6, %v13785_v53  ;;  %v8183_v14 = vpop.f32.mrb[29].mxu1 }
 0x6ac   : > { %v8236_v47 = vadd.f32 %v13785_v53, %v8183_v14  ;;  %v8753_v19 = vpop.f32.mrb[30].mxu1 }
 0x6ad   : > { %8270 = vst [vmem:[%s13796_s20 + $0xf0] sm:$0xff] %v8238_v39  ;;  %v8239_v8 = vadd.f32 %v8753_v19, %v13785_v53  ;;  %v8186_v18 = vpop.f32.mrb[31].mxu1 }
 0x6ae   : > { %8268 = vst [vmem:[%s13796_s20 + $0xe0] sm:$0xff] %v8236_v47  ;;  %v8237_v25 = vadd.f32 %v13785_v53, %v8186_v18 }
 0x6af   : > { %8271 = vst [vmem:[%s13796_s20 + $0xf8] sm:$0xff] %v8239_v8 }
 0x6b0   : > { %8269 = vst [vmem:[%s13796_s20 + $0xe8] sm:$0xff] %v8237_v25 }
 0x6b1 PF: > { %s17_s26 = sadd.s32 1, %s8915_s26   ;;  %s15228_s24 = smov %s8911_s25 }
 0x6b2   : > { %p14_p5 = scmp.ge.s32.totalorder %s17_s26, 4   ;;  %s15229_s25 = smov %s15231_s27 }
 0x6b4   :  { %16 = sbr.rel (!%p14_p5) target bundleno = 2 (0x2), region = 102 }

</bundles_post_ra>
